<compile_context>
chip_gen: v7x
topology: tpu7x:2x2x1
jax: 0.10.0
libtpu: 0.0.40
codegen_flags: <defaults>
</compile_context>

<pallas_src>
import functools
import numpy as np
import jax
import jax.numpy as jnp
from jax.experimental import pallas as pl
from jax.experimental.pallas import tpu as pltpu

EMBEDDING_DIM_POS = 20
HIDDEN_DIM = 128
L = EMBEDDING_DIM_POS // 2          # 10 frequencies
EMB_DIM = 3 * 2 * L                 # 60 PE columns (original layout)
ARG_DIM = 3 * L                     # 30 de-duplicated PE arguments
OUT_DIM = 75


def _round_up(x, m):
    return ((x + m - 1) // m) * m


def choose_tm(n, tm_max=1024):
    """Row tile: multiple of 256, >=2 grid steps when possible (v7x 2 TCs),
    capped at tm_max so the f32 activation chain fits v5e's scoped VMEM."""
    n256 = _round_up(max(n, 1), 256)
    if n256 <= 256:
        return 256
    half = _round_up(n256 // 2, 256)
    return int(max(256, min(tm_max, half)))


def appearance_kernel(o_ref, sel_ref,
                      w1s, w1c, b1, w2, b2, w3, b3, w4, b4, w5, b5, w6, b6,
                      out_ref):
    # ---- positional encoding (de-duplicated) ----
    # One-hot selector with 2**j folded in (exact: power-of-two scaling), giving
    # one (tm, 30) argument; sin/cos are each evaluated ONCE.  The original
    # interleaved column order is absorbed into w1 (split into sin/cos rows).
    x = o_ref[...]                                                       # (tm, 3)
    arg = jnp.dot(x, sel_ref[...], preferred_element_type=jnp.float32)   # (tm, 30)
    s = jnp.sin(arg)
    c = jnp.cos(arg)

    def dense(h, w_ref, b_ref, relu):
        w = w_ref[...]
        # Weights may be bf16 (production path); accumulation stays f32.
        acc = jnp.dot(h.astype(w.dtype), w, preferred_element_type=jnp.float32)
        acc = acc + b_ref[...]
        return jnp.maximum(acc, 0.0) if relu else acc

    # ---- block1 layer 1: emb @ w1 == sin(arg) @ w1_sin + cos(arg) @ w1_cos ----
    ws, wc = w1s[...], w1c[...]
    h = jnp.dot(s.astype(ws.dtype), ws, preferred_element_type=jnp.float32)
    h = h + jnp.dot(c.astype(wc.dtype), wc, preferred_element_type=jnp.float32)
    h = jnp.maximum(h + b1[...], 0.0)

    # ---- block1 layers 2-4 ----
    h = dense(h, w2, b2, True)
    h = dense(h, w3, b3, True)
    h = dense(h, w4, b4, True)
    # ---- block3: Linear(128 -> 64, zero-padded to 128 lanes) + ReLU ----
    h = dense(h, w5, b5, True)
    # ---- block4: Linear(64(pad 128) -> 75), masked 75-lane store ----
    out_ref[...] = dense(h, w6, b6, False)


def make_pe_constants():
    """(3, 30) selector: sel[i, i*L + j] = 2**j, so (x @ sel)[:, i*L+j] = 2**j * x_i."""
    sel = np.zeros((3, ARG_DIM), dtype=np.float32)
    for i in range(3):
        for j in range(L):
            sel[i, i * L + j] = 2.0 ** j
    return jnp.asarray(sel)


def init_params(key):
    """Deterministic synthetic parameters (shapes match the PyTorch module)."""
    dims = [(EMB_DIM, HIDDEN_DIM), (HIDDEN_DIM, HIDDEN_DIM),
            (HIDDEN_DIM, HIDDEN_DIM), (HIDDEN_DIM, HIDDEN_DIM),
            (HIDDEN_DIM, HIDDEN_DIM // 2), (HIDDEN_DIM // 2, OUT_DIM)]
    params = []
    for (fan_in, fan_out) in dims:
        key, kw, kb = jax.random.split(key, 3)
        bound = 1.0 / np.sqrt(fan_in)
        w = jax.random.uniform(kw, (fan_in, fan_out), jnp.float32, -bound, bound)
        b = jax.random.uniform(kb, (1, fan_out), jnp.float32, -bound, bound)
        params += [w, b]
    # unused parameters (kept for module parity, not part of forward)
    key, kp = jax.random.split(key)
    bandwidth = jnp.zeros((1, 25), jnp.float32)
    p = jax.random.normal(kp, (25, 2), jnp.float32)
    return params, (bandwidth, p)


def pad_params_for_kernel(params, use_bf16=True):
    """Split w1 into sin/cos halves (PE de-dup, exact permutation), zero-pad the
    64-wide hidden to 128 lanes, keep the 75-wide output as-is (masked store)."""
    w1, b1, w2, b2, w3, b3, w4, b4, w5, b5, w6, b6 = params

    # Original PyTorch PE column order: col i*(2L)+2j = sin, +1 = cos.
    sin_rows = jnp.asarray([i * (2 * L) + 2 * j for i in range(3) for j in range(L)])
    cos_rows = sin_rows + 1
    w1s = w1[sin_rows, :]                                                  # (30, 128)
    w1c = w1[cos_rows, :]                                                  # (30, 128)

    w5 = jnp.pad(w5, ((0, 0), (0, HIDDEN_DIM - w5.shape[1])))              # (128, 128)
    b5 = jnp.pad(b5, ((0, 0), (0, HIDDEN_DIM - b5.shape[1])))              # (1, 128)
    w6 = jnp.pad(w6, ((0, HIDDEN_DIM - w6.shape[0]), (0, 0)))              # (128, 75)

    if use_bf16:
        # Production path (~2-4x MXU on all generations); biases stay f32 and
        # every matmul accumulates in f32.
        cast = lambda w: w.astype(jnp.bfloat16)
        w1s, w1c, w2, w3, w4, w5, w6 = map(cast, (w1s, w1c, w2, w3, w4, w5, w6))

    return [w1s, w1c, b1, w2, b2, w3, b3, w4, b4, w5, b5, w6, b6]


@functools.partial(jax.jit, static_argnames=("tm",))
def appearance_forward(o, kernel_params, sel_scaled, tm=1024):
    n = o.shape[0]
    n_pad = _round_up(n, tm)
    if n_pad != n:
        o = jnp.pad(o, ((0, n_pad - n), (0, 0)))

    # Weights / PE constants: full-array blocks with constant index_maps, so
    # Pallas DMAs them once and keeps them VMEM-resident across grid steps.
    full = lambda arr: pl.BlockSpec(arr.shape, lambda r: (0, 0))
    in_specs = [pl.BlockSpec((tm, 3), lambda r: (r, 0)),   # o (row-tiled)
                full(sel_scaled)]
    in_specs += [full(p_) for p_ in kernel_params]

    out = pl.pallas_call(
        appearance_kernel,
        out_shape=jax.ShapeDtypeStruct((n_pad, OUT_DIM), jnp.float32),
        grid_spec=pltpu.PrefetchScalarGridSpec(
            num_scalar_prefetch=0,
            grid=(n_pad // tm,),
            in_specs=in_specs,
            out_specs=pl.BlockSpec((tm, OUT_DIM), lambda r: (r, 0)),
        ),
        compiler_params=pltpu.CompilerParams(
            dimension_semantics=("parallel",),
            vmem_limit_bytes=32 * 1024 * 1024,   # lift v5e's 16 MiB scoped default
        ),
    )(o, sel_scaled, *kernel_params)
    # Only the batch-padding rows are dropped; no column slice copy remains.
    return out[:n]


def reference_forward(o, params):
    """Pure-JAX reference reproducing the PyTorch forward exactly."""
    j = jnp.arange(L, dtype=jnp.float32)
    scaled = o[:, :, None] * (2.0 ** j)                      # (N, 3, L)
    emb = jnp.stack([jnp.sin(scaled), jnp.cos(scaled)], axis=-1).reshape(o.shape[0], EMB_DIM)
    w1, b1, w2, b2, w3, b3, w4, b4, w5, b5, w6, b6 = params
    h = jax.nn.relu(emb @ w1 + b1)
    h = jax.nn.relu(h @ w2 + b2)
    h = jax.nn.relu(h @ w3 + b3)
    h = jax.nn.relu(h @ w4 + b4)
    h = jax.nn.relu(h @ w5 + b5)
    return h @ w6 + b6


if __name__ == "__main__":
    key = jax.random.PRNGKey(0)
    key, ko = jax.random.split(key)
    params, _unused = init_params(key)
    sel_scaled = make_pe_constants()

    # ---- strict f32 check (exercises batch pad + masked 75-lane store) ----
    N1 = 300                                   # not a multiple of tm
    o1 = jax.random.uniform(ko, (N1, 3), jnp.float32, -1.0, 1.0)
    kp_f32 = pad_params_for_kernel(params, use_bf16=False)
    tm1 = choose_tm(N1)                        # -> 256, grid = 2 steps
    out1 = jax.block_until_ready(appearance_forward(o1, kp_f32, sel_scaled, tm=tm1))
    ref1 = reference_forward(o1, params)
    assert out1.shape == (N1, OUT_DIM)
    np.testing.assert_allclose(np.asarray(out1), np.asarray(ref1), rtol=5e-5, atol=5e-5)

    # ---- production bf16 path (larger tile, >=2 grid steps for v7x 2 TCs) ----
    N2 = 1500
    key, ko2 = jax.random.split(key)
    o2 = jax.random.uniform(ko2, (N2, 3), jnp.float32, -1.0, 1.0)
    kp_bf16 = pad_params_for_kernel(params, use_bf16=True)
    tm2 = choose_tm(N2)                        # -> 768, grid = 2 steps
    out2 = jax.block_until_ready(appearance_forward(o2, kp_bf16, sel_scaled, tm=tm2))
    ref2 = reference_forward(o2, params)
    assert out2.shape == (N2, OUT_DIM)
    # bf16 matmul operands, f32 accumulation: relaxed tolerance (expected, documented).
    np.testing.assert_allclose(np.asarray(out2), np.asarray(ref2), rtol=5e-2, atol=5e-2)

    print("KERNEL_OK")
</pallas_src>

<mosaic_0001>
module attributes {stable_mosaic.version = 11 : i64} {
  func.func @appearance_kernel(%arg0: i32, %arg1: memref<256x3xf32, #tpu.memory_space<vmem>>, %arg2: memref<3x30xf32, #tpu.memory_space<vmem>>, %arg3: memref<30x128xf32, #tpu.memory_space<vmem>>, %arg4: memref<30x128xf32, #tpu.memory_space<vmem>>, %arg5: memref<1x128xf32, #tpu.memory_space<vmem>>, %arg6: memref<128x128xf32, #tpu.memory_space<vmem>>, %arg7: memref<1x128xf32, #tpu.memory_space<vmem>>, %arg8: memref<128x128xf32, #tpu.memory_space<vmem>>, %arg9: memref<1x128xf32, #tpu.memory_space<vmem>>, %arg10: memref<128x128xf32, #tpu.memory_space<vmem>>, %arg11: memref<1x128xf32, #tpu.memory_space<vmem>>, %arg12: memref<128x128xf32, #tpu.memory_space<vmem>>, %arg13: memref<1x128xf32, #tpu.memory_space<vmem>>, %arg14: memref<128x75xf32, #tpu.memory_space<vmem>>, %arg15: memref<1x75xf32, #tpu.memory_space<vmem>>, %arg16: memref<256x75xf32, #tpu.memory_space<vmem>>) attributes {dimension_semantics = [#tpu.dimension_semantics<parallel>], iteration_bounds = array<i64: 2>, scalar_prefetch = 0 : i64, scratch_operands = 0 : i64, tpu.core_type = #tpu.core_type<tc>, window_params = [{transform_indices = @transform_0, window_bounds = array<i64: 256, 3>}, {pipeline_mode = #tpu.pipeline_mode<synchronous>, transform_indices = @transform_1, window_bounds = array<i64: 3, 30>}, {pipeline_mode = #tpu.pipeline_mode<synchronous>, transform_indices = @transform_2, window_bounds = array<i64: 30, 128>}, {pipeline_mode = #tpu.pipeline_mode<synchronous>, transform_indices = @transform_3, window_bounds = array<i64: 30, 128>}, {pipeline_mode = #tpu.pipeline_mode<synchronous>, transform_indices = @transform_4, window_bounds = array<i64: 1, 128>}, {pipeline_mode = #tpu.pipeline_mode<synchronous>, transform_indices = @transform_5, window_bounds = array<i64: 128, 128>}, {pipeline_mode = #tpu.pipeline_mode<synchronous>, transform_indices = @transform_6, window_bounds = array<i64: 1, 128>}, {pipeline_mode = #tpu.pipeline_mode<synchronous>, transform_indices = @transform_7, window_bounds = array<i64: 128, 128>}, {pipeline_mode = #tpu.pipeline_mode<synchronous>, transform_indices = @transform_8, window_bounds = array<i64: 1, 128>}, {pipeline_mode = #tpu.pipeline_mode<synchronous>, transform_indices = @transform_9, window_bounds = array<i64: 128, 128>}, {pipeline_mode = #tpu.pipeline_mode<synchronous>, transform_indices = @transform_10, window_bounds = array<i64: 1, 128>}, {pipeline_mode = #tpu.pipeline_mode<synchronous>, transform_indices = @transform_11, window_bounds = array<i64: 128, 128>}, {pipeline_mode = #tpu.pipeline_mode<synchronous>, transform_indices = @transform_12, window_bounds = array<i64: 1, 128>}, {pipeline_mode = #tpu.pipeline_mode<synchronous>, transform_indices = @transform_13, window_bounds = array<i64: 128, 75>}, {pipeline_mode = #tpu.pipeline_mode<synchronous>, transform_indices = @transform_14, window_bounds = array<i64: 1, 75>}, {transform_indices = @transform_15, window_bounds = array<i64: 256, 75>}]} {
    %c0 = arith.constant 0 : index
    %c0_0 = arith.constant 0 : index
    %0 = vector.load %arg1[%c0, %c0_0] : memref<256x3xf32, #tpu.memory_space<vmem>>, vector<256x3xf32>
    %c0_1 = arith.constant 0 : index
    %c0_2 = arith.constant 0 : index
    %1 = vector.load %arg2[%c0_1, %c0_2] : memref<3x30xf32, #tpu.memory_space<vmem>>, vector<3x30xf32>
    %cst = arith.constant dense<0.000000e+00> : vector<256x30xf32>
    %2 = tpu.matmul %0, %1, %cst {dimension_numbers = #tpu.dot_dimension_numbers<[1], [0], [0], [1], [0, 0, 1, 1], [], []>} : vector<256x3xf32>, vector<3x30xf32>, vector<256x30xf32> -> vector<256x30xf32>
    %3 = math.sin %2 : vector<256x30xf32>
    %4 = math.cos %2 : vector<256x30xf32>
    %c0_3 = arith.constant 0 : index
    %c0_4 = arith.constant 0 : index
    %5 = vector.load %arg3[%c0_3, %c0_4] : memref<30x128xf32, #tpu.memory_space<vmem>>, vector<30x128xf32>
    %c0_5 = arith.constant 0 : index
    %c0_6 = arith.constant 0 : index
    %6 = vector.load %arg4[%c0_5, %c0_6] : memref<30x128xf32, #tpu.memory_space<vmem>>, vector<30x128xf32>
    %cst_7 = arith.constant dense<0.000000e+00> : vector<256x128xf32>
    %7 = tpu.matmul %3, %5, %cst_7 {dimension_numbers = #tpu.dot_dimension_numbers<[1], [0], [0], [1], [0, 0, 1, 1], [], []>} : vector<256x30xf32>, vector<30x128xf32>, vector<256x128xf32> -> vector<256x128xf32>
    %cst_8 = arith.constant dense<0.000000e+00> : vector<256x128xf32>
    %8 = tpu.matmul %4, %6, %cst_8 {dimension_numbers = #tpu.dot_dimension_numbers<[1], [0], [0], [1], [0, 0, 1, 1], [], []>} : vector<256x30xf32>, vector<30x128xf32>, vector<256x128xf32> -> vector<256x128xf32>
    %9 = arith.addf %7, %8 : vector<256x128xf32>
    %c0_9 = arith.constant 0 : index
    %c0_10 = arith.constant 0 : index
    %10 = vector.load %arg5[%c0_9, %c0_10] : memref<1x128xf32, #tpu.memory_space<vmem>>, vector<1x128xf32>
    %11 = vector.broadcast %10 : vector<1x128xf32> to vector<256x128xf32>
    %12 = arith.addf %9, %11 : vector<256x128xf32>
    %cst_11 = arith.constant 0.000000e+00 : f32
    %13 = vector.broadcast %cst_11 : f32 to vector<256x128xf32>
    %14 = arith.maximumf %12, %13 : vector<256x128xf32>
    %c0_12 = arith.constant 0 : index
    %c0_13 = arith.constant 0 : index
    %15 = vector.load %arg6[%c0_12, %c0_13] : memref<128x128xf32, #tpu.memory_space<vmem>>, vector<128x128xf32>
    %cst_14 = arith.constant dense<0.000000e+00> : vector<256x128xf32>
    %16 = tpu.matmul %14, %15, %cst_14 {dimension_numbers = #tpu.dot_dimension_numbers<[1], [0], [0], [1], [0, 0, 1, 1], [], []>} : vector<256x128xf32>, vector<128x128xf32>, vector<256x128xf32> -> vector<256x128xf32>
    %c0_15 = arith.constant 0 : index
    %c0_16 = arith.constant 0 : index
    %17 = vector.load %arg7[%c0_15, %c0_16] : memref<1x128xf32, #tpu.memory_space<vmem>>, vector<1x128xf32>
    %18 = vector.broadcast %17 : vector<1x128xf32> to vector<256x128xf32>
    %19 = arith.addf %16, %18 : vector<256x128xf32>
    %cst_17 = arith.constant 0.000000e+00 : f32
    %20 = vector.broadcast %cst_17 : f32 to vector<256x128xf32>
    %21 = arith.maximumf %19, %20 : vector<256x128xf32>
    %c0_18 = arith.constant 0 : index
    %c0_19 = arith.constant 0 : index
    %22 = vector.load %arg8[%c0_18, %c0_19] : memref<128x128xf32, #tpu.memory_space<vmem>>, vector<128x128xf32>
    %cst_20 = arith.constant dense<0.000000e+00> : vector<256x128xf32>
    %23 = tpu.matmul %21, %22, %cst_20 {dimension_numbers = #tpu.dot_dimension_numbers<[1], [0], [0], [1], [0, 0, 1, 1], [], []>} : vector<256x128xf32>, vector<128x128xf32>, vector<256x128xf32> -> vector<256x128xf32>
    %c0_21 = arith.constant 0 : index
    %c0_22 = arith.constant 0 : index
    %24 = vector.load %arg9[%c0_21, %c0_22] : memref<1x128xf32, #tpu.memory_space<vmem>>, vector<1x128xf32>
    %25 = vector.broadcast %24 : vector<1x128xf32> to vector<256x128xf32>
    %26 = arith.addf %23, %25 : vector<256x128xf32>
    %cst_23 = arith.constant 0.000000e+00 : f32
    %27 = vector.broadcast %cst_23 : f32 to vector<256x128xf32>
    %28 = arith.maximumf %26, %27 : vector<256x128xf32>
    %c0_24 = arith.constant 0 : index
    %c0_25 = arith.constant 0 : index
    %29 = vector.load %arg10[%c0_24, %c0_25] : memref<128x128xf32, #tpu.memory_space<vmem>>, vector<128x128xf32>
    %cst_26 = arith.constant dense<0.000000e+00> : vector<256x128xf32>
    %30 = tpu.matmul %28, %29, %cst_26 {dimension_numbers = #tpu.dot_dimension_numbers<[1], [0], [0], [1], [0, 0, 1, 1], [], []>} : vector<256x128xf32>, vector<128x128xf32>, vector<256x128xf32> -> vector<256x128xf32>
    %c0_27 = arith.constant 0 : index
    %c0_28 = arith.constant 0 : index
    %31 = vector.load %arg11[%c0_27, %c0_28] : memref<1x128xf32, #tpu.memory_space<vmem>>, vector<1x128xf32>
    %32 = vector.broadcast %31 : vector<1x128xf32> to vector<256x128xf32>
    %33 = arith.addf %30, %32 : vector<256x128xf32>
    %cst_29 = arith.constant 0.000000e+00 : f32
    %34 = vector.broadcast %cst_29 : f32 to vector<256x128xf32>
    %35 = arith.maximumf %33, %34 : vector<256x128xf32>
    %c0_30 = arith.constant 0 : index
    %c0_31 = arith.constant 0 : index
    %36 = vector.load %arg12[%c0_30, %c0_31] : memref<128x128xf32, #tpu.memory_space<vmem>>, vector<128x128xf32>
    %cst_32 = arith.constant dense<0.000000e+00> : vector<256x128xf32>
    %37 = tpu.matmul %35, %36, %cst_32 {dimension_numbers = #tpu.dot_dimension_numbers<[1], [0], [0], [1], [0, 0, 1, 1], [], []>} : vector<256x128xf32>, vector<128x128xf32>, vector<256x128xf32> -> vector<256x128xf32>
    %c0_33 = arith.constant 0 : index
    %c0_34 = arith.constant 0 : index
    %38 = vector.load %arg13[%c0_33, %c0_34] : memref<1x128xf32, #tpu.memory_space<vmem>>, vector<1x128xf32>
    %39 = vector.broadcast %38 : vector<1x128xf32> to vector<256x128xf32>
    %40 = arith.addf %37, %39 : vector<256x128xf32>
    %cst_35 = arith.constant 0.000000e+00 : f32
    %41 = vector.broadcast %cst_35 : f32 to vector<256x128xf32>
    %42 = arith.maximumf %40, %41 : vector<256x128xf32>
    %c0_36 = arith.constant 0 : index
    %c0_37 = arith.constant 0 : index
    %43 = vector.load %arg14[%c0_36, %c0_37] : memref<128x75xf32, #tpu.memory_space<vmem>>, vector<128x75xf32>
    %cst_38 = arith.constant dense<0.000000e+00> : vector<256x75xf32>
    %44 = tpu.matmul %42, %43, %cst_38 {dimension_numbers = #tpu.dot_dimension_numbers<[1], [0], [0], [1], [0, 0, 1, 1], [], []>} : vector<256x128xf32>, vector<128x75xf32>, vector<256x75xf32> -> vector<256x75xf32>
    %c0_39 = arith.constant 0 : index
    %c0_40 = arith.constant 0 : index
    %45 = vector.load %arg15[%c0_39, %c0_40] : memref<1x75xf32, #tpu.memory_space<vmem>>, vector<1x75xf32>
    %46 = vector.broadcast %45 : vector<1x75xf32> to vector<256x75xf32>
    %47 = arith.addf %44, %46 : vector<256x75xf32>
    %c0_41 = arith.constant 0 : index
    %c0_42 = arith.constant 0 : index
    %48 = vector.load %arg16[%c0_41, %c0_42] : memref<256x75xf32, #tpu.memory_space<vmem>>, vector<256x75xf32>
    tpu.vector_store %arg16[%c0_41, %c0_42], %47 {strides = array<i32>} : memref<256x75xf32, #tpu.memory_space<vmem>>, vector<256x75xf32>,
    return
  }
  func.func @transform_0(%arg0: i32) -> (i32, i32) {
    %c0_i32 = arith.constant 0 : i32
    %c0_i32_0 = arith.constant 0 : i32
    return %arg0, %c0_i32 : i32, i32
  }
  func.func @transform_1(%arg0: i32) -> (i32, i32) {
    %c0_i32 = arith.constant 0 : i32
    %c0_i32_0 = arith.constant 0 : i32
    %c0_i32_1 = arith.constant 0 : i32
    return %c0_i32, %c0_i32_0 : i32, i32
  }
  func.func @transform_2(%arg0: i32) -> (i32, i32) {
    %c0_i32 = arith.constant 0 : i32
    %c0_i32_0 = arith.constant 0 : i32
    %c0_i32_1 = arith.constant 0 : i32
    return %c0_i32, %c0_i32_0 : i32, i32
  }
  func.func @transform_3(%arg0: i32) -> (i32, i32) {
    %c0_i32 = arith.constant 0 : i32
    %c0_i32_0 = arith.constant 0 : i32
    %c0_i32_1 = arith.constant 0 : i32
    return %c0_i32, %c0_i32_0 : i32, i32
  }
  func.func @transform_4(%arg0: i32) -> (i32, i32) {
    %c0_i32 = arith.constant 0 : i32
    %c0_i32_0 = arith.constant 0 : i32
    %c0_i32_1 = arith.constant 0 : i32
    return %c0_i32, %c0_i32_0 : i32, i32
  }
  func.func @transform_5(%arg0: i32) -> (i32, i32) {
    %c0_i32 = arith.constant 0 : i32
    %c0_i32_0 = arith.constant 0 : i32
    %c0_i32_1 = arith.constant 0 : i32
    return %c0_i32, %c0_i32_0 : i32, i32
  }
  func.func @transform_6(%arg0: i32) -> (i32, i32) {
    %c0_i32 = arith.constant 0 : i32
    %c0_i32_0 = arith.constant 0 : i32
    %c0_i32_1 = arith.constant 0 : i32
    return %c0_i32, %c0_i32_0 : i32, i32
  }
  func.func @transform_7(%arg0: i32) -> (i32, i32) {
    %c0_i32 = arith.constant 0 : i32
    %c0_i32_0 = arith.constant 0 : i32
    %c0_i32_1 = arith.constant 0 : i32
    return %c0_i32, %c0_i32_0 : i32, i32
  }
  func.func @transform_8(%arg0: i32) -> (i32, i32) {
    %c0_i32 = arith.constant 0 : i32
    %c0_i32_0 = arith.constant 0 : i32
    %c0_i32_1 = arith.constant 0 : i32
    return %c0_i32, %c0_i32_0 : i32, i32
  }
  func.func @transform_9(%arg0: i32) -> (i32, i32) {
    %c0_i32 = arith.constant 0 : i32
    %c0_i32_0 = arith.constant 0 : i32
    %c0_i32_1 = arith.constant 0 : i32
    return %c0_i32, %c0_i32_0 : i32, i32
  }
  func.func @transform_10(%arg0: i32) -> (i32, i32) {
    %c0_i32 = arith.constant 0 : i32
    %c0_i32_0 = arith.constant 0 : i32
    %c0_i32_1 = arith.constant 0 : i32
    return %c0_i32, %c0_i32_0 : i32, i32
  }
  func.func @transform_11(%arg0: i32) -> (i32, i32) {
    %c0_i32 = arith.constant 0 : i32
    %c0_i32_0 = arith.constant 0 : i32
    %c0_i32_1 = arith.constant 0 : i32
    return %c0_i32, %c0_i32_0 : i32, i32
  }
  func.func @transform_12(%arg0: i32) -> (i32, i32) {
    %c0_i32 = arith.constant 0 : i32
    %c0_i32_0 = arith.constant 0 : i32
    %c0_i32_1 = arith.constant 0 : i32
    return %c0_i32, %c0_i32_0 : i32, i32
  }
  func.func @transform_13(%arg0: i32) -> (i32, i32) {
    %c0_i32 = arith.constant 0 : i32
    %c0_i32_0 = arith.constant 0 : i32
    %c0_i32_1 = arith.constant 0 : i32
    return %c0_i32, %c0_i32_0 : i32, i32
  }
  func.func @transform_14(%arg0: i32) -> (i32, i32) {
    %c0_i32 = arith.constant 0 : i32
    %c0_i32_0 = arith.constant 0 : i32
    %c0_i32_1 = arith.constant 0 : i32
    return %c0_i32, %c0_i32_0 : i32, i32
  }
  func.func @transform_15(%arg0: i32) -> (i32, i32) {
    %c0_i32 = arith.constant 0 : i32
    %c0_i32_0 = arith.constant 0 : i32
    return %arg0, %c0_i32 : i32, i32
  }
}

</mosaic_0001>

<bundles_post_ra>
// kernel: appearance_forward.1
= control target key start
LH: loop header
LB: loop body
LE: loop exit
PB: predicated region body
PF: predicated region fallthrough
CT: control target
= control target key end

     0   :  { %s11524_s18 = smov 0   ;;  %s15585_s0 = inlined_call_operand.vmem [shape: f32[512,3], index: 0, kind: input, shape index: {}]   ;;  %s15586_s1 = inlined_call_operand.vmem [shape: f32[3,30], index: 1, kind: input, shape index: {}]   ;;  %s15587_s2 = inlined_call_operand.vmem [shape: f32[30,128], index: 2, kind: input, shape index: {}]   ;;  %s15588_s3 = inlined_call_operand.vmem [shape: f32[30,128], index: 3, kind: input, shape index: {}]   ;;  %s15589_s4 = inlined_call_operand.vmem [shape: f32[1,128], index: 4, kind: input, shape index: {}]   ;;  %s15590_s5 = inlined_call_operand.vmem [shape: f32[128,128], index: 5, kind: input, shape index: {}]   ;;  %s15591_s6 = inlined_call_operand.vmem [shape: f32[1,128], index: 6, kind: input, shape index: {}]   ;;  %s15592_s7 = inlined_call_operand.vmem [shape: f32[128,128], index: 7, kind: input, shape index: {}]   ;;  %s15593_s8 = inlined_call_operand.vmem [shape: f32[1,128], index: 8, kind: input, shape index: {}]   ;;  %s15594_s9 = inlined_call_operand.vmem [shape: f32[128,128], index: 9, kind: input, shape index: {}]   ;;  %s15595_s10 = inlined_call_operand.vmem [shape: f32[1,128], index: 10, kind: input, shape index: {}]   ;;  %s15596_s11 = inlined_call_operand.vmem [shape: f32[128,128], index: 11, kind: input, shape index: {}]   ;;  %s15597_s12 = inlined_call_operand.vmem [shape: f32[1,128], index: 12, kind: input, shape index: {}]   ;;  %s15598_s13 = inlined_call_operand.vmem [shape: f32[128,75], index: 13, kind: input, shape index: {}]   ;;  %s15599_s14 = inlined_call_operand.vmem [shape: f32[1,75], index: 14, kind: input, shape index: {}]   ;;  %s15600_s15 = inlined_call_operand.vmem [shape: f32[512,75], index: 15, kind: output, shape index: {}]  }
   0x1 LB: > { %s9667_s19 = sadd.s32 4294967295, %s11435_s18   ;;  %p9671_p0 = scmp.ge.s32.totalorder %s11435_s18, 1  ;;  %s11435_s18 = sphi %s11524_s18, %s25_s18  }
   0x2   : > { %p438_p1 = scmp.lt.s32.totalorder %s11435_s18, 3 }
   0x4   : > { %p439_p2 = pnand %p9671_p0, %p438_p1 }
   0x6   : > { %442 = sbr.rel (%p439_p2) target bundleno = 2431 (0x97f), region = 80 }
   0xd   : > { %v530_v0 = vld [vmem:[%s15586_s1] sm:$0x7]  ;;  %vm628_vm0 = vcmask 1042432   ;;  %s9672_s22 = sshll.u32 %s9667_s19, 5  ;;  %vm531_vm1 = vcmask 23552  }
   0xe   : > { %10384 = vmatprep.subr.msk.mxu0 %vm628_vm0, %v530_v0  ;;  %p487_p3 = scmp.lt.s32.totalorder %s9672_s22, 63 }
   0xf   : > { %10385 = vmatpush3.msk.msra.mxu0 %vm628_vm0, %v530_v0 }
  0x10   : > { %s16394_s22 = smov (!%p487_p3, %s9672_s22), 63 }
  0x11   : > { %s9673_s23 = sshll.u32 %s16394_s22, 3 }
  0x12   : > { %s11543_s26 = scalar_lea.vmem %s15585_s0, %s9673_s23  ;;  %s15484_s25 = scalar_lea.vmem %s15600_s15, %s9673_s23 }
  0x13   : > { %v498_v1 = vld [vmem:[%s11543_s26] sm:$0xff]  ;;  %v499_v2 = vld [vmem:[%s11543_s26 + $0x8] sm:$0xff]  ;;  %v500_v3 = vld [vmem:[%s11543_s26 + $0x10] sm:$0xff] }
  0x14   : > { %10386 = vmatprep.mubr.msk.f32.mxu0 %vm531_vm1, %v498_v1  ;;  %v501_v4 = vld [vmem:[%s11543_s26 + $0x18] sm:$0xff]  ;;  %v502_v5 = vld [vmem:[%s11543_s26 + $0x20] sm:$0xff]  ;;  %v503_v6 = vld [vmem:[%s11543_s26 + $0x28] sm:$0xff]  ;;  %v15613_v1 = vmov 683565275  }
  0x15   : > { %10387 = vmatmul.mubr.msk.f32.vlgmr.msra.gmra.mrb[0].mxu0 %vm531_vm1, %v499_v2  ;;  %v504_v7 = vld [vmem:[%s11543_s26 + $0x30] sm:$0xff]  ;;  %v505_v8 = vld [vmem:[%s11543_s26 + $0x38] sm:$0xff]  ;;  %v506_v9 = vld [vmem:[%s11543_s26 + $0x40] sm:$0xff] }
  0x16   : > { %10389 = vmatprep.mubr.msk.f32.mxu0 %vm531_vm1, %v500_v3  ;;  %v507_v10 = vld [vmem:[%s11543_s26 + $0x48] sm:$0xff]  ;;  %v508_v11 = vld [vmem:[%s11543_s26 + $0x50] sm:$0xff]  ;;  %v509_v12 = vld [vmem:[%s11543_s26 + $0x58] sm:$0xff] }
  0x17   : > { %v510_v13 = vld [vmem:[%s11543_s26 + $0x60] sm:$0xff]  ;;  %v511_v14 = vld [vmem:[%s11543_s26 + $0x68] sm:$0xff]  ;;  %v512_v15 = vld [vmem:[%s11543_s26 + $0x70] sm:$0xff] }
  0x18   : > { %v513_v16 = vld [vmem:[%s11543_s26 + $0x78] sm:$0xff]  ;;  %v514_v17 = vld [vmem:[%s11543_s26 + $0x80] sm:$0xff]  ;;  %v515_v18 = vld [vmem:[%s11543_s26 + $0x88] sm:$0xff] }
  0x19   : > { %10390 = vmatmul.mubr.msk.f32.gmra.mrb[2].mxu0 %vm531_vm1, %v501_v4  ;;  %v516_v19 = vld [vmem:[%s11543_s26 + $0x90] sm:$0xff]  ;;  %v517_v20 = vld [vmem:[%s11543_s26 + $0x98] sm:$0xff]  ;;  %v518_v21 = vld [vmem:[%s11543_s26 + $0xa0] sm:$0xff] }
  0x1a   : > { %10392 = vmatprep.mubr.msk.f32.mxu0 %vm531_vm1, %v502_v5  ;;  %v519_v22 = vld [vmem:[%s11543_s26 + $0xa8] sm:$0xff]  ;;  %v520_v23 = vld [vmem:[%s11543_s26 + $0xb0] sm:$0xff]  ;;  %v521_v24 = vld [vmem:[%s11543_s26 + $0xb8] sm:$0xff] }
  0x1b   : > { %v522_v25 = vld [vmem:[%s11543_s26 + $0xc0] sm:$0xff]  ;;  %v523_v26 = vld [vmem:[%s11543_s26 + $0xc8] sm:$0xff]  ;;  %v524_v27 = vld [vmem:[%s11543_s26 + $0xd0] sm:$0xff] }
  0x1c   : > { %v525_v28 = vld [vmem:[%s11543_s26 + $0xd8] sm:$0xff]  ;;  %v526_v29 = vld [vmem:[%s11543_s26 + $0xe0] sm:$0xff]  ;;  %v527_v30 = vld [vmem:[%s11543_s26 + $0xe8] sm:$0xff] }
  0x1d   : > { %10393 = vmatmul.mubr.msk.f32.gmra.mrb[4].mxu0 %vm531_vm1, %v503_v6  ;;  %v528_v31 = vld [vmem:[%s11543_s26 + $0xf0] sm:$0xff]  ;;  %v529_v32 = vld [vmem:[%s11543_s26 + $0xf8] sm:$0xff]  ;;  %v15608_v6 = vmov 2475754826  }
  0x1e   : > { %10395 = vmatprep.mubr.msk.f32.mxu0 %vm531_vm1, %v504_v7 }
  0x21   : > { %10396 = vmatmul.mubr.msk.f32.gmra.mrb[6].mxu0 %vm531_vm1, %v505_v8  ;;  %v15606_v8 = vmov 2131351028  }
  0x22   : > { %10398 = vmatprep.mubr.msk.f32.mxu0 %vm531_vm1, %v506_v9 }
  0x25   : > { %10399 = vmatmul.mubr.msk.f32.gmra.mrb[8].mxu0 %vm531_vm1, %v507_v10  ;;  %v15610_v10 = vmov 2102212464  }
  0x26   : > { %10401 = vmatprep.mubr.msk.f32.mxu0 %vm531_vm1, %v508_v11 }
  0x29   : > { %10402 = vmatmul.mubr.msk.f32.gmra.mrb[10].mxu0 %vm531_vm1, %v509_v12  ;;  %v15618_v12 = vmov 920167782  }
  0x2a   : > { %10404 = vmatprep.mubr.msk.f32.mxu0 %vm531_vm1, %v510_v13 }
  0x2d   : > { %10405 = vmatmul.mubr.msk.f32.gmra.mrb[12].mxu0 %vm531_vm1, %v511_v14 }
  0x2e   : > { %10407 = vmatprep.mubr.msk.f32.mxu0 %vm531_vm1, %v512_v15 }
  0x31   : > { %10408 = vmatmul.mubr.msk.f32.gmra.mrb[14].mxu0 %vm531_vm1, %v513_v16 }
  0x32   : > { %10410 = vmatprep.mubr.msk.f32.mxu0 %vm531_vm1, %v514_v17 }
  0x35   : > { %10411 = vmatmul.mubr.msk.f32.gmra.mrb[16].mxu0 %vm531_vm1, %v515_v18 }
  0x36   : > { %10413 = vmatprep.mubr.msk.f32.mxu0 %vm531_vm1, %v516_v19  ;;  %v15616_v19 = vmov 1326507024  }
  0x39   : > { %10414 = vmatmul.mubr.msk.f32.gmra.mrb[18].mxu0 %vm531_vm1, %v517_v20 }
  0x3a   : > { %10416 = vmatprep.mubr.msk.f32.mxu0 %vm531_vm1, %v518_v21 }
  0x3d   : > { %10417 = vmatmul.mubr.msk.f32.gmra.mrb[20].mxu0 %vm531_vm1, %v519_v22 }
  0x3e   : > { %10419 = vmatprep.mubr.msk.f32.mxu0 %vm531_vm1, %v520_v23 }
  0x41   : > { %10420 = vmatmul.mubr.msk.f32.gmra.mrb[22].mxu0 %vm531_vm1, %v521_v24 }
  0x42   : > { %10422 = vmatprep.mubr.msk.f32.mxu0 %vm531_vm1, %v522_v25 }
  0x45   : > { %10423 = vmatmul.mubr.msk.f32.gmra.mrb[24].mxu0 %vm531_vm1, %v523_v26 }
  0x46   : > { %10425 = vmatprep.mubr.msk.f32.mxu0 %vm531_vm1, %v524_v27 }
  0x49   : > { %10426 = vmatmul.mubr.msk.f32.gmra.mrb[26].mxu0 %vm531_vm1, %v525_v28 }
  0x4a   : > { %10428 = vmatprep.mubr.msk.f32.mxu0 %vm531_vm1, %v526_v29 }
  0x4d   : > { %10429 = vmatmul.mubr.msk.f32.gmra.mrb[28].mxu0 %vm531_vm1, %v527_v30 }
  0x4e   : > { %10431 = vmatprep.mubr.msk.f32.mxu0 %vm531_vm1, %v528_v31 }
  0x51   : > { %10432 = vmatmul.mubr.msk.f32.gmra.mrb[30].mxu0 %vm531_vm1, %v529_v32 }
  0xe8   : > { %v11609_v33 = vpop.f32.mrb[0].mxu0 }
  0xe9   : > { %15879 = vst [vmem:[#allocation2_spill] sm:$0xff] %v11609_v33  ;;  %v961_v34 = vand.u32 2147483647, %v11609_v33  ;;  %v964_v35 = vand.u32 2139095040, %v11609_v33  ;;  %v11613_v36 = vpop.f32.mrb[1].mxu0 }
  0xea   : > { %15880 = vst [vmem:[#allocation3_spill] sm:$0xff] %v11613_v36  ;;  %v15605_v37 = vand.u32 2147483647, %v11613_v36  ;;  %v860_v38 = vand.u32 2139095040, %v11613_v36 }
  0xeb   : > { %v965_v39 = vshrl.u32 %v964_v35, 23  ;;  %v968_v40 = vand.u32 8388607, %v961_v34 }
  0xec   : > { %v861_v41 = vshrl.u32 %v860_v38, 23  ;;  %v864_v42 = vand.u32 8388607, %v15605_v37  ;;  %v11621_v43 = vpop.f32.mrb[2].mxu0 }
  0xed   : > { %15881 = vst [vmem:[#allocation4_spill] sm:$0xff] %v11621_v43  ;;  %v9713_v44 = vadd.s32 4294967169, %v965_v39  ;;  %v11623_v45 = vpop.f32.mrb[3].mxu0  ;;  %v1172_v47 = vand.u32 2139095040, %v11621_v43  ;;  %v969_v49 = vor.u32 8388608, %v968_v40 }
  0xee   : > { %15882 = vst [vmem:[#allocation5_spill] sm:$0xff] %v11623_v45  ;;  %v9709_v46 = vadd.s32 4294967169, %v861_v41  ;;  %v865_v50 = vor.u32 8388608, %v864_v42 }
  0xef   : > { %v971_v48 = vadd.s32 1, %v9713_v44  ;;  %v1173_v52 = vshrl.u32 %v1172_v47, 23  ;;  %v11630_v60 = vshll.u32 %v969_v49, 8 }
  0xf0   : > { %v867_v51 = vadd.s32 1, %v9709_v46  ;;  %v11626_v53 = vpop.f32.mrb[4].mxu0  ;;  %v11634_v62 = vshll.u32 %v865_v50, 8 }
  0xf1   : > { %15883 = vst [vmem:[#allocation6_spill] sm:$0xff] %v11626_v53  ;;  %vm972_vm2 = vcmp.gt.s32.totalorder %v971_v48, 0  ;;  %v11628_v54 = vpop.f32.mrb[5].mxu0  ;;  %v9721_v56 = vadd.s32 4294967169, %v1173_v52 }
  0xf2   : > { %15884 = vst [vmem:[#allocation7_spill] sm:$0xff] %v11628_v54  ;;  %v973_v55 = vsel %vm972_vm2, %v971_v48, 0  ;;  %vm868_vm3 = vcmp.gt.s32.totalorder %v867_v51, 0 }
  0xf3   : > { %v974_v57 = vshrl.u32 %v973_v55, 5  ;;  %v975_v58 = vand.u32 31, %v973_v55  ;;  %v869_v59 = vsel %vm868_vm3, %v867_v51, 0  ;;  %v11639_v4 = vadd.s32 1, %v9721_v56 }
  0xf4   : > { %v11632_v61 = vshrl.u32 %v869_v59, 5  ;;  %v11636_v63 = vpop.f32.mrb[6].mxu0  ;;  %v871_v3 = vand.u32 31, %v869_v59 }
  0xf5   : > { %15885 = vst [vmem:[#allocation8_spill] sm:$0xff] %v11636_v63  ;;  %v976_v0 = vsub.s32 32, %v975_v58  ;;  %v978_v2 = vshll.u32 %v15613_v1, %v975_v58  ;;  %v11641_v5 = vpop.f32.mrb[7].mxu0  ;;  %v981_v7 = vshll.u32 %v15608_v6, %v975_v58  ;;  %v984_v9 = vshll.u32 %v15606_v8, %v975_v58 }
  0xf6   : > { %15886 = vst [vmem:[#allocation9_spill] sm:$0xff] %v11641_v5  ;;  %v987_v11 = vshll.u32 %v15610_v10, %v975_v58  ;;  %v990_v13 = vshll.u32 %v15618_v12, %v975_v58  ;;  %vm993_vm4 = vcmp.lt.s32.totalorder %v974_v57, 1  ;;  %vm994_vm5 = vcmp.lt.s32.totalorder %v974_v57, 2 }
  0xf7   : > { %v979_v14 = vshrl.u32 %v15608_v6, %v976_v0  ;;  %v982_v15 = vshrl.u32 %v15606_v8, %v976_v0  ;;  %v985_v16 = vshrl.u32 %v15610_v10, %v976_v0  ;;  %v977_v17 = vshrl.u32 %v15613_v1, %v976_v0 }
  0xf8   : > { %v988_v18 = vshrl.u32 %v15618_v12, %v976_v0  ;;  %v991_v20 = vshrl.u32 %v15616_v19, %v976_v0  ;;  %v11653_v21 = vpop.f32.mrb[8].mxu0  ;;  %v872_v25 = vsub.s32 32, %v871_v3  ;;  %vm995_vm6 = vcmp.lt.s32.totalorder %v974_v57, 3 }
  0xf9   : > { %15887 = vst [vmem:[#allocation10_spill] sm:$0xff] %v11653_v21  ;;  %v980_v22 = vor.u32 %v979_v14, %v978_v2  ;;  %v983_v23 = vor.u32 %v982_v15, %v981_v7  ;;  %v986_v24 = vor.u32 %v985_v16, %v984_v9  ;;  %vm996_vm7 = vcmp.lt.s32.totalorder %v974_v57, 4 }
  0xfa   : > { %v989_v26 = vor.u32 %v988_v18, %v987_v11  ;;  %v992_v27 = vor.u32 %v991_v20, %v990_v13  ;;  %v874_v39 = vshll.u32 %v15613_v1, %v871_v3  ;;  %v875_v42 = vshrl.u32 %v15608_v6, %v872_v25 }
  0xfb   : > { %v997_v28 = vsel %vm993_vm4, %v977_v17, %v980_v22  ;;  %v998_v29 = vsel %vm996_vm7, %v986_v24, 2102212464  ;;  %v1001_v30 = vsel %vm993_vm4, %v980_v22, %v983_v23  ;;  %v1005_v31 = vsel %vm993_vm4, %v983_v23, %v986_v24 }
  0xfc   : > { %v999_v32 = vsel %vm995_vm6, %v983_v23, %v998_v29  ;;  %v1002_v35 = vsel %vm996_vm7, %v989_v26, 920167782  ;;  %v1006_v38 = vsel %vm996_vm7, %v992_v27, 1326507024  ;;  %v877_v44 = vshll.u32 %v15608_v6, %v871_v3 }
  0xfd   : > { %v1003_v40 = vsel %vm995_vm6, %v986_v24, %v1002_v35  ;;  %v1007_v41 = vsel %vm995_vm6, %v989_v26, %v1006_v38  ;;  %v1000_v46 = vsel %vm994_vm5, %v997_v28, %v999_v32  ;;  %v878_v49 = vshrl.u32 %v15606_v8, %v872_v25 }
  0xfe   : > { %v1004_v47 = vsel %vm994_vm5, %v1001_v30, %v1003_v40  ;;  %v1008_v48 = vsel %vm994_vm5, %v1005_v31, %v1007_v41  ;;  %v876_v56 = vor.u32 %v875_v42, %v874_v39  ;;  %v880_v59 = vshll.u32 %v15606_v8, %v871_v3 }
  0xff   : > { %v11666_v50 = vmul.u32.u64.low %v11630_v60, %v1008_v48  ;;  %v11667_v51 = vmul.u32.u64.high %v11630_v60, %v1008_v48, %v11666_v50  ;;  %v11670_v52 = vmul.u32.u64.low %v11630_v60, %v1004_v47  ;;  %v11671_v55 = vmul.u32.u64.high %v11630_v60, %v1004_v47, %v11670_v52 }
 0x100   : > { %v879_v58 = vor.u32 %v878_v49, %v877_v44  ;;  %v881_v0 = vshrl.u32 %v15610_v10, %v872_v25  ;;  %v873_v57 = vshrl.u32 %v15613_v1, %v872_v25  ;;  %v883_v2 = vshll.u32 %v15610_v10, %v871_v3 }
 0x101   : > { %v884_v7 = vshrl.u32 %v15618_v12, %v872_v25  ;;  %v887_v9 = vshrl.u32 %v15616_v19, %v872_v25  ;;  %v1016_v11 = vmul.u32 %v11630_v60, %v1000_v46  ;;  %v886_v14 = vshll.u32 %v15618_v12, %v871_v3 }
 0x102   : > { %v882_v13 = vor.u32 %v881_v0, %v880_v59  ;;  %vm889_vm8 = vcmp.lt.s32.totalorder %v11632_v61, 1  ;;  %vm1018_vm9 = vc.u32 %v11667_v51, %v11670_v52  ;;  %v1019_v15 = vadd.s32 1, %v11671_v55 }
 0x103   : > { %v885_v16 = vor.u32 %v884_v7, %v883_v2  ;;  %vm890_vm10 = vcmp.lt.s32.totalorder %v11632_v61, 2  ;;  %v888_v17 = vor.u32 %v887_v9, %v886_v14  ;;  %vm891_vm11 = vcmp.lt.s32.totalorder %v11632_v61, 3 }
 0x104   : > { %vm892_vm12 = vcmp.lt.s32.totalorder %v11632_v61, 4  ;;  %v897_v18 = vsel %vm889_vm8, %v876_v56, %v879_v58  ;;  %v1020_v60 = vsel %vm1018_vm9, %v1019_v15, %v11671_v55  ;;  %v901_v22 = vsel %vm889_vm8, %v879_v58, %v882_v13 }
 0x105   : > { %v894_v20 = vsel %vm892_vm12, %v882_v13, 2102212464  ;;  %v898_v3 = vsel %vm892_vm12, %v885_v16, 920167782  ;;  %v1021_v23 = vadd.s32 %v1020_v60, %v1016_v11  ;;  %v893_v24 = vsel %vm889_vm8, %v873_v57, %v876_v56  ;;  %v11719_v56 = vpop.f32.mrb[9].mxu0 }
 0x106   : > { %v899_v25 = vsel %vm891_vm11, %v882_v13, %v898_v3  ;;  %v902_v26 = vsel %vm892_vm12, %v888_v17, 1326507024  ;;  %v895_v27 = vsel %vm891_vm11, %v879_v58, %v894_v20  ;;  %vm1180_vm13 = vcmp.gt.s32.totalorder %v11639_v4, 0  ;;  %15888 = vst [vmem:[#allocation11_spill] sm:$0xff] %v11719_v56 }
 0x107   : > { %v900_v28 = vsel %vm890_vm10, %v897_v18, %v899_v25  ;;  %v903_v29 = vsel %vm891_vm11, %v885_v16, %v902_v26  ;;  %v1022_v30 = vadd.s32 536870912, %v1021_v23  ;;  %v1181_v40 = vsel %vm1180_vm13, %v11639_v4, 0 }
 0x108   : > { %v904_v31 = vsel %vm890_vm10, %v901_v22, %v903_v29  ;;  %v11696_v32 = vmul.u32.u64.low %v11634_v62, %v900_v28  ;;  %v11697_v35 = vmul.u32.u64.high %v11634_v62, %v900_v28, %v11696_v32  ;;  %v896_v42 = vsel %vm890_vm10, %v893_v24, %v895_v27 }
 0x109   : > { %v11701_v38 = vmul.u32.u64.low %v11634_v62, %v904_v31  ;;  %v11702_v39 = vmul.u32.u64.high %v11634_v62, %v904_v31, %v11701_v38  ;;  %v11705_v41 = vshrl.u32 %v1022_v30, 30  ;;  %v1183_v44 = vand.u32 31, %v1181_v40 }
 0x10a   : > { %v15603_v46 = vand.u32 2147483647, %v11621_v43  ;;  %v915_v48 = vadd.s32 1, %v11697_v35  ;;  %v912_v50 = vmul.u32 %v11634_v62, %v896_v42  ;;  %v1068_v4 = vand.u32 2139095040, %v11623_v45 }
 0x10b   : > { %v1024_v47 = vshll.u32 %v11705_v41, 30  ;;  %v1184_v49 = vsub.s32 32, %v1183_v44  ;;  %vm914_vm14 = vc.u32 %v11702_v39, %v11696_v32  ;;  %v1186_v2 = vshll.u32 %v15613_v1, %v1183_v44 }
 0x10c   : > { %v916_v61 = vsel %vm914_vm14, %v915_v48, %v11697_v35  ;;  %v1176_v59 = vand.u32 8388607, %v15603_v46  ;;  %v1189_v7 = vshll.u32 %v15608_v6, %v1183_v44  ;;  %v1182_v13 = vshrl.u32 %v1181_v40, 5 }
 0x10d   : > { %v11716_v55 = vsub.s32 %v1021_v23, %v1024_v47  ;;  %v917_v58 = vadd.s32 %v916_v61, %v912_v50  ;;  %v1187_v0 = vshrl.u32 %v15608_v6, %v1184_v49  ;;  %v1190_v57 = vshrl.u32 %v15606_v8, %v1184_v49 }
 0x10e   : > { %v1193_v9 = vshrl.u32 %v15610_v10, %v1184_v49  ;;  %v1192_v14 = vshll.u32 %v15606_v8, %v1183_v44  ;;  %v1069_v15 = vshrl.u32 %v1068_v4, 23  ;;  %v1195_v18 = vshll.u32 %v15610_v10, %v1183_v44 }
 0x10f   : > { %v1027_v62 = vsub.s32 0, %v11716_v55  ;;  %v918_v11 = vadd.s32 536870912, %v917_v58  ;;  %v1188_v16 = vor.u32 %v1187_v0, %v1186_v2  ;;  %v1191_v17 = vor.u32 %v1190_v57, %v1189_v7 }
 0x110   : > { %v1196_v60 = vshrl.u32 %v15618_v12, %v1184_v49  ;;  %v1194_v3 = vor.u32 %v1193_v9, %v1192_v14  ;;  %v1198_v22 = vshll.u32 %v15618_v12, %v1183_v44  ;;  %v1199_v23 = vshrl.u32 %v15616_v19, %v1184_v49 }
 0x111   : > { %v11732_v20 = vshrl.u32 %v918_v11, 30  ;;  %v9714_v24 = vmin.u32 %v1027_v62, %v11716_v55  ;;  %v1177_v25 = vor.u32 8388608, %v1176_v59  ;;  %vm1201_vm15 = vcmp.lt.s32.totalorder %v1182_v13, 1 }
 0x112   : > { %v1197_v26 = vor.u32 %v1196_v60, %v1195_v18  ;;  %v1200_v28 = vor.u32 %v1199_v23, %v1198_v22  ;;  %vm1204_vm0 = vcmp.lt.s32.totalorder %v1182_v13, 4  ;;  %vm1203_vm1 = vcmp.lt.s32.totalorder %v1182_v13, 3 }
 0x113   : > { %15889 = vst [vmem:[#allocation12_spill] sm:$0xff] %v11732_v20  ;;  %v920_v27 = vshll.u32 %v11732_v20, 30  ;;  %v1209_v29 = vsel %vm1201_vm15, %v1188_v16, %v1191_v17  ;;  %v1213_v35 = vsel %vm1201_vm15, %v1191_v17, %v1194_v3  ;;  %v9717_v38 = vadd.s32 4294967169, %v1069_v15 }
 0x114   : > { %v1210_v30 = vsel %vm1204_vm0, %v1197_v26, 920167782  ;;  %vm1202_vm2 = vcmp.lt.s32.totalorder %v1182_v13, 2  ;;  %v1214_v40 = vsel %vm1204_vm0, %v1200_v28, 1326507024  ;;  %v1217_v42 = vshll.u32 %v1177_v25, 8 }
 0x115   : > { %v1211_v31 = vsel %vm1203_vm1, %v1194_v3, %v1210_v30  ;;  %v1029_v44 = vclz %v9714_v24  ;;  %v11741_v47 = vsub.s32 %v917_v58, %v920_v27  ;;  %v1215_v50 = vsel %vm1203_vm1, %v1197_v26, %v1214_v40  ;;  %v11768_v26 = vpop.f32.mrb[10].mxu0 }
 0x116   : > { %v1212_v48 = vsel %vm1202_vm2, %v1209_v29, %v1211_v31  ;;  %v1185_v4 = vshrl.u32 %v15613_v1, %v1184_v49  ;;  %v1206_v61 = vsel %vm1204_vm0, %v1194_v3, 2102212464  ;;  %v1216_v59 = vsel %vm1202_vm2, %v1213_v35, %v1215_v50  ;;  %15890 = vst [vmem:[#allocation13_spill] sm:$0xff] %v11768_v26 }
 0x117   : > { %v11747_v0 = vmul.u32.u64.low %v1217_v42, %v1216_v59  ;;  %v11748_v57 = vmul.u32.u64.high %v1217_v42, %v1216_v59, %v11747_v0  ;;  %v1075_v62 = vadd.s32 1, %v9717_v38  ;;  %v9715_v58 = vadd.s32 4294967294, %v1029_v44 }
 0x118   : > { %v1205_v2 = vsel %vm1201_vm15, %v1185_v4, %v1188_v16  ;;  %v11751_v7 = vmul.u32.u64.low %v1217_v42, %v1212_v48  ;;  %v11752_v9 = vmul.u32.u64.high %v1217_v42, %v1212_v48, %v11751_v7  ;;  %v923_v11 = vsub.s32 0, %v11741_v47 }
 0x119   : > { %v1207_v14 = vsel %vm1203_vm1, %v1191_v17, %v1206_v61  ;;  %vm1076_vm3 = vcmp.gt.s32.totalorder %v1075_v62, 0  ;;  %v15602_v15 = vand.u32 2147483647, %v11623_v45  ;;  %vm9716_vm5 = vcmp.lt.s32.totalorder %v9715_v58, 0 }
 0x11a   : > { %v1077_v49 = vsel %vm1076_vm3, %v1075_v62, 0  ;;  %vm1226_vm4 = vc.u32 %v11748_v57, %v11751_v7  ;;  %v1208_v18 = vsel %vm1202_vm2, %v1205_v2, %v1207_v14  ;;  %v1227_v16 = vadd.s32 1, %v11752_v9 }
 0x11b   : > { %v1079_v60 = vand.u32 31, %v1077_v49  ;;  %v9710_v3 = vmin.u32 %v923_v11, %v11741_v47  ;;  %v1224_v24 = vmul.u32 %v1217_v42, %v1208_v18  ;;  %v1072_v17 = vand.u32 8388607, %v15602_v15 }
 0x11c   : > { %v1228_v22 = vsel %vm1226_vm4, %v1227_v16, %v11752_v9  ;;  %v11766_v25 = vsel %vm9716_vm5, 0, %v9715_v58  ;;  %v1380_v38 = vand.u32 2139095040, %v11626_v53  ;;  %v1078_v61 = vshrl.u32 %v1077_v49, 5 }
 0x11d   : > { %v1080_v23 = vsub.s32 32, %v1079_v60  ;;  %v925_v27 = vclz %v9710_v3  ;;  %v1229_v13 = vadd.s32 %v1228_v22, %v1224_v24  ;;  %v1037_v30 = vsub.s32 4294967266, %v11766_v25 }
 0x11e   : > { %v1073_v31 = vor.u32 8388608, %v1072_v17  ;;  %v1082_v40 = vshll.u32 %v15613_v1, %v1079_v60  ;;  %v1085_v42 = vshll.u32 %v15608_v6, %v1079_v60  ;;  %v1091_v44 = vshll.u32 %v15610_v10, %v1079_v60 }
 0x11f   : > { %v1083_v28 = vshrl.u32 %v15608_v6, %v1080_v23  ;;  %v1086_v29 = vshrl.u32 %v15606_v8, %v1080_v23  ;;  %v1089_v35 = vshrl.u32 %v15610_v10, %v1080_v23  ;;  %v1092_v48 = vshrl.u32 %v15618_v12, %v1080_v23 }
 0x120   : > { %v9711_v50 = vadd.s32 4294967294, %v925_v27  ;;  %v1230_v4 = vadd.s32 536870912, %v1229_v13  ;;  %v1088_v59 = vshll.u32 %v15606_v8, %v1079_v60  ;;  %v1017_v9 = vadd.s32 %v11670_v52, %v11667_v51 }
 0x121   : > { %v1084_v0 = vor.u32 %v1083_v28, %v1082_v40  ;;  %v1087_v62 = vor.u32 %v1086_v29, %v1085_v42  ;;  %v1093_v2 = vor.u32 %v1092_v48, %v1091_v44  ;;  %v1033_v58 = vsub.s32 32, %v11766_v25 }
 0x122   : > { %v1038_v11 = vadd.s32 127, %v1037_v30  ;;  %v1090_v14 = vor.u32 %v1089_v35, %v1088_v59  ;;  %v1094_v18 = vshll.u32 %v15618_v12, %v1079_v60  ;;  %v1095_v16 = vshrl.u32 %v15616_v19, %v1080_v23 }
 0x123   : > { %v1113_v3 = vshll.u32 %v1073_v31, 8  ;;  %v1381_v22 = vshrl.u32 %v1380_v38, 23  ;;  %vm9712_vm6 = vcmp.lt.s32.totalorder %v9711_v50, 0  ;;  %v11785_v49 = vshrl.u32 %v1230_v4, 30 }
 0x124   : > { %vm1097_vm7 = vcmp.lt.s32.totalorder %v1078_v61, 1  ;;  %vm1100_vm8 = vcmp.lt.s32.totalorder %v1078_v61, 4  ;;  %v1096_v24 = vor.u32 %v1095_v16, %v1094_v18  ;;  %vm1099_vm9 = vcmp.lt.s32.totalorder %v1078_v61, 3 }
 0x125   : > { %v1105_v17 = vsel %vm1097_vm7, %v1084_v0, %v1087_v62  ;;  %v1106_v27 = vsel %vm1100_vm8, %v1093_v2, 920167782  ;;  %v1081_v51 = vshrl.u32 %v15613_v1, %v1080_v23  ;;  %vm1098_vm10 = vcmp.lt.s32.totalorder %v1078_v61, 2 }
 0x126   : > { %v1102_v52 = vsel %vm1100_vm8, %v1090_v14, 2102212464  ;;  %v1107_v28 = vsel %vm1099_vm9, %v1090_v14, %v1106_v27  ;;  %v11788_v29 = vsel %vm9712_vm6, 0, %v9711_v50  ;;  %v1109_v30 = vsel %vm1097_vm7, %v1087_v62, %v1090_v14 }
 0x127   : > { %v1108_v60 = vsel %vm1098_vm10, %v1105_v17, %v1107_v28  ;;  %v1110_v31 = vsel %vm1100_vm8, %v1096_v24, 1326507024  ;;  %v1232_v35 = vshll.u32 %v11785_v49, 30  ;;  %v1101_v38 = vsel %vm1097_vm7, %v1081_v51, %v1084_v0 }
 0x128   : > { %v1111_v40 = vsel %vm1099_vm9, %v1093_v2, %v1110_v31  ;;  %v9729_v42 = vadd.s32 4294967169, %v1381_v22  ;;  %v1103_v44 = vsel %vm1099_vm9, %v1087_v62, %v1102_v52  ;;  %v1035_v23 = vshrl.u32 %v1017_v9, %v1033_v58 }
 0x129   : > { %v1112_v48 = vsel %vm1098_vm10, %v1109_v30, %v1111_v40  ;;  %v11793_v4 = vmul.u32.u64.low %v1113_v3, %v1108_v60  ;;  %v11794_v59 = vmul.u32.u64.high %v1113_v3, %v1108_v60, %v11793_v4  ;;  %v1039_v18 = vshll.u32 %v1038_v11, 23 }
 0x12a   : > { %v11797_v50 = vmul.u32.u64.low %v1113_v3, %v1112_v48  ;;  %v11798_v16 = vmul.u32.u64.high %v1113_v3, %v1112_v48, %v11797_v50  ;;  %v1387_v17 = vadd.s32 1, %v9729_v42  ;;  %v1034_v14 = vshll.u32 %v11716_v55, %v11766_v25  ;;  %v11811_v25 = vpop.f32.mrb[11].mxu0 }
 0x12b   : > { %v933_v0 = vsub.s32 4294967266, %v11788_v29  ;;  %v11803_v2 = vsub.s32 %v1229_v13, %v1232_v35  ;;  %v1104_v62 = vsel %vm1098_vm10, %v1101_v38, %v1103_v44  ;;  %v1123_v22 = vadd.s32 1, %v11794_v59  ;;  %15891 = vst [vmem:[#allocation14_spill] sm:$0xff] %v11811_v25 }
 0x12c   : > { %vm1388_vm11 = vcmp.gt.s32.totalorder %v1387_v17, 0  ;;  %v1036_v24 = vor.u32 %v1035_v23, %v1034_v14  ;;  %v1040_v27 = vor.u32 4788187, %v1039_v18  ;;  %v15601_v9 = vand.u32 2147483647, %v11626_v53 }
 0x12d   : > { %v929_v58 = vsub.s32 32, %v11788_v29  ;;  %v1120_v11 = vmul.u32 %v1113_v3, %v1104_v62  ;;  %vm1122_vm12 = vc.u32 %v11798_v16, %v11793_v4  ;;  %v1389_v55 = vsel %vm1388_vm11, %v1387_v17, 0 }
 0x12e   : > { %v934_v13 = vadd.s32 127, %v933_v0  ;;  %v1235_v61 = vsub.s32 0, %v11803_v2  ;;  %v1124_v51 = vsel %vm1122_vm12, %v1123_v22, %v11794_v59  ;;  %vm963_vm13 = vcmp.lt.s32.totalorder %v11609_v33, 0 }
 0x12f   : > { %v913_v52 = vadd.s32 %v11696_v32, %v11702_v39  ;;  %v1125_v28 = vadd.s32 %v1124_v51, %v1120_v11  ;;  %v1391_v60 = vand.u32 31, %v1389_v55  ;;  %v1041_v30 = vand.u32 2147483647, %v1040_v27 }
 0x130   : > { %v1043_v3 = vcvt.s32.f32 %v1036_v24  ;;  %v1047_v31 = vsub.s32 4, %v11705_v41  ;;  %v930_v35 = vshll.u32 %v11741_v47, %v11788_v29  ;;  %v1384_v42 = vand.u32 8388607, %v15601_v9 }
 0x131   : > { %v931_v38 = vshrl.u32 %v913_v52, %v929_v58  ;;  %v1126_v40 = vadd.s32 536870912, %v1125_v28  ;;  %v1392_v44 = vsub.s32 32, %v1391_v60  ;;  %v935_v48 = vshll.u32 %v934_v13, 23 }
 0x132   : > { %v9722_v59 = vmin.u32 %v1235_v61, %v11803_v2  ;;  %v1390_v23 = vshrl.u32 %v1389_v55, 5  ;;  %v1276_v32 = vand.u32 2139095040, %v11628_v54  ;;  %v1394_v39 = vshll.u32 %v15613_v1, %v1391_v60 }
 0x133   : > { %v1395_v18 = vshrl.u32 %v15608_v6, %v1392_v44  ;;  %v1397_v50 = vshll.u32 %v15608_v6, %v1391_v60  ;;  %v1398_v47 = vshrl.u32 %v15606_v8, %v1392_v44  ;;  %vm11831_vm14 = vcmp.le.f32.partialorder %v961_v34, 0.7853982 }
 0x134   : > { %v1400_v17 = vshll.u32 %v15606_v8, %v1391_v60  ;;  %v1401_v14 = vshrl.u32 %v15610_v10, %v1392_v44  ;;  %v1403_v0 = vshll.u32 %v15610_v10, %v1391_v60  ;;  %v1404_v62 = vshrl.u32 %v15618_v12, %v1392_v44 }
 0x135   : > { %v11839_v22 = vshrl.u32 %v1126_v40, 30  ;;  %v1385_v24 = vor.u32 8388608, %v1384_v42  ;;  %v1396_v27 = vor.u32 %v1395_v18, %v1394_v39  ;;  %v1399_v58 = vor.u32 %v1398_v47, %v1397_v50 }
 0x136   : > { %v1402_v11 = vor.u32 %v1401_v14, %v1400_v17  ;;  %v1405_v55 = vor.u32 %v1404_v62, %v1403_v0  ;;  %v1406_v34 = vshll.u32 %v15618_v12, %v1391_v60  ;;  %v1407_v13 = vshrl.u32 %v15616_v19, %v1392_v44 }
 0x137   : > { %v1044_v61 = vmul.f32 %v1043_v3, %v1041_v30  ;;  %v1048_v51 = vsel %vm963_vm13, %v1047_v31, %v11705_v41  ;;  %v932_v52 = vor.u32 %v931_v38, %v930_v35  ;;  %v1237_v9 = vclz %v9722_v59 }
 0x138   : > { %v936_v15 = vor.u32 4788187, %v935_v48  ;;  %v1408_v46 = vor.u32 %v1407_v13, %v1406_v34  ;;  %vm1409_vm15 = vcmp.lt.s32.totalorder %v1390_v23, 1  ;;  %vm1412_vm0 = vcmp.lt.s32.totalorder %v1390_v23, 4 }
 0x139   : > { %v1128_v40 = vshll.u32 %v11839_v22, 30  ;;  %vm1411_vm1 = vcmp.lt.s32.totalorder %v1390_v23, 3  ;;  %v1417_v42 = vsel %vm1409_vm15, %v1396_v27, %v1399_v58  ;;  %v1418_v39 = vsel %vm1412_vm0, %v1405_v55, 920167782 }
 0x13a   : > { %vm1410_vm2 = vcmp.lt.s32.totalorder %v1390_v23, 2  ;;  %v1419_v60 = vsel %vm1411_vm1, %v1402_v11, %v1418_v39  ;;  %v1425_v30 = vshll.u32 %v1385_v24, 8  ;;  %v1277_v3 = vshrl.u32 %v1276_v32, 23 }
 0x13b   : > { %v9723_v18 = vadd.s32 4294967294, %v1237_v9  ;;  %v1414_v50 = vsel %vm1412_vm0, %v1402_v11, 2102212464  ;;  %v1420_v41 = vsel %vm1410_vm2, %v1417_v42, %v1419_v60  ;;  %v1421_v31 = vsel %vm1409_vm15, %v1399_v58, %v1402_v11 }
 0x13c   : > { %v1393_v35 = vshrl.u32 %v15613_v1, %v1392_v44  ;;  %v1422_v38 = vsel %vm1412_vm0, %v1408_v46, 1326507024  ;;  %v11852_v48 = vmul.u32.u64.low %v1425_v30, %v1420_v41  ;;  %v11853_v59 = vmul.u32.u64.high %v1425_v30, %v1420_v41, %v11852_v48 }
 0x13d   : > { %v11858_v47 = vsel %vm11831_vm14, 0, %v1048_v51  ;;  %v11860_v17 = vsub.s32 %v1125_v28, %v1128_v40  ;;  %v1423_v9 = vsel %vm1411_vm1, %v1405_v55, %v1422_v38  ;;  %v1415_v14 = vsel %vm1411_vm1, %v1399_v58, %v1414_v50  ;;  %v11874_v40 = vpop.f32.mrb[12].mxu0 }
 0x13e   : > { %15894 = vst [vmem:[#allocation15_spill] sm:$0xff] %v11858_v47  ;;  %v1413_v32 = vsel %vm1409_vm15, %v1393_v35, %v1396_v27  ;;  %v1424_v0 = vsel %vm1410_vm2, %v1421_v31, %v1423_v9  ;;  %v9725_v44 = vadd.s32 4294967169, %v1277_v3  ;;  %v1045_v46 = vxor.u32 2147483648, %v1044_v61  ;;  %15895 = vst [vmem:[#allocation16_spill] sm:$0xff] %v11874_v40 }
 0x13f   : > { %v937_v62 = vand.u32 2147483647, %v936_v15  ;;  %v11866_v24 = vmul.u32.u64.low %v1425_v30, %v1424_v0  ;;  %v11867_v11 = vmul.u32.u64.high %v1425_v30, %v1424_v0, %v11866_v24  ;;  %v939_v34 = vcvt.s32.f32 %v932_v52 }
 0x140   : > { %vm9724_vm3 = vcmp.lt.s32.totalorder %v9723_v18, 0  ;;  %v1283_v13 = vadd.s32 1, %v9725_v44  ;;  %v1131_v28 = vsub.s32 0, %v11860_v17  ;;  %v1416_v51 = vsel %vm1410_vm2, %v1413_v32, %v1415_v14 }
 0x141   : > { %v1435_v55 = vadd.s32 1, %v11853_v59  ;;  %v15604_v27 = vand.u32 2147483647, %v11628_v54  ;;  %v1054_v58 = vadd.s32 3, %v11858_v47  ;;  %v1046_v15 = vsel %vm963_vm13, %v1045_v46, %v1044_v61 }
 0x142   : > { %vm1284_vm4 = vcmp.gt.s32.totalorder %v1283_v13, 0  ;;  %v11878_v42 = vmul.f32 %v939_v34, %v937_v62  ;;  %v1240_v52 = vsel %vm9724_vm3, 0, %v9723_v18  ;;  %v1432_v39 = vmul.u32 %v1425_v30, %v1416_v51 }
 0x143   : > { %vm1434_vm5 = vc.u32 %v11867_v11, %v11852_v48  ;;  %v1285_v23 = vsel %vm1284_vm4, %v1283_v13, 0  ;;  %v1588_v60 = vand.u32 2139095040, %v11636_v63  ;;  %v9718_v3 = vmin.u32 %v1131_v28, %v11860_v17 }
 0x144   : > { %v1436_v50 = vsel %vm1434_vm5, %v1435_v55, %v11853_v59  ;;  %v1280_v41 = vand.u32 8388607, %v15604_v27  ;;  %v11887_v31 = vand.u32 3, %v1054_v58  ;;  %v1225_v61 = vadd.s32 %v11751_v7, %v11748_v57 }
 0x145   : > { %v1437_v18 = vadd.s32 %v1436_v50, %v1432_v39  ;;  %v1287_v30 = vand.u32 31, %v1285_v23  ;;  %v11894_v35 = vsel %vm11831_vm14, %v11609_v33, %v1046_v15  ;;  %v1241_v9 = vsub.s32 32, %v1240_v52 }
 0x146   : > { %15896 = vst [vmem:[#allocation17_spill] sm:$0xff] %v11887_v31  ;;  %v15612_v59 = vand.u32 2147483647, %v11636_v63  ;;  %v1245_v32 = vsub.s32 4294967266, %v1240_v52  ;;  %v1589_v44 = vshrl.u32 %v1588_v60, 23  ;;  %v1133_v46 = vclz %v9718_v3 }
 0x147   : > { %v1438_v14 = vadd.s32 536870912, %v1437_v18  ;;  %v1288_v0 = vsub.s32 32, %v1287_v30  ;;  %v1281_v62 = vor.u32 8388608, %v1280_v41  ;;  %v1286_v24 = vshrl.u32 %v1285_v23, 5 }
 0x148   : > { %v1290_v57 = vshll.u32 %v15613_v1, %v1287_v30  ;;  %v1293_v34 = vshll.u32 %v15608_v6, %v1287_v30  ;;  %v1296_v28 = vshll.u32 %v15606_v8, %v1287_v30  ;;  %v1299_v55 = vshll.u32 %v15610_v10, %v1287_v30 }
 0x149   : > { %v11899_v7 = vshrl.u32 %v1438_v14, 30  ;;  %v1291_v29 = vshrl.u32 %v15608_v6, %v1288_v0  ;;  %v1294_v13 = vshrl.u32 %v15606_v8, %v1288_v0  ;;  %v1297_v51 = vshrl.u32 %v15610_v10, %v1288_v0 }
 0x14a   : > { %v1300_v58 = vshrl.u32 %v15618_v12, %v1288_v0  ;;  %v9737_v60 = vadd.s32 4294967169, %v1589_v44  ;;  %v1302_v41 = vshll.u32 %v15618_v12, %v1287_v30  ;;  %v1303_v14 = vshrl.u32 %v15616_v19, %v1288_v0 }
 0x14b   : > { %v1440_v15 = vshll.u32 %v11899_v7, 30  ;;  %v1292_v39 = vor.u32 %v1291_v29, %v1290_v57  ;;  %v1295_v23 = vor.u32 %v1294_v13, %v1293_v34  ;;  %v1298_v3 = vor.u32 %v1297_v51, %v1296_v28 }
 0x14c   : > { %v1301_v50 = vor.u32 %v1300_v58, %v1299_v55  ;;  %v1242_v27 = vshll.u32 %v11803_v2, %v1240_v52  ;;  %v1243_v37 = vshrl.u32 %v1225_v61, %v1241_v9  ;;  %v1246_v8 = vadd.s32 127, %v1245_v32 }
 0x14d   : > { %v11912_v6 = vsub.s32 %v1437_v18, %v1440_v15  ;;  %vm859_vm6 = vcmp.lt.s32.totalorder %v11613_v36, 0  ;;  %v9719_v10 = vadd.s32 4294967294, %v1133_v46  ;;  %v1304_v38 = vor.u32 %v1303_v14, %v1302_v41 }
 0x14e   : > { %vm1305_vm7 = vcmp.lt.s32.totalorder %v1286_v24, 1  ;;  %vm1308_vm8 = vcmp.lt.s32.totalorder %v1286_v24, 4  ;;  %vm1307_vm9 = vcmp.lt.s32.totalorder %v1286_v24, 3  ;;  %vm1306_vm10 = vcmp.lt.s32.totalorder %v1286_v24, 2 }
 0x14f   : > { %v1443_v44 = vsub.s32 0, %v11912_v6  ;;  %v1313_v57 = vsel %vm1305_vm7, %v1292_v39, %v1295_v23  ;;  %v1314_v30 = vsel %vm1308_vm8, %v1301_v50, 920167782  ;;  %v1321_v2 = vshll.u32 %v1281_v62, 8 }
 0x150   : > { %v1315_v29 = vsel %vm1307_vm9, %v1298_v3, %v1314_v30  ;;  %v1595_v52 = vadd.s32 1, %v9737_v60  ;;  %v11918_v61 = vor.u32 %v1243_v37, %v1242_v27  ;;  %v1310_v18 = vsel %vm1308_vm8, %v1298_v3, 2102212464 }
 0x151   : > { %v1316_v9 = vsel %vm1306_vm10, %v1313_v57, %v1315_v29  ;;  %v1317_v32 = vsel %vm1305_vm7, %v1295_v23, %v1298_v3  ;;  %v1289_v46 = vshrl.u32 %v15613_v1, %v1288_v0  ;;  %v1318_v34 = vsel %vm1308_vm8, %v1304_v38, 1326507024 }
 0x152   : > { %v11923_v13 = vmul.u32.u64.low %v1321_v2, %v1316_v9  ;;  %v11924_v28 = vmul.u32.u64.high %v1321_v2, %v1316_v9, %v11923_v13  ;;  %v1247_v51 = vshll.u32 %v1246_v8, 23  ;;  %vm9720_vm11 = vcmp.lt.s32.totalorder %v9719_v10, 0 }
 0x153   : > { %v9730_v55 = vmin.u32 %v1443_v44, %v11912_v6  ;;  %v1319_v62 = vsel %vm1307_vm9, %v1301_v50, %v1318_v34  ;;  %v1309_v37 = vsel %vm1305_vm7, %v1289_v46, %v1292_v39  ;;  %v1311_v27 = vsel %vm1307_vm9, %v1295_v23, %v1310_v18 }
 0x154   : > { %v1320_v58 = vsel %vm1306_vm10, %v1317_v32, %v1319_v62  ;;  %vm1596_vm12 = vcmp.gt.s32.totalorder %v1595_v52, 0  ;;  %v1592_v38 = vand.u32 8388607, %v15612_v59  ;;  %11301 = vcosq.f32 %v11894_v35 }
 0x155   : > { %v11932_v15 = vmul.u32.u64.low %v1321_v2, %v1320_v58  ;;  %v11933_v0 = vmul.u32.u64.high %v1321_v2, %v1320_v58, %v11932_v15  ;;  %v1597_v60 = vsel %vm1596_vm12, %v1595_v52, 0  ;;  %v11939_v3 = vsel %vm9720_vm11, 0, %v9719_v10  ;;  %v11955_v52 = vpop.f32.mrb[13].mxu0 }
 0x156   : > { %v1599_v50 = vand.u32 31, %v1597_v60  ;;  %v15897_v39 = vxor.u32 2147483648, %v11878_v42  ;;  %v1445_v41 = vclz %v9730_v55  ;;  %v1312_v14 = vsel %vm1306_vm10, %v1309_v37, %v1311_v27  ;;  %15898 = vst [vmem:[#allocation18_spill] sm:$0xff] %v11955_v52 }
 0x157   : > { %v1331_v44 = vadd.s32 1, %v11924_v28  ;;  %v11950_v57 = vor.u32 4788187, %v1247_v51  ;;  %v1121_v10 = vadd.s32 %v11793_v4, %v11798_v16  ;;  %v1137_v18 = vsub.s32 32, %v11939_v3 }
 0x158   : > { %v11946_v23 = vsel %vm859_vm6, %v15897_v39, %v11878_v42  ;;  %v1600_v29 = vsub.s32 32, %v1599_v50  ;;  %v1141_v42 = vsub.s32 4294967266, %v11939_v3  ;;  %v1593_v9 = vor.u32 8388608, %v1592_v38 }
 0x159   : > { %v1484_v24 = vand.u32 2139095040, %v11641_v5  ;;  %v1328_v32 = vmul.u32 %v1321_v2, %v1312_v14  ;;  %vm1330_vm13 = vc.u32 %v11933_v0, %v11923_v13  ;;  %v15899_v46 = vmov 2475754826  }
 0x15a   : > { %v1603_v34 = vshrl.u32 %v15899_v46, %v1600_v29  ;;  %v15900_v51 = vmov 2131351028   ;;  %v9731_v62 = vadd.s32 4294967294, %v1445_v41  ;;  %v1332_v4 = vsel %vm1330_vm13, %v1331_v44, %v11924_v28 }
 0x15b   : > { %v1606_v55 = vshrl.u32 %v15900_v51, %v1600_v29  ;;  %v1602_v16 = vshll.u32 %v15613_v1, %v1599_v50  ;;  %v1605_v37 = vshll.u32 %v15899_v46, %v1599_v50  ;;  %v1333_v27 = vadd.s32 %v1332_v4, %v1328_v32 }
 0x15c   : > { %v1598_v58 = vshrl.u32 %v1597_v60, 5  ;;  %v1608_v15 = vshll.u32 %v15900_v51, %v1599_v50  ;;  %v15901_v38 = vmov 2102212464   ;;  %v1612_v8 = vshrl.u32 %v15618_v12, %v1600_v29 }
 0x15d   : > { %v1609_v2 = vshrl.u32 %v15901_v38, %v1600_v29  ;;  %v1604_v39 = vor.u32 %v1603_v34, %v1602_v16  ;;  %v1607_v14 = vor.u32 %v1606_v55, %v1605_v37  ;;  %v1611_v59 = vshll.u32 %v15901_v38, %v1599_v50 }
 0x15e   : > { %v1249_v41 = vand.u32 2147483647, %v11950_v57  ;;  %v1334_v30 = vadd.s32 536870912, %v1333_v27  ;;  %v1615_v44 = vshrl.u32 %v15616_v19, %v1600_v29  ;;  %v15902_v1 = vand.u32 2147483647, %v11613_v36  ;;  %v11980_v16 = vpop.eup %11301 }
 0x15f   : > { %v1610_v28 = vor.u32 %v1609_v2, %v1608_v15  ;;  %v15903_v60 = vmov 0  ;;  %v1139_v32 = vshrl.u32 %v1121_v10, %v1137_v18  ;;  %v1613_v4 = vor.u32 %v1612_v8, %v1611_v59  ;;  %15906 = vst [vmem:[#allocation20_spill] sm:$0xff] %v11980_v16 }
 0x160   : > { %vm11975_vm14 = vcmp.le.f32.partialorder %v15902_v1, 0.7853982  ;;  %v1614_v34 = vshll.u32 %v15618_v12, %v1599_v50  ;;  %v1485_v55 = vshrl.u32 %v1484_v24, 23  ;;  %v1142_v37 = vadd.s32 127, %v1141_v42 }
 0x161   : > { %v15904_v60 = vsel %vm11975_vm14, 4294967295, %v15903_v60  ;;  %v11982_v47 = vshrl.u32 %v1334_v30, 30  ;;  %vm1617_vm15 = vcmp.lt.s32.totalorder %v1598_v58, 1  ;;  %v1633_v57 = vshll.u32 %v1593_v9, 8 }
 0x162   : > { %15905 = vst [vmem:[#allocation19_spill] sm:$0xff] %v15904_v60  ;;  %vm9732_vm0 = vcmp.lt.s32.totalorder %v9731_v62, 0  ;;  %v1616_v15 = vor.u32 %v1615_v44, %v1614_v34  ;;  %vm1620_vm1 = vcmp.lt.s32.totalorder %v1598_v58, 4  ;;  %v1625_v1 = vsel %vm1617_vm15, %v1604_v39, %v1607_v14 }
 0x163   : > { %vm1171_vm2 = vcmp.lt.s32.totalorder %v11621_v43, 0  ;;  %v1336_v10 = vshll.u32 %v11982_v47, 30  ;;  %vm1619_vm3 = vcmp.lt.s32.totalorder %v1598_v58, 3  ;;  %v1622_v59 = vsel %vm1620_vm1, %v1610_v28, 2102212464 }
 0x164   : > { %v1626_v8 = vsel %vm1620_vm1, %v1613_v4, 920167782  ;;  %v15907_v50 = vmov 683565275   ;;  %vm1618_vm4 = vcmp.lt.s32.totalorder %v1598_v58, 2  ;;  %v9733_v42 = vadd.s32 4294967169, %v1485_v55 }
 0x165   : > { %v1601_v18 = vshrl.u32 %v15907_v50, %v1600_v29  ;;  %v1627_v30 = vsel %vm1619_vm3, %v1610_v28, %v1626_v8  ;;  %v11991_v9 = vsel %vm9732_vm0, 0, %v9731_v62  ;;  %v11993_v24 = vsub.s32 %v1333_v27, %v1336_v10  ;;  %v12033_v58 = vpop.f32.mrb[14].mxu0 }
 0x166   : > { %v1628_v2 = vsel %vm1618_vm4, %v1625_v1, %v1627_v30  ;;  %v1629_v44 = vsel %vm1617_vm15, %v1607_v14, %v1610_v28  ;;  %v1143_v34 = vshll.u32 %v1142_v37, 23  ;;  %v1623_v12 = vsel %vm1619_vm3, %v1607_v14, %v1622_v59  ;;  %15910 = vst [vmem:[#allocation21_spill] sm:$0xff] %v12033_v58 }
 0x167   : > { %v1621_v19 = vsel %vm1617_vm15, %v1601_v18, %v1604_v39  ;;  %v1630_v16 = vsel %vm1620_vm1, %v1616_v15, 1326507024  ;;  %v1339_v29 = vsub.s32 0, %v11993_v24  ;;  %v1138_v27 = vshll.u32 %v11860_v17, %v11939_v3 }
 0x168   : > { %v1631_v8 = vsel %vm1619_vm3, %v1613_v4, %v1630_v16  ;;  %v12002_v55 = vmul.u32.u64.low %v1633_v57, %v1628_v2  ;;  %v12003_v62 = vmul.u32.u64.high %v1633_v57, %v1628_v2, %v12002_v55  ;;  %v1453_v28 = vsub.s32 4294967266, %v11991_v9 }
 0x169   : > { %v1632_v37 = vsel %vm1618_vm4, %v1629_v44, %v1631_v8  ;;  %v1491_v39 = vadd.s32 1, %v9733_v42  ;;  %v12014_v14 = vsel %vm11975_vm14, %v11613_v36, %v11946_v23  ;;  %v15621_v16 = vand.u32 2147483647, %v11641_v5 }
 0x16a   : > { %v12016_v15 = vmul.u32.u64.low %v1633_v57, %v1632_v37  ;;  %v12017_v4 = vmul.u32.u64.high %v1633_v57, %v1632_v37, %v12016_v15  ;;  %v15908_v1 = vcvt.s32.f32 %v11918_v61  ;;  %v1140_v17 = vor.u32 %v1139_v32, %v1138_v27 }
 0x16b   : > { %v1624_v3 = vsel %vm1618_vm4, %v1621_v19, %v1623_v12  ;;  %vm1492_vm5 = vcmp.gt.s32.totalorder %v1491_v39, 0  ;;  %v1144_v59 = vor.u32 4788187, %v1143_v34  ;;  %v9726_v18 = vmin.u32 %v1339_v29, %v11993_v24 }
 0x16c   : > { %v1252_v10 = vmul.f32 %v15908_v1, %v1249_v41  ;;  %v1643_v30 = vadd.s32 1, %v12003_v62  ;;  %v1493_v42 = vsel %vm1492_vm5, %v1491_v39, 0  ;;  %11303 = vsinq.f32 %v11894_v35 }
 0x16d   : > { %v15909_v23 = vsub.s32 4, %v11785_v49  ;;  %v1454_v61 = vadd.s32 127, %v1453_v28  ;;  %v1495_v41 = vand.u32 31, %v1493_v42  ;;  %11305 = vcosq.f32 %v12014_v14 }
 0x16e   : > { %v1640_v12 = vmul.u32 %v1633_v57, %v1624_v3  ;;  %vm1642_vm7 = vc.u32 %v12017_v4, %v12002_v55  ;;  %v1488_v19 = vand.u32 8388607, %v15621_v16  ;;  %v1253_v35 = vxor.u32 2147483648, %v1252_v10 }
 0x16f   : > { %v12031_v2 = vsel %vm1171_vm2, %v15909_v23, %v11785_v49  ;;  %v1433_v32 = vadd.s32 %v11852_v48, %v11867_v11  ;;  %v1644_v49 = vsel %vm1642_vm7, %v1643_v30, %v12003_v62  ;;  %v1496_v44 = vsub.s32 32, %v1495_v41 }
 0x170   : > { %v1145_v34 = vand.u32 2147483647, %v1144_v59  ;;  %v1147_v29 = vcvt.s32.f32 %v1140_v17  ;;  %v1341_v8 = vclz %v9726_v18  ;;  %v1645_v27 = vadd.s32 %v1644_v49, %v1640_v12 }
 0x171   : > { %v1449_v28 = vsub.s32 32, %v11991_v9  ;;  %v1455_v57 = vshll.u32 %v1454_v61, 23  ;;  %v1499_v37 = vshrl.u32 %v15899_v46, %v1496_v44  ;;  %v1502_v39 = vshrl.u32 %v15900_v51, %v1496_v44 }
 0x172   : > { %v1646_v15 = vadd.s32 536870912, %v1645_v27  ;;  %v1489_v1 = vor.u32 8388608, %v1488_v19  ;;  %v1494_v3 = vshrl.u32 %v1493_v42, 5  ;;  %v1498_v23 = vshll.u32 %v15907_v50, %v1495_v41 }
 0x173   : > { %v1501_v48 = vshll.u32 %v15899_v46, %v1495_v41  ;;  %v1504_v11 = vshll.u32 %v15900_v51, %v1495_v41  ;;  %v1505_v62 = vshrl.u32 %v15901_v38, %v1496_v44  ;;  %v15911_v17 = vmov 920167782  }
 0x174   : > { %v1508_v59 = vshrl.u32 %v15911_v17, %v1496_v44  ;;  %v9727_v18 = vadd.s32 4294967294, %v1341_v8  ;;  %v12051_v30 = vshrl.u32 %v1646_v15, 30  ;;  %v1500_v61 = vor.u32 %v1499_v37, %v1498_v23 }
 0x175   : > { %v1507_v12 = vshll.u32 %v15901_v38, %v1495_v41  ;;  %v1503_v49 = vor.u32 %v1502_v39, %v1501_v48  ;;  %v1506_v16 = vor.u32 %v1505_v62, %v1504_v11  ;;  %v1510_v42 = vshll.u32 %v15911_v17, %v1495_v41 }
 0x176   : > { %v15912_v19 = vmov 1326507024   ;;  %v1254_v31 = vsel %vm1171_vm2, %v1253_v35, %v1252_v10  ;;  %v1148_v60 = vmul.f32 %v1147_v29, %v1145_v34  ;;  %v1151_v36 = vsub.s32 4, %v11839_v22  ;;  %v12059_v58 = vpop.eup %11303 }
 0x177   : > { %v1511_v33 = vshrl.u32 %v15912_v19, %v1496_v44  ;;  %v1509_v20 = vor.u32 %v1508_v59, %v1507_v12  ;;  %15913 = vst [vmem:[#allocation22_spill] sm:$0xff] %v12059_v58  ;;  %v15914_v8 = vand.u32 2147483647, %v11621_v43  ;;  %vm1067_vm9 = vcmp.lt.s32.totalorder %v11623_v45, 0  ;;  %v12071_v34 = vpop.eup %11305 }
 0x178   : > { %v1450_v41 = vshll.u32 %v11912_v6, %v11991_v9  ;;  %v1451_v39 = vshrl.u32 %v1433_v32, %v1449_v28  ;;  %v1648_v10 = vshll.u32 %v12051_v30, 30  ;;  %15917 = vst [vmem:[#allocation23_spill] sm:$0xff] %v12071_v34  ;;  %v1456_v29 = vor.u32 4788187, %v1455_v57 }
 0x179   : > { %vm12063_vm8 = vcmp.le.f32.partialorder %v15914_v8, 0.7853982  ;;  %v1512_v35 = vor.u32 %v1511_v33, %v1510_v42  ;;  %vm1513_vm10 = vcmp.lt.s32.totalorder %v1494_v3, 1  ;;  %vm1516_vm11 = vcmp.lt.s32.totalorder %v1494_v3, 4 }
 0x17a   : > { %v1529_v15 = vshll.u32 %v1489_v1, 8  ;;  %vm9728_vm12 = vcmp.lt.s32.totalorder %v9727_v18, 0  ;;  %v1518_v23 = vsel %vm1516_vm11, %v1506_v16, 2102212464  ;;  %v1521_v48 = vsel %vm1513_vm10, %v1500_v61, %v1503_v49 }
 0x17b   : > { %v1796_v11 = vand.u32 2139095040, %v11653_v21  ;;  %vm1379_vm13 = vcmp.lt.s32.totalorder %v11626_v53, 0  ;;  %v1497_v6 = vshrl.u32 %v15907_v50, %v1496_v44  ;;  %vm1514_vm15 = vcmp.lt.s32.totalorder %v1494_v3, 2 }
 0x17c   : > { %vm1515_vm0 = vcmp.lt.s32.totalorder %v1494_v3, 3  ;;  %v1522_v9 = vsel %vm1516_vm11, %v1509_v20, 920167782  ;;  %v15918_v33 = vand.u32 2147483647, %v11623_v45  ;;  %v12083_v28 = vsub.s32 %v1645_v27, %v1648_v10 }
 0x17d   : > { %v1523_v57 = vsel %vm1515_vm0, %v1506_v16, %v1522_v9  ;;  %v1525_v1 = vsel %vm1513_vm10, %v1503_v49, %v1506_v16  ;;  %v1526_v62 = vsel %vm1516_vm11, %v1512_v35, 1326507024  ;;  %v1517_v59 = vsel %vm1513_vm10, %v1497_v6, %v1500_v61 }
 0x17e   : > { %vm12079_vm1 = vcmp.le.f32.partialorder %v15918_v33, 0.7853982  ;;  %v1519_v12 = vsel %vm1515_vm0, %v1503_v49, %v1518_v23  ;;  %v1524_v44 = vsel %vm1514_vm15, %v1521_v48, %v1523_v57  ;;  %v1527_v42 = vsel %vm1515_vm0, %v1509_v20, %v1526_v62 }
 0x17f   : > { %v1149_v8 = vxor.u32 2147483648, %v1148_v60  ;;  %v1528_v58 = vsel %vm1514_vm15, %v1525_v1, %v1527_v42  ;;  %v12089_v34 = vmul.u32.u64.low %v1529_v15, %v1524_v44  ;;  %v12090_v33 = vmul.u32.u64.high %v1529_v15, %v1524_v44, %v12089_v34 }
 0x180   : > { %11307 = vsinq.f32 %v12014_v14  ;;  %v15921_v27 = vand.u32 2147483647, %v11626_v53  ;;  %v1452_v61 = vor.u32 %v1451_v39, %v1450_v41  ;;  %v1463_v20 = vsub.s32 4, %v11899_v7 }
 0x181   : > { %v12100_v49 = vmul.u32.u64.low %v1529_v15, %v1528_v58  ;;  %v12101_v10 = vmul.u32.u64.high %v1529_v15, %v1528_v58, %v12100_v49  ;;  %v12105_v35 = vsel %vm9728_vm12, 0, %v9727_v18  ;;  %v1520_v23 = vsel %vm1514_vm15, %v1517_v59, %v1519_v12 }
 0x182   : > { %vm12096_vm2 = vcmp.le.f32.partialorder %v15921_v27, 0.7853982  ;;  %v1797_v48 = vshrl.u32 %v1796_v11, 23  ;;  %v1257_v14 = vsel %vm12063_vm8, %v11621_v43, %v1254_v31  ;;  %v1152_v6 = vsel %vm1067_vm9, %v1151_v36, %v11839_v22 }
 0x183   : > { %v1457_v41 = vand.u32 2147483647, %v1456_v29  ;;  %v1651_v58 = vsub.s32 0, %v12083_v28  ;;  %v1150_v39 = vsel %vm1067_vm9, %v1149_v8, %v1148_v60  ;;  %v1539_v18 = vadd.s32 1, %v12090_v33 }
 0x184   : > { %v15633_v3 = vand.u32 2147483647, %v11653_v21  ;;  %v9745_v9 = vadd.s32 4294967169, %v1797_v48  ;;  %v1459_v11 = vcvt.s32.f32 %v1452_v61  ;;  %v1349_v57 = vsub.s32 4294967266, %v12105_v35 }
 0x185   : > { %v1536_v1 = vmul.u32 %v1529_v15, %v1520_v23  ;;  %vm1538_vm3 = vc.u32 %v12101_v10, %v12089_v34  ;;  %11309 = vcosq.f32 %v1257_v14  ;;  %v1464_v36 = vsel %vm1379_vm13, %v1463_v20, %v11899_v7 }
 0x186   : > { %v1540_v22 = vsel %vm1538_vm3, %v1539_v18, %v12090_v33  ;;  %v1803_v31 = vadd.s32 1, %v9745_v9  ;;  %v12129_v60 = vsel %vm12079_vm1, %v11623_v45, %v1150_v39  ;;  %v12131_v29 = vmul.f32 %v1459_v11, %v1457_v41  ;;  %v12145_v33 = vpop.f32.mrb[15].mxu0 }
 0x187   : > { %v9738_v15 = vmin.u32 %v1651_v58, %v12083_v28  ;;  %v1541_v62 = vadd.s32 %v1540_v22, %v1536_v1  ;;  %v12137_v59 = vsel %vm12063_vm8, 0, %v12031_v2  ;;  %11311 = vsinq.f32 %v1257_v14  ;;  %15926 = vst [vmem:[#allocation26_spill] sm:$0xff] %v12145_v33 }
 0x188   : > { %15924 = vst [vmem:[#allocation24_spill] sm:$0xff] %v12137_v59  ;;  %v12141_v7 = vsel %vm12079_vm1, 0, %v1152_v6  ;;  %vm1804_vm4 = vcmp.gt.s32.totalorder %v1803_v31, 0  ;;  %v1350_v12 = vadd.s32 127, %v1349_v57  ;;  %v1800_v42 = vand.u32 8388607, %v15633_v3 }
 0x189   : > { %15925 = vst [vmem:[#allocation25_spill] sm:$0xff] %v12141_v7  ;;  %v1542_v44 = vadd.s32 536870912, %v1541_v62  ;;  %v1805_v8 = vsel %vm1804_vm4, %v1803_v31, 0  ;;  %11313 = vcosq.f32 %v12129_v60  ;;  %v12150_v2 = vsel %vm12096_vm2, 0, %v1464_v36 }
 0x18a   : > { %15927 = vst [vmem:[#allocation27_spill] sm:$0xff] %v12150_v2  ;;  %v1329_v37 = vadd.s32 %v11923_v13, %v11933_v0  ;;  %v1807_v32 = vand.u32 31, %v1805_v8  ;;  %v12154_v27 = vpop.eup %11307  ;;  %v1461_v61 = vxor.u32 2147483648, %v12131_v29  ;;  %v1653_v49 = vclz %v9738_v15 }
 0x18b   : > { %v12157_v20 = vshrl.u32 %v1542_v44, 30  ;;  %v1345_v48 = vsub.s32 32, %v12105_v35  ;;  %v1346_v14 = vshll.u32 %v11993_v24, %v12105_v35  ;;  %v1692_v41 = vand.u32 2139095040, %v11719_v56 }
 0x18c   : > { %v1808_v6 = vsub.s32 32, %v1807_v32  ;;  %v1351_v58 = vshll.u32 %v1350_v12, 23  ;;  %v1801_v0 = vor.u32 8388608, %v1800_v42  ;;  %v1810_v39 = vshll.u32 %v15907_v50, %v1807_v32 }
 0x18d   : > { %v1544_v13 = vshll.u32 %v12157_v20, 30  ;;  %v1813_v9 = vshll.u32 %v15899_v46, %v1807_v32  ;;  %v9739_v1 = vadd.s32 4294967294, %v1653_v49  ;;  %v1806_v24 = vshrl.u32 %v1805_v8, 5 }
 0x18e   : > { %v1811_v18 = vshrl.u32 %v15899_v46, %v1808_v6  ;;  %v1814_v11 = vshrl.u32 %v15900_v51, %v1808_v6  ;;  %v1817_v57 = vshrl.u32 %v15901_v38, %v1808_v6  ;;  %v1816_v35 = vshll.u32 %v15900_v51, %v1807_v32 }
 0x18f   : > { %v12170_v36 = vsub.s32 %v1541_v62, %v1544_v13  ;;  %v12173_v22 = vpop.eup %11309  ;;  %v1347_v31 = vshrl.u32 %v1329_v37, %v1345_v48  ;;  %v1693_v44 = vshrl.u32 %v1692_v41, 23  ;;  %v1819_v23 = vshll.u32 %v15901_v38, %v1807_v32 }
 0x190   : > { %15928 = vst [vmem:[#allocation28_spill] sm:$0xff] %v12173_v22  ;;  %v1812_v15 = vor.u32 %v1811_v18, %v1810_v39  ;;  %v1815_v12 = vor.u32 %v1814_v11, %v1813_v9  ;;  %v1818_v3 = vor.u32 %v1817_v57, %v1816_v35  ;;  %v1820_v2 = vshrl.u32 %v15911_v17, %v1808_v6 }
 0x191   : > { %v1547_v42 = vsub.s32 0, %v12170_v36  ;;  %v12178_v59 = vpop.eup %11311  ;;  %v1352_v62 = vor.u32 4788187, %v1351_v58  ;;  %v1822_v8 = vshll.u32 %v15911_v17, %v1807_v32  ;;  %v1823_v49 = vshrl.u32 %v15912_v19, %v1808_v6 }
 0x192   : > { %15929 = vst [vmem:[#allocation29_spill] sm:$0xff] %v12178_v59  ;;  %v1841_v13 = vshll.u32 %v1801_v0, 8  ;;  %vm9740_vm5 = vcmp.lt.s32.totalorder %v9739_v1, 0  ;;  %v1821_v48 = vor.u32 %v1820_v2, %v1819_v23  ;;  %vm1825_vm7 = vcmp.lt.s32.totalorder %v1806_v24, 1 }
 0x193   : > { %v9734_v37 = vmin.u32 %v1547_v42, %v12170_v36  ;;  %v12183_v41 = vpop.eup %11313  ;;  %v1824_v39 = vor.u32 %v1823_v49, %v1822_v8  ;;  %vm1828_vm8 = vcmp.lt.s32.totalorder %v1806_v24, 4  ;;  %v1833_v18 = vsel %vm1825_vm7, %v1812_v15, %v1815_v12 }
 0x194   : > { %15930 = vst [vmem:[#allocation30_spill] sm:$0xff] %v12183_v41  ;;  %v9741_v9 = vadd.s32 4294967169, %v1693_v44  ;;  %v1809_v11 = vshrl.u32 %v15907_v50, %v1808_v6  ;;  %vm1827_vm9 = vcmp.lt.s32.totalorder %v1806_v24, 3  ;;  %v1830_v58 = vsel %vm1828_vm8, %v1818_v3, 2102212464 }
 0x195   : > { %v1834_v57 = vsel %vm1828_vm8, %v1821_v48, 920167782  ;;  %v1549_v32 = vclz %v9734_v37  ;;  %vm1826_vm10 = vcmp.lt.s32.totalorder %v1806_v24, 2  ;;  %v1837_v0 = vsel %vm1825_vm7, %v1815_v12, %v1818_v3 }
 0x196   : > { %v1835_v35 = vsel %vm1827_vm9, %v1818_v3, %v1834_v57  ;;  %v1348_v22 = vor.u32 %v1347_v31, %v1346_v14  ;;  %v1829_v59 = vsel %vm1825_vm7, %v1809_v11, %v1812_v15  ;;  %v1838_v23 = vsel %vm1828_vm8, %v1824_v39, 1326507024 }
 0x197   : > { %v1836_v2 = vsel %vm1826_vm10, %v1833_v18, %v1835_v35  ;;  %v1831_v42 = vsel %vm1827_vm9, %v1815_v12, %v1830_v58  ;;  %v1839_v43 = vsel %vm1827_vm9, %v1821_v48, %v1838_v23  ;;  %v1462_v6 = vsel %vm1379_vm13, %v1461_v61, %v12131_v29 }
 0x198   : > { %v12187_v8 = vmul.u32.u64.low %v1841_v13, %v1836_v2  ;;  %v12188_v49 = vmul.u32.u64.high %v1841_v13, %v1836_v2, %v12187_v8  ;;  %v12195_v44 = vsel %vm9740_vm5, 0, %v9739_v1  ;;  %v1840_v3 = vsel %vm1826_vm10, %v1837_v0, %v1839_v43 }
 0x199   : > { %v1699_v14 = vadd.s32 1, %v9741_v9  ;;  %v1353_v31 = vand.u32 2147483647, %v1352_v62  ;;  %v9735_v15 = vadd.s32 4294967294, %v1549_v32  ;;  %11315 = vsinq.f32 %v12129_v60  ;;  %v12207_v9 = vpop.f32.mrb[16].mxu0 }
 0x19a   : > { %v12198_v37 = vmul.u32.u64.low %v1841_v13, %v1840_v3  ;;  %v12199_v39 = vmul.u32.u64.high %v1841_v13, %v1840_v3, %v12198_v37  ;;  %v1355_v12 = vcvt.s32.f32 %v1348_v22  ;;  %v1832_v48 = vsel %vm1826_vm10, %v1829_v59, %v1831_v42  ;;  %15932 = vst [vmem:[#allocation31_spill] sm:$0xff] %v12207_v9 }
 0x19b   : > { %vm1700_vm11 = vcmp.gt.s32.totalorder %v1699_v14, 0  ;;  %v1661_v18 = vsub.s32 4294967266, %v12195_v44  ;;  %v1851_v29 = vadd.s32 1, %v12188_v49  ;;  %v15931_v61 = vand.u32 2147483647, %v11719_v56 }
 0x19c   : > { %v1701_v43 = vsel %vm1700_vm11, %v1699_v14, 0  ;;  %v12212_v62 = vsel %vm12096_vm2, %v11626_v53, %v1462_v6  ;;  %v1641_v59 = vadd.s32 %v12002_v55, %v12017_v4  ;;  %v12217_v22 = vmul.f32 %v1355_v12, %v1353_v31 }
 0x19d   : > { %v1696_v1 = vand.u32 8388607, %v15931_v61  ;;  %v1703_v24 = vand.u32 31, %v1701_v43  ;;  %vm9736_vm12 = vcmp.lt.s32.totalorder %v9735_v15, 0  ;;  %v1848_v11 = vmul.u32 %v1841_v13, %v1832_v48 }
 0x19e   : > { %vm1850_vm13 = vc.u32 %v12199_v39, %v12187_v8  ;;  %v1657_v58 = vsub.s32 32, %v12195_v44  ;;  %v1537_v16 = vadd.s32 %v12089_v34, %v12101_v10  ;;  %v1658_v35 = vshll.u32 %v12083_v28, %v12195_v44 }
 0x19f   : > { %v1852_v57 = vsel %vm1850_vm13, %v1851_v29, %v12188_v49  ;;  %v1704_v32 = vsub.s32 32, %v1703_v24  ;;  %v1662_v55 = vadd.s32 127, %v1661_v18  ;;  %v1697_v0 = vor.u32 8388608, %v1696_v1 }
 0x1a0   : > { %v1853_v4 = vadd.s32 %v1852_v57, %v1848_v11  ;;  %v12227_v2 = vsel %vm9736_vm12, 0, %v9735_v15  ;;  %v1702_v13 = vshrl.u32 %v1701_v43, 5  ;;  %v1706_v23 = vshll.u32 %v15907_v50, %v1703_v24 }
 0x1a1   : > { %v1707_v42 = vshrl.u32 %v15899_v46, %v1704_v32  ;;  %v1709_v3 = vshll.u32 %v15899_v46, %v1703_v24  ;;  %v1710_v34 = vshrl.u32 %v15900_v51, %v1704_v32  ;;  %v1713_v10 = vshrl.u32 %v15901_v38, %v1704_v32 }
 0x1a2   : > { %v1854_v6 = vadd.s32 536870912, %v1853_v4  ;;  %v1712_v28 = vshll.u32 %v15900_v51, %v1703_v24  ;;  %v1715_v44 = vshll.u32 %v15901_v38, %v1703_v24  ;;  %v1716_v14 = vshrl.u32 %v15911_v17, %v1704_v32 }
 0x1a3   : > { %v1708_v49 = vor.u32 %v1707_v42, %v1706_v23  ;;  %v1711_v15 = vor.u32 %v1710_v34, %v1709_v3  ;;  %v1719_v37 = vshrl.u32 %v15912_v19, %v1704_v32  ;;  %v2004_v12 = vand.u32 2139095040, %v11768_v26  ;;  %v12241_v48 = vpop.eup %11315 }
 0x1a4   : > { %v12237_v31 = vshrl.u32 %v1854_v6, 30  ;;  %15933 = vst [vmem:[#allocation32_spill] sm:$0xff] %v12241_v48  ;;  %v1659_v18 = vshrl.u32 %v1641_v59, %v1657_v58  ;;  %v1714_v29 = vor.u32 %v1713_v10, %v1712_v28  ;;  %v1717_v61 = vor.u32 %v1716_v14, %v1715_v44 }
 0x1a5   : > { %v1718_v1 = vshll.u32 %v15911_v17, %v1703_v24  ;;  %v1663_v43 = vshll.u32 %v1662_v55, 23  ;;  %v1557_v11 = vsub.s32 4294967266, %v12227_v2  ;;  %vm1721_vm15 = vcmp.lt.s32.totalorder %v1702_v13, 1 }
 0x1a6   : > { %v1856_v57 = vshll.u32 %v12237_v31, 30  ;;  %v1553_v23 = vsub.s32 32, %v12227_v2  ;;  %vm1724_vm0 = vcmp.lt.s32.totalorder %v1702_v13, 4  ;;  %v1729_v6 = vsel %vm1721_vm15, %v1708_v49, %v1711_v15 }
 0x1a7   : > { %v1720_v42 = vor.u32 %v1719_v37, %v1718_v1  ;;  %vm1723_vm1 = vcmp.lt.s32.totalorder %v1702_v13, 3  ;;  %v1730_v59 = vsel %vm1724_vm0, %v1717_v61, 920167782  ;;  %v2005_v58 = vshrl.u32 %v2004_v12, 23 }
 0x1a8   : > { %v12248_v3 = vsub.s32 %v1853_v4, %v1856_v57  ;;  %v1705_v24 = vshrl.u32 %v15907_v50, %v1704_v32  ;;  %vm1722_vm2 = vcmp.lt.s32.totalorder %v1702_v13, 2  ;;  %v1726_v55 = vsel %vm1724_vm0, %v1714_v29, 2102212464 }
 0x1a9   : > { %v1731_v34 = vsel %vm1723_vm1, %v1714_v29, %v1730_v59  ;;  %v1558_v10 = vadd.s32 127, %v1557_v11  ;;  %v1737_v14 = vshll.u32 %v1697_v0, 8  ;;  %vm1275_vm3 = vcmp.lt.s32.totalorder %v11628_v54, 0 }
 0x1aa   : > { %v1859_v28 = vsub.s32 0, %v12248_v3  ;;  %v1732_v44 = vsel %vm1722_vm2, %v1729_v6, %v1731_v34  ;;  %vm1587_vm4 = vcmp.lt.s32.totalorder %v11636_v63, 0  ;;  %v1664_v4 = vor.u32 4788187, %v1663_v43 }
 0x1ab   : > { %v1725_v37 = vsel %vm1721_vm15, %v1705_v24, %v1708_v49  ;;  %v1733_v32 = vsel %vm1721_vm15, %v1711_v15, %v1714_v29  ;;  %v1734_v12 = vsel %vm1724_vm0, %v1720_v42, 1326507024  ;;  %v1727_v11 = vsel %vm1723_vm1, %v1711_v15, %v1726_v55 }
 0x1ac   : > { %v9746_v1 = vmin.u32 %v1859_v28, %v12248_v3  ;;  %v1735_v57 = vsel %vm1723_vm1, %v1717_v61, %v1734_v12  ;;  %v9753_v59 = vadd.s32 4294967169, %v2005_v58  ;;  %v1555_v6 = vshrl.u32 %v1537_v16, %v1553_v23 }
 0x1ad   : > { %v1736_v0 = vsel %vm1722_vm2, %v1733_v32, %v1735_v57  ;;  %v12265_v34 = vmul.u32.u64.low %v1737_v14, %v1732_v44  ;;  %v12266_v60 = vmul.u32.u64.high %v1737_v14, %v1732_v44, %v12265_v34  ;;  %v1559_v43 = vshll.u32 %v1558_v10, 23 }
 0x1ae   : > { %v12269_v49 = vmul.u32.u64.low %v1737_v14, %v1736_v0  ;;  %v12270_v24 = vmul.u32.u64.high %v1737_v14, %v1736_v0, %v12269_v49  ;;  %v2011_v29 = vadd.s32 1, %v9753_v59  ;;  %11317 = vcosq.f32 %v12212_v62  ;;  %v12302_v59 = vpop.f32.mrb[17].mxu0 }
 0x1af   : > { %v1660_v42 = vor.u32 %v1659_v18, %v1658_v35  ;;  %v1861_v28 = vclz %v9746_v1  ;;  %v1728_v15 = vsel %vm1722_vm2, %v1725_v37, %v1727_v11  ;;  %v1357_v61 = vxor.u32 2147483648, %v12217_v22  ;;  %15938 = vst [vmem:[#allocation33_spill] sm:$0xff] %v12302_v59 }
 0x1b0   : > { %v1671_v16 = vsub.s32 4, %v12051_v30  ;;  %v1554_v23 = vshll.u32 %v12170_v36, %v12227_v2  ;;  %vm2012_vm5 = vcmp.gt.s32.totalorder %v2011_v29, 0  ;;  %v1665_v58 = vand.u32 2147483647, %v1664_v4 }
 0x1b1   : > { %v1747_v55 = vadd.s32 1, %v12266_v60  ;;  %v15640_v10 = vand.u32 2147483647, %v11768_v26  ;;  %v2013_v44 = vsel %vm2012_vm5, %v2011_v29, 0  ;;  %v1560_v12 = vor.u32 4788187, %v1559_v43 }
 0x1b2   : > { %v1556_v32 = vor.u32 %v1555_v6, %v1554_v23  ;;  %v1744_v35 = vmul.u32 %v1737_v14, %v1728_v15  ;;  %vm1746_vm7 = vc.u32 %v12270_v24, %v12265_v34  ;;  %v15934_v13 = vand.u32 2147483647, %v11628_v54 }
 0x1b3   : > { %v1667_v36 = vcvt.s32.f32 %v1660_v42  ;;  %v9747_v2 = vadd.s32 4294967294, %v1861_v28  ;;  %v1748_v4 = vsel %vm1746_vm7, %v1747_v55, %v12266_v60  ;;  %v2015_v37 = vand.u32 31, %v2013_v44 }
 0x1b4   : > { %vm12284_vm8 = vcmp.le.f32.partialorder %v15934_v13, 0.7853982  ;;  %11319 = vsinq.f32 %v12212_v62  ;;  %v15937_v1 = vsub.s32 4, %v11982_v47  ;;  %v12300_v11 = vsel %vm1587_vm4, %v1671_v16, %v12051_v30 }
 0x1b5   : > { %v1749_v57 = vadd.s32 %v1748_v4, %v1744_v35  ;;  %v1358_v60 = vsel %vm1275_vm3, %v1357_v61, %v12217_v22  ;;  %v1668_v62 = vmul.f32 %v1667_v36, %v1665_v58  ;;  %v2016_v6 = vsub.s32 32, %v2015_v37 }
 0x1b6   : > { %v12295_v14 = vsel %vm1275_vm3, %v15937_v1, %v11982_v47  ;;  %v1900_v0 = vand.u32 2139095040, %v11811_v25  ;;  %v1561_v43 = vand.u32 2147483647, %v1560_v12  ;;  %v1563_v49 = vcvt.s32.f32 %v1556_v32 }
 0x1b7   : > { %v1750_v47 = vadd.s32 536870912, %v1749_v57  ;;  %v2008_v29 = vand.u32 8388607, %v15640_v10  ;;  %vm9748_vm9 = vcmp.lt.s32.totalorder %v9747_v2, 0  ;;  %v2019_v30 = vshrl.u32 %v15899_v46, %v2016_v6 }
 0x1b8   : > { %v2022_v42 = vshrl.u32 %v15900_v51, %v2016_v6  ;;  %v2025_v28 = vshrl.u32 %v15901_v38, %v2016_v6  ;;  %v2018_v22 = vshll.u32 %v15907_v50, %v2015_v37  ;;  %v2021_v61 = vshll.u32 %v15899_v46, %v2015_v37  ;;  %v12318_v23 = vpop.eup %11317 }
 0x1b9   : > { %v12313_v15 = vshrl.u32 %v1750_v47, 30  ;;  %v2028_v16 = vshrl.u32 %v15911_v17, %v2016_v6  ;;  %15939 = vst [vmem:[#allocation34_spill] sm:$0xff] %v12318_v23  ;;  %v2014_v58 = vshrl.u32 %v2013_v44, 5  ;;  %v2024_v55 = vshll.u32 %v15900_v51, %v2015_v37 }
 0x1ba   : > { %v2027_v32 = vshll.u32 %v15901_v38, %v2015_v37  ;;  %v1901_v12 = vshrl.u32 %v1900_v0, 23  ;;  %v12322_v35 = vsel %vm9748_vm9, 0, %v9747_v2  ;;  %v2020_v36 = vor.u32 %v2019_v30, %v2018_v22 }
 0x1bb   : > { %v1752_v13 = vshll.u32 %v12313_v15, 30  ;;  %v2023_v4 = vor.u32 %v2022_v42, %v2021_v61  ;;  %v2026_v1 = vor.u32 %v2025_v28, %v2024_v55  ;;  %v2030_v10 = vshll.u32 %v15911_v17, %v2015_v37 }
 0x1bc   : > { %v2029_v47 = vor.u32 %v2028_v16, %v2027_v32  ;;  %v2031_v53 = vshrl.u32 %v15912_v19, %v2016_v6  ;;  %v1361_v44 = vsel %vm12284_vm8, %v11628_v54, %v1358_v60  ;;  %v1669_v23 = vxor.u32 2147483648, %v1668_v62 }
 0x1bd   : > { %v1567_v7 = vsub.s32 4, %v12157_v20  ;;  %v12331_v0 = vsub.s32 %v1749_v57, %v1752_v13  ;;  %v15940_v2 = vand.u32 2147483647, %v11636_v63  ;;  %v1564_v42 = vmul.f32 %v1563_v49, %v1561_v43 }
 0x1be   : > { %v2009_v28 = vor.u32 8388608, %v2008_v29  ;;  %v2032_v37 = vor.u32 %v2031_v53, %v2030_v10  ;;  %vm2033_vm11 = vcmp.lt.s32.totalorder %v2014_v58, 1  ;;  %v12339_v22 = vpop.eup %11319  ;;  %vm1483_vm12 = vcmp.lt.s32.totalorder %v11641_v5, 0 }
 0x1bf   : > { %vm12335_vm10 = vcmp.le.f32.partialorder %v15940_v2, 0.7853982  ;;  %15943 = vst [vmem:[#allocation35_spill] sm:$0xff] %v12339_v22  ;;  %v1869_v60 = vsub.s32 4294967266, %v12322_v35  ;;  %vm2036_vm13 = vcmp.lt.s32.totalorder %v2014_v58, 4  ;;  %v2041_v57 = vsel %vm2033_vm11, %v2020_v36, %v2023_v4 }
 0x1c0   : > { %v9749_v61 = vadd.s32 4294967169, %v1901_v12  ;;  %vm2035_vm15 = vcmp.lt.s32.totalorder %v2014_v58, 3  ;;  %v2042_v16 = vsel %vm2036_vm13, %v2029_v47, 920167782  ;;  %v2045_v55 = vsel %vm2033_vm11, %v2023_v4, %v2026_v1 }
 0x1c1   : > { %v2046_v32 = vsel %vm2036_vm13, %v2032_v37, 1326507024  ;;  %v1755_v43 = vsub.s32 0, %v12331_v0  ;;  %vm2034_vm0 = vcmp.lt.s32.totalorder %v2014_v58, 2  ;;  %v2038_v53 = vsel %vm2036_vm13, %v2026_v1, 2102212464 }
 0x1c2   : > { %v2043_v10 = vsel %vm2035_vm15, %v2026_v1, %v2042_v16  ;;  %v2017_v49 = vshrl.u32 %v15907_v50, %v2016_v6  ;;  %v2047_v13 = vsel %vm2035_vm15, %v2029_v47, %v2046_v32  ;;  %v2049_v2 = vshll.u32 %v2009_v28, 8 }
 0x1c3   : > { %v2044_v29 = vsel %vm2034_vm0, %v2041_v57, %v2043_v10  ;;  %v1670_v12 = vsel %vm1587_vm4, %v1669_v23, %v1668_v62  ;;  %v2048_v22 = vsel %vm2034_vm0, %v2045_v55, %v2047_v13  ;;  %v15651_v37 = vand.u32 2147483647, %v11811_v25 }
 0x1c4   : > { %v1907_v54 = vadd.s32 1, %v9749_v61  ;;  %v2037_v41 = vsel %vm2033_vm11, %v2017_v49, %v2020_v36  ;;  %v2039_v45 = vsel %vm2035_vm15, %v2023_v4, %v2038_v53  ;;  %v1870_v6 = vadd.s32 127, %v1869_v60 }
 0x1c5   : > { %v12356_v1 = vmul.u32.u64.low %v2049_v2, %v2048_v22  ;;  %v12357_v16 = vmul.u32.u64.high %v2049_v2, %v2048_v22, %v12356_v1  ;;  %v9742_v57 = vmin.u32 %v1755_v43, %v12331_v0  ;;  %v12367_v62 = vsel %vm12284_vm8, 0, %v12295_v14 }
 0x1c6   : > { %v12360_v47 = vmul.u32.u64.low %v2049_v2, %v2044_v29  ;;  %v12361_v28 = vmul.u32.u64.high %v2049_v2, %v2044_v29, %v12360_v47  ;;  %15944 = vst [vmem:[#allocation36_spill] sm:$0xff] %v12367_v62  ;;  %11321 = vcosq.f32 %v1361_v44  ;;  %v1565_v23 = vxor.u32 2147483648, %v1564_v42 }
 0x1c7   : > { %vm1908_vm1 = vcmp.gt.s32.totalorder %v1907_v54, 0  ;;  %11323 = vsinq.f32 %v1361_v44  ;;  %v12372_v36 = vsel %vm12335_vm10, 0, %v12300_v11  ;;  %v2040_v4 = vsel %vm2034_vm0, %v2037_v41, %v2039_v45  ;;  %v12388_v11 = vpop.f32.mrb[18].mxu0 }
 0x1c8   : > { %15945 = vst [vmem:[#allocation37_spill] sm:$0xff] %v12372_v36  ;;  %v1909_v22 = vsel %vm1908_vm1, %v1907_v54, 0  ;;  %v12378_v60 = vsel %vm12335_vm10, %v11636_v63, %v1670_v12  ;;  %v12383_v18 = vsel %vm1483_vm12, %v1567_v7, %v12157_v20  ;;  %v1865_v14 = vsub.s32 32, %v12322_v35  ;;  %15946 = vst [vmem:[#allocation38_spill] sm:$0xff] %v12388_v11 }
 0x1c9   : > { %vm2058_vm2 = vc.u32 %v12357_v16, %v12360_v47  ;;  %v1871_v58 = vshll.u32 %v1870_v6, 23  ;;  %v1757_v45 = vclz %v9742_v57  ;;  %v2059_v54 = vadd.s32 1, %v12361_v28 }
 0x1ca   : > { %v1904_v41 = vand.u32 8388607, %v15651_v37  ;;  %v12395_v44 = vsel %vm1483_vm12, %v1565_v23, %v1564_v42  ;;  %v1849_v7 = vadd.s32 %v12187_v8, %v12199_v39  ;;  %v2056_v20 = vmul.u32 %v2049_v2, %v2040_v4 }
 0x1cb   : > { %v1911_v30 = vand.u32 31, %v1909_v22  ;;  %v1866_v61 = vshll.u32 %v12248_v3, %v12322_v35  ;;  %v2060_v55 = vsel %vm2058_vm2, %v2059_v54, %v12361_v28  ;;  %v15652_v32 = vand.u32 2147483647, %v11874_v40 }
 0x1cc   : > { %v2212_v43 = vand.u32 2139095040, %v11874_v40  ;;  %v1867_v53 = vshrl.u32 %v1849_v7, %v1865_v14  ;;  %v2061_v10 = vadd.s32 %v2060_v55, %v2056_v20  ;;  %v1910_v49 = vshrl.u32 %v1909_v22, 5 }
 0x1cd   : > { %v1912_v29 = vsub.s32 32, %v1911_v30  ;;  %v12404_v42 = vor.u32 4788187, %v1871_v58  ;;  %v9743_v13 = vadd.s32 4294967294, %v1757_v45  ;;  %v1905_v12 = vor.u32 8388608, %v1904_v41 }
 0x1ce   : > { %v1914_v8 = vshll.u32 %v15907_v50, %v1911_v30  ;;  %v2062_v39 = vadd.s32 536870912, %v2061_v10  ;;  %v1917_v3 = vshll.u32 %v15899_v46, %v1911_v30  ;;  %v1920_v1 = vshll.u32 %v15900_v51, %v1911_v30 }
 0x1cf   : > { %v1915_v2 = vshrl.u32 %v15899_v46, %v1912_v29  ;;  %v1918_v35 = vshrl.u32 %v15900_v51, %v1912_v29  ;;  %v1921_v6 = vshrl.u32 %v15901_v38, %v1912_v29  ;;  %v1923_v57 = vshll.u32 %v15901_v38, %v1911_v30 }
 0x1d0   : > { %v1924_v28 = vshrl.u32 %v15911_v17, %v1912_v29  ;;  %v12414_v23 = vpop.eup %11321  ;;  %v12416_v4 = vshrl.u32 %v2062_v39, 30  ;;  %vm1929_vm3 = vcmp.lt.s32.totalorder %v1910_v49, 1  ;;  %v1926_v41 = vshll.u32 %v15911_v17, %v1911_v30 }
 0x1d1   : > { %15947 = vst [vmem:[#allocation39_spill] sm:$0xff] %v12414_v23  ;;  %v1916_v22 = vor.u32 %v1915_v2, %v1914_v8  ;;  %v1919_v14 = vor.u32 %v1918_v35, %v1917_v3  ;;  %v12418_v58 = vpop.eup %11323  ;;  %v1922_v45 = vor.u32 %v1921_v6, %v1920_v1  ;;  %v1927_v7 = vshrl.u32 %v15912_v19, %v1912_v29 }
 0x1d2   : > { %15948 = vst [vmem:[#allocation40_spill] sm:$0xff] %v12418_v58  ;;  %v1925_v54 = vor.u32 %v1924_v28, %v1923_v57  ;;  %v15949_v20 = vand.u32 2147483647, %v11641_v5  ;;  %v2064_v39 = vshll.u32 %v12416_v4, 30  ;;  %vm1932_vm5 = vcmp.lt.s32.totalorder %v1910_v49, 4 }
 0x1d3   : > { %v1937_v8 = vsel %vm1929_vm3, %v1916_v22, %v1919_v14  ;;  %v2213_v2 = vshrl.u32 %v2212_v43, 23  ;;  %v1928_v3 = vor.u32 %v1927_v7, %v1926_v41  ;;  %vm1930_vm7 = vcmp.lt.s32.totalorder %v1910_v49, 2 }
 0x1d4   : > { %vm12424_vm4 = vcmp.le.f32.partialorder %v15949_v20, 0.7853982  ;;  %vm1931_vm8 = vcmp.lt.s32.totalorder %v1910_v49, 3  ;;  %v1938_v35 = vsel %vm1932_vm5, %v1925_v54, 920167782  ;;  %v12431_v30 = vsub.s32 %v2061_v10, %v2064_v39 }
 0x1d5   : > { %v1913_v1 = vshrl.u32 %v15907_v50, %v1912_v29  ;;  %v1934_v6 = vsel %vm1932_vm5, %v1922_v45, 2102212464  ;;  %v1939_v57 = vsel %vm1931_vm8, %v1922_v45, %v1938_v35  ;;  %v1868_v28 = vor.u32 %v1867_v53, %v1866_v61 }
 0x1d6   : > { %vm9744_vm9 = vcmp.lt.s32.totalorder %v9743_v13, 0  ;;  %v1940_v20 = vsel %vm1930_vm7, %v1937_v8, %v1939_v57  ;;  %v1945_v37 = vshll.u32 %v1905_v12, 8  ;;  %vm1795_vm10 = vcmp.lt.s32.totalorder %v11653_v21, 0 }
 0x1d7   : > { %v2067_v43 = vsub.s32 0, %v12431_v30  ;;  %v1933_v41 = vsel %vm1929_vm3, %v1913_v1, %v1916_v22  ;;  %v1941_v10 = vsel %vm1929_vm3, %v1919_v14, %v1922_v45  ;;  %v1942_v7 = vsel %vm1932_vm5, %v1928_v3, 1326507024 }
 0x1d8   : > { %v1935_v29 = vsel %vm1931_vm8, %v1919_v14, %v1934_v6  ;;  %v1943_v39 = vsel %vm1931_vm8, %v1925_v54, %v1942_v7  ;;  %v12444_v35 = vmul.u32.u64.low %v1945_v37, %v1940_v20  ;;  %v12445_v61 = vmul.u32.u64.high %v1945_v37, %v1940_v20, %v12444_v35 }
 0x1d9   : > { %v1873_v53 = vand.u32 2147483647, %v12404_v42  ;;  %v9754_v12 = vmin.u32 %v2067_v43, %v12431_v30  ;;  %v1944_v8 = vsel %vm1930_vm7, %v1941_v10, %v1943_v39  ;;  %v9761_v57 = vadd.s32 4294967169, %v2213_v2 }
 0x1da   : > { %11325 = vcosq.f32 %v12378_v60  ;;  %v1875_v22 = vcvt.s32.f32 %v1868_v28  ;;  %v12452_v45 = vmul.u32.u64.low %v1945_v37, %v1944_v8  ;;  %v12453_v3 = vmul.u32.u64.high %v1945_v37, %v1944_v8, %v12452_v45 }
 0x1db   : > { %v12456_v14 = vsel %vm9744_vm9, 0, %v9743_v13  ;;  %v2069_v54 = vclz %v9754_v12  ;;  %v1936_v1 = vsel %vm1930_vm7, %v1933_v41, %v1935_v29  ;;  %v2219_v6 = vadd.s32 1, %v9761_v57 }
 0x1dc   : > { %11327 = vsinq.f32 %v12378_v60  ;;  %v12464_v42 = vsel %vm12424_vm4, %v11641_v5, %v12395_v44  ;;  %v1879_v2 = vsub.s32 4, %v12237_v31  ;;  %v1955_v28 = vadd.s32 1, %v12445_v61  ;;  %v12475_v44 = vpop.f32.mrb[19].mxu0 }
 0x1dd   : > { %v12468_v20 = vmul.f32 %v1875_v22, %v1873_v53  ;;  %v9755_v13 = vadd.s32 4294967294, %v2069_v54  ;;  %v2216_v49 = vand.u32 8388607, %v15652_v32  ;;  %vm2220_vm11 = vcmp.gt.s32.totalorder %v2219_v6, 0  ;;  %15952 = vst [vmem:[#allocation41_spill] sm:$0xff] %v12475_v44 }
 0x1de   : > { %v1765_v43 = vsub.s32 4294967266, %v12456_v14  ;;  %v1952_v60 = vmul.u32 %v1945_v37, %v1936_v1  ;;  %vm1954_vm12 = vc.u32 %v12453_v3, %v12444_v35  ;;  %v2221_v41 = vsel %vm2220_vm11, %v2219_v6, 0 }
 0x1df   : > { %vm9756_vm13 = vcmp.lt.s32.totalorder %v9755_v13, 0  ;;  %v1956_v10 = vsel %vm1954_vm12, %v1955_v28, %v12445_v61  ;;  %v2223_v7 = vand.u32 31, %v2221_v41  ;;  %v2108_v29 = vand.u32 2139095040, %v11955_v52 }
 0x1e0   : > { %v12482_v39 = vsel %vm12424_vm4, 0, %v12383_v18  ;;  %11329 = vcosq.f32 %v12464_v42  ;;  %v12488_v37 = vsel %vm1795_vm10, %v1879_v2, %v12237_v31  ;;  %v1957_v53 = vadd.s32 %v1956_v10, %v1952_v60 }
 0x1e1   : > { %15953 = vst [vmem:[#allocation42_spill] sm:$0xff] %v12482_v39  ;;  %v1745_v12 = vadd.s32 %v12265_v34, %v12270_v24  ;;  %v12493_v8 = vsel %vm9756_vm13, 0, %v9755_v13  ;;  %v2224_v57 = vsub.s32 32, %v2223_v7  ;;  %v1877_v55 = vxor.u32 2147483648, %v12468_v20 }
 0x1e2   : > { %v1761_v18 = vsub.s32 32, %v12456_v14  ;;  %v12499_v22 = vadd.s32 %v12360_v47, %v12357_v16  ;;  %v1958_v45 = vadd.s32 536870912, %v1957_v53  ;;  %v1766_v31 = vadd.s32 127, %v1765_v43 }
 0x1e3   : > { %v2217_v54 = vor.u32 8388608, %v2216_v49  ;;  %v2227_v1 = vshrl.u32 %v15899_v46, %v2224_v57  ;;  %v2109_v6 = vshrl.u32 %v2108_v29, 23  ;;  %v2077_v24 = vsub.s32 4294967266, %v12493_v8 }
 0x1e4   : > { %v12502_v34 = vpop.eup %11325  ;;  %v12505_v2 = vshrl.u32 %v1958_v45, 30  ;;  %v2230_v28 = vshrl.u32 %v15900_v51, %v2224_v57  ;;  %v2233_v13 = vshrl.u32 %v15901_v38, %v2224_v57  ;;  %v2226_v60 = vshll.u32 %v15907_v50, %v2223_v7 }
 0x1e5   : > { %15954 = vst [vmem:[#allocation43_spill] sm:$0xff] %v12502_v34  ;;  %v2229_v16 = vshll.u32 %v15899_v46, %v2223_v7  ;;  %v2235_v47 = vshll.u32 %v15901_v38, %v2223_v7  ;;  %v2236_v49 = vshrl.u32 %v15911_v17, %v2224_v57  ;;  %v1762_v10 = vshll.u32 %v12331_v0, %v12456_v14 }
 0x1e6   : > { %v12513_v43 = vpop.eup %11327  ;;  %v1960_v29 = vshll.u32 %v12505_v2, 30  ;;  %v2222_v45 = vshrl.u32 %v2221_v41, 5  ;;  %v2232_v32 = vshll.u32 %v15900_v51, %v2223_v7  ;;  %v1763_v61 = vshrl.u32 %v1745_v12, %v1761_v18 }
 0x1e7   : > { %15955 = vst [vmem:[#allocation44_spill] sm:$0xff] %v12513_v43  ;;  %v2228_v36 = vor.u32 %v2227_v1, %v2226_v60  ;;  %v2231_v34 = vor.u32 %v2230_v28, %v2229_v16  ;;  %v2237_v63 = vor.u32 %v2236_v49, %v2235_v47  ;;  %v2238_v62 = vshll.u32 %v15911_v17, %v2223_v7 }
 0x1e8   : > { %v12519_v39 = vsub.s32 %v1957_v53, %v1960_v29  ;;  %v2234_v5 = vor.u32 %v2233_v13, %v2232_v32  ;;  %v2239_v23 = vshrl.u32 %v15912_v19, %v2224_v57  ;;  %v1767_v43 = vshll.u32 %v1766_v31, 23 }
 0x1e9   : > { %v2078_v58 = vadd.s32 127, %v2077_v24  ;;  %v2257_v48 = vshll.u32 %v2217_v54, 8  ;;  %v9757_v0 = vadd.s32 4294967169, %v2109_v6  ;;  %v15956_v41 = vand.u32 2147483647, %v11653_v21 }
 0x1ea   : > { %v12523_v14 = vpop.eup %11329  ;;  %v2225_v53 = vshrl.u32 %v15907_v50, %v2224_v57  ;;  %v2240_v18 = vor.u32 %v2239_v23, %v2238_v62  ;;  %vm2241_vm0 = vcmp.lt.s32.totalorder %v2222_v45, 1  ;;  %vm2244_vm1 = vcmp.lt.s32.totalorder %v2222_v45, 4 }
 0x1eb   : > { %vm12527_vm15 = vcmp.le.f32.partialorder %v15956_v41, 0.7853982  ;;  %vm1691_vm2 = vcmp.lt.s32.totalorder %v11719_v56, 0  ;;  %v1963_v32 = vsub.s32 0, %v12519_v39  ;;  %vm2243_vm3 = vcmp.lt.s32.totalorder %v2222_v45, 3 }
 0x1ec   : > { %v2249_v7 = vsel %vm2241_vm0, %v2228_v36, %v2231_v34  ;;  %v2250_v31 = vsel %vm2244_vm1, %v2237_v63, 920167782  ;;  %vm2242_vm4 = vcmp.lt.s32.totalorder %v2222_v45, 2  ;;  %v2246_v54 = vsel %vm2244_vm1, %v2234_v5, 2102212464 }
 0x1ed   : > { %v2251_v1 = vsel %vm2243_vm3, %v2234_v5, %v2250_v31  ;;  %v2253_v6 = vsel %vm2241_vm0, %v2231_v34, %v2234_v5  ;;  %v2073_v24 = vsub.s32 32, %v12493_v8  ;;  %v2079_v28 = vshll.u32 %v2078_v58, 23 }
 0x1ee   : > { %v2252_v13 = vsel %vm2242_vm4, %v2249_v7, %v2251_v1  ;;  %v2254_v57 = vsel %vm2244_vm1, %v2240_v18, 1326507024  ;;  %v2245_v62 = vsel %vm2241_vm0, %v2225_v53, %v2228_v36  ;;  %v9750_v47 = vmin.u32 %v1963_v32, %v12519_v39 }
 0x1ef   : > { %v2255_v23 = vsel %vm2243_vm3, %v2237_v63, %v2254_v57  ;;  %v12536_v60 = vmul.u32.u64.low %v2257_v48, %v2252_v13  ;;  %v12537_v16 = vmul.u32.u64.high %v2257_v48, %v2252_v13, %v12536_v60  ;;  %v2247_v49 = vsel %vm2243_vm3, %v2231_v34, %v2246_v54 }
 0x1f0   : > { %v2256_v29 = vsel %vm2242_vm4, %v2253_v6, %v2255_v23  ;;  %v2115_v41 = vadd.s32 1, %v9757_v0  ;;  %v1878_v5 = vsel %vm1795_vm10, %v1877_v55, %v12468_v20  ;;  %v1764_v58 = vor.u32 %v1763_v61, %v1762_v10 }
 0x1f1   : > { %v12545_v31 = vmul.u32.u64.low %v2257_v48, %v2256_v29  ;;  %v12546_v7 = vmul.u32.u64.high %v2257_v48, %v2256_v29, %v12545_v31  ;;  %v1768_v36 = vor.u32 4788187, %v1767_v43  ;;  %v2075_v63 = vshrl.u32 %v12499_v22, %v2073_v24 }
 0x1f2   : > { %v15667_v53 = vand.u32 2147483647, %v11955_v52  ;;  %vm2116_vm5 = vcmp.gt.s32.totalorder %v2115_v41, 0  ;;  %v2080_v18 = vor.u32 4788187, %v2079_v28  ;;  %v2248_v34 = vsel %vm2242_vm4, %v2245_v62, %v2247_v49 }
 0x1f3   : > { %v2267_v32 = vadd.s32 1, %v12537_v16  ;;  %v2117_v0 = vsel %vm2116_vm5, %v2115_v41, 0  ;;  %11331 = vsinq.f32 %v12464_v42  ;;  %v12556_v20 = vsel %vm12527_vm15, 0, %v12488_v37 }
 0x1f4   : > { %15959 = vst [vmem:[#allocation45_spill] sm:$0xff] %v12556_v20  ;;  %v1965_v61 = vclz %v9750_v47  ;;  %v2119_v55 = vand.u32 31, %v2117_v0  ;;  %v12561_v22 = vsel %vm12527_vm15, %v11653_v21, %v1878_v5  ;;  %v1771_v43 = vcvt.s32.f32 %v1764_v58 }
 0x1f5   : > { %v15960_v10 = vsub.s32 4, %v12313_v15  ;;  %v2074_v42 = vshll.u32 %v12431_v30, %v12493_v8  ;;  %v1769_v37 = vand.u32 2147483647, %v1768_v36  ;;  %v2264_v54 = vmul.u32 %v2257_v48, %v2248_v34  ;;  %v12579_v30 = vpop.f32.mrb[20].mxu0 }
 0x1f6   : > { %vm2266_vm7 = vc.u32 %v12546_v7, %v12536_v60  ;;  %v2120_v1 = vsub.s32 32, %v2119_v55  ;;  %v2081_v6 = vand.u32 2147483647, %v2080_v18  ;;  %v2112_v28 = vand.u32 8388607, %v15667_v53  ;;  %15961 = vst [vmem:[#allocation46_spill] sm:$0xff] %v12579_v30 }
 0x1f7   : > { %v12568_v45 = vsel %vm1691_vm2, %v15960_v10, %v12313_v15  ;;  %v2076_v12 = vor.u32 %v2075_v63, %v2074_v42  ;;  %v2268_v24 = vsel %vm2266_vm7, %v2267_v32, %v12537_v16  ;;  %v9751_v13 = vadd.s32 4294967294, %v1965_v61 }
 0x1f8   : > { %v2269_v57 = vadd.s32 %v2268_v24, %v2264_v54  ;;  %v2123_v15 = vshrl.u32 %v15899_v46, %v2120_v1  ;;  %v2126_v62 = vshrl.u32 %v15900_v51, %v2120_v1  ;;  %v2122_v48 = vshll.u32 %v15907_v50, %v2119_v55 }
 0x1f9   : > { %v2125_v8 = vshll.u32 %v15899_v46, %v2119_v55  ;;  %v2128_v23 = vshll.u32 %v15900_v51, %v2119_v55  ;;  %v2129_v47 = vshrl.u32 %v15901_v38, %v2120_v1  ;;  %v2118_v49 = vshrl.u32 %v2117_v0, 5 }
 0x1fa   : > { %v2270_v16 = vadd.s32 536870912, %v2269_v57  ;;  %v2131_v29 = vshll.u32 %v15901_v38, %v2119_v55  ;;  %v2132_v41 = vshrl.u32 %v15911_v17, %v2120_v1  ;;  %v2083_v5 = vcvt.s32.f32 %v2076_v12 }
 0x1fb   : > { %v2124_v58 = vor.u32 %v2123_v15, %v2122_v48  ;;  %v2127_v31 = vor.u32 %v2126_v62, %v2125_v8  ;;  %v2130_v36 = vor.u32 %v2129_v47, %v2128_v23  ;;  %v2134_v34 = vshll.u32 %v15911_v17, %v2119_v55 }
 0x1fc   : > { %v12587_v63 = vshrl.u32 %v2270_v16, 30  ;;  %v2133_v18 = vor.u32 %v2132_v41, %v2131_v29  ;;  %v2135_v32 = vshrl.u32 %v15912_v19, %v2120_v1  ;;  %v1772_v61 = vmul.f32 %v1771_v43, %v1769_v37 }
 0x1fd   : > { %v2084_v10 = vmul.f32 %v2083_v5, %v2081_v6  ;;  %vm9752_vm8 = vcmp.lt.s32.totalorder %v9751_v13, 0  ;;  %v2113_v42 = vor.u32 8388608, %v2112_v28  ;;  %v12591_v0 = vpop.eup %11331  ;;  %v15962_v54 = vand.u32 2147483647, %v11719_v56 }
 0x1fe   : > { %v2272_v24 = vshll.u32 %v12587_v63, 30  ;;  %v2136_v15 = vor.u32 %v2135_v32, %v2134_v34  ;;  %vm2137_vm10 = vcmp.lt.s32.totalorder %v2118_v49, 1  ;;  %vm2140_vm11 = vcmp.lt.s32.totalorder %v2118_v49, 4 }
 0x1ff   : > { %vm12595_vm9 = vcmp.le.f32.partialorder %v15962_v54, 0.7853982  ;;  %vm2003_vm12 = vcmp.lt.s32.totalorder %v11768_v26, 0  ;;  %v2121_v55 = vshrl.u32 %v15907_v50, %v2120_v1  ;;  %vm2139_vm13 = vcmp.lt.s32.totalorder %v2118_v49, 3 }
 0x200   : > { %v2145_v43 = vsel %vm2137_vm10, %v2124_v58, %v2127_v31  ;;  %v2146_v37 = vsel %vm2140_vm11, %v2133_v18, 920167782  ;;  %v12604_v6 = vsub.s32 %v2269_v57, %v2272_v24  ;;  %vm2138_vm15 = vcmp.lt.s32.totalorder %v2118_v49, 2 }
 0x201   : > { %v2142_v28 = vsel %vm2140_vm11, %v2130_v36, 2102212464  ;;  %v2147_v62 = vsel %vm2139_vm13, %v2130_v36, %v2146_v37  ;;  %v1773_v48 = vxor.u32 2147483648, %v1772_v61  ;;  %v12609_v8 = vsel %vm9752_vm8, 0, %v9751_v13 }
 0x202   : > { %v2148_v23 = vsel %vm2138_vm15, %v2145_v43, %v2147_v62  ;;  %v2153_v47 = vshll.u32 %v2113_v42, 8  ;;  %v2275_v1 = vsub.s32 0, %v12604_v6  ;;  %v2141_v16 = vsel %vm2137_vm10, %v2121_v55, %v2124_v58 }
 0x203   : > { %v2149_v29 = vsel %vm2137_vm10, %v2127_v31, %v2130_v36  ;;  %v2150_v57 = vsel %vm2140_vm11, %v2136_v15, 1326507024  ;;  %v15965_v41 = vand.u32 2147483647, %v11768_v26  ;;  %v2143_v13 = vsel %vm2139_vm13, %v2127_v31, %v2142_v28  ;;  %v15968_v31 = vld [vmem:[#allocation21_spill] sm:$0xff] }
 0x204   : > { %v2151_v34 = vsel %vm2139_vm13, %v2133_v18, %v2150_v57  ;;  %v12624_v32 = vmul.u32.u64.low %v2153_v47, %v2148_v23  ;;  %v12625_v42 = vmul.u32.u64.high %v2153_v47, %v2148_v23, %v12624_v32  ;;  %11333 = vcosq.f32 %v12561_v22 }
 0x205   : > { %vm12618_vm0 = vcmp.le.f32.partialorder %v15965_v41, 0.7853982  ;;  %v2085_v58 = vxor.u32 2147483648, %v2084_v10  ;;  %v9762_v36 = vmin.u32 %v2275_v1, %v12604_v6  ;;  %v2152_v54 = vsel %vm2138_vm15, %v2149_v29, %v2151_v34  ;;  %v12657_v41 = vpop.f32.mrb[21].mxu0 }
 0x206   : > { %v1774_v24 = vsel %vm1691_vm2, %v1773_v48, %v1772_v61  ;;  %v12633_v15 = vmul.u32.u64.low %v2153_v47, %v2152_v54  ;;  %v12634_v55 = vmul.u32.u64.high %v2153_v47, %v2152_v54, %v12633_v15  ;;  %v2420_v43 = vand.u32 2139095040, %v15968_v31  ;;  %15970 = vst [vmem:[#allocation48_spill] sm:$0xff] %v12657_v41 }
 0x207   : > { %v2087_v18 = vsub.s32 4, %v12416_v4  ;;  %v1973_v37 = vsub.s32 4294967266, %v12609_v8  ;;  %v2277_v28 = vclz %v9762_v36  ;;  %v2144_v62 = vsel %vm2138_vm15, %v2141_v16, %v2143_v13 }
 0x208   : > { %11335 = vsinq.f32 %v12561_v22  ;;  %v12644_v23 = vsel %vm12595_vm9, 0, %v12568_v45  ;;  %vm1899_vm1 = vcmp.lt.s32.totalorder %v11811_v25, 0  ;;  %v2163_v61 = vadd.s32 1, %v12625_v42 }
 0x209   : > { %15969 = vst [vmem:[#allocation47_spill] sm:$0xff] %v12644_v23  ;;  %v2421_v48 = vshrl.u32 %v2420_v43, 23  ;;  %v1777_v1 = vsel %vm12595_vm9, %v11719_v56, %v1774_v24  ;;  %v2086_v49 = vsel %vm2003_vm12, %v2085_v58, %v2084_v10  ;;  %v9763_v16 = vadd.s32 4294967294, %v2277_v28 }
 0x20a   : > { %v15666_v22 = vand.u32 2147483647, %v15968_v31  ;;  %v1969_v29 = vsub.s32 32, %v12609_v8  ;;  %v2160_v57 = vmul.u32 %v2153_v47, %v2144_v62  ;;  %vm2162_vm2 = vc.u32 %v12634_v55, %v12624_v32 }
 0x20b   : > { %v9769_v45 = vadd.s32 4294967169, %v2421_v48  ;;  %v2088_v12 = vsel %vm2003_vm12, %v2087_v18, %v12416_v4  ;;  %v1974_v13 = vadd.s32 127, %v1973_v37  ;;  %v2164_v34 = vsel %vm2162_vm2, %v2163_v61, %v12625_v42 }
 0x20c   : > { %v2316_v10 = vand.u32 2139095040, %v12145_v33  ;;  %11337 = vcosq.f32 %v1777_v1  ;;  %v1953_v58 = vadd.s32 %v12444_v35, %v12453_v3  ;;  %v2165_v47 = vadd.s32 %v2164_v34, %v2160_v57 }
 0x20d   : > { %v2427_v36 = vadd.s32 1, %v9769_v45  ;;  %11339 = vsinq.f32 %v1777_v1  ;;  %v12669_v54 = vsel %vm12618_vm0, %v11768_v26, %v2086_v49  ;;  %v1983_v24 = vsub.s32 4, %v12505_v2 }
 0x20e   : > { %vm9764_vm3 = vcmp.lt.s32.totalorder %v9763_v16, 0  ;;  %v1971_v4 = vshrl.u32 %v1953_v58, %v1969_v29  ;;  %v2166_v15 = vadd.s32 536870912, %v2165_v47  ;;  %v2424_v42 = vand.u32 8388607, %v15666_v22  ;;  %v12674_v43 = vpop.eup %11333 }
 0x20f   : > { %vm2428_vm4 = vcmp.gt.s32.totalorder %v2427_v36, 0  ;;  %15971 = vst [vmem:[#allocation49_spill] sm:$0xff] %v12674_v43  ;;  %v1975_v35 = vshll.u32 %v1974_v13, 23  ;;  %v15665_v18 = vand.u32 2147483647, %v12145_v33  ;;  %v2317_v37 = vshrl.u32 %v2316_v10, 23 }
 0x210   : > { %v2429_v3 = vsel %vm2428_vm4, %v2427_v36, 0  ;;  %v1970_v28 = vshll.u32 %v12519_v39, %v12609_v8  ;;  %v12679_v62 = vsel %vm9764_vm3, 0, %v9763_v16  ;;  %v12681_v61 = vshrl.u32 %v2166_v15, 30 }
 0x211   : > { %v2431_v48 = vand.u32 31, %v2429_v3  ;;  %v12685_v1 = vsel %vm12618_vm0, 0, %v2088_v12  ;;  %11341 = vcosq.f32 %v12669_v54  ;;  %v12691_v49 = vsel %vm1899_vm1, %v1983_v24, %v12505_v2 }
 0x212   : > { %15972 = vst [vmem:[#allocation50_spill] sm:$0xff] %v12685_v1  ;;  %v2265_v29 = vadd.s32 %v12536_v60, %v12546_v7  ;;  %v12695_v39 = vpop.eup %11335  ;;  %v12697_v8 = vor.u32 %v1971_v4, %v1970_v28  ;;  %v2168_v16 = vshll.u32 %v12681_v61, 30  ;;  %v2425_v57 = vor.u32 8388608, %v2424_v42 }
 0x213   : > { %15973 = vst [vmem:[#allocation51_spill] sm:$0xff] %v12695_v39  ;;  %v2432_v5 = vsub.s32 32, %v2431_v48  ;;  %v12700_v45 = vor.u32 4788187, %v1975_v35  ;;  %v2285_v12 = vsub.s32 4294967266, %v12679_v62  ;;  %v9765_v13 = vadd.s32 4294967169, %v2317_v37 }
 0x214   : > { %v12705_v2 = vand.u32 8388607, %v15665_v18  ;;  %v12707_v34 = vsub.s32 %v2165_v47, %v2168_v16  ;;  %v2430_v60 = vshrl.u32 %v2429_v3, 5  ;;  %v2434_v7 = vshll.u32 %v15907_v50, %v2431_v48 }
 0x215   : > { %v2435_v10 = vshrl.u32 %v15899_v46, %v2432_v5  ;;  %v2437_v58 = vshll.u32 %v15899_v46, %v2431_v48  ;;  %v2438_v36 = vshrl.u32 %v15900_v51, %v2432_v5  ;;  %v2440_v24 = vshll.u32 %v15900_v51, %v2431_v48 }
 0x216   : > { %v2441_v4 = vshrl.u32 %v15901_v38, %v2432_v5  ;;  %v12715_v15 = vpop.eup %11337  ;;  %v2171_v42 = vsub.s32 0, %v12707_v34  ;;  %v2443_v47 = vshll.u32 %v15901_v38, %v2431_v48  ;;  %v2444_v35 = vshrl.u32 %v15911_v17, %v2432_v5 }
 0x217   : > { %15974 = vst [vmem:[#allocation52_spill] sm:$0xff] %v12715_v15  ;;  %v12720_v3 = vshll.u32 %v2425_v57, 8  ;;  %v12722_v37 = vpop.eup %11339  ;;  %v2436_v28 = vor.u32 %v2435_v10, %v2434_v7  ;;  %v2439_v16 = vor.u32 %v2438_v36, %v2437_v58  ;;  %v2323_v22 = vadd.s32 1, %v9765_v13 }
 0x218   : > { %15975 = vst [vmem:[#allocation53_spill] sm:$0xff] %v12722_v37  ;;  %v2442_v18 = vor.u32 %v2441_v4, %v2440_v24  ;;  %v9758_v53 = vmin.u32 %v2171_v42, %v12707_v34  ;;  %v2445_v1 = vor.u32 %v2444_v35, %v2443_v47  ;;  %v2446_v26 = vshll.u32 %v15911_v17, %v2431_v48 }
 0x219   : > { %v2447_v20 = vshrl.u32 %v15912_v19, %v2432_v5  ;;  %v15976_v43 = vand.u32 2147483647, %v11811_v25  ;;  %v2281_v57 = vsub.s32 32, %v12679_v62  ;;  %v2286_v21 = vadd.s32 127, %v2285_v12 }
 0x21a   : > { %v2433_v7 = vshrl.u32 %v15907_v50, %v2432_v5  ;;  %vm2452_vm7 = vcmp.lt.s32.totalorder %v2430_v60, 4  ;;  %v2173_v13 = vclz %v9758_v53  ;;  %vm2449_vm8 = vcmp.lt.s32.totalorder %v2430_v60, 1 }
 0x21b   : > { %vm12729_vm5 = vcmp.le.f32.partialorder %v15976_v43, 0.7853982  ;;  %v2448_v10 = vor.u32 %v2447_v20, %v2446_v26  ;;  %v2454_v58 = vsel %vm2452_vm7, %v2442_v18, 2102212464  ;;  %v12736_v48 = vpop.eup %11341  ;;  %vm2451_vm9 = vcmp.lt.s32.totalorder %v2430_v60, 3 }
 0x21c   : > { %15979 = vst [vmem:[#allocation54_spill] sm:$0xff] %v12736_v48  ;;  %v2457_v36 = vsel %vm2449_vm8, %v2436_v28, %v2439_v16  ;;  %v2458_v43 = vsel %vm2452_vm7, %v2445_v1, 920167782  ;;  %vm2324_vm10 = vcmp.gt.s32.totalorder %v2323_v22, 0  ;;  %vm2450_vm11 = vcmp.lt.s32.totalorder %v2430_v60, 2 }
 0x21d   : > { %v2453_v24 = vsel %vm2449_vm8, %v2433_v7, %v2436_v28  ;;  %v2455_v4 = vsel %vm2451_vm9, %v2439_v16, %v2454_v58  ;;  %v2459_v42 = vsel %vm2451_vm9, %v2442_v18, %v2458_v43  ;;  %v9759_v12 = vadd.s32 4294967294, %v2173_v13 }
 0x21e   : > { %v2460_v5 = vsel %vm2450_vm11, %v2457_v36, %v2459_v42  ;;  %v2461_v47 = vsel %vm2449_vm8, %v2439_v16, %v2442_v18  ;;  %v2462_v26 = vsel %vm2452_vm7, %v2448_v10, 1326507024  ;;  %v1977_v53 = vand.u32 2147483647, %v12700_v45  ;;  %v12781_v36 = vpop.f32.mrb[22].mxu0 }
 0x21f   : > { %v2463_v20 = vsel %vm2451_vm9, %v2445_v1, %v2462_v26  ;;  %v2321_v35 = vor.u32 8388608, %v12705_v2  ;;  %v2325_v48 = vsel %vm2324_vm10, %v2323_v22, 0  ;;  %v2283_v23 = vshrl.u32 %v2265_v29, %v2281_v57  ;;  %15981 = vst [vmem:[#allocation56_spill] sm:$0xff] %v12781_v36 }
 0x220   : > { %v2464_v15 = vsel %vm2450_vm11, %v2461_v47, %v2463_v20  ;;  %v12745_v37 = vmul.u32.u64.low %v12720_v3, %v2460_v5  ;;  %v12746_v28 = vmul.u32.u64.high %v12720_v3, %v2460_v5, %v12745_v37  ;;  %v1979_v7 = vcvt.s32.f32 %v12697_v8 }
 0x221   : > { %v2282_v18 = vshll.u32 %v12604_v6, %v12679_v62  ;;  %v2287_v16 = vshll.u32 %v2286_v21, 23  ;;  %v2456_v45 = vsel %vm2450_vm11, %v2453_v24, %v2455_v4  ;;  %vm9760_vm12 = vcmp.lt.s32.totalorder %v9759_v12, 0 }
 0x222   : > { %v12754_v1 = vmul.u32.u64.low %v12720_v3, %v2464_v15  ;;  %v12755_v22 = vmul.u32.u64.high %v12720_v3, %v2464_v15, %v12754_v1  ;;  %v2327_v29 = vand.u32 31, %v2325_v48  ;;  %11343 = vsinq.f32 %v12669_v54 }
 0x223   : > { %v12758_v2 = vmul.f32 %v1979_v7, %v1977_v53  ;;  %v12763_v8 = vsel %vm12729_vm5, 0, %v12691_v49  ;;  %v2295_v6 = vsub.s32 4, %v12587_v63  ;;  %v12766_v21 = vor.u32 %v2283_v23, %v2282_v18 }
 0x224   : > { %15980 = vst [vmem:[#allocation55_spill] sm:$0xff] %v12763_v8  ;;  %v2475_v62 = vadd.s32 1, %v12746_v28  ;;  %v2328_v60 = vsub.s32 32, %v2327_v29  ;;  %v12769_v57 = vshll.u32 %v2321_v35, 8  ;;  %v12771_v15 = vor.u32 4788187, %v2287_v16 }
 0x225   : > { %v12773_v13 = vsel %vm9760_vm12, 0, %v9759_v12  ;;  %v2472_v54 = vmul.u32 %v12720_v3, %v2456_v45  ;;  %v2326_v10 = vshrl.u32 %v2325_v48, 5  ;;  %vm2474_vm13 = vc.u32 %v12755_v22, %v12745_v37 }
 0x226   : > { %v2330_v49 = vshll.u32 %v15907_v50, %v2327_v29  ;;  %v2331_v23 = vshrl.u32 %v15899_v46, %v2328_v60  ;;  %v2333_v58 = vshll.u32 %v15899_v46, %v2327_v29  ;;  %v2476_v43 = vsel %vm2474_vm13, %v2475_v62, %v12746_v28 }
 0x227   : > { %v2334_v24 = vshrl.u32 %v15900_v51, %v2328_v60  ;;  %v2336_v4 = vshll.u32 %v15900_v51, %v2327_v29  ;;  %v2339_v3 = vshll.u32 %v15901_v38, %v2327_v29  ;;  %v2477_v48 = vadd.s32 %v2476_v43, %v2472_v54 }
 0x228   : > { %v2332_v42 = vor.u32 %v2331_v23, %v2330_v49  ;;  %v2337_v12 = vshrl.u32 %v15901_v38, %v2328_v60  ;;  %v2340_v5 = vshrl.u32 %v15911_v17, %v2328_v60  ;;  %v2181_v47 = vsub.s32 4294967266, %v12773_v13 }
 0x229   : > { %v2335_v26 = vor.u32 %v2334_v24, %v2333_v58  ;;  %v2342_v53 = vshll.u32 %v15911_v17, %v2327_v29  ;;  %v2343_v20 = vshrl.u32 %v15912_v19, %v2328_v60  ;;  %v2289_v35 = vand.u32 2147483647, %v12771_v15 }
 0x22a   : > { %v2478_v28 = vadd.s32 536870912, %v2477_v48  ;;  %v2338_v7 = vor.u32 %v2337_v12, %v2336_v4  ;;  %v2341_v18 = vor.u32 %v2340_v5, %v2339_v3  ;;  %v2177_v16 = vsub.s32 32, %v12773_v13 }
 0x22b   : > { %v2344_v45 = vor.u32 %v2343_v20, %v2342_v53  ;;  %vm2345_vm15 = vcmp.lt.s32.totalorder %v2326_v10, 1  ;;  %vm2348_vm0 = vcmp.lt.s32.totalorder %v2326_v10, 4  ;;  %vm2347_vm2 = vcmp.lt.s32.totalorder %v2326_v10, 3 }
 0x22c   : > { %v12794_v1 = vshrl.u32 %v2478_v28, 30  ;;  %v2353_v62 = vsel %vm2345_vm15, %v2332_v42, %v2335_v26  ;;  %v2354_v54 = vsel %vm2348_vm0, %v2341_v18, 920167782  ;;  %v12797_v49 = vpop.eup %11343  ;;  %v2182_v29 = vadd.s32 127, %v2181_v47 }
 0x22d   : > { %15982 = vst [vmem:[#allocation57_spill] sm:$0xff] %v12797_v49  ;;  %vm2346_vm3 = vcmp.lt.s32.totalorder %v2326_v10, 2  ;;  %v2350_v23 = vsel %vm2348_vm0, %v2338_v7, 2102212464  ;;  %v2355_v15 = vsel %vm2347_vm2, %v2338_v7, %v2354_v54  ;;  %vm2211_vm4 = vcmp.lt.s32.totalorder %v11874_v40, 0 }
 0x22e   : > { %v2480_v58 = vshll.u32 %v12794_v1, 30  ;;  %v2329_v43 = vshrl.u32 %v15907_v50, %v2328_v60  ;;  %v2356_v24 = vsel %vm2346_vm3, %v2353_v62, %v2355_v15  ;;  %v2357_v4 = vsel %vm2345_vm15, %v2335_v26, %v2338_v7 }
 0x22f   : > { %v2358_v3 = vsel %vm2348_vm0, %v2344_v45, 1326507024  ;;  %v12806_v12 = vmul.u32.u64.low %v12769_v57, %v2356_v24  ;;  %v12807_v5 = vmul.u32.u64.high %v12769_v57, %v2356_v24, %v12806_v12  ;;  %v2628_v47 = vand.u32 2139095040, %v12207_v9 }
 0x230   : > { %v12811_v53 = vsub.s32 %v2477_v48, %v2480_v58  ;;  %v2349_v20 = vsel %vm2345_vm15, %v2329_v43, %v2332_v42  ;;  %v2351_v28 = vsel %vm2347_vm2, %v2335_v26, %v2350_v23  ;;  %v2359_v60 = vsel %vm2347_vm2, %v2341_v18, %v2358_v3 }
 0x231   : > { %v2161_v62 = vadd.s32 %v12624_v32, %v12634_v55  ;;  %v2183_v7 = vshll.u32 %v2182_v29, 23  ;;  %v2360_v45 = vsel %vm2346_vm3, %v2357_v4, %v2359_v60  ;;  %v15681_v54 = vand.u32 2147483647, %v12207_v9 }
 0x232   : > { %v15983_v15 = vand.u32 2147483647, %v11874_v40  ;;  %v2291_v48 = vcvt.s32.f32 %v12766_v21  ;;  %v2483_v42 = vsub.s32 0, %v12811_v53  ;;  %v1981_v32 = vxor.u32 2147483648, %v12758_v2 }
 0x233   : > { %v12829_v26 = vmul.u32.u64.low %v12769_v57, %v2360_v45  ;;  %v12830_v18 = vmul.u32.u64.high %v12769_v57, %v2360_v45, %v12829_v26  ;;  %v2352_v55 = vsel %vm2346_vm3, %v2349_v20, %v2351_v28  ;;  %v2371_v29 = vadd.s32 1, %v12807_v5  ;;  %v12854_v20 = vpop.f32.mrb[23].mxu0 }
 0x234   : > { %vm12822_vm7 = vcmp.le.f32.partialorder %v15983_v15, 0.7853982  ;;  %v2629_v23 = vshrl.u32 %v2628_v47, 23  ;;  %v2292_v58 = vmul.f32 %v2291_v48, %v2289_v35  ;;  %v2178_v43 = vshll.u32 %v12707_v34, %v12773_v13 }
 0x235   : > { %v2179_v4 = vshrl.u32 %v2161_v62, %v2177_v16  ;;  %v9770_v21 = vmin.u32 %v2483_v42, %v12811_v53  ;;  %v2184_v3 = vor.u32 4788187, %v2183_v7  ;;  %v2632_v45 = vand.u32 8388607, %v15681_v54 }
 0x236   : > { %v9777_v60 = vadd.s32 4294967169, %v2629_v23  ;;  %v2524_v15 = vand.u32 2139095040, %v12302_v59  ;;  %v2368_v10 = vmul.u32 %v12769_v57, %v2352_v55  ;;  %vm2370_vm8 = vc.u32 %v12830_v18, %v12806_v12 }
 0x237   : > { %v2485_v26 = vclz %v9770_v21  ;;  %v15680_v35 = vand.u32 2147483647, %v12302_v59  ;;  %v1982_v34 = vsel %vm1899_vm1, %v1981_v32, %v12758_v2  ;;  %v2296_v13 = vsel %vm2211_vm4, %v2295_v6, %v12587_v63 }
 0x238   : > { %v2372_v16 = vsel %vm2370_vm8, %v2371_v29, %v12807_v5  ;;  %v2635_v47 = vadd.s32 1, %v9777_v60  ;;  %v2293_v57 = vxor.u32 2147483648, %v2292_v58  ;;  %v2180_v28 = vor.u32 %v2179_v4, %v2178_v43 }
 0x239   : > { %v9771_v62 = vadd.s32 4294967294, %v2485_v26  ;;  %v2373_v7 = vadd.s32 %v2372_v16, %v2368_v10  ;;  %v2185_v48 = vand.u32 2147483647, %v2184_v3  ;;  %v2633_v42 = vor.u32 8388608, %v2632_v45 }
 0x23a   : > { %vm2636_vm9 = vcmp.gt.s32.totalorder %v2635_v47, 0  ;;  %v2525_v55 = vshrl.u32 %v2524_v15, 23  ;;  %v12858_v23 = vand.u32 8388607, %v15680_v35  ;;  %v12863_v63 = vsel %vm12729_vm5, %v11811_v25, %v1982_v34 }
 0x23b   : > { %vm9772_vm1 = vcmp.lt.s32.totalorder %v9771_v62, 0  ;;  %v2374_v2 = vadd.s32 536870912, %v2373_v7  ;;  %v2637_v32 = vsel %vm2636_vm9, %v2635_v47, 0  ;;  %v12867_v6 = vsel %vm12822_vm7, 0, %v2296_v13 }
 0x23c   : > { %15986 = vst [vmem:[#allocation58_spill] sm:$0xff] %v12867_v6  ;;  %v2488_v5 = vsel %vm9772_vm1, 0, %v9771_v62  ;;  %v2639_v29 = vand.u32 31, %v2637_v32  ;;  %v12871_v43 = vsel %vm2211_vm4, %v2293_v57, %v2292_v58  ;;  %v2187_v4 = vcvt.s32.f32 %v2180_v28 }
 0x23d   : > { %v12874_v3 = vshrl.u32 %v2374_v2, 30  ;;  %v2473_v39 = vadd.s32 %v12745_v37, %v12755_v22  ;;  %v2493_v60 = vsub.s32 4294967266, %v2488_v5  ;;  %v9773_v15 = vadd.s32 4294967169, %v2525_v55 }
 0x23e   : > { %v2640_v45 = vsub.s32 32, %v2639_v29  ;;  %v12878_v26 = vmul.f32 %v2187_v4, %v2185_v48  ;;  %v12881_v34 = vshll.u32 %v2633_v42, 8  ;;  %v2489_v13 = vsub.s32 32, %v2488_v5 }
 0x23f   : > { %v2376_v10 = vshll.u32 %v12874_v3, 30  ;;  %v2642_v37 = vshll.u32 %v15907_v50, %v2639_v29  ;;  %v2645_v22 = vshll.u32 %v15899_v46, %v2639_v29  ;;  %v2648_v62 = vshll.u32 %v15900_v51, %v2639_v29 }
 0x240   : > { %v2643_v16 = vshrl.u32 %v15899_v46, %v2640_v45  ;;  %v2646_v47 = vshrl.u32 %v15900_v51, %v2640_v45  ;;  %v2649_v57 = vshrl.u32 %v15901_v38, %v2640_v45  ;;  %v2494_v48 = vadd.s32 127, %v2493_v60 }
 0x241   : > { %v12887_v28 = vsub.s32 %v2373_v7, %v2376_v10  ;;  %v2638_v42 = vshrl.u32 %v2637_v32, 5  ;;  %v2531_v55 = vadd.s32 1, %v9773_v15  ;;  %v2836_v2 = vand.u32 2139095040, %v12388_v11 }
 0x242   : > { %v2644_v35 = vor.u32 %v2643_v16, %v2642_v37  ;;  %v2647_v54 = vor.u32 %v2646_v47, %v2645_v22  ;;  %v2650_v58 = vor.u32 %v2649_v57, %v2648_v62  ;;  %vm2107_vm5 = vcmp.lt.s32.totalorder %v11955_v52, 0 }
 0x243   : > { %v2379_v4 = vsub.s32 0, %v12887_v28  ;;  %v2651_v7 = vshll.u32 %v15901_v38, %v2639_v29  ;;  %v2652_v10 = vshrl.u32 %v15911_v17, %v2640_v45  ;;  %v2654_v21 = vshll.u32 %v15911_v17, %v2639_v29 }
 0x244   : > { %v2655_v6 = vshrl.u32 %v15912_v19, %v2640_v45  ;;  %v2490_v32 = vshll.u32 %v12811_v53, %v2488_v5  ;;  %v2491_v60 = vshrl.u32 %v2473_v39, %v2489_v13  ;;  %v2641_v49 = vshrl.u32 %v15907_v50, %v2640_v45 }
 0x245   : > { %v9766_v15 = vmin.u32 %v2379_v4, %v12887_v28  ;;  %v2495_v16 = vshll.u32 %v2494_v48, 23  ;;  %v2653_v47 = vor.u32 %v2652_v10, %v2651_v7  ;;  %vm2660_vm10 = vcmp.lt.s32.totalorder %v2638_v42, 4 }
 0x246   : > { %v2656_v57 = vor.u32 %v2655_v6, %v2654_v21  ;;  %vm2657_vm11 = vcmp.lt.s32.totalorder %v2638_v42, 1  ;;  %vm2659_vm12 = vcmp.lt.s32.totalorder %v2638_v42, 3  ;;  %v2662_v22 = vsel %vm2660_vm10, %v2650_v58, 2102212464 }
 0x247   : > { %v2381_v37 = vclz %v9766_v15  ;;  %v2665_v62 = vsel %vm2657_vm11, %v2644_v35, %v2647_v54  ;;  %v2666_v8 = vsel %vm2660_vm10, %v2653_v47, 920167782  ;;  %v2669_v29 = vsel %vm2657_vm11, %v2647_v54, %v2650_v58 }
 0x248   : > { %v2670_v25 = vsel %vm2660_vm10, %v2656_v57, 1326507024  ;;  %v12902_v56 = vor.u32 %v2491_v60, %v2490_v32  ;;  %vm2658_vm13 = vcmp.lt.s32.totalorder %v2638_v42, 2  ;;  %v2667_v5 = vsel %vm2659_vm12, %v2650_v58, %v2666_v8  ;;  %v12942_v57 = vpop.f32.mrb[24].mxu0 }
 0x249   : > { %v9767_v53 = vadd.s32 4294967294, %v2381_v37  ;;  %v2661_v39 = vsel %vm2657_vm11, %v2641_v49, %v2644_v35  ;;  %v2663_v13 = vsel %vm2659_vm12, %v2647_v54, %v2662_v22  ;;  %v2671_v45 = vsel %vm2659_vm12, %v2653_v47, %v2670_v25  ;;  %15989 = vst [vmem:[#allocation59_spill] sm:$0xff] %v12942_v57 }
 0x24a   : > { %vm2532_vm15 = vcmp.gt.s32.totalorder %v2531_v55, 0  ;;  %v12904_v48 = vor.u32 4788187, %v2495_v16  ;;  %v2668_v6 = vsel %vm2658_vm13, %v2665_v62, %v2667_v5  ;;  %v2672_v21 = vsel %vm2658_vm13, %v2669_v29, %v2671_v45 }
 0x24b   : > { %vm9768_vm0 = vcmp.lt.s32.totalorder %v9767_v53, 0  ;;  %v12911_v7 = vmul.u32.u64.low %v12881_v34, %v2672_v21  ;;  %v12912_v10 = vmul.u32.u64.high %v12881_v34, %v2672_v21, %v12911_v7  ;;  %v2533_v32 = vsel %vm2532_vm15, %v2531_v55, 0 }
 0x24c   : > { %v12908_v4 = vsel %vm9768_vm0, 0, %v9767_v53  ;;  %11345 = vcosq.f32 %v12863_v63  ;;  %v15987_v25 = vsub.s32 4, %v12681_v61  ;;  %v2664_v54 = vsel %vm2658_vm13, %v2661_v39, %v2663_v13 }
 0x24d   : > { %v2389_v49 = vsub.s32 4294967266, %v12908_v4  ;;  %v12928_v35 = vsel %vm12822_vm7, %v11874_v40, %v12871_v43  ;;  %v12932_v55 = vmul.u32.u64.low %v12881_v34, %v2668_v6  ;;  %v12933_v60 = vmul.u32.u64.high %v12881_v34, %v2668_v6, %v12932_v55 }
 0x24e   : > { %v12920_v8 = vsel %vm2107_vm5, %v15987_v25, %v12681_v61  ;;  %v2369_v61 = vadd.s32 %v12806_v12, %v12830_v18  ;;  %v2535_v16 = vand.u32 31, %v2533_v32  ;;  %v15988_v42 = vor.u32 8388608, %v12858_v23 }
 0x24f   : > { %v2390_v15 = vadd.s32 127, %v2389_v49  ;;  %v2497_v24 = vand.u32 2147483647, %v12904_v48  ;;  %v2499_v43 = vcvt.s32.f32 %v12902_v56  ;;  %v2680_v37 = vmul.u32 %v12881_v34, %v2664_v54 }
 0x250   : > { %v12940_v47 = vshll.u32 %v15988_v42, 8  ;;  %v2837_v22 = vshrl.u32 %v2836_v2, 23  ;;  %v2385_v62 = vsub.s32 32, %v12908_v4  ;;  %v2386_v12 = vshll.u32 %v12887_v28, %v12908_v4 }
 0x251   : > { %vm2682_vm2 = vc.u32 %v12912_v10, %v12932_v55  ;;  %v2536_v18 = vsub.s32 32, %v2535_v16  ;;  %v2391_v23 = vshll.u32 %v2390_v15, 23  ;;  %v2683_v29 = vadd.s32 1, %v12933_v60 }
 0x252   : > { %v2534_v53 = vshrl.u32 %v2533_v32, 5  ;;  %v2538_v5 = vshll.u32 %v15907_v50, %v2535_v16  ;;  %v2541_v34 = vshll.u32 %v15899_v46, %v2535_v16  ;;  %v2544_v2 = vshll.u32 %v15900_v51, %v2535_v16 }
 0x253   : > { %v2539_v56 = vshrl.u32 %v15899_v46, %v2536_v18  ;;  %v2547_v39 = vshll.u32 %v15901_v38, %v2535_v16  ;;  %v2684_v28 = vsel %vm2682_vm2, %v2683_v29, %v12933_v60  ;;  %v2542_v13 = vshrl.u32 %v15900_v51, %v2536_v18 }
 0x254   : > { %v2545_v45 = vshrl.u32 %v15901_v38, %v2536_v18  ;;  %v2548_v48 = vshrl.u32 %v15911_v17, %v2536_v18  ;;  %v2387_v6 = vshrl.u32 %v2369_v61, %v2385_v62  ;;  %v2685_v21 = vadd.s32 %v2684_v28, %v2680_v37 }
 0x255   : > { %v2540_v4 = vor.u32 %v2539_v56, %v2538_v5  ;;  %v2550_v7 = vshll.u32 %v15911_v17, %v2535_v16  ;;  %v2543_v32 = vor.u32 %v2542_v13, %v2541_v34  ;;  %v2551_v54 = vshrl.u32 %v15912_v19, %v2536_v18 }
 0x256   : > { %v2546_v25 = vor.u32 %v2545_v45, %v2544_v2  ;;  %v2549_v49 = vor.u32 %v2548_v48, %v2547_v39  ;;  %v12964_v15 = vpop.eup %11345  ;;  %v15991_v60 = vand.u32 2147483647, %v11955_v52  ;;  %v2392_v29 = vor.u32 4788187, %v2391_v23 }
 0x257   : > { %15990 = vst [vmem:[#allocation60_spill] sm:$0xff] %v12964_v15  ;;  %v2686_v58 = vadd.s32 536870912, %v2685_v21  ;;  %vm2553_vm4 = vcmp.lt.s32.totalorder %v2534_v53, 1  ;;  %v9785_v61 = vadd.s32 4294967169, %v2837_v22  ;;  %v2537_v37 = vshrl.u32 %v15907_v50, %v2536_v18 }
 0x258   : > { %vm12968_vm3 = vcmp.le.f32.partialorder %v15991_v60, 0.7853982  ;;  %v2552_v16 = vor.u32 %v2551_v54, %v2550_v7  ;;  %vm2556_vm7 = vcmp.lt.s32.totalorder %v2534_v53, 4  ;;  %v2561_v62 = vsel %vm2553_vm4, %v2540_v4, %v2543_v32 }
 0x259   : > { %v12974_v5 = vshrl.u32 %v2686_v58, 30  ;;  %vm2555_vm8 = vcmp.lt.s32.totalorder %v2534_v53, 3  ;;  %v2558_v56 = vsel %vm2556_vm7, %v2546_v25, 2102212464  ;;  %v2562_v34 = vsel %vm2556_vm7, %v2549_v49, 920167782 }
 0x25a   : > { %vm2554_vm9 = vcmp.lt.s32.totalorder %v2534_v53, 2  ;;  %v2563_v2 = vsel %vm2555_vm8, %v2546_v25, %v2562_v34  ;;  %v2565_v39 = vsel %vm2553_vm4, %v2543_v32, %v2546_v25  ;;  %v2566_v28 = vsel %vm2556_vm7, %v2552_v16, 1326507024 }
 0x25b   : > { %v2388_v23 = vor.u32 %v2387_v6, %v2386_v12  ;;  %v2688_v13 = vshll.u32 %v12974_v5, 30  ;;  %v2557_v22 = vsel %vm2553_vm4, %v2537_v37, %v2540_v4  ;;  %v2564_v18 = vsel %vm2554_vm9, %v2561_v62, %v2563_v2 }
 0x25c   : > { %vm2419_vm1 = vcmp.lt.s32.totalorder %v15968_v31, 0  ;;  %v2559_v45 = vsel %vm2555_vm8, %v2543_v32, %v2558_v56  ;;  %v2567_v58 = vsel %vm2555_vm8, %v2549_v49, %v2566_v28  ;;  %v2500_v54 = vmul.f32 %v2499_v43, %v2497_v24 }
 0x25d   : > { %v12982_v48 = vmul.u32.u64.low %v12940_v47, %v2564_v18  ;;  %v12983_v7 = vmul.u32.u64.high %v12940_v47, %v2564_v18, %v12982_v48  ;;  %v2393_v60 = vand.u32 2147483647, %v2392_v29  ;;  %v12986_v25 = vsub.s32 %v2685_v21, %v2688_v13 }
 0x25e   : > { %v2568_v12 = vsel %vm2554_vm9, %v2565_v39, %v2567_v58  ;;  %11347 = vsinq.f32 %v12863_v63  ;;  %v15689_v32 = vand.u32 2147483647, %v12388_v11  ;;  %v2395_v49 = vcvt.s32.f32 %v2388_v23  ;;  %v13032_v58 = vpop.f32.mrb[25].mxu0 }
 0x25f   : > { %v12991_v6 = vmul.u32.u64.low %v12940_v47, %v2568_v12  ;;  %v12992_v4 = vmul.u32.u64.high %v12940_v47, %v2568_v12, %v12991_v6  ;;  %v2691_v37 = vsub.s32 0, %v12986_v25  ;;  %v2560_v16 = vsel %vm2554_vm9, %v2557_v22, %v2559_v45  ;;  %15996 = vst [vmem:[#allocation62_spill] sm:$0xff] %v13032_v58 }
 0x260   : > { %v2843_v62 = vadd.s32 1, %v9785_v61  ;;  %11349 = vcosq.f32 %v12928_v35  ;;  %v15994_v24 = vxor.u32 2147483648, %v12878_v26  ;;  %v13006_v43 = vsel %vm12968_vm3, 0, %v12920_v8 }
 0x261   : > { %15995 = vst [vmem:[#allocation61_spill] sm:$0xff] %v13006_v43  ;;  %v2579_v21 = vadd.s32 1, %v12983_v7  ;;  %v2501_v29 = vxor.u32 2147483648, %v2500_v54  ;;  %v13009_v56 = vmul.f32 %v2395_v49, %v2393_v60  ;;  %v9778_v53 = vmin.u32 %v2691_v37, %v12986_v25 }
 0x262   : > { %v2190_v63 = vsel %vm2107_vm5, %v15994_v24, %v12878_v26  ;;  %vm2844_vm10 = vcmp.gt.s32.totalorder %v2843_v62, 0  ;;  %v2576_v61 = vmul.u32 %v12940_v47, %v2560_v16  ;;  %vm2578_vm11 = vc.u32 %v12992_v4, %v12982_v48 }
 0x263   : > { %v2840_v26 = vand.u32 8388607, %v15689_v32  ;;  %v2845_v34 = vsel %vm2844_vm10, %v2843_v62, 0  ;;  %11351 = vsinq.f32 %v12928_v35  ;;  %v2693_v8 = vclz %v9778_v53 }
 0x264   : > { %v2580_v2 = vsel %vm2578_vm11, %v2579_v21, %v12983_v7  ;;  %v2847_v39 = vand.u32 31, %v2845_v34  ;;  %v13022_v28 = vsel %vm12968_vm3, %v11955_v52, %v2190_v63  ;;  %v13028_v22 = vsel %vm2419_vm1, %v2501_v29, %v2500_v54 }
 0x265   : > { %v2581_v13 = vadd.s32 %v2580_v2, %v2576_v61  ;;  %v2681_v35 = vadd.s32 %v12932_v55, %v12912_v10  ;;  %v9779_v18 = vadd.s32 4294967294, %v2693_v8  ;;  %v2841_v60 = vor.u32 8388608, %v2840_v26 }
 0x266   : > { %v2848_v45 = vsub.s32 32, %v2847_v39  ;;  %v2732_v12 = vand.u32 2139095040, %v12475_v44  ;;  %v13036_v6 = vshrl.u32 %v2845_v34, 5  ;;  %v2850_v21 = vshll.u32 %v15907_v50, %v2847_v39 }
 0x267   : > { %v2582_v7 = vadd.s32 536870912, %v2581_v13  ;;  %vm9780_vm5 = vcmp.lt.s32.totalorder %v9779_v18, 0  ;;  %v2853_v29 = vshll.u32 %v15899_v46, %v2847_v39  ;;  %v2856_v26 = vshll.u32 %v15900_v51, %v2847_v39 }
 0x268   : > { %v2851_v49 = vshrl.u32 %v15899_v46, %v2848_v45  ;;  %v2854_v54 = vshrl.u32 %v15900_v51, %v2848_v45  ;;  %v13040_v37 = vpop.eup %11347  ;;  %v2696_v10 = vsel %vm9780_vm5, 0, %v9779_v18  ;;  %v2857_v16 = vshrl.u32 %v15901_v38, %v2848_v45 }
 0x269   : > { %15997 = vst [vmem:[#allocation63_spill] sm:$0xff] %v13040_v37  ;;  %v13042_v55 = vshrl.u32 %v2582_v7, 30  ;;  %v2860_v62 = vshrl.u32 %v15911_v17, %v2848_v45  ;;  %v2697_v24 = vsub.s32 32, %v2696_v10  ;;  %v2701_v63 = vsub.s32 4294967266, %v2696_v10 }
 0x26a   : > { %v13048_v53 = vpop.eup %11349  ;;  %v2859_v34 = vshll.u32 %v15901_v38, %v2847_v39  ;;  %v2862_v8 = vshll.u32 %v15911_v17, %v2847_v39  ;;  %v2852_v18 = vor.u32 %v2851_v49, %v2850_v21  ;;  %v2855_v7 = vor.u32 %v2854_v54, %v2853_v29 }
 0x26b   : > { %15998 = vst [vmem:[#allocation64_spill] sm:$0xff] %v13048_v53  ;;  %v2584_v61 = vshll.u32 %v13042_v55, 30  ;;  %v2702_v2 = vadd.s32 127, %v2701_v63  ;;  %v2863_v32 = vshrl.u32 %v15912_v19, %v2848_v45  ;;  %v15999_v23 = vand.u32 2147483647, %v15968_v31 }
 0x26c   : > { %vm2315_vm13 = vcmp.lt.s32.totalorder %v12145_v33, 0  ;;  %v2858_v53 = vor.u32 %v2857_v16, %v2856_v26  ;;  %v2861_v40 = vor.u32 %v2860_v62, %v2859_v34  ;;  %v2881_v43 = vshll.u32 %v2841_v60, 8 }
 0x26d   : > { %vm13057_vm12 = vcmp.le.f32.partialorder %v15999_v23, 0.7853982  ;;  %v13062_v42 = vsub.s32 %v2581_v13, %v2584_v61  ;;  %v13064_v52 = vpop.eup %11351  ;;  %v2699_v39 = vshrl.u32 %v2681_v35, %v2697_v24  ;;  %v2849_v49 = vshrl.u32 %v15907_v50, %v2848_v45 }
 0x26e   : > { %16002 = vst [vmem:[#allocation65_spill] sm:$0xff] %v13064_v52  ;;  %v2864_v54 = vor.u32 %v2863_v32, %v2862_v8  ;;  %v2733_v63 = vshrl.u32 %v2732_v12, 23  ;;  %v2698_v21 = vshll.u32 %v12986_v25, %v2696_v10  ;;  %v2703_v23 = vshll.u32 %v2702_v2, 23 }
 0x26f   : > { %v2587_v29 = vsub.s32 0, %v13062_v42  ;;  %vm2865_vm15 = vcmp.lt.s32.totalorder %v13036_v6, 1  ;;  %v16003_v13 = vand.u32 2147483647, %v12145_v33  ;;  %vm2866_vm2 = vcmp.lt.s32.totalorder %v13036_v6, 2 }
 0x270   : > { %vm2867_vm3 = vcmp.lt.s32.totalorder %v13036_v6, 3  ;;  %vm2868_vm4 = vcmp.lt.s32.totalorder %v13036_v6, 4  ;;  %v2873_v32 = vsel %vm2865_vm15, %v2852_v18, %v2855_v7  ;;  %v2877_v60 = vsel %vm2865_vm15, %v2855_v7, %v2858_v53 }
 0x271   : > { %vm13072_vm0 = vcmp.le.f32.partialorder %v16003_v13, 0.7853982  ;;  %v9774_v25 = vmin.u32 %v2587_v29, %v13062_v42  ;;  %v2870_v35 = vsel %vm2868_vm4, %v2858_v53, 2102212464  ;;  %v2874_v45 = vsel %vm2868_vm4, %v2861_v40, 920167782 }
 0x272   : > { %v2700_v12 = vor.u32 %v2699_v39, %v2698_v21  ;;  %v2869_v10 = vsel %vm2865_vm15, %v2849_v49, %v2852_v18  ;;  %v2875_v62 = vsel %vm2867_vm3, %v2858_v53, %v2874_v45  ;;  %v2878_v24 = vsel %vm2868_vm4, %v2864_v54, 1326507024 }
 0x273   : > { %v2704_v61 = vor.u32 4788187, %v2703_v23  ;;  %v2589_v26 = vclz %v9774_v25  ;;  %v2876_v34 = vsel %vm2866_vm2, %v2873_v32, %v2875_v62  ;;  %v2879_v8 = vsel %vm2867_vm3, %v2861_v40, %v2878_v24 }
 0x274   : > { %v2871_v2 = vsel %vm2867_vm3, %v2855_v7, %v2870_v35  ;;  %v2880_v13 = vsel %vm2866_vm2, %v2877_v60, %v2879_v8  ;;  %v13084_v52 = vmul.u32.u64.low %v2881_v43, %v2876_v34  ;;  %v13085_v15 = vmul.u32.u64.high %v2881_v43, %v2876_v34, %v13084_v52 }
 0x275   : > { %v9775_v29 = vadd.s32 4294967294, %v2589_v26  ;;  %v13088_v37 = vmul.u32.u64.low %v2881_v43, %v2880_v13  ;;  %v13089_v39 = vmul.u32.u64.high %v2881_v43, %v2880_v13, %v13088_v37  ;;  %v9781_v53 = vadd.s32 4294967169, %v2733_v63 }
 0x276   : > { %11353 = vcosq.f32 %v13022_v28  ;;  %v2505_v40 = vsel %vm13057_vm12, %v15968_v31, %v13028_v22  ;;  %v16006_v18 = vxor.u32 2147483648, %v13009_v56  ;;  %v15700_v49 = vand.u32 2147483647, %v12475_v44 }
 0x277   : > { %v2705_v54 = vand.u32 2147483647, %v2704_v61  ;;  %vm9776_vm7 = vcmp.lt.s32.totalorder %v9775_v29, 0  ;;  %v2872_v37 = vsel %vm2866_vm2, %v2869_v10, %v2871_v2  ;;  %v2739_v63 = vadd.s32 1, %v9781_v53 }
 0x278   : > { %v2398_v7 = vsel %vm2315_vm13, %v16006_v18, %v13009_v56  ;;  %11355 = vsinq.f32 %v13022_v28  ;;  %v16007_v21 = vsub.s32 4, %v12794_v1  ;;  %v2592_v23 = vsel %vm9776_vm7, 0, %v9775_v29 }
 0x279   : > { %v2891_v32 = vadd.s32 1, %v13085_v15  ;;  %11357 = vcosq.f32 %v2505_v40  ;;  %v16008_v56 = vsub.s32 4, %v12874_v3  ;;  %v13119_v28 = vsel %vm13072_vm0, %v12145_v33, %v2398_v7 }
 0x27a   : > { %v2504_v22 = vsel %vm2419_vm1, %v16007_v21, %v12794_v1  ;;  %v2707_v25 = vcvt.s32.f32 %v2700_v12  ;;  %v2888_v35 = vmul.u32 %v2881_v43, %v2872_v37  ;;  %vm2890_vm8 = vc.u32 %v13089_v39, %v13084_v52  ;;  %v13129_v12 = vpop.f32.mrb[26].mxu0 }
 0x27b   : > { %v2400_v6 = vsel %vm2315_vm13, %v16008_v56, %v12874_v3  ;;  %vm2740_vm9 = vcmp.gt.s32.totalorder %v2739_v63, 0  ;;  %v15699_v1 = vand.u32 2147483647, %v12579_v30  ;;  %v2597_v60 = vsub.s32 4294967266, %v2592_v23  ;;  %16009 = vst [vmem:[#allocation66_spill] sm:$0xff] %v13129_v12 }
 0x27c   : > { %v2708_v45 = vmul.f32 %v2707_v25, %v2705_v54  ;;  %v2892_v10 = vsel %vm2890_vm8, %v2891_v32, %v13085_v15  ;;  %v2736_v3 = vand.u32 8388607, %v15700_v49  ;;  %vm2627_vm1 = vcmp.lt.s32.totalorder %v12207_v9, 0 }
 0x27d   : > { %v2593_v62 = vsub.s32 32, %v2592_v23  ;;  %v2893_v24 = vadd.s32 %v2892_v10, %v2888_v35  ;;  %v2741_v61 = vsel %vm2740_vm9, %v2739_v63, 0  ;;  %v3044_v43 = vand.u32 2139095040, %v12579_v30 }
 0x27e   : > { %v13133_v26 = vsel %vm13057_vm12, 0, %v2504_v22  ;;  %11359 = vsinq.f32 %v2505_v40  ;;  %v13137_v15 = vsel %vm13072_vm0, 0, %v2400_v6  ;;  %v2743_v34 = vand.u32 31, %v2741_v61 }
 0x27f   : > { %16010 = vst [vmem:[#allocation67_spill] sm:$0xff] %v13133_v26  ;;  %16011 = vst [vmem:[#allocation68_spill] sm:$0xff] %v13137_v15  ;;  %11361 = vcosq.f32 %v13119_v28  ;;  %v2577_v2 = vadd.s32 %v12982_v48, %v12992_v4  ;;  %v2894_v13 = vadd.s32 536870912, %v2893_v24  ;;  %v2709_v29 = vxor.u32 2147483648, %v2708_v45 }
 0x280   : > { %v2598_v53 = vadd.s32 127, %v2597_v60  ;;  %v2737_v18 = vor.u32 8388608, %v2736_v3  ;;  %v2744_v47 = vsub.s32 32, %v2743_v34  ;;  %v13143_v7 = vpop.eup %11353  ;;  %v3045_v16 = vshrl.u32 %v3044_v43, 23 }
 0x281   : > { %16012 = vst [vmem:[#allocation69_spill] sm:$0xff] %v13143_v7  ;;  %v2595_v40 = vshrl.u32 %v2577_v2, %v2593_v62  ;;  %v13145_v54 = vshrl.u32 %v2894_v13, 30  ;;  %v13149_v37 = vand.u32 8388607, %v15699_v1  ;;  %v2746_v63 = vshll.u32 %v15907_v50, %v2743_v34 }
 0x282   : > { %v2747_v21 = vshrl.u32 %v15899_v46, %v2744_v47  ;;  %v2749_v48 = vshll.u32 %v15899_v46, %v2743_v34  ;;  %v2750_v4 = vshrl.u32 %v15900_v51, %v2744_v47  ;;  %v13155_v22 = vpop.eup %11355  ;;  %v2752_v56 = vshll.u32 %v15900_v51, %v2743_v34 }
 0x283   : > { %16013 = vst [vmem:[#allocation70_spill] sm:$0xff] %v13155_v22  ;;  %v2896_v32 = vshll.u32 %v13145_v54, 30  ;;  %v2753_v6 = vshrl.u32 %v15901_v38, %v2744_v47  ;;  %v2756_v25 = vshrl.u32 %v15911_v17, %v2744_v47  ;;  %v13161_v35 = vpop.eup %11357  ;;  %v2594_v60 = vshll.u32 %v13062_v42, %v2592_v23 }
 0x284   : > { %16014 = vst [vmem:[#allocation71_spill] sm:$0xff] %v13161_v35  ;;  %v2599_v10 = vshll.u32 %v2598_v53, 23  ;;  %v2742_v3 = vshrl.u32 %v2741_v61, 5  ;;  %v2755_v62 = vshll.u32 %v15901_v38, %v2743_v34  ;;  %v2748_v2 = vor.u32 %v2747_v21, %v2746_v63 }
 0x285   : > { %v13165_v43 = vsub.s32 %v2893_v24, %v2896_v32  ;;  %v2751_v13 = vor.u32 %v2750_v4, %v2749_v48  ;;  %v2754_v1 = vor.u32 %v2753_v6, %v2752_v56  ;;  %v2710_v49 = vsel %vm2627_vm1, %v2709_v29, %v2708_v45 }
 0x286   : > { %v2757_v8 = vor.u32 %v2756_v25, %v2755_v62  ;;  %v2758_v26 = vshll.u32 %v15911_v17, %v2743_v34  ;;  %v2759_v31 = vshrl.u32 %v15912_v19, %v2744_v47  ;;  %v16015_v35 = vand.u32 2147483647, %v12207_v9 }
 0x287   : > { %v2596_v23 = vor.u32 %v2595_v40, %v2594_v60  ;;  %v2899_v24 = vsub.s32 0, %v13165_v43  ;;  %v2777_v61 = vshll.u32 %v2737_v18, 8  ;;  %v9793_v53 = vadd.s32 4294967169, %v3045_v16 }
 0x288   : > { %vm13173_vm10 = vcmp.le.f32.partialorder %v16015_v35, 0.7853982  ;;  %v13178_v63 = vpop.eup %11359  ;;  %v2600_v21 = vor.u32 4788187, %v2599_v10  ;;  %v2760_v45 = vor.u32 %v2759_v31, %v2758_v26  ;;  %vm2761_vm11 = vcmp.lt.s32.totalorder %v2742_v3, 1 }
 0x289   : > { %16018 = vst [vmem:[#allocation72_spill] sm:$0xff] %v13178_v63  ;;  %vm2764_vm5 = vcmp.lt.s32.totalorder %v2742_v3, 4  ;;  %v13180_v34 = vpop.eup %11361  ;;  %v9786_v29 = vmin.u32 %v2899_v24, %v13165_v43  ;;  %v2745_v48 = vshrl.u32 %v15907_v50, %v2744_v47  ;;  %v2769_v32 = vsel %vm2761_vm11, %v2748_v2, %v2751_v13 }
 0x28a   : > { %16019 = vst [vmem:[#allocation73_spill] sm:$0xff] %v13180_v34  ;;  %v2766_v4 = vsel %vm2764_vm5, %v2754_v1, 2102212464  ;;  %vm2762_vm12 = vcmp.lt.s32.totalorder %v2742_v3, 2  ;;  %vm2763_vm13 = vcmp.lt.s32.totalorder %v2742_v3, 3  ;;  %v2773_v56 = vsel %vm2761_vm11, %v2751_v13, %v2754_v1 }
 0x28b   : > { %v2770_v40 = vsel %vm2764_vm5, %v2757_v8, 920167782  ;;  %v2901_v18 = vclz %v9786_v29  ;;  %v2765_v16 = vsel %vm2761_vm11, %v2745_v48, %v2748_v2  ;;  %v2774_v25 = vsel %vm2764_vm5, %v2760_v45, 1326507024 }
 0x28c   : > { %v2771_v6 = vsel %vm2763_vm13, %v2754_v1, %v2770_v40  ;;  %v2767_v35 = vsel %vm2763_vm13, %v2751_v13, %v2766_v4  ;;  %v2775_v26 = vsel %vm2763_vm13, %v2757_v8, %v2774_v25  ;;  %v3051_v60 = vadd.s32 1, %v9793_v53 }
 0x28d   : > { %v2772_v31 = vsel %vm2762_vm12, %v2769_v32, %v2771_v6  ;;  %v9787_v10 = vadd.s32 4294967294, %v2901_v18  ;;  %v2776_v62 = vsel %vm2762_vm12, %v2773_v56, %v2775_v26  ;;  %v16020_v63 = vsub.s32 4, %v12974_v5 }
 0x28e   : > { %v13186_v24 = vmul.u32.u64.low %v2777_v61, %v2772_v31  ;;  %v13187_v47 = vmul.u32.u64.high %v2777_v61, %v2772_v31, %v13186_v24  ;;  %v13197_v1 = vmul.u32.u64.low %v2777_v61, %v2776_v62  ;;  %v13198_v13 = vmul.u32.u64.high %v2777_v61, %v2776_v62, %v13197_v1 }
 0x28f   : > { %v13195_v2 = vsel %vm2627_vm1, %v16020_v63, %v12974_v5  ;;  %vm3052_vm15 = vcmp.gt.s32.totalorder %v3051_v60, 0  ;;  %vm9788_vm0 = vcmp.lt.s32.totalorder %v9787_v10, 0  ;;  %v2768_v8 = vsel %vm2762_vm12, %v2765_v16, %v2767_v35  ;;  %v13207_v5 = vpop.f32.mrb[27].mxu0 }
 0x290   : > { %v3049_v53 = vor.u32 8388608, %v13149_v37  ;;  %v3053_v45 = vsel %vm3052_vm15, %v3051_v60, 0  ;;  %v13205_v29 = vsel %vm13173_vm10, %v12207_v9, %v2710_v49  ;;  %v2601_v48 = vand.u32 2147483647, %v2600_v21 }
 0x291   : > { %v2904_v4 = vsel %vm9788_vm0, 0, %v9787_v10  ;;  %v3055_v32 = vand.u32 31, %v3053_v45  ;;  %v2603_v63 = vcvt.s32.f32 %v2596_v23  ;;  %v2889_v40 = vadd.s32 %v13084_v52, %v13089_v39 }
 0x292   : > { %v2909_v56 = vsub.s32 4294967266, %v2904_v4  ;;  %v2787_v3 = vadd.s32 1, %v13187_v47  ;;  %v2905_v18 = vsub.s32 32, %v2904_v4  ;;  %v2784_v37 = vmul.u32 %v2777_v61, %v2768_v8 }
 0x293   : > { %vm2786_vm2 = vc.u32 %v13198_v13, %v13186_v24  ;;  %v3056_v16 = vsub.s32 32, %v3055_v32  ;;  %v13215_v6 = vshll.u32 %v3049_v53, 8  ;;  %v13218_v23 = vmul.f32 %v2603_v63, %v2601_v48 }
 0x294   : > { %v2910_v49 = vadd.s32 127, %v2909_v56  ;;  %v2788_v21 = vsel %vm2786_vm2, %v2787_v3, %v13187_v47  ;;  %v3058_v61 = vshll.u32 %v15907_v50, %v3055_v32  ;;  %v3061_v26 = vshll.u32 %v15899_v46, %v3055_v32 }
 0x295   : > { %v2789_v35 = vadd.s32 %v2788_v21, %v2784_v37  ;;  %v3059_v52 = vshrl.u32 %v15899_v46, %v3056_v16  ;;  %v3062_v39 = vshrl.u32 %v15900_v51, %v3056_v16  ;;  %v3065_v60 = vshrl.u32 %v15901_v38, %v3056_v16 }
 0x296   : > { %v2911_v31 = vshll.u32 %v2910_v49, 23  ;;  %v2907_v10 = vshrl.u32 %v2889_v40, %v2905_v18  ;;  %v3054_v47 = vshrl.u32 %v3053_v45, 5  ;;  %v3064_v1 = vshll.u32 %v15900_v51, %v3055_v32 }
 0x297   : > { %v2790_v62 = vadd.s32 536870912, %v2789_v35  ;;  %v3060_v8 = vor.u32 %v3059_v52, %v3058_v61  ;;  %v3063_v53 = vor.u32 %v3062_v39, %v3061_v26  ;;  %v3067_v48 = vshll.u32 %v15901_v38, %v3055_v32 }
 0x298   : > { %v3068_v63 = vshrl.u32 %v15911_v17, %v3056_v16  ;;  %v3066_v3 = vor.u32 %v3065_v60, %v3064_v1  ;;  %v3070_v37 = vshll.u32 %v15911_v17, %v3055_v32  ;;  %v3071_v49 = vshrl.u32 %v15912_v19, %v3056_v16 }
 0x299   : > { %v13228_v56 = vshrl.u32 %v2790_v62, 30  ;;  %v2605_v21 = vxor.u32 2147483648, %v13218_v23  ;;  %v2906_v40 = vshll.u32 %v13165_v43, %v2904_v4  ;;  %v2912_v45 = vor.u32 4788187, %v2911_v31 }
 0x29a   : > { %v3069_v18 = vor.u32 %v3068_v63, %v3067_v48  ;;  %vm2523_vm3 = vcmp.lt.s32.totalorder %v12302_v59, 0  ;;  %v3072_v39 = vor.u32 %v3071_v49, %v3070_v37  ;;  %vm3073_vm4 = vcmp.lt.s32.totalorder %v3054_v47, 1 }
 0x29b   : > { %v2792_v52 = vshll.u32 %v13228_v56, 30  ;;  %v2940_v61 = vand.u32 2139095040, %v12657_v41  ;;  %v2908_v26 = vor.u32 %v2907_v10, %v2906_v40  ;;  %v3057_v60 = vshrl.u32 %v15907_v50, %v3056_v16 }
 0x29c   : > { %vm3076_vm7 = vcmp.lt.s32.totalorder %v3054_v47, 4  ;;  %v3081_v32 = vsel %vm3073_vm4, %v3060_v8, %v3063_v53  ;;  %vm3075_vm8 = vcmp.lt.s32.totalorder %v3054_v47, 3  ;;  %v16021_v31 = vand.u32 2147483647, %v12302_v59 }
 0x29d   : > { %v13239_v62 = vsub.s32 %v2789_v35, %v2792_v52  ;;  %v3078_v43 = vsel %vm3076_vm7, %v3066_v3, 2102212464  ;;  %v3082_v4 = vsel %vm3076_vm7, %v3069_v18, 920167782  ;;  %v2913_v48 = vand.u32 2147483647, %v2912_v45 }
 0x29e   : > { %vm13243_vm9 = vcmp.le.f32.partialorder %v16021_v31, 0.7853982  ;;  %vm3074_vm1 = vcmp.lt.s32.totalorder %v3054_v47, 2  ;;  %v3077_v10 = vsel %vm3073_vm4, %v3057_v60, %v3060_v8  ;;  %v3083_v63 = vsel %vm3075_vm8, %v3066_v3, %v3082_v4 }
 0x29f   : > { %v2795_v16 = vsub.s32 0, %v13239_v62  ;;  %v3084_v37 = vsel %vm3074_vm1, %v3081_v32, %v3083_v63  ;;  %v3085_v35 = vsel %vm3073_vm4, %v3063_v53, %v3066_v3  ;;  %v3086_v49 = vsel %vm3076_vm7, %v3072_v39, 1326507024 }
 0x2a0   : > { %v3079_v40 = vsel %vm3075_vm8, %v3063_v53, %v3078_v43  ;;  %v3087_v52 = vsel %vm3075_vm8, %v3069_v18, %v3086_v49  ;;  %v13252_v25 = vmul.u32.u64.low %v13215_v6, %v3084_v37  ;;  %v13253_v31 = vmul.u32.u64.high %v13215_v6, %v3084_v37, %v13252_v25 }
 0x2a1   : > { %v2607_v45 = vsub.s32 4, %v13042_v55  ;;  %v2915_v9 = vcvt.s32.f32 %v2908_v26  ;;  %v9782_v8 = vmin.u32 %v2795_v16, %v13239_v62  ;;  %v3088_v60 = vsel %vm3074_vm1, %v3085_v35, %v3087_v52  ;;  %v13291_v52 = vpop.f32.mrb[28].mxu0 }
 0x2a2   : > { %11363 = vsinq.f32 %v13119_v28  ;;  %vm2835_vm11 = vcmp.lt.s32.totalorder %v12388_v11, 0  ;;  %v13262_v3 = vmul.u32.u64.low %v13215_v6, %v3088_v60  ;;  %v13263_v53 = vmul.u32.u64.high %v13215_v6, %v3088_v60, %v13262_v3  ;;  %16026 = vst [vmem:[#allocation75_spill] sm:$0xff] %v13291_v52 }
 0x2a3   : > { %v2941_v18 = vshrl.u32 %v2940_v61, 23  ;;  %11365 = vcosq.f32 %v13205_v29  ;;  %v2916_v39 = vmul.f32 %v2915_v9, %v2913_v48  ;;  %v2797_v32 = vclz %v9782_v8 }
 0x2a4   : > { %v3080_v43 = vsel %vm3074_vm1, %v3077_v10, %v3079_v40  ;;  %v2606_v26 = vsel %vm2523_vm3, %v2605_v21, %v13218_v23  ;;  %v3099_v4 = vadd.s32 1, %v13253_v31  ;;  %v16024_v63 = vand.u32 2147483647, %v12657_v41 }
 0x2a5   : > { %v9789_v28 = vadd.s32 4294967169, %v2941_v18  ;;  %v13276_v61 = vsel %vm13173_vm10, 0, %v13195_v2  ;;  %11367 = vsinq.f32 %v13205_v29  ;;  %v2608_v9 = vsel %vm2523_vm3, %v2607_v45, %v13042_v55 }
 0x2a6   : > { %v2944_v16 = vand.u32 8388607, %v16024_v63  ;;  %16025 = vst [vmem:[#allocation74_spill] sm:$0xff] %v13276_v61  ;;  %v9783_v47 = vadd.s32 4294967294, %v2797_v32  ;;  %v2919_v23 = vsub.s32 4, %v13145_v54  ;;  %v3096_v21 = vmul.u32 %v13215_v6, %v3080_v43 }
 0x2a7   : > { %vm3098_vm5 = vc.u32 %v13263_v53, %v13252_v25  ;;  %v2947_v48 = vadd.s32 1, %v9789_v28  ;;  %v2609_v42 = vsel %vm13243_vm9, %v12302_v59, %v2606_v26  ;;  %v2917_v2 = vxor.u32 2147483648, %v2916_v39 }
 0x2a8   : > { %vm9784_vm10 = vcmp.lt.s32.totalorder %v9783_v47, 0  ;;  %v3100_v29 = vsel %vm3098_vm5, %v3099_v4, %v13253_v31  ;;  %v2945_v55 = vor.u32 8388608, %v2944_v16  ;;  %v3252_v6 = vand.u32 2139095040, %v12781_v36 }
 0x2a9   : > { %v2800_v10 = vsel %vm9784_vm10, 0, %v9783_v47  ;;  %v3101_v37 = vadd.s32 %v3100_v29, %v3096_v21  ;;  %vm2948_vm12 = vcmp.gt.s32.totalorder %v2947_v48, 0  ;;  %v13295_v45 = vsel %vm13243_vm9, 0, %v2608_v9 }
 0x2aa   : > { %v2801_v35 = vsub.s32 32, %v2800_v10  ;;  %v2805_v49 = vsub.s32 4294967266, %v2800_v10  ;;  %v2949_v40 = vsel %vm2948_vm12, %v2947_v48, 0  ;;  %16027 = vst [vmem:[#allocation76_spill] sm:$0xff] %v13295_v45  ;;  %11369 = vcosq.f32 %v2609_v42 }
 0x2ab   : > { %v3102_v8 = vadd.s32 536870912, %v3101_v37  ;;  %v2951_v60 = vand.u32 31, %v2949_v40  ;;  %11371 = vsinq.f32 %v2609_v42  ;;  %v13300_v31 = vsel %vm2835_vm11, %v2919_v23, %v13145_v54 }
 0x2ac   : > { %v2785_v3 = vadd.s32 %v13186_v24, %v13198_v13  ;;  %v2806_v18 = vadd.s32 127, %v2805_v49  ;;  %v13304_v32 = vpop.eup %11363  ;;  %v2918_v1 = vsel %vm2835_vm11, %v2917_v2, %v2916_v39  ;;  %v13313_v16 = vshll.u32 %v2945_v55, 8 }
 0x2ad   : > { %16028 = vst [vmem:[#allocation77_spill] sm:$0xff] %v13304_v32  ;;  %v13309_v26 = vshrl.u32 %v3102_v8, 30  ;;  %v2952_v4 = vsub.s32 32, %v2951_v60  ;;  %v13311_v28 = vpop.eup %11365  ;;  %v3253_v9 = vshrl.u32 %v3252_v6, 23  ;;  %v2954_v13 = vshll.u32 %v15907_v50, %v2951_v60 }
 0x2ae   : > { %16029 = vst [vmem:[#allocation78_spill] sm:$0xff] %v13311_v28  ;;  %v2803_v63 = vshrl.u32 %v2785_v3, %v2801_v35  ;;  %v2957_v39 = vshll.u32 %v15899_v46, %v2951_v60  ;;  %v2807_v21 = vshll.u32 %v2806_v18, 23  ;;  %v2960_v42 = vshll.u32 %v15900_v51, %v2951_v60 }
 0x2af   : > { %v3104_v24 = vshll.u32 %v13309_v26, 30  ;;  %v2955_v47 = vshrl.u32 %v15899_v46, %v2952_v4  ;;  %v13320_v23 = vpop.eup %11367  ;;  %v2958_v48 = vshrl.u32 %v15900_v51, %v2952_v4  ;;  %v2961_v2 = vshrl.u32 %v15901_v38, %v2952_v4 }
 0x2b0   : > { %16030 = vst [vmem:[#allocation79_spill] sm:$0xff] %v13320_v23  ;;  %v16031_v29 = vand.u32 2147483647, %v12388_v11  ;;  %v2950_v49 = vshrl.u32 %v2949_v40, 5  ;;  %v2963_v6 = vshll.u32 %v15901_v38, %v2951_v60  ;;  %v2964_v8 = vshrl.u32 %v15911_v17, %v2952_v4 }
 0x2b1   : > { %v13331_v35 = vsub.s32 %v3101_v37, %v3104_v24  ;;  %v2802_v3 = vshll.u32 %v13239_v62, %v2800_v10  ;;  %v2956_v18 = vor.u32 %v2955_v47, %v2954_v13  ;;  %v2959_v43 = vor.u32 %v2958_v48, %v2957_v39 }
 0x2b2   : > { %vm13327_vm13 = vcmp.le.f32.partialorder %v16031_v29, 0.7853982  ;;  %v2962_v54 = vor.u32 %v2961_v2, %v2960_v42  ;;  %v2965_v28 = vor.u32 %v2964_v8, %v2963_v6  ;;  %v2966_v29 = vshll.u32 %v15911_v17, %v2951_v60 }
 0x2b3   : > { %v3107_v61 = vsub.s32 0, %v13331_v35  ;;  %v2967_v23 = vshrl.u32 %v15912_v19, %v2952_v4  ;;  %vm2731_vm15 = vcmp.lt.s32.totalorder %v12475_v44, 0  ;;  %v2804_v37 = vor.u32 %v2803_v63, %v2802_v3 }
 0x2b4   : > { %v2808_v40 = vor.u32 4788187, %v2807_v21  ;;  %v2953_v24 = vshrl.u32 %v15907_v50, %v2952_v4  ;;  %v9801_v45 = vadd.s32 4294967169, %v3253_v9  ;;  %v13341_v59 = vpop.eup %11369  ;;  %vm2969_vm0 = vcmp.lt.s32.totalorder %v2950_v49, 1 }
 0x2b5   : > { %16034 = vst [vmem:[#allocation80_spill] sm:$0xff] %v13341_v59  ;;  %v9794_v62 = vmin.u32 %v3107_v61, %v13331_v35  ;;  %v2968_v10 = vor.u32 %v2967_v23, %v2966_v29  ;;  %vm2972_vm2 = vcmp.lt.s32.totalorder %v2950_v49, 4  ;;  %v13344_v13 = vpop.eup %11371  ;;  %vm2971_vm3 = vcmp.lt.s32.totalorder %v2950_v49, 3 }
 0x2b6   : > { %16035 = vst [vmem:[#allocation81_spill] sm:$0xff] %v13344_v13  ;;  %v2974_v60 = vsel %vm2972_vm2, %v2962_v54, 2102212464  ;;  %v2977_v47 = vsel %vm2969_vm0, %v2956_v18, %v2959_v43  ;;  %v2978_v39 = vsel %vm2972_vm2, %v2965_v28, 920167782  ;;  %vm2970_vm4 = vcmp.lt.s32.totalorder %v2950_v49, 2 }
 0x2b7   : > { %v3109_v48 = vclz %v9794_v62  ;;  %v2979_v63 = vsel %vm2971_vm3, %v2962_v54, %v2978_v39  ;;  %v2981_v4 = vsel %vm2969_vm0, %v2959_v43, %v2962_v54  ;;  %v2809_v9 = vand.u32 2147483647, %v2808_v40 }
 0x2b8   : > { %v2980_v21 = vsel %vm2970_vm4, %v2977_v47, %v2979_v63  ;;  %v2982_v42 = vsel %vm2972_vm2, %v2968_v10, 1326507024  ;;  %v3259_v61 = vadd.s32 1, %v9801_v45  ;;  %v2973_v2 = vsel %vm2969_vm0, %v2953_v24, %v2956_v18 }
 0x2b9   : > { %v9795_v23 = vadd.s32 4294967294, %v3109_v48  ;;  %v2975_v6 = vsel %vm2971_vm3, %v2959_v43, %v2974_v60  ;;  %v2983_v8 = vsel %vm2971_vm3, %v2965_v28, %v2982_v42  ;;  %v13353_v3 = vsel %vm13327_vm13, %v12388_v11, %v2918_v1 }
 0x2ba   : > { %v2984_v29 = vsel %vm2970_vm4, %v2981_v4, %v2983_v8  ;;  %v13357_v62 = vmul.u32.u64.low %v13313_v16, %v2980_v21  ;;  %v13358_v54 = vmul.u32.u64.high %v13313_v16, %v2980_v21, %v13357_v62  ;;  %v2811_v40 = vcvt.s32.f32 %v2804_v37  ;;  %v13380_v4 = vpop.f32.mrb[29].mxu0 }
 0x2bb   : > { %vm9796_vm7 = vcmp.lt.s32.totalorder %v9795_v23, 0  ;;  %v13362_v45 = vmul.u32.u64.low %v13313_v16, %v2984_v29  ;;  %v13363_v10 = vmul.u32.u64.high %v13313_v16, %v2984_v29, %v13362_v45  ;;  %v2976_v28 = vsel %vm2970_vm4, %v2973_v2, %v2975_v6 }
 0x2bc   : > { %v3112_v43 = vsel %vm9796_vm7, 0, %v9795_v23  ;;  %v16036_v18 = vand.u32 2147483647, %v12781_v36  ;;  %vm3260_vm8 = vcmp.gt.s32.totalorder %v3259_v61, 0  ;;  %v2812_v24 = vmul.f32 %v2811_v40, %v2809_v9 }
 0x2bd   : > { %v16037_v60 = vsub.s32 4, %v13228_v56  ;;  %v3117_v37 = vsub.s32 4294967266, %v3112_v43  ;;  %v3261_v39 = vsel %vm3260_vm8, %v3259_v61, 0  ;;  %11373 = vcosq.f32 %v13353_v3 }
 0x2be   : > { %v3256_v1 = vand.u32 8388607, %v16036_v18  ;;  %vm3043_vm9 = vcmp.lt.s32.totalorder %v12579_v30, 0  ;;  %v3097_v49 = vadd.s32 %v13252_v25, %v13263_v53  ;;  %v2995_v48 = vadd.s32 1, %v13358_v54 }
 0x2bf   : > { %v13373_v47 = vsel %vm2731_vm15, %v16037_v60, %v13228_v56  ;;  %v3263_v63 = vand.u32 31, %v3261_v39  ;;  %v3113_v9 = vsub.s32 32, %v3112_v43  ;;  %v3118_v21 = vadd.s32 127, %v3117_v37 }
 0x2c0   : > { %v2992_v42 = vmul.u32 %v13313_v16, %v2976_v28  ;;  %vm2994_vm1 = vc.u32 %v13363_v10, %v13357_v62  ;;  %v3127_v56 = vsub.s32 4, %v13309_v26  ;;  %v3257_v23 = vor.u32 8388608, %v3256_v1 }
 0x2c1   : > { %v2996_v61 = vsel %vm2994_vm1, %v2995_v48, %v13358_v54  ;;  %v3264_v2 = vsub.s32 32, %v3263_v63  ;;  %v2813_v6 = vxor.u32 2147483648, %v2812_v24  ;;  %v13387_v53 = vshrl.u32 %v3261_v39, 5 }
 0x2c2   : > { %v2997_v25 = vadd.s32 %v2996_v61, %v2992_v42  ;;  %v3148_v8 = vand.u32 2139095040, %v12854_v20  ;;  %v3266_v29 = vshll.u32 %v15907_v50, %v3263_v63  ;;  %v3115_v28 = vshrl.u32 %v3097_v49, %v3113_v9 }
 0x2c3   : > { %v3267_v40 = vshrl.u32 %v15899_v46, %v3264_v2  ;;  %v3270_v16 = vshrl.u32 %v15900_v51, %v3264_v2  ;;  %v3273_v45 = vshrl.u32 %v15901_v38, %v3264_v2  ;;  %v3119_v18 = vshll.u32 %v3118_v21, 23 }
 0x2c4   : > { %v2998_v60 = vadd.s32 536870912, %v2997_v25  ;;  %v3269_v54 = vshll.u32 %v15899_v46, %v3263_v63  ;;  %v3272_v37 = vshll.u32 %v15900_v51, %v3263_v63  ;;  %v3275_v39 = vshll.u32 %v15901_v38, %v3263_v63 }
 0x2c5   : > { %v3268_v1 = vor.u32 %v3267_v40, %v3266_v29  ;;  %v3276_v48 = vshrl.u32 %v15911_v17, %v3264_v2  ;;  %v3278_v11 = vshll.u32 %v15911_v17, %v3263_v63  ;;  %v3279_v59 = vshrl.u32 %v15912_v19, %v3264_v2 }
 0x2c6   : > { %v13398_v42 = vshrl.u32 %v2998_v60, 30  ;;  %v3271_v61 = vor.u32 %v3270_v16, %v3269_v54  ;;  %v3114_v49 = vshll.u32 %v13331_v35, %v3112_v43  ;;  %v3274_v9 = vor.u32 %v3273_v45, %v3272_v37 }
 0x2c7   : > { %v3277_v21 = vor.u32 %v3276_v48, %v3275_v39  ;;  %v16038_v29 = vand.u32 2147483647, %v12475_v44  ;;  %v3128_v16 = vsel %vm3043_vm9, %v3127_v56, %v13309_v26  ;;  %v3280_v60 = vor.u32 %v3279_v59, %v3278_v11  ;;  %v13414_v15 = vpop.eup %11373 }
 0x2c8   : > { %v3000_v63 = vshll.u32 %v13398_v42, 30  ;;  %v3297_v54 = vshll.u32 %v3257_v23, 8  ;;  %16041 = vst [vmem:[#allocation82_spill] sm:$0xff] %v13414_v15  ;;  %v2814_v35 = vsel %vm2731_vm15, %v2813_v6, %v2812_v24  ;;  %v3116_v43 = vor.u32 %v3115_v28, %v3114_v49 }
 0x2c9   : > { %vm13406_vm11 = vcmp.le.f32.partialorder %v16038_v29, 0.7853982  ;;  %vm3281_vm5 = vcmp.lt.s32.totalorder %v13387_v53, 1  ;;  %v3149_v45 = vshrl.u32 %v3148_v8, 23  ;;  %v16042_v37 = vand.u32 2147483647, %v12579_v30 }
 0x2ca   : > { %v3120_v26 = vor.u32 4788187, %v3119_v18  ;;  %v13425_v56 = vsub.s32 %v2997_v25, %v3000_v63  ;;  %vm3284_vm12 = vcmp.lt.s32.totalorder %v13387_v53, 4  ;;  %v3289_v59 = vsel %vm3281_vm5, %v3268_v1, %v3271_v61 }
 0x2cb   : > { %vm13421_vm10 = vcmp.le.f32.partialorder %v16042_v37, 0.7853982  ;;  %vm3283_vm15 = vcmp.lt.s32.totalorder %v13387_v53, 3  ;;  %v3290_v11 = vsel %vm3284_vm12, %v3277_v21, 920167782  ;;  %v3293_v24 = vsel %vm3281_vm5, %v3271_v61, %v3274_v9 }
 0x2cc   : > { %v3294_v23 = vsel %vm3284_vm12, %v3280_v60, 1326507024  ;;  %v3003_v6 = vsub.s32 0, %v13425_v56  ;;  %vm3282_vm0 = vcmp.lt.s32.totalorder %v13387_v53, 2  ;;  %v3286_v8 = vsel %vm3284_vm12, %v3274_v9, 2102212464 }
 0x2cd   : > { %v3291_v25 = vsel %vm3283_vm15, %v3274_v9, %v3290_v11  ;;  %v3123_v28 = vcvt.s32.f32 %v3116_v43  ;;  %v3265_v18 = vshrl.u32 %v15907_v50, %v3264_v2  ;;  %v3295_v49 = vsel %vm3283_vm15, %v3277_v21, %v3294_v23 }
 0x2ce   : > { %v3292_v48 = vsel %vm3282_vm0, %v3289_v59, %v3291_v25  ;;  %v3121_v29 = vand.u32 2147483647, %v3120_v26  ;;  %v9790_v63 = vmin.u32 %v3003_v6, %v13425_v56  ;;  %v3296_v60 = vsel %vm3282_vm0, %v3293_v24, %v3295_v49  ;;  %v13491_v49 = vpop.f32.mrb[30].mxu0 }
 0x2cf   : > { %v9797_v37 = vadd.s32 4294967169, %v3149_v45  ;;  %v3285_v13 = vsel %vm3281_vm5, %v3265_v18, %v3268_v1  ;;  %v3287_v9 = vsel %vm3283_vm15, %v3271_v61, %v3286_v8  ;;  %v13459_v26 = vsel %vm13327_vm13, 0, %v13300_v31 }
 0x2d0   : > { %v13449_v2 = vmul.u32.u64.low %v3297_v54, %v3296_v60  ;;  %v13450_v43 = vmul.u32.u64.high %v3297_v54, %v3296_v60, %v13449_v2  ;;  %v3005_v59 = vclz %v9790_v63  ;;  %16045 = vst [vmem:[#allocation83_spill] sm:$0xff] %v13459_v26  ;;  %11375 = vsinq.f32 %v13353_v3 }
 0x2d1   : > { %v13452_v11 = vmul.u32.u64.low %v3297_v54, %v3292_v48  ;;  %v13453_v25 = vmul.u32.u64.high %v3297_v54, %v3292_v48, %v13452_v11  ;;  %v3155_v21 = vadd.s32 1, %v9797_v37  ;;  %v13465_v1 = vsel %vm13406_vm11, %v12475_v44, %v2814_v35 }
 0x2d2   : > { %v13470_v61 = vsel %vm13406_vm11, 0, %v13373_v47  ;;  %v13472_v45 = vmul.f32 %v3123_v28, %v3121_v29  ;;  %v9791_v24 = vadd.s32 4294967294, %v3005_v59  ;;  %v3288_v55 = vsel %vm3282_vm0, %v3285_v13, %v3287_v9 }
 0x2d3   : > { %16046 = vst [vmem:[#allocation84_spill] sm:$0xff] %v13470_v61  ;;  %vm3156_vm13 = vcmp.gt.s32.totalorder %v3155_v21, 0  ;;  %v13478_v31 = vsel %vm13421_vm10, 0, %v3128_v16  ;;  %vm3306_vm2 = vc.u32 %v13450_v43, %v13452_v11  ;;  %v16048_v3 = vand.u32 2147483647, %v12854_v20 }
 0x2d4   : > { %16047 = vst [vmem:[#allocation85_spill] sm:$0xff] %v13478_v31  ;;  %v3157_v40 = vsel %vm3156_vm13, %v3155_v21, 0  ;;  %11377 = vcosq.f32 %v13465_v1  ;;  %vm9792_vm3 = vcmp.lt.s32.totalorder %v9791_v24, 0  ;;  %v3307_v47 = vadd.s32 1, %v13453_v25 }
 0x2d5   : > { %v3152_v35 = vand.u32 8388607, %v16048_v3  ;;  %v3159_v23 = vand.u32 31, %v3157_v40  ;;  %v2993_v13 = vadd.s32 %v13357_v62, %v13363_v10  ;;  %v3008_v53 = vsel %vm9792_vm3, 0, %v9791_v24 }
 0x2d6   : > { %v3304_v6 = vmul.u32 %v3297_v54, %v3288_v55  ;;  %v3009_v28 = vsub.s32 32, %v3008_v53  ;;  %v3013_v18 = vsub.s32 4294967266, %v3008_v53  ;;  %v3308_v48 = vsel %vm3306_vm2, %v3307_v47, %v13453_v25 }
 0x2d7   : > { %v3153_v63 = vor.u32 8388608, %v3152_v35  ;;  %v3160_v60 = vsub.s32 32, %v3159_v23  ;;  %v3460_v37 = vand.u32 2139095040, %v12942_v57  ;;  %v3010_v9 = vshll.u32 %v13425_v56, %v3008_v53 }
 0x2d8   : > { %v3309_v29 = vadd.s32 %v3308_v48, %v3304_v6  ;;  %v3011_v62 = vshrl.u32 %v2993_v13, %v3009_v28  ;;  %v3014_v10 = vadd.s32 127, %v3013_v18  ;;  %v3162_v2 = vshll.u32 %v15907_v50, %v3159_v23 }
 0x2d9   : > { %v3163_v59 = vshrl.u32 %v15899_v46, %v3160_v60  ;;  %v3165_v21 = vshll.u32 %v15899_v46, %v3159_v23  ;;  %v3166_v25 = vshrl.u32 %v15900_v51, %v3160_v60  ;;  %v3168_v55 = vshll.u32 %v15900_v51, %v3159_v23 }
 0x2da   : > { %v3310_v54 = vadd.s32 536870912, %v3309_v29  ;;  %v3015_v24 = vshll.u32 %v3014_v10, 23  ;;  %v3169_v3 = vshrl.u32 %v15901_v38, %v3160_v60  ;;  %v3172_v35 = vshrl.u32 %v15911_v17, %v3160_v60  ;;  %v13502_v47 = vpop.eup %11375 }
 0x2db   : > { %16049 = vst [vmem:[#allocation86_spill] sm:$0xff] %v13502_v47  ;;  %v3012_v56 = vor.u32 %v3011_v62, %v3010_v9  ;;  %v3158_v53 = vshrl.u32 %v3157_v40, 5  ;;  %v3171_v6 = vshll.u32 %v15901_v38, %v3159_v23  ;;  %v3164_v18 = vor.u32 %v3163_v59, %v3162_v2 }
 0x2dc   : > { %v13504_v13 = vshrl.u32 %v3310_v54, 30  ;;  %v3016_v28 = vor.u32 4788187, %v3015_v24  ;;  %v3167_v48 = vor.u32 %v3166_v25, %v3165_v21  ;;  %v3170_v16 = vor.u32 %v3169_v3, %v3168_v55 }
 0x2dd   : > { %v3173_v8 = vor.u32 %v3172_v35, %v3171_v6  ;;  %v3174_v31 = vshll.u32 %v15911_v17, %v3159_v23  ;;  %v3175_v26 = vshrl.u32 %v15912_v19, %v3160_v60  ;;  %vm2939_vm4 = vcmp.lt.s32.totalorder %v12657_v41, 0 }
 0x2de   : > { %v3312_v10 = vshll.u32 %v13504_v13, 30  ;;  %v13510_v15 = vpop.eup %11377  ;;  %v3017_v9 = vand.u32 2147483647, %v3016_v28  ;;  %v3161_v40 = vshrl.u32 %v15907_v50, %v3160_v60  ;;  %v3193_v62 = vshll.u32 %v3153_v63, 8 }
 0x2df   : > { %16050 = vst [vmem:[#allocation87_spill] sm:$0xff] %v13510_v15  ;;  %v3461_v54 = vshrl.u32 %v3460_v37, 23  ;;  %v3176_v2 = vor.u32 %v3175_v26, %v3174_v31  ;;  %vm3177_vm7 = vcmp.lt.s32.totalorder %v3158_v53, 1  ;;  %vm3180_vm8 = vcmp.lt.s32.totalorder %v3158_v53, 4 }
 0x2e0   : > { %v13514_v24 = vsub.s32 %v3309_v29, %v3312_v10  ;;  %v3019_v59 = vcvt.s32.f32 %v3012_v56  ;;  %vm3178_vm1 = vcmp.lt.s32.totalorder %v3158_v53, 2  ;;  %v3182_v21 = vsel %vm3180_vm8, %v3170_v16, 2102212464 }
 0x2e1   : > { %v3185_v23 = vsel %vm3177_vm7, %v3164_v18, %v3167_v48  ;;  %vm3179_vm11 = vcmp.lt.s32.totalorder %v3158_v53, 3  ;;  %v3186_v55 = vsel %vm3180_vm8, %v3173_v8, 920167782  ;;  %v3189_v3 = vsel %vm3177_vm7, %v3167_v48, %v3170_v16 }
 0x2e2   : > { %v3315_v25 = vsub.s32 0, %v13514_v24  ;;  %v3020_v35 = vmul.f32 %v3019_v59, %v3017_v9  ;;  %vm3251_vm5 = vcmp.lt.s32.totalorder %v12781_v36, 0  ;;  %v3181_v60 = vsel %vm3177_vm7, %v3161_v40, %v3164_v18 }
 0x2e3   : > { %v3187_v63 = vsel %vm3179_vm11, %v3170_v16, %v3186_v55  ;;  %v3190_v37 = vsel %vm3180_vm8, %v3176_v2, 1326507024  ;;  %v16051_v29 = vand.u32 2147483647, %v12657_v41  ;;  %v3183_v56 = vsel %vm3179_vm11, %v3167_v48, %v3182_v21 }
 0x2e4   : > { %v9802_v31 = vmin.u32 %v3315_v25, %v13514_v24  ;;  %v3188_v6 = vsel %vm3178_vm1, %v3185_v23, %v3187_v63  ;;  %v3191_v28 = vsel %vm3179_vm11, %v3173_v8, %v3190_v37  ;;  %v16054_v10 = vxor.u32 2147483648, %v13472_v45 }
 0x2e5   : > { %vm13520_vm12 = vcmp.le.f32.partialorder %v16051_v29, 0.7853982  ;;  %v3192_v16 = vsel %vm3178_vm1, %v3189_v3, %v3191_v28  ;;  %v13532_v9 = vmul.u32.u64.low %v3193_v62, %v3188_v6  ;;  %v13533_v40 = vmul.u32.u64.high %v3193_v62, %v3188_v6, %v13532_v9 }
 0x2e6   : > { %v3126_v18 = vsel %vm3043_vm9, %v16054_v10, %v13472_v45  ;;  %v16055_v2 = vand.u32 2147483647, %v12781_v36  ;;  %v3317_v48 = vclz %v9802_v31  ;;  %v15721_v23 = vand.u32 2147483647, %v12942_v57 }
 0x2e7   : > { %v13542_v8 = vmul.u32.u64.low %v3193_v62, %v3192_v16  ;;  %v13543_v21 = vmul.u32.u64.high %v3193_v62, %v3192_v16, %v13542_v8  ;;  %11379 = vsinq.f32 %v13465_v1  ;;  %v3021_v45 = vxor.u32 2147483648, %v3020_v35 }
 0x2e8   : > { %vm13538_vm15 = vcmp.le.f32.partialorder %v16055_v2, 0.7853982  ;;  %v3184_v25 = vsel %vm3178_vm1, %v3181_v60, %v3183_v56  ;;  %v9809_v55 = vadd.s32 4294967169, %v3461_v54  ;;  %v3129_v3 = vsel %vm13421_vm10, %v12579_v30, %v3126_v18 }
 0x2e9   : > { %v16058_v63 = vsub.s32 4, %v13398_v42  ;;  %v9803_v29 = vadd.s32 4294967294, %v3317_v48  ;;  %v3335_v31 = vsub.s32 4, %v13504_v13  ;;  %v3305_v1 = vadd.s32 %v13452_v11, %v13450_v43 }
 0x2ea   : > { %v3203_v53 = vadd.s32 1, %v13533_v40  ;;  %v3467_v60 = vadd.s32 1, %v9809_v55  ;;  %v3356_v54 = vand.u32 2139095040, %v13032_v58  ;;  %v3200_v39 = vmul.u32 %v3193_v62, %v3184_v25 }
 0x2eb   : > { %v3024_v37 = vsel %vm2939_vm4, %v16058_v63, %v13398_v42  ;;  %vm9804_vm9 = vcmp.lt.s32.totalorder %v9803_v29, 0  ;;  %vm3202_vm10 = vc.u32 %v13543_v21, %v13532_v9  ;;  %v3464_v56 = vand.u32 8388607, %v15721_v23  ;;  %v13565_v42 = vpop.f32.mrb[31].mxu0 }
 0x2ec   : > { %v3022_v6 = vsel %vm2939_vm4, %v3021_v45, %v3020_v35  ;;  %v3320_v28 = vsel %vm9804_vm9, 0, %v9803_v29  ;;  %v3204_v43 = vsel %vm3202_vm10, %v3203_v53, %v13533_v40  ;;  %vm3468_vm0 = vcmp.gt.s32.totalorder %v3467_v60, 0 }
 0x2ed   : > { %v3321_v11 = vsub.s32 32, %v3320_v28  ;;  %v3325_v10 = vsub.s32 4294967266, %v3320_v28  ;;  %v3336_v62 = vsel %vm3251_vm5, %v3335_v31, %v13504_v13  ;;  %v3205_v18 = vadd.s32 %v3204_v43, %v3200_v39 }
 0x2ee   : > { %11381 = vcosq.f32 %v3129_v3  ;;  %v13575_v16 = vsel %vm13520_vm12, 0, %v3024_v37  ;;  %v3469_v2 = vsel %vm3468_vm0, %v3467_v60, 0  ;;  %v3357_v48 = vshrl.u32 %v3356_v54, 23 }
 0x2ef   : > { %16059 = vst [vmem:[#allocation88_spill] sm:$0xff] %v13575_v16  ;;  %v13580_v35 = vsel %vm13520_vm12, %v12657_v41, %v3022_v6  ;;  %v3323_v40 = vshrl.u32 %v3305_v1, %v3321_v11  ;;  %v3326_v8 = vadd.s32 127, %v3325_v10  ;;  %v3206_v45 = vadd.s32 536870912, %v3205_v18 }
 0x2f0   : > { %11383 = vsinq.f32 %v3129_v3  ;;  %v13584_v13 = vsel %vm13538_vm15, 0, %v3336_v62  ;;  %v3471_v25 = vand.u32 31, %v3469_v2  ;;  %v15723_v55 = vand.u32 2147483647, %v13032_v58 }
 0x2f1   : > { %16060 = vst [vmem:[#allocation89_spill] sm:$0xff] %v13584_v13  ;;  %v3322_v63 = vshll.u32 %v13514_v24, %v3320_v28  ;;  %v3327_v37 = vshll.u32 %v3326_v8, 23  ;;  %v13588_v29 = vshrl.u32 %v3206_v45, 30  ;;  %v3465_v31 = vor.u32 8388608, %v3464_v56  ;;  %v13590_v26 = vpop.eup %11379 }
 0x2f2   : > { %16061 = vst [vmem:[#allocation90_spill] sm:$0xff] %v13590_v26  ;;  %11385 = vcosq.f32 %v13580_v35  ;;  %v3470_v1 = vshrl.u32 %v3469_v2, 5  ;;  %v3472_v53 = vsub.s32 32, %v3471_v25  ;;  %v9805_v3 = vadd.s32 4294967169, %v3357_v48 }
 0x2f3   : > { %v3324_v60 = vor.u32 %v3323_v40, %v3322_v63  ;;  %v3208_v54 = vshll.u32 %v13588_v29, 30  ;;  %v3474_v39 = vshll.u32 %v15907_v50, %v3471_v25  ;;  %v3477_v6 = vshll.u32 %v15899_v46, %v3471_v25 }
 0x2f4   : > { %v3475_v24 = vshrl.u32 %v15899_v46, %v3472_v53  ;;  %v3478_v28 = vshrl.u32 %v15900_v51, %v3472_v53  ;;  %v3480_v56 = vshll.u32 %v15900_v51, %v3471_v25  ;;  %v3481_v43 = vshrl.u32 %v15901_v38, %v3472_v53 }
 0x2f5   : > { %v3328_v11 = vor.u32 4788187, %v3327_v37  ;;  %v13600_v10 = vsub.s32 %v3205_v18, %v3208_v54  ;;  %v13602_v62 = vshll.u32 %v3465_v31, 8  ;;  %v13606_v2 = vand.u32 8388607, %v15723_v55 }
 0x2f6   : > { %v3476_v48 = vor.u32 %v3475_v24, %v3474_v39  ;;  %v3479_v40 = vor.u32 %v3478_v28, %v3477_v6  ;;  %v3482_v8 = vor.u32 %v3481_v43, %v3480_v56  ;;  %v3363_v45 = vadd.s32 1, %v9805_v3 }
 0x2f7   : > { %v3211_v63 = vsub.s32 0, %v13600_v10  ;;  %v3483_v23 = vshll.u32 %v15901_v38, %v3471_v25  ;;  %v3484_v13 = vshrl.u32 %v15911_v17, %v3472_v53  ;;  %vm3489_vm13 = vcmp.lt.s32.totalorder %v3470_v1, 1 }
 0x2f8   : > { %v13611_v37 = vpop.eup %11381  ;;  %v3331_v18 = vcvt.s32.f32 %v3324_v60  ;;  %v3473_v31 = vshrl.u32 %v15907_v50, %v3472_v53  ;;  %v3486_v54 = vshll.u32 %v15911_v17, %v3471_v25  ;;  %v3487_v55 = vshrl.u32 %v15912_v19, %v3472_v53 }
 0x2f9   : > { %16062 = vst [vmem:[#allocation91_spill] sm:$0xff] %v13611_v37  ;;  %v3329_v39 = vand.u32 2147483647, %v3328_v11  ;;  %v9798_v6 = vmin.u32 %v3211_v63, %v13600_v10  ;;  %v3485_v3 = vor.u32 %v3484_v13, %v3483_v23  ;;  %vm3492_vm2 = vcmp.lt.s32.totalorder %v3470_v1, 4 }
 0x2fa   : > { %v13617_v24 = vpop.eup %11383  ;;  %v3488_v28 = vor.u32 %v3487_v55, %v3486_v54  ;;  %vm3490_vm3 = vcmp.lt.s32.totalorder %v3470_v1, 2  ;;  %v3494_v56 = vsel %vm3492_vm2, %v3482_v8, 2102212464  ;;  %v3497_v43 = vsel %vm3489_vm13, %v3476_v48, %v3479_v40 }
 0x2fb   : > { %16063 = vst [vmem:[#allocation92_spill] sm:$0xff] %v13617_v24  ;;  %v3213_v37 = vclz %v9798_v6  ;;  %vm3491_vm4 = vcmp.lt.s32.totalorder %v3470_v1, 3  ;;  %v3498_v60 = vsel %vm3492_vm2, %v3485_v3, 920167782  ;;  %v3501_v30 = vsel %vm3489_vm13, %v3479_v40, %v3482_v8 }
 0x2fc   : > { %v13621_v25 = vpop.eup %11385  ;;  %v3493_v53 = vsel %vm3489_vm13, %v3473_v31, %v3476_v48  ;;  %v3495_v11 = vsel %vm3491_vm4, %v3479_v40, %v3494_v56  ;;  %v3499_v63 = vsel %vm3491_vm4, %v3482_v8, %v3498_v60  ;;  %v3502_v23 = vsel %vm3492_vm2, %v3488_v28, 1326507024 }
 0x2fd   : > { %16064 = vst [vmem:[#allocation93_spill] sm:$0xff] %v13621_v25  ;;  %v3201_v13 = vadd.s32 %v13532_v9, %v13543_v21  ;;  %v9799_v55 = vadd.s32 4294967294, %v3213_v37  ;;  %v3500_v54 = vsel %vm3490_vm3, %v3497_v43, %v3499_v63  ;;  %v3503_v24 = vsel %vm3491_vm4, %v3485_v3, %v3502_v23 }
 0x2fe   : > { %v3332_v16 = vmul.f32 %v3331_v18, %v3329_v39  ;;  %v3504_v6 = vsel %vm3490_vm3, %v3501_v30, %v3503_v24  ;;  %v13629_v41 = vmul.u32.u64.low %v13602_v62, %v3500_v54  ;;  %v13630_v47 = vmul.u32.u64.high %v13602_v62, %v3500_v54, %v13629_v41 }
 0x2ff   : > { %vm9800_vm7 = vcmp.lt.s32.totalorder %v9799_v55, 0  ;;  %v3496_v48 = vsel %vm3490_vm3, %v3493_v53, %v3495_v11  ;;  %v13635_v40 = vmul.u32.u64.low %v13602_v62, %v3504_v6  ;;  %v13636_v8 = vmul.u32.u64.high %v13602_v62, %v3504_v6, %v13635_v40 }
 0x300   : > { %v3216_v9 = vsel %vm9800_vm7, 0, %v9799_v55  ;;  %v3361_v21 = vor.u32 8388608, %v13606_v2  ;;  %vm3364_vm8 = vcmp.gt.s32.totalorder %v3363_v45, 0  ;;  %v3668_v37 = vand.u32 2139095040, %v13129_v12 }
 0x301   : > { %v3217_v18 = vsub.s32 32, %v3216_v9  ;;  %v3221_v30 = vsub.s32 4294967266, %v3216_v9  ;;  %v3231_v31 = vsub.s32 4, %v13588_v29  ;;  %v3365_v39 = vsel %vm3364_vm8, %v3363_v45, 0 }
 0x302   : > { %v3333_v3 = vxor.u32 2147483648, %v3332_v16  ;;  %vm3147_vm1 = vcmp.lt.s32.totalorder %v12854_v20, 0  ;;  %v3512_v1 = vmul.u32 %v13602_v62, %v3496_v48  ;;  %v3515_v24 = vadd.s32 1, %v13630_v47 }
 0x303   : > { %v3367_v28 = vand.u32 31, %v3365_v39  ;;  %v3218_v56 = vshll.u32 %v13600_v10, %v3216_v9  ;;  %v3219_v43 = vshrl.u32 %v3201_v13, %v3217_v18  ;;  %v3222_v2 = vadd.s32 127, %v3221_v30 }
 0x304   : > { %vm3514_vm11 = vc.u32 %v13636_v8, %v13629_v41  ;;  %v13648_v53 = vshrl.u32 %v3365_v39, 5  ;;  %v3669_v11 = vshrl.u32 %v3668_v37, 23  ;;  %v13660_v25 = vshll.u32 %v3361_v21, 8 }
 0x305   : > { %v3516_v60 = vsel %vm3514_vm11, %v3515_v24, %v13630_v47  ;;  %v3368_v45 = vsub.s32 32, %v3367_v28  ;;  %v3220_v63 = vor.u32 %v3219_v43, %v3218_v56  ;;  %v3223_v23 = vshll.u32 %v3222_v2, 23 }
 0x306   : > { %v3517_v55 = vadd.s32 %v3516_v60, %v3512_v1  ;;  %v3370_v62 = vshll.u32 %v15907_v50, %v3367_v28  ;;  %v3373_v10 = vshll.u32 %v15899_v46, %v3367_v28  ;;  %v3376_v9 = vshll.u32 %v15900_v51, %v3367_v28 }
 0x307   : > { %v3371_v54 = vshrl.u32 %v15899_v46, %v3368_v45  ;;  %v3374_v13 = vshrl.u32 %v15900_v51, %v3368_v45  ;;  %v3377_v6 = vshrl.u32 %v15901_v38, %v3368_v45  ;;  %v3224_v48 = vor.u32 4788187, %v3223_v23 }
 0x308   : > { %v3227_v40 = vcvt.s32.f32 %v3220_v63  ;;  %v3518_v47 = vadd.s32 536870912, %v3517_v55  ;;  %v3379_v30 = vshll.u32 %v15901_v38, %v3367_v28  ;;  %v3380_v39 = vshrl.u32 %v15911_v17, %v3368_v45 }
 0x309   : > { %v3372_v18 = vor.u32 %v3371_v54, %v3370_v62  ;;  %v3375_v37 = vor.u32 %v3374_v13, %v3373_v10  ;;  %v3225_v1 = vand.u32 2147483647, %v3224_v48  ;;  %v3382_v56 = vshll.u32 %v15911_v17, %v3367_v28 }
 0x30a   : > { %v3519_v24 = vshrl.u32 %v3518_v47, 30  ;;  %v3383_v43 = vshrl.u32 %v15912_v19, %v3368_v45  ;;  %v3378_v2 = vor.u32 %v3377_v6, %v3376_v9  ;;  %v3381_v60 = vor.u32 %v3380_v39, %v3379_v30 }
 0x30b   : > { %v15733_v63 = vand.u32 2147483647, %v13129_v12  ;;  %v16065_v23 = vand.u32 2147483647, %v12854_v20  ;;  %v3228_v54 = vmul.f32 %v3227_v40, %v3225_v1  ;;  %v3232_v10 = vsel %vm3147_vm1, %v3231_v31, %v13588_v29 }
 0x30c   : > { %v3520_v28 = vshll.u32 %v3519_v24, 30  ;;  %v3384_v13 = vor.u32 %v3383_v43, %v3382_v56  ;;  %v3334_v6 = vsel %vm3251_vm5, %v3333_v3, %v3332_v16  ;;  %v3369_v21 = vshrl.u32 %v15907_v50, %v3368_v45 }
 0x30d   : > { %vm13665_vm12 = vcmp.le.f32.partialorder %v16065_v23, 0.7853982  ;;  %vm3385_vm9 = vcmp.lt.s32.totalorder %v13648_v53, 1  ;;  %v9817_v48 = vadd.s32 4294967169, %v3669_v11  ;;  %vm3459_vm10 = vcmp.lt.s32.totalorder %v12942_v57, 0 }
 0x30e   : > { %v13677_v47 = vsub.s32 %v3517_v55, %v3520_v28  ;;  %vm3387_vm0 = vcmp.lt.s32.totalorder %v13648_v53, 3  ;;  %vm3388_vm13 = vcmp.lt.s32.totalorder %v13648_v53, 4  ;;  %v3393_v29 = vsel %vm3385_vm9, %v3372_v18, %v3375_v37 }
 0x30f   : > { %v3390_v31 = vsel %vm3388_vm13, %v3378_v2, 2102212464  ;;  %v3394_v40 = vsel %vm3388_vm13, %v3381_v60, 920167782  ;;  %v3397_v16 = vsel %vm3385_vm9, %v3375_v37, %v3378_v2  ;;  %v3398_v3 = vsel %vm3388_vm13, %v3384_v13, 1326507024 }
 0x310   : > { %v3229_v45 = vxor.u32 2147483648, %v3228_v54  ;;  %v3523_v11 = vsub.s32 0, %v13677_v47  ;;  %vm3386_vm5 = vcmp.lt.s32.totalorder %v13648_v53, 2  ;;  %v3395_v55 = vsel %vm3387_vm0, %v3378_v2, %v3394_v40 }
 0x311   : > { %v13692_v9 = vsel %vm13538_vm15, %v12781_v36, %v3334_v6  ;;  %v3396_v30 = vsel %vm3386_vm5, %v3393_v29, %v3395_v55  ;;  %v3399_v39 = vsel %vm3387_vm0, %v3381_v60, %v3398_v3  ;;  %v3672_v1 = vand.u32 8388607, %v15733_v63 }
 0x312   : > { %v9810_v56 = vmin.u32 %v3523_v11, %v13677_v47  ;;  %v3389_v43 = vsel %vm3385_vm9, %v3369_v21, %v3372_v18  ;;  %v3391_v2 = vsel %vm3387_vm0, %v3375_v37, %v3390_v31  ;;  %v3400_v59 = vsel %vm3386_vm5, %v3397_v16, %v3399_v39 }
 0x313   : > { %v3543_v23 = vsub.s32 4, %v3519_v24  ;;  %v13708_v28 = vmul.u32.u64.low %v13660_v25, %v3400_v59  ;;  %v13709_v13 = vmul.u32.u64.high %v13660_v25, %v3400_v59, %v13708_v28  ;;  %v3675_v60 = vadd.s32 1, %v9817_v48 }
 0x314   : > { %v3230_v6 = vsel %vm3147_vm1, %v3229_v45, %v3228_v54  ;;  %v3525_v29 = vclz %v9810_v56  ;;  %v13714_v40 = vmul.u32.u64.low %v13660_v25, %v3396_v30  ;;  %v13715_v3 = vmul.u32.u64.high %v13660_v25, %v3396_v30, %v13714_v40 }
 0x315   : > { %11387 = vsinq.f32 %v13580_v35  ;;  %v13721_v18 = vsel %vm13665_vm12, 0, %v3232_v10  ;;  %v3392_v37 = vsel %vm3386_vm5, %v3389_v43, %v3391_v2  ;;  %vm3676_vm15 = vcmp.gt.s32.totalorder %v3675_v60, 0 }
 0x316   : > { %16068 = vst [vmem:[#allocation94_spill] sm:$0xff] %v13721_v18  ;;  %11389 = vcosq.f32 %v13692_v9  ;;  %v3513_v54 = vadd.s32 %v13629_v41, %v13636_v8  ;;  %v9811_v21 = vadd.s32 4294967294, %v3525_v29  ;;  %v3677_v48 = vsel %vm3676_vm15, %v3675_v60, 0 }
 0x317   : > { %v13731_v31 = vsel %vm13665_vm12, %v12854_v20, %v3230_v6  ;;  %v13735_v35 = vsel %vm3459_vm10, %v3543_v23, %v3519_v24  ;;  %vm3410_vm2 = vc.u32 %v13709_v13, %v13714_v40  ;;  %v3679_v53 = vand.u32 31, %v3677_v48 }
 0x318   : > { %vm9812_vm3 = vcmp.lt.s32.totalorder %v9811_v21, 0  ;;  %v3408_v10 = vmul.u32 %v13660_v25, %v3392_v37  ;;  %v3411_v41 = vadd.s32 1, %v13715_v3  ;;  %v3673_v8 = vor.u32 8388608, %v3672_v1 }
 0x319   : > { %v3528_v16 = vsel %vm9812_vm3, 0, %v9811_v21  ;;  %v13741_v45 = vshrl.u32 %v3677_v48, 5  ;;  %v3680_v62 = vsub.s32 32, %v3679_v53  ;;  %v3564_v11 = vand.u32 2139095040, %v13207_v5 }
 0x31a   : > { %v3529_v55 = vsub.s32 32, %v3528_v16  ;;  %v3533_v30 = vsub.s32 4294967266, %v3528_v16  ;;  %v3412_v24 = vsel %vm3410_vm2, %v3411_v41, %v13715_v3  ;;  %v3682_v39 = vshll.u32 %v15907_v50, %v3679_v53 }
 0x31b   : > { %v3413_v56 = vadd.s32 %v3412_v24, %v3408_v10  ;;  %v3683_v43 = vshrl.u32 %v15899_v46, %v3680_v62  ;;  %v3685_v25 = vshll.u32 %v15899_v46, %v3679_v53  ;;  %v3686_v2 = vshrl.u32 %v15900_v51, %v3680_v62 }
 0x31c   : > { %v3530_v1 = vshll.u32 %v13677_v47, %v3528_v16  ;;  %v3531_v59 = vshrl.u32 %v3513_v54, %v3529_v55  ;;  %v3534_v23 = vadd.s32 127, %v3533_v30  ;;  %v3689_v28 = vshrl.u32 %v15901_v38, %v3680_v62 }
 0x31d   : > { %v3414_v60 = vadd.s32 536870912, %v3413_v56  ;;  %v3684_v6 = vor.u32 %v3683_v43, %v3682_v39  ;;  %v3687_v29 = vor.u32 %v3686_v2, %v3685_v25  ;;  %v3688_v3 = vshll.u32 %v15900_v51, %v3679_v53 }
 0x31e   : > { %v3532_v37 = vor.u32 %v3531_v59, %v3530_v1  ;;  %v3535_v21 = vshll.u32 %v3534_v23, 23  ;;  %v3691_v48 = vshll.u32 %v15901_v38, %v3679_v53  ;;  %v3692_v10 = vshrl.u32 %v15911_v17, %v3680_v62 }
 0x31f   : > { %v13754_v41 = vpop.eup %11387  ;;  %v16070_v24 = vand.u32 2147483647, %v12942_v57  ;;  %v3415_v54 = vshrl.u32 %v3414_v60, 30  ;;  %v3695_v16 = vshrl.u32 %v15912_v19, %v3680_v62  ;;  %v13763_v55 = vshll.u32 %v3673_v8, 8 }
 0x320   : > { %16069 = vst [vmem:[#allocation95_spill] sm:$0xff] %v13754_v41  ;;  %v3565_v30 = vshrl.u32 %v3564_v11, 23  ;;  %v13765_v39 = vpop.eup %11389  ;;  %v3536_v43 = vor.u32 4788187, %v3535_v21  ;;  %v3690_v25 = vor.u32 %v3689_v28, %v3688_v3  ;;  %v3693_v2 = vor.u32 %v3692_v10, %v3691_v48 }
 0x321   : > { %vm13758_vm4 = vcmp.le.f32.partialorder %v16070_v24, 0.7853982  ;;  %16073 = vst [vmem:[#allocation96_spill] sm:$0xff] %v13765_v39  ;;  %v3694_v1 = vshll.u32 %v15911_v17, %v3679_v53  ;;  %v3539_v59 = vcvt.s32.f32 %v3532_v37  ;;  %v3416_v23 = vshll.u32 %v3415_v54, 30 }
 0x322   : > { %v3681_v24 = vshrl.u32 %v15907_v50, %v3680_v62  ;;  %vm3697_vm7 = vcmp.lt.s32.totalorder %v13741_v45, 1  ;;  %v3537_v63 = vand.u32 2147483647, %v3536_v43  ;;  %vm3355_vm8 = vcmp.lt.s32.totalorder %v13032_v58, 0 }
 0x323   : > { %v3696_v60 = vor.u32 %v3695_v16, %v3694_v1  ;;  %vm3700_vm1 = vcmp.lt.s32.totalorder %v13741_v45, 4  ;;  %v3705_v8 = vsel %vm3697_vm7, %v3684_v6, %v3687_v29  ;;  %v13774_v11 = vsub.s32 %v3413_v56, %v3416_v23 }
 0x324   : > { %vm3698_vm11 = vcmp.lt.s32.totalorder %v13741_v45, 2  ;;  %vm3699_vm12 = vcmp.lt.s32.totalorder %v13741_v45, 3  ;;  %v3706_v53 = vsel %vm3700_vm1, %v3693_v2, 920167782  ;;  %v3540_v62 = vmul.f32 %v3539_v59, %v3537_v63 }
 0x325   : > { %v3439_v28 = vsub.s32 4, %v3415_v54  ;;  %v3702_v3 = vsel %vm3700_vm1, %v3690_v25, 2102212464  ;;  %v3707_v37 = vsel %vm3699_vm12, %v3690_v25, %v3706_v53  ;;  %v16074_v21 = vand.u32 2147483647, %v13032_v58 }
 0x326   : > { %v3419_v48 = vsub.s32 0, %v13774_v11  ;;  %v3701_v10 = vsel %vm3697_vm7, %v3681_v24, %v3684_v6  ;;  %v3708_v63 = vsel %vm3698_vm11, %v3705_v8, %v3707_v37  ;;  %v3709_v16 = vsel %vm3697_vm7, %v3687_v29, %v3690_v25 }
 0x327   : > { %vm13786_vm9 = vcmp.le.f32.partialorder %v16074_v21, 0.7853982  ;;  %v3541_v43 = vxor.u32 2147483648, %v3540_v62  ;;  %v3710_v1 = vsel %vm3700_vm1, %v3696_v60, 1326507024  ;;  %v3703_v6 = vsel %vm3699_vm12, %v3687_v29, %v3702_v3 }
 0x328   : > { %v13800_v59 = vmul.u32.u64.low %v13763_v55, %v3708_v63  ;;  %v13801_v23 = vmul.u32.u64.high %v13763_v55, %v3708_v63, %v13800_v59  ;;  %v9806_v53 = vmin.u32 %v3419_v48, %v13774_v11  ;;  %v3711_v24 = vsel %vm3699_vm12, %v3693_v2, %v3710_v1 }
 0x329   : > { %v9813_v8 = vadd.s32 4294967169, %v3565_v30  ;;  %11391 = vsinq.f32 %v13692_v9  ;;  %v13813_v25 = vsel %vm13758_vm4, 0, %v13735_v35  ;;  %v3712_v60 = vsel %vm3698_vm11, %v3709_v16, %v3711_v24 }
 0x32a   : > { %16077 = vst [vmem:[#allocation97_spill] sm:$0xff] %v13813_v25  ;;  %v15734_v37 = vand.u32 2147483647, %v13207_v5  ;;  %v3542_v21 = vsel %vm3459_vm10, %v3541_v43, %v3540_v62  ;;  %v3421_v29 = vclz %v9806_v53  ;;  %11393 = vcosq.f32 %v13731_v31 }
 0x32b   : > { %v13821_v3 = vmul.u32.u64.low %v13763_v55, %v3712_v60  ;;  %v13822_v2 = vmul.u32.u64.high %v13763_v55, %v3712_v60, %v13821_v3  ;;  %v3704_v9 = vsel %vm3698_vm11, %v3701_v10, %v3703_v6  ;;  %v3723_v35 = vadd.s32 1, %v13801_v23 }
 0x32c   : > { %v3571_v30 = vadd.s32 1, %v9813_v8  ;;  %11395 = vsinq.f32 %v13731_v31  ;;  %v9807_v48 = vadd.s32 4294967294, %v3421_v29  ;;  %v3440_v63 = vsel %vm3355_vm8, %v3439_v28, %v3415_v54 }
 0x32d   : > { %v15743_v62 = vand.u32 2147483647, %v13291_v52  ;;  %v13835_v16 = vsel %vm13758_vm4, %v12942_v57, %v3542_v21  ;;  %v3409_v45 = vadd.s32 %v13714_v40, %v13709_v13  ;;  %v3568_v10 = vand.u32 8388607, %v15734_v37 }
 0x32e   : > { %vm3572_vm10 = vcmp.gt.s32.totalorder %v3571_v30, 0  ;;  %vm9808_vm0 = vcmp.lt.s32.totalorder %v9807_v48, 0  ;;  %v3720_v31 = vmul.u32 %v13763_v55, %v3704_v9  ;;  %vm3722_vm13 = vc.u32 %v13822_v2, %v13800_v59 }
 0x32f   : > { %v3573_v54 = vsel %vm3572_vm10, %v3571_v30, 0  ;;  %v3424_v28 = vsel %vm9808_vm0, 0, %v9807_v48  ;;  %v13846_v47 = vsel %vm13786_vm9, 0, %v3440_v63  ;;  %v3724_v43 = vsel %vm3722_vm13, %v3723_v35, %v13801_v23 }
 0x330   : > { %16078 = vst [vmem:[#allocation98_spill] sm:$0xff] %v13846_v47  ;;  %v3575_v1 = vand.u32 31, %v3573_v54  ;;  %11397 = vcosq.f32 %v13835_v16  ;;  %v3425_v13 = vsub.s32 32, %v3424_v28  ;;  %v3429_v40 = vsub.s32 4294967266, %v3424_v28 }
 0x331   : > { %v3725_v53 = vadd.s32 %v3724_v43, %v3720_v31  ;;  %v3426_v6 = vshll.u32 %v13774_v11, %v3424_v28  ;;  %v3569_v55 = vor.u32 8388608, %v3568_v10  ;;  %v3876_v8 = vand.u32 2139095040, %v13291_v52 }
 0x332   : > { %v3576_v24 = vsub.s32 32, %v3575_v1  ;;  %v3427_v60 = vshrl.u32 %v3409_v45, %v3425_v13  ;;  %v3430_v21 = vadd.s32 127, %v3429_v40  ;;  %v3578_v3 = vshll.u32 %v15907_v50, %v3575_v1 }
 0x333   : > { %v3726_v29 = vadd.s32 536870912, %v3725_v53  ;;  %v13853_v9 = vpop.eup %11391  ;;  %v3581_v35 = vshll.u32 %v15899_v46, %v3575_v1  ;;  %v3574_v28 = vshrl.u32 %v3573_v54, 5  ;;  %v3584_v43 = vshll.u32 %v15900_v51, %v3575_v1 }
 0x334   : > { %16079 = vst [vmem:[#allocation99_spill] sm:$0xff] %v13853_v9  ;;  %v3579_v23 = vshrl.u32 %v15899_v46, %v3576_v24  ;;  %v3582_v30 = vshrl.u32 %v15900_v51, %v3576_v24  ;;  %v3585_v48 = vshrl.u32 %v15901_v38, %v3576_v24  ;;  %v3428_v11 = vor.u32 %v3427_v60, %v3426_v6  ;;  %v13860_v45 = vpop.eup %11393 }
 0x335   : > { %v3431_v63 = vshll.u32 %v3430_v21, 23  ;;  %v3727_v10 = vshrl.u32 %v3726_v29, 30  ;;  %v3588_v31 = vshrl.u32 %v15911_v17, %v3576_v24  ;;  %16080 = vst [vmem:[#allocation100_spill] sm:$0xff] %v13860_v45  ;;  %v3587_v13 = vshll.u32 %v15901_v38, %v3575_v1 }
 0x336   : > { %v13866_v40 = vand.u32 8388607, %v15743_v62  ;;  %v13868_v37 = vpop.eup %11395  ;;  %v3580_v6 = vor.u32 %v3579_v23, %v3578_v3  ;;  %v3583_v60 = vor.u32 %v3582_v30, %v3581_v35  ;;  %v3586_v21 = vor.u32 %v3585_v48, %v3584_v43 }
 0x337   : > { %16081 = vst [vmem:[#allocation101_spill] sm:$0xff] %v13868_v37  ;;  %v3432_v25 = vor.u32 4788187, %v3431_v63  ;;  %v3728_v57 = vshll.u32 %v3727_v10, 30  ;;  %v3589_v29 = vor.u32 %v3588_v31, %v3587_v13  ;;  %v3590_v47 = vshll.u32 %v15911_v17, %v3575_v1 }
 0x338   : > { %v3591_v54 = vshrl.u32 %v15912_v19, %v3576_v24  ;;  %v3435_v9 = vcvt.s32.f32 %v3428_v11  ;;  %vm3667_vm5 = vcmp.lt.s32.totalorder %v13129_v12, 0  ;;  %v3609_v62 = vshll.u32 %v3569_v55, 8 }
 0x339   : > { %v3433_v39 = vand.u32 2147483647, %v3432_v25  ;;  %v13873_v36 = vsub.s32 %v3725_v53, %v3728_v57  ;;  %v3577_v18 = vshrl.u32 %v15907_v50, %v3576_v24  ;;  %vm3593_vm15 = vcmp.lt.s32.totalorder %v3574_v28, 1 }
 0x33a   : > { %v3592_v45 = vor.u32 %v3591_v54, %v3590_v47  ;;  %vm3595_vm2 = vcmp.lt.s32.totalorder %v3574_v28, 3  ;;  %v13876_v3 = vpop.eup %11397  ;;  %vm3596_vm3 = vcmp.lt.s32.totalorder %v3574_v28, 4  ;;  %v3601_v1 = vsel %vm3593_vm15, %v3580_v6, %v3583_v60 }
 0x33b   : > { %16082 = vst [vmem:[#allocation102_spill] sm:$0xff] %v13876_v3  ;;  %v3436_v23 = vmul.f32 %v3435_v9, %v3433_v39  ;;  %v3731_v35 = vsub.s32 0, %v13873_v36  ;;  %v16083_v25 = vand.u32 2147483647, %v13129_v12  ;;  %v3598_v57 = vsel %vm3596_vm3, %v3586_v21, 2102212464 }
 0x33c   : > { %v3602_v53 = vsel %vm3596_vm3, %v3589_v29, 920167782  ;;  %v3605_v47 = vsel %vm3593_vm15, %v3583_v60, %v3586_v21  ;;  %v3606_v55 = vsel %vm3596_vm3, %v3592_v45, 1326507024  ;;  %vm3594_vm7 = vcmp.lt.s32.totalorder %v3574_v28, 2 }
 0x33d   : > { %vm13882_vm4 = vcmp.le.f32.partialorder %v16083_v25, 0.7853982  ;;  %v3437_v24 = vxor.u32 2147483648, %v3436_v23  ;;  %v9818_v48 = vmin.u32 %v3731_v35, %v13873_v36  ;;  %v3603_v39 = vsel %vm3595_vm2, %v3586_v21, %v3602_v53 }
 0x33e   : > { %v3751_v9 = vsub.s32 4, %v3727_v10  ;;  %v3604_v11 = vsel %vm3594_vm7, %v3601_v1, %v3603_v39  ;;  %v3607_v63 = vsel %vm3595_vm2, %v3589_v29, %v3606_v55  ;;  %v3877_v31 = vshrl.u32 %v3876_v8, 23 }
 0x33f   : > { %v3733_v43 = vclz %v9818_v48  ;;  %v3597_v13 = vsel %vm3593_vm15, %v3577_v18, %v3580_v6  ;;  %v3599_v54 = vsel %vm3595_vm2, %v3583_v60, %v3598_v57  ;;  %v3608_v25 = vsel %vm3594_vm7, %v3605_v47, %v3607_v63 }
 0x340   : > { %v3438_v45 = vsel %vm3355_vm8, %v3437_v24, %v3436_v23  ;;  %v13896_v35 = vmul.u32.u64.low %v3609_v62, %v3608_v25  ;;  %v13897_v3 = vmul.u32.u64.high %v3609_v62, %v3608_v25, %v13896_v35  ;;  %v9825_v21 = vadd.s32 4294967169, %v3877_v31 }
 0x341   : > { %11399 = vsinq.f32 %v13835_v16  ;;  %v9819_v1 = vadd.s32 4294967294, %v3733_v43  ;;  %v13900_v53 = vmul.u32.u64.low %v3609_v62, %v3604_v11  ;;  %v13901_v29 = vmul.u32.u64.high %v3609_v62, %v3604_v11, %v13900_v53 }
 0x342   : > { %v3721_v18 = vadd.s32 %v13800_v59, %v13822_v2  ;;  %v3752_v8 = vsel %vm3667_vm5, %v3751_v9, %v3727_v10  ;;  %v3883_v6 = vadd.s32 1, %v9825_v21  ;;  %v15747_v60 = vand.u32 2147483647, %v13380_v4 }
 0x343   : > { %v3441_v23 = vsel %vm13786_vm9, %v13032_v58, %v3438_v45  ;;  %vm9820_vm8 = vcmp.lt.s32.totalorder %v9819_v1, 0  ;;  %v3600_v16 = vsel %vm3594_vm7, %v3597_v13, %v3599_v54  ;;  %v3772_v57 = vand.u32 2139095040, %v13380_v4 }
 0x344   : > { %v3736_v47 = vsel %vm9820_vm8, 0, %v9819_v1  ;;  %vm3618_vm1 = vc.u32 %v13897_v3, %v13900_v53  ;;  %v3881_v59 = vor.u32 8388608, %v13866_v40  ;;  %vm3884_vm11 = vcmp.gt.s32.totalorder %v3883_v6, 0 }
 0x345   : > { %v3737_v2 = vsub.s32 32, %v3736_v47  ;;  %v3741_v10 = vsub.s32 4294967266, %v3736_v47  ;;  %v13919_v55 = vsel %vm13882_vm4, 0, %v3752_v8  ;;  %v3619_v56 = vadd.s32 1, %v13901_v29 }
 0x346   : > { %16086 = vst [vmem:[#allocation103_spill] sm:$0xff] %v13919_v55  ;;  %11401 = vcosq.f32 %v3441_v23  ;;  %v3616_v28 = vmul.u32 %v3609_v62, %v3600_v16  ;;  %v3885_v24 = vsel %vm3884_vm11, %v3883_v6, 0  ;;  %v3773_v48 = vshrl.u32 %v3772_v57, 23 }
 0x347   : > { %v3738_v39 = vshll.u32 %v13873_v36, %v3736_v47  ;;  %v3739_v9 = vshrl.u32 %v3721_v18, %v3737_v2  ;;  %v3742_v11 = vadd.s32 127, %v3741_v10  ;;  %v3620_v63 = vsel %vm3618_vm1, %v3619_v56, %v13901_v29 }
 0x348   : > { %11403 = vsinq.f32 %v3441_v23  ;;  %v3621_v40 = vadd.s32 %v3620_v63, %v3616_v28  ;;  %v3887_v31 = vand.u32 31, %v3885_v24  ;;  %v13924_v43 = vshll.u32 %v3881_v59, 8 }
 0x349   : > { %v3740_v13 = vor.u32 %v3739_v9, %v3738_v39  ;;  %v3743_v54 = vshll.u32 %v3742_v11, 23  ;;  %v13928_v25 = vand.u32 8388607, %v15747_v60  ;;  %v3886_v35 = vshrl.u32 %v3885_v24, 5 }
 0x34a   : > { %v3622_v45 = vadd.s32 536870912, %v3621_v40  ;;  %v3888_v36 = vsub.s32 32, %v3887_v31  ;;  %v9821_v21 = vadd.s32 4294967169, %v3773_v48  ;;  %v3890_v8 = vshll.u32 %v15907_v50, %v3887_v31 }
 0x34b   : > { %v13931_v1 = vpop.eup %11399  ;;  %v3744_v29 = vor.u32 4788187, %v3743_v54  ;;  %v3747_v18 = vcvt.s32.f32 %v3740_v13  ;;  %v3893_v6 = vshll.u32 %v15899_v46, %v3887_v31  ;;  %v3896_v47 = vshll.u32 %v15900_v51, %v3887_v31 }
 0x34c   : > { %16087 = vst [vmem:[#allocation104_spill] sm:$0xff] %v13931_v1  ;;  %v3623_v23 = vshrl.u32 %v3622_v45, 30  ;;  %v3891_v16 = vshrl.u32 %v15899_v46, %v3888_v36  ;;  %v3894_v57 = vshrl.u32 %v15900_v51, %v3888_v36  ;;  %vm3563_vm12 = vcmp.lt.s32.totalorder %v13207_v5, 0 }
 0x34d   : > { %v3745_v59 = vand.u32 2147483647, %v3744_v29  ;;  %v3897_v2 = vshrl.u32 %v15901_v38, %v3888_v36  ;;  %v3899_v10 = vshll.u32 %v15901_v38, %v3887_v31  ;;  %v3900_v56 = vshrl.u32 %v15911_v17, %v3888_v36 }
 0x34e   : > { %v3624_v28 = vshll.u32 %v3623_v23, 30  ;;  %v3892_v24 = vor.u32 %v3891_v16, %v3890_v8  ;;  %v3895_v48 = vor.u32 %v3894_v57, %v3893_v6  ;;  %v3902_v39 = vshll.u32 %v15911_v17, %v3887_v31 }
 0x34f   : > { %v3748_v9 = vmul.f32 %v3747_v18, %v3745_v59  ;;  %v3898_v11 = vor.u32 %v3897_v2, %v3896_v47  ;;  %v3901_v63 = vor.u32 %v3900_v56, %v3899_v10  ;;  %v3903_v13 = vshrl.u32 %v15912_v19, %v3888_v36 }
 0x350   : > { %v13944_v54 = vpop.eup %11401  ;;  %v16089_v45 = vand.u32 2147483647, %v13207_v5  ;;  %v13952_v60 = vsub.s32 %v3621_v40, %v3624_v28  ;;  %v3647_v62 = vsub.s32 4, %v3623_v23  ;;  %v3889_v8 = vshrl.u32 %v15907_v50, %v3888_v36 }
 0x351   : > { %16088 = vst [vmem:[#allocation105_spill] sm:$0xff] %v13944_v54  ;;  %vm3905_vm10 = vcmp.lt.s32.totalorder %v3886_v35, 1  ;;  %v3749_v31 = vxor.u32 2147483648, %v3748_v9  ;;  %v3904_v18 = vor.u32 %v3903_v13, %v3902_v39  ;;  %vm3907_vm0 = vcmp.lt.s32.totalorder %v3886_v35, 3 }
 0x352   : > { %vm13948_vm9 = vcmp.le.f32.partialorder %v16089_v45, 0.7853982  ;;  %vm3908_vm13 = vcmp.lt.s32.totalorder %v3886_v35, 4  ;;  %v13955_v6 = vpop.eup %11403  ;;  %v3627_v16 = vsub.s32 0, %v13952_v60  ;;  %v3913_v47 = vsel %vm3905_vm10, %v3892_v24, %v3895_v48 }
 0x353   : > { %16092 = vst [vmem:[#allocation106_spill] sm:$0xff] %v13955_v6  ;;  %v3910_v57 = vsel %vm3908_vm13, %v3898_v11, 2102212464  ;;  %v3914_v59 = vsel %vm3908_vm13, %v3901_v63, 920167782  ;;  %v3750_v40 = vsel %vm3667_vm5, %v3749_v31, %v3748_v9  ;;  %vm3906_vm15 = vcmp.lt.s32.totalorder %v3886_v35, 2 }
 0x354   : > { %v3909_v2 = vsel %vm3905_vm10, %v3889_v8, %v3892_v24  ;;  %v3915_v36 = vsel %vm3907_vm0, %v3898_v11, %v3914_v59  ;;  %v9814_v10 = vmin.u32 %v3627_v16, %v13952_v60  ;;  %v3911_v56 = vsel %vm3907_vm0, %v3895_v48, %v3910_v57 }
 0x355   : > { %v3916_v28 = vsel %vm3906_vm15, %v3913_v47, %v3915_v36  ;;  %v3917_v39 = vsel %vm3905_vm10, %v3895_v48, %v3898_v11  ;;  %v3918_v13 = vsel %vm3908_vm13, %v3904_v18, 1326507024  ;;  %v3777_v9 = vor.u32 8388608, %v13928_v25 }
 0x356   : > { %v13968_v45 = vmul.u32.u64.low %v13924_v43, %v3916_v28  ;;  %v13969_v55 = vmul.u32.u64.high %v13924_v43, %v3916_v28, %v13968_v45  ;;  %v3753_v24 = vsel %vm13882_vm4, %v13129_v12, %v3750_v40  ;;  %v3629_v8 = vclz %v9814_v10 }
 0x357   : > { %v3648_v31 = vsel %vm3563_vm12, %v3647_v62, %v3623_v23  ;;  %v3919_v16 = vsel %vm3907_vm0, %v3901_v63, %v3918_v13  ;;  %v3617_v48 = vadd.s32 %v13900_v53, %v13897_v3  ;;  %v3912_v11 = vsel %vm3906_vm15, %v3909_v2, %v3911_v56 }
 0x358   : > { %v3920_v18 = vsel %vm3906_vm15, %v3917_v39, %v3919_v16  ;;  %v3779_v57 = vadd.s32 1, %v9821_v21  ;;  %v9815_v47 = vadd.s32 4294967294, %v3629_v8  ;;  %v4084_v30 = vand.u32 2139095040, %v13491_v49 }
 0x359   : > { %v13984_v25 = vmul.u32.u64.low %v13924_v43, %v3920_v18  ;;  %v13985_v59 = vmul.u32.u64.high %v13924_v43, %v3920_v18, %v13984_v25  ;;  %11405 = vcosq.f32 %v3753_v24  ;;  %v13990_v62 = vsel %vm13948_vm9, 0, %v3648_v31 }
 0x35a   : > { %16093 = vst [vmem:[#allocation107_spill] sm:$0xff] %v13990_v62  ;;  %vm3780_vm5 = vcmp.gt.s32.totalorder %v3779_v57, 0  ;;  %v13992_v23 = vshll.u32 %v3777_v9, 8  ;;  %11407 = vsinq.f32 %v3753_v24  ;;  %vm9816_vm2 = vcmp.lt.s32.totalorder %v9815_v47, 0 }
 0x35b   : > { %v3931_v3 = vadd.s32 1, %v13969_v55  ;;  %v3781_v53 = vsel %vm3780_vm5, %v3779_v57, 0  ;;  %v3632_v35 = vsel %vm9816_vm2, 0, %v9815_v47  ;;  %v3928_v21 = vmul.u32 %v13924_v43, %v3912_v11 }
 0x35c   : > { %v3783_v63 = vand.u32 31, %v3781_v53  ;;  %v16094_v40 = vand.u32 2147483647, %v13491_v49  ;;  %v3633_v36 = vsub.s32 32, %v3632_v35  ;;  %v3637_v10 = vsub.s32 4294967266, %v3632_v35 }
 0x35d   : > { %v4085_v56 = vshrl.u32 %v4084_v30, 23  ;;  %v3634_v39 = vshll.u32 %v13952_v60, %v3632_v35  ;;  %vm3930_vm3 = vc.u32 %v13985_v59, %v13968_v45  ;;  %v3782_v13 = vshrl.u32 %v3781_v53, 5 }
 0x35e   : > { %v13998_v2 = vand.u32 8388607, %v16094_v40  ;;  %v3784_v9 = vsub.s32 32, %v3783_v63  ;;  %v3635_v24 = vshrl.u32 %v3617_v48, %v3633_v36  ;;  %v3638_v8 = vadd.s32 127, %v3637_v10 }
 0x35f   : > { %v3932_v43 = vsel %vm3930_vm3, %v3931_v3, %v13969_v55  ;;  %v3786_v31 = vshll.u32 %v15907_v50, %v3783_v63  ;;  %v3789_v18 = vshll.u32 %v15899_v46, %v3783_v63  ;;  %vm3875_vm4 = vcmp.lt.s32.totalorder %v13291_v52, 0 }
 0x360   : > { %v3933_v16 = vadd.s32 %v3932_v43, %v3928_v21  ;;  %v3787_v11 = vshrl.u32 %v15899_v46, %v3784_v9  ;;  %v3790_v57 = vshrl.u32 %v15900_v51, %v3784_v9  ;;  %v3636_v47 = vor.u32 %v3635_v24, %v3634_v39 }
 0x361   : > { %v3639_v60 = vshll.u32 %v3638_v8, 23  ;;  %v3792_v25 = vshll.u32 %v15900_v51, %v3783_v63  ;;  %v3793_v48 = vshrl.u32 %v15901_v38, %v3784_v9  ;;  %v3785_v55 = vshrl.u32 %v15907_v50, %v3784_v9 }
 0x362   : > { %v3934_v30 = vadd.s32 536870912, %v3933_v16  ;;  %v3795_v3 = vshll.u32 %v15901_v38, %v3783_v63  ;;  %v3796_v53 = vshrl.u32 %v15911_v17, %v3784_v9  ;;  %v3788_v21 = vor.u32 %v3787_v11, %v3786_v31 }
 0x363   : > { %v3640_v35 = vor.u32 4788187, %v3639_v60  ;;  %v3791_v40 = vor.u32 %v3790_v57, %v3789_v18  ;;  %v3794_v36 = vor.u32 %v3793_v48, %v3792_v25  ;;  %v14015_v10 = vpop.eup %11405  ;;  %v3798_v8 = vshll.u32 %v15911_v17, %v3783_v63 }
 0x364   : > { %16095 = vst [vmem:[#allocation108_spill] sm:$0xff] %v14015_v10  ;;  %v3935_v39 = vshrl.u32 %v3934_v30, 30  ;;  %v3797_v24 = vor.u32 %v3796_v53, %v3795_v3  ;;  %v3799_v43 = vshrl.u32 %v15912_v19, %v3784_v9  ;;  %v14019_v28 = vpop.eup %11407  ;;  %v3643_v62 = vcvt.s32.f32 %v3636_v47 }
 0x365   : > { %16096 = vst [vmem:[#allocation109_spill] sm:$0xff] %v14019_v28  ;;  %v3641_v12 = vand.u32 2147483647, %v3640_v35  ;;  %v16097_v1 = vand.u32 2147483647, %v13291_v52  ;;  %vm3801_vm8 = vcmp.lt.s32.totalorder %v3782_v13, 1 }
 0x366   : > { %vm3803_vm1 = vcmp.lt.s32.totalorder %v3782_v13, 3  ;;  %v3936_v31 = vshll.u32 %v3935_v39, 30  ;;  %v3959_v11 = vsub.s32 4, %v3935_v39  ;;  %v3800_v18 = vor.u32 %v3799_v43, %v3798_v8 }
 0x367   : > { %vm14023_vm7 = vcmp.le.f32.partialorder %v16097_v1, 0.7853982  ;;  %vm3804_vm11 = vcmp.lt.s32.totalorder %v3782_v13, 4  ;;  %v3644_v57 = vmul.f32 %v3643_v62, %v3641_v12  ;;  %v3809_v9 = vsel %vm3801_vm8, %v3788_v21, %v3791_v40 }
 0x368   : > { %v3806_v63 = vsel %vm3804_vm11, %v3794_v36, 2102212464  ;;  %v3810_v60 = vsel %vm3804_vm11, %v3797_v24, 920167782  ;;  %v14030_v47 = vsub.s32 %v3933_v16, %v3936_v31  ;;  %vm3802_vm10 = vcmp.lt.s32.totalorder %v3782_v13, 2  ;;  %v7486_v13 = vld [vmem:[%s15588_s3 + $0x8] sm:$0xff] }
 0x369   : > { %v3811_v1 = vsel %vm3803_vm1, %v3794_v36, %v3810_v60  ;;  %v9833_v25 = vadd.s32 4294967169, %v4085_v56  ;;  %v3645_v48 = vxor.u32 2147483648, %v3644_v57  ;;  %v3805_v30 = vsel %vm3801_vm8, %v3785_v55, %v3788_v21 }
 0x36a   : > { %v3807_v3 = vsel %vm3803_vm1, %v3791_v40, %v3806_v63  ;;  %v3812_v53 = vsel %vm3802_vm10, %v3809_v9, %v3811_v1  ;;  %v3939_v12 = vsub.s32 0, %v14030_v47  ;;  %v3960_v62 = vsel %vm3875_vm4, %v3959_v11, %v3935_v39 }
 0x36b   : > { %v3813_v35 = vsel %vm3801_vm8, %v3791_v40, %v3794_v36  ;;  %v3814_v16 = vsel %vm3804_vm11, %v3800_v18, 1326507024  ;;  %v3646_v8 = vsel %vm3563_vm12, %v3645_v48, %v3644_v57  ;;  %v3808_v31 = vsel %vm3802_vm10, %v3805_v30, %v3807_v3  ;;  %v7485_v57 = vld [vmem:[%s15588_s3] sm:$0xff] }
 0x36c   : > { %v3815_v56 = vsel %vm3803_vm1, %v3797_v24, %v3814_v16  ;;  %v14045_v55 = vmul.u32.u64.low %v13992_v23, %v3812_v53  ;;  %v14046_v21 = vmul.u32.u64.high %v13992_v23, %v3812_v53, %v14045_v55  ;;  %v9826_v43 = vmin.u32 %v3939_v12, %v14030_v47 }
 0x36d   : > { %v3816_v39 = vsel %vm3802_vm10, %v3813_v35, %v3815_v56  ;;  %v4091_v11 = vadd.s32 1, %v9833_v25  ;;  %v3649_v40 = vsel %vm13948_vm9, %v13207_v5, %v3646_v8  ;;  %v4089_v24 = vor.u32 8388608, %v13998_v2 }
 0x36e   : > { %v14056_v36 = vmul.u32.u64.low %v13992_v23, %v3816_v39  ;;  %v14057_v18 = vmul.u32.u64.high %v13992_v23, %v3816_v39, %v14056_v36  ;;  %v3929_v63 = vadd.s32 %v13968_v45, %v13985_v59  ;;  %v3941_v9 = vclz %v9826_v43 }
 0x36f   : > { %v14070_v29 = vsel %vm14023_vm7, 0, %v3960_v62  ;;  %vm4092_vm12 = vcmp.gt.s32.totalorder %v4091_v11, 0  ;;  %v3824_v60 = vmul.u32 %v13992_v23, %v3808_v31  ;;  %v3827_v2 = vadd.s32 1, %v14046_v21 }
 0x370   : > { %16100 = vst [vmem:[#allocation110_spill] sm:$0xff] %v14070_v29  ;;  %v4093_v1 = vsel %vm4092_vm12, %v4091_v11, 0  ;;  %v3980_v25 = vand.u32 2139095040, %v13565_v42  ;;  %11409 = vcosq.f32 %v3649_v40  ;;  %v9827_v48 = vadd.s32 4294967294, %v3941_v9 }
 0x371   : > { %v4095_v30 = vand.u32 31, %v4093_v1  ;;  %v10946_v3 = vpack.c.bf16 %v7486_v13, %v7485_v57  ;;  %11411 = vsinq.f32 %v3649_v40  ;;  %vm3826_vm9 = vc.u32 %v14057_v18, %v14045_v55 }
 0x372   : > { %v14077_v45 = vshll.u32 %v4089_v24, 8  ;;  %v16101_v59 = vand.u32 2147483647, %v13565_v42  ;;  %vm9828_vm0 = vcmp.lt.s32.totalorder %v9827_v48, 0  ;;  %v3828_v23 = vsel %vm3826_vm9, %v3827_v2, %v14046_v21 }
 0x373   : > { %v14084_v12 = vshrl.u32 %v4093_v1, 5  ;;  %v4096_v62 = vsub.s32 32, %v4095_v30  ;;  %10947 = vmatprep.subr.bf16.mxu1 %v10946_v3  ;;  %v3944_v35 = vsel %vm9828_vm0, 0, %v9827_v48  ;;  %v3829_v16 = vadd.s32 %v3828_v23, %v3824_v60 }
 0x374   : > { %v14081_v53 = vand.u32 8388607, %v16101_v59  ;;  %v4098_v8 = vshll.u32 %v15907_v50, %v4095_v30  ;;  %v14087_v56 = vshrl.u32 %v3980_v25, 23  ;;  %10949 = vmatpush3.bf16.msra.mxu1 %v10946_v3  ;;  %v3945_v43 = vsub.s32 32, %v3944_v35 }
 0x375   : > { %v3949_v31 = vsub.s32 4294967266, %v3944_v35  ;;  %v4101_v39 = vshll.u32 %v15899_v46, %v4095_v30  ;;  %v4104_v11 = vshll.u32 %v15900_v51, %v4095_v30  ;;  %v3830_v40 = vadd.s32 536870912, %v3829_v16 }
 0x376   : > { %v4099_v21 = vshrl.u32 %v15899_v46, %v4096_v62  ;;  %v4102_v36 = vshrl.u32 %v15900_v51, %v4096_v62  ;;  %v4105_v24 = vshrl.u32 %v15901_v38, %v4096_v62  ;;  %v3946_v57 = vshll.u32 %v14030_v47, %v3944_v35 }
 0x377   : > { %v3947_v13 = vshrl.u32 %v3929_v63, %v3945_v43  ;;  %v3950_v9 = vadd.s32 127, %v3949_v31  ;;  %vm3771_vm13 = vcmp.lt.s32.totalorder %v13380_v4, 0  ;;  %v4108_v60 = vshrl.u32 %v15911_v17, %v4096_v62 }
 0x378   : > { %v3831_v2 = vshrl.u32 %v3830_v40, 30  ;;  %v4100_v1 = vor.u32 %v4099_v21, %v4098_v8  ;;  %v4107_v25 = vshll.u32 %v15901_v38, %v4095_v30  ;;  %v3985_v48 = vor.u32 8388608, %v14081_v53 }
 0x379   : > { %v3948_v3 = vor.u32 %v3947_v13, %v3946_v57  ;;  %v3951_v59 = vshll.u32 %v3950_v9, 23  ;;  %v4103_v23 = vor.u32 %v4102_v36, %v4101_v39  ;;  %v4106_v29 = vor.u32 %v4105_v24, %v4104_v11  ;;  %v7482_v36 = vld [vmem:[%s15587_s2 + $0x8] sm:$0xff] }
 0x37a   : > { %v3832_v10 = vshll.u32 %v3831_v2, 30  ;;  %v4109_v28 = vor.u32 %v4108_v60, %v4107_v25  ;;  %v4110_v47 = vshll.u32 %v15911_v17, %v4095_v30  ;;  %v4111_v63 = vshrl.u32 %v15912_v19, %v4096_v62  ;;  %v14101_v35 = vpop.eup %11409 }
 0x37b   : > { %16102 = vst [vmem:[#allocation111_spill] sm:$0xff] %v14101_v35  ;;  %v3952_v43 = vor.u32 4788187, %v3951_v59  ;;  %v3855_v31 = vsub.s32 4, %v3831_v2  ;;  %v4097_v8 = vshrl.u32 %v15907_v50, %v4096_v62  ;;  %vm4113_vm15 = vcmp.lt.s32.totalorder %v14084_v12, 1  ;;  %v14105_v40 = vpop.eup %11411 }
 0x37c   : > { %v3955_v21 = vcvt.s32.f32 %v3948_v3  ;;  %v14107_v57 = vsub.s32 %v3829_v16, %v3832_v10  ;;  %v4112_v39 = vor.u32 %v4111_v63, %v4110_v47  ;;  %vm4116_vm5 = vcmp.lt.s32.totalorder %v14084_v12, 4 }
 0x37d   : > { %v3953_v11 = vand.u32 2147483647, %v3952_v43  ;;  %v16103_v30 = vand.u32 2147483647, %v13380_v4  ;;  %vm4114_vm3 = vcmp.lt.s32.totalorder %v14084_v12, 2  ;;  %vm4115_vm8 = vcmp.lt.s32.totalorder %v14084_v12, 3 }
 0x37e   : > { %v4118_v62 = vsel %vm4116_vm5, %v4106_v29, 2102212464  ;;  %v3835_v10 = vsub.s32 0, %v14107_v57  ;;  %v4117_v16 = vsel %vm4113_vm15, %v4097_v8, %v4100_v1  ;;  %v4121_v24 = vsel %vm4113_vm15, %v4100_v1, %v4103_v23 }
 0x37f   : > { %vm14112_vm2 = vcmp.le.f32.partialorder %v16103_v30, 0.7853982  ;;  %v4122_v13 = vsel %vm4116_vm5, %v4109_v28, 920167782  ;;  %v3956_v9 = vmul.f32 %v3955_v21, %v3953_v11  ;;  %v4119_v60 = vsel %vm4115_vm8, %v4103_v23, %v4118_v62 }
 0x380   : > { %v4123_v25 = vsel %vm4115_vm8, %v4106_v29, %v4122_v13  ;;  %v4125_v3 = vsel %vm4113_vm15, %v4103_v23, %v4106_v29  ;;  %v9822_v59 = vmin.u32 %v3835_v10, %v14107_v57  ;;  %v3856_v47 = vsel %vm3771_vm13, %v3855_v31, %v3831_v2  ;;  %v7487_v29 = vld [vmem:[%s15588_s3 + $0x10] sm:$0xff]  ;;  %v7488_v2 = vld [vmem:[%s15588_s3 + $0x18] sm:$0x3f] }
 0x381   : > { %v4124_v63 = vsel %vm4114_vm3, %v4121_v24, %v4123_v25  ;;  %v4126_v1 = vsel %vm4116_vm5, %v4112_v39, 1326507024  ;;  %v3957_v43 = vxor.u32 2147483648, %v3956_v9  ;;  %v4120_v31 = vsel %vm4114_vm3, %v4117_v16, %v4119_v60  ;;  %v16106_v16 = vld [vmem:[#allocation12_spill] sm:$0xff] }
 0x382   : > { %v4127_v8 = vsel %vm4115_vm8, %v4109_v28, %v4126_v1  ;;  %v14137_v21 = vmul.u32.u64.low %v14077_v45, %v4124_v63  ;;  %v14138_v11 = vmul.u32.u64.high %v14077_v45, %v4124_v63, %v14137_v21  ;;  %v3837_v23 = vclz %v9822_v59 }
 0x383   : > { %v4128_v39 = vsel %vm4114_vm3, %v4125_v3, %v4127_v8  ;;  %v9829_v28 = vadd.s32 4294967169, %v14087_v56  ;;  %v3958_v30 = vsel %vm3875_vm4, %v3957_v43, %v3956_v9  ;;  %vm7586_vm1 = vcmask 1045504  }
 0x384   : > { %v14154_v62 = vmul.u32.u64.low %v14077_v45, %v4128_v39  ;;  %v14155_v10 = vmul.u32.u64.high %v14077_v45, %v4128_v39, %v14154_v62  ;;  %v3825_v24 = vadd.s32 %v14045_v55, %v14057_v18  ;;  %v9823_v13 = vadd.s32 4294967294, %v3837_v23 }
 0x385   : > { %v3987_v25 = vadd.s32 1, %v9829_v28  ;;  %v10950_v59 = vpack.c.bf16 %v7488_v2, %v7487_v29  ;;  %v3961_v12 = vsel %vm14023_vm7, %v13291_v52, %v3958_v30  ;;  %v4139_v56 = vadd.s32 1, %v14138_v11  ;;  %v16109_v29 = vld [vmem:[#allocation3_spill] sm:$0xff] }
 0x386   : > { %v943_v60 = vsub.s32 4, %v16106_v16  ;;  %vm9824_vm4 = vcmp.lt.s32.totalorder %v9823_v13, 0  ;;  %v14166_v9 = vsel %vm14112_vm2, 0, %v3856_v47  ;;  %v4136_v3 = vmul.u32 %v14077_v45, %v4120_v31 }
 0x387   : > { %vm3988_vm11 = vcmp.gt.s32.totalorder %v3987_v25, 0  ;;  %vm11443_vm10 = vmmov 1   ;;  %v3840_v18 = vsel %vm9824_vm4, 0, %v9823_v13  ;;  %vm4138_vm7 = vc.u32 %v14155_v10, %v14137_v21 }
 0x388   : > { %vm14169_vm12 = vmpackc.low %vm7586_vm1, %vm11443_vm10  ;;  %v3989_v54 = vsel %vm3988_vm11, %v3987_v25, 0  ;;  %v14176_v63 = vshll.u32 %v3985_v48, 8  ;;  %11413 = vcosq.f32 %v3961_v12  ;;  %v3841_v47 = vsub.s32 32, %v3840_v18 }
 0x389   : > { %10952 = vmatprep.subr.msk.bf16.mxu1 %vm14169_vm12, %v10950_v59  ;;  %v3845_v45 = vsub.s32 4294967266, %v3840_v18  ;;  %v4140_v1 = vsel %vm4138_vm7, %v4139_v56, %v14138_v11  ;;  %11415 = vsinq.f32 %v3961_v12  ;;  %v3991_v8 = vand.u32 31, %v3989_v54 }
 0x38a   : > { %10955 = vmatpush3.bf16.msk.msra.mxu1 %vm14169_vm12, %v10950_v59  ;;  %v4141_v43 = vadd.s32 %v4140_v1, %v4136_v3  ;;  %v944_v53 = vsel %vm859_vm6, %v943_v60, %v16106_v16  ;;  %v3842_v48 = vshll.u32 %v14107_v57, %v3840_v18  ;;  %v3843_v2 = vshrl.u32 %v3825_v24, %v3841_v47 }
 0x38b   : > { %v3846_v23 = vadd.s32 127, %v3845_v45  ;;  %v14188_v31 = vadd.s32 %v14137_v21, %v14155_v10  ;;  %v3990_v28 = vshrl.u32 %v3989_v54, 5  ;;  %v3992_v11 = vsub.s32 32, %v3991_v8 }
 0x38c   : > { %v4142_v39 = vadd.s32 536870912, %v4141_v43  ;;  %v14192_v62 = vsel %vm11975_vm14, 0, %v944_v53  ;;  %v3844_v13 = vor.u32 %v3843_v2, %v3842_v48  ;;  %v3994_v59 = vshll.u32 %v15907_v50, %v3991_v8 }
 0x38d   : > { %v3847_v25 = vshll.u32 %v3846_v23, 23  ;;  %v3997_v12 = vshll.u32 %v15899_v46, %v3991_v8  ;;  %vm4083_vm6 = vcmp.lt.s32.totalorder %v13491_v49, 0  ;;  %v3995_v24 = vshrl.u32 %v15899_v46, %v3992_v11 }
 0x38e   : > { %v4143_v57 = vshrl.u32 %v4142_v39, 30  ;;  %v3998_v21 = vshrl.u32 %v15900_v51, %v3992_v11  ;;  %v4000_v10 = vshll.u32 %v15900_v51, %v3991_v8  ;;  %v4001_v16 = vshrl.u32 %v15901_v38, %v3992_v11 }
 0x38f   : > { %v3848_v56 = vor.u32 4788187, %v3847_v25  ;;  %v4003_v60 = vshll.u32 %v15901_v38, %v3991_v8  ;;  %v4004_v3 = vshrl.u32 %v15911_v17, %v3992_v11  ;;  %v3851_v18 = vcvt.s32.f32 %v3844_v13 }
 0x390   : > { %v4144_v54 = vshll.u32 %v4143_v57, 30  ;;  %v3993_v47 = vshrl.u32 %v15907_v50, %v3992_v11  ;;  %v3996_v45 = vor.u32 %v3995_v24, %v3994_v59  ;;  %v16111_v53 = vand.u32 2147483647, %v13491_v49 }
 0x391   : > { %v3849_v1 = vand.u32 2147483647, %v3848_v56  ;;  %v3999_v51 = vor.u32 %v3998_v21, %v3997_v12  ;;  %v4002_v48 = vor.u32 %v4001_v16, %v4000_v10  ;;  %v4005_v2 = vor.u32 %v4004_v3, %v4003_v60 }
 0x392   : > { %vm14206_vm14 = vcmp.le.f32.partialorder %v16111_v53, 0.7853982  ;;  %v14210_v23 = vsub.s32 %v4141_v43, %v4144_v54  ;;  %v4167_v38 = vsub.s32 4, %v4143_v57  ;;  %v4006_v39 = vshll.u32 %v15911_v17, %v3991_v8  ;;  %v14214_v13 = vpop.eup %11413 }
 0x393   : > { %v4007_v30 = vshrl.u32 %v15912_v19, %v3992_v11  ;;  %v3852_v50 = vmul.f32 %v3851_v18, %v3849_v1  ;;  %vm4009_vm9 = vcmp.lt.s32.totalorder %v3990_v28, 1  ;;  %vm4010_vm0 = vcmp.lt.s32.totalorder %v3990_v28, 2  ;;  %v14216_v25 = vpop.eup %11415 }
 0x394   : > { %vm4011_vm15 = vcmp.lt.s32.totalorder %v3990_v28, 3  ;;  %v4147_v59 = vsub.s32 0, %v14210_v23  ;;  %vm4012_vm5 = vcmp.lt.s32.totalorder %v3990_v28, 4  ;;  %v4013_v24 = vsel %vm4009_vm9, %v3993_v47, %v3996_v45 }
 0x395   : > { %v4008_v12 = vor.u32 %v4007_v30, %v4006_v39  ;;  %v3853_v43 = vxor.u32 2147483648, %v3852_v50  ;;  %v4014_v21 = vsel %vm4012_vm5, %v4002_v48, 2102212464  ;;  %v4017_v10 = vsel %vm4009_vm9, %v3996_v45, %v3999_v51 }
 0x396   : > { %v4018_v56 = vsel %vm4012_vm5, %v4005_v2, 920167782  ;;  %v9834_v17 = vmin.u32 %v4147_v59, %v14210_v23  ;;  %v4015_v19 = vsel %vm4011_vm15, %v3999_v51, %v4014_v21  ;;  %v4021_v11 = vsel %vm4009_vm9, %v3999_v51, %v4002_v48 }
 0x397   : > { %v4019_v8 = vsel %vm4011_vm15, %v4002_v48, %v4018_v56  ;;  %v3854_v16 = vsel %vm3771_vm13, %v3853_v43, %v3852_v50  ;;  %v4168_v60 = vsel %vm4083_vm6, %v4167_v38, %v4143_v57  ;;  %v4022_v18 = vsel %vm4012_vm5, %v4008_v12, 1326507024  ;;  %v7481_v38 = vld [vmem:[%s15587_s2] sm:$0xff] }
 0x398   : > { %v4020_v3 = vsel %vm4010_vm0, %v4017_v10, %v4019_v8  ;;  %v3857_v54 = vsel %vm14112_vm2, %v13380_v4, %v3854_v16  ;;  %v4149_v47 = vclz %v9834_v17  ;;  %v4016_v45 = vsel %vm4010_vm0, %v4013_v24, %v4015_v19  ;;  %v16114_v24 = vld [vmem:[#allocation23_spill] sm:$0xff] }
 0x399   : > { %v4023_v1 = vsel %vm4011_vm15, %v4005_v2, %v4022_v18  ;;  %v14234_v51 = vmul.u32.u64.low %v14176_v63, %v4020_v3  ;;  %v14235_v48 = vmul.u32.u64.high %v14176_v63, %v4020_v3, %v14234_v51  ;;  %v954_v57 = vxor.u32 2147483648, %v12154_v27  ;;  %v16116_v3 = vld [vmem:[#allocation2_spill] sm:$0xff] }
 0x39a   : > { %v4024_v53 = vsel %vm4010_vm0, %v4021_v11, %v4023_v1  ;;  %v9835_v39 = vadd.s32 4294967294, %v4149_v47  ;;  %v14246_v2 = vsel %vm14206_vm14, 0, %v4168_v60  ;;  %vm949_vm13 = vweird.f32 %v16109_v29 }
 0x39b   : > { %v14249_v28 = vmul.u32.u64.low %v14176_v63, %v4024_v53  ;;  %v14250_v30 = vmul.u32.u64.high %v14176_v63, %v4024_v53, %v14249_v28  ;;  %11417 = vcosq.f32 %v3857_v54  ;;  %v4032_v50 = vmul.u32 %v14176_v63, %v4016_v45  ;;  %v16115_v63 = vld [vmem:[#allocation17_spill] sm:$0xff] }
 0x39c   : > { %v950_v59 = vadd.s32 3, %v14192_v62  ;;  %v4278_v12 = vand.u32 3, %v14192_v62  ;;  %11419 = vsinq.f32 %v3857_v54  ;;  %vm9836_vm2 = vcmp.lt.s32.totalorder %v9835_v39, 0 }
 0x39d   : > { %v957_v43 = vxor.u32 2147483648, %v16114_v24  ;;  %v14257_v21 = vpack.c.bf16 %v7482_v36, %v7481_v38  ;;  %v4152_v10 = vsel %vm9836_vm2, 0, %v9835_v39  ;;  %v4035_v56 = vadd.s32 1, %v14235_v48 }
 0x39e   : > { %v951_v17 = vand.u32 3, %v950_v59  ;;  %vm7489_vm3 = vcmask 244736   ;;  %v4153_v19 = vsub.s32 32, %v4152_v10  ;;  %v4154_v8 = vshll.u32 %v14210_v23, %v4152_v10 }
 0x39f   : > { %v4157_v11 = vsub.s32 4294967266, %v4152_v10  ;;  %vm4279_vm8 = vcmp.lt.s32.totalorder %v4278_v12, 2  ;;  %10957 = vmatprep.subr.bf16.mxu1 %v14257_v21  ;;  %vm4034_vm1 = vc.u32 %v14250_v30, %v14234_v51  ;;  %vm1056_vm7 = vcmp.lt.s32.totalorder %v16115_v63, 2  ;;  %v16120_v10 = vld [vmem:[#allocation22_spill] sm:$0xff] }
 0x3a0   : > { %vm952_vm4 = vcmp.lt.s32.totalorder %v951_v17, 2  ;;  %vm953_vm11 = vcmp.eq.s32.totalorder %v951_v17, 0  ;;  %vm956_vm10 = vcmp.eq.s32.totalorder %v951_v17, 2  ;;  %v4155_v62 = vshrl.u32 %v14188_v31, %v4153_v19 }
 0x3a1   : > { %v4158_v16 = vadd.s32 127, %v4157_v11  ;;  %vm3979_vm9 = vcmp.lt.s32.totalorder %v13565_v42, 0  ;;  %v4036_v60 = vsel %vm4034_vm1, %v4035_v56, %v14235_v48  ;;  %v955_v23 = vsel %vm953_vm11, %v16114_v24, %v954_v57 }
 0x3a2   : > { %vm1053_vm0 = vweird.f32 %v16116_v3  ;;  %v16117_v18 = vand.u32 2147483647, %v13565_v42  ;;  %v4037_v47 = vadd.s32 %v4036_v60, %v4032_v50  ;;  %v958_v45 = vsel %vm956_vm10, %v957_v43, %v12154_v27 }
 0x3a3   : > { %vm4280_vm5 = vcmp.eq.s32.totalorder %v4278_v12, 0  ;;  %vm4283_vm2 = vcmp.eq.s32.totalorder %v4278_v12, 2  ;;  %v4156_v31 = vor.u32 %v4155_v62, %v4154_v8  ;;  %v4159_v1 = vshll.u32 %v4158_v16, 23  ;;  %v16122_v12 = vld [vmem:[#allocation15_spill] sm:$0xff] }
 0x3a4   : > { %vm14271_vm15 = vcmp.le.f32.partialorder %v16117_v18, 0.7853982  ;;  %v959_v53 = vsel %vm952_vm4, %v955_v23, %v958_v45  ;;  %v4282_v48 = vsel %vm4280_vm5, %v16114_v24, %v954_v57  ;;  %v14279_v38 = vadd.s32 %v14234_v51, %v14250_v30  ;;  %v16121_v30 = vld [vmem:[#allocation20_spill] sm:$0xff] }
 0x3a5   : > { %v4038_v36 = vadd.s32 536870912, %v4037_v47  ;;  %v14283_v39 = vsel %vm949_vm13, nan, %v959_v53  ;;  %v4285_v28 = vsel %vm4283_vm2, %v957_v43, %v12154_v27  ;;  %v4160_v50 = vor.u32 4788187, %v4159_v1  ;;  %v14289_v17 = vpop.eup %11417  ;;  %v16123_v23 = vld [vmem:[#allocation32_spill] sm:$0xff] }
 0x3a6   : > { %v4286_v59 = vsel %vm4279_vm8, %v4282_v48, %v4285_v28  ;;  %vm1057_vm1 = vcmp.eq.s32.totalorder %v16115_v63, 0  ;;  %v1058_v56 = vxor.u32 2147483648, %v16120_v10  ;;  %v4163_v57 = vcvt.s32.f32 %v4156_v31  ;;  %v14294_v8 = vpop.eup %11419  ;;  %v16124_v31 = vld [vmem:[#allocation5_spill] sm:$0xff] }
 0x3a7   : > { %v4039_v24 = vshrl.u32 %v4038_v36, 30  ;;  %v4287_v51 = vsel %vm949_vm13, nan, %v4286_v59  ;;  %v1061_v19 = vxor.u32 2147483648, %v16121_v30  ;;  %v4161_v11 = vand.u32 2147483647, %v4160_v50  ;;  %v16126_v50 = vld [vmem:[#allocation30_spill] sm:$0xff] }
 0x3a8   : > { %10442 = vmatprep.mubr.msk.f32.mxu1 %vm7489_vm3, %v4287_v51  ;;  %v1059_v27 = vsel %vm1057_vm1, %v16121_v30, %v1058_v56  ;;  %vm1060_vm8 = vcmp.eq.s32.totalorder %v16115_v63, 2  ;;  %v4381_v43 = vand.u32 3, %v16122_v12  ;;  %v15760_v29 = vxor.u32 2147483648, %v16123_v23  ;;  %v16127_v51 = vld [vmem:[#allocation25_spill] sm:$0xff] }
 0x3a9   : > { %v4040_v62 = vshll.u32 %v4039_v24, 30  ;;  %v4063_v16 = vsub.s32 4, %v4039_v24  ;;  %v1062_v60 = vsel %vm1060_vm8, %v1061_v19, %v16120_v10  ;;  %v4164_v18 = vmul.f32 %v4163_v57, %v4161_v11  ;;  %v16128_v11 = vld [vmem:[#allocation4_spill] sm:$0xff] }
 0x3aa   : > { %v1063_v45 = vsel %vm1056_vm7, %v1059_v27, %v1062_v60  ;;  %vm4382_vm13 = vcmp.lt.s32.totalorder %v4381_v43, 2  ;;  %vm4383_vm4 = vcmp.eq.s32.totalorder %v4381_v43, 0  ;;  %vm1157_vm11 = vweird.f32 %v16124_v31 }
 0x3ab   : > { %v14305_v1 = vsub.s32 %v4037_v47, %v4040_v62  ;;  %v4064_v53 = vsel %vm3979_vm9, %v4063_v16, %v4039_v24  ;;  %v14311_v48 = vsel %vm1053_vm0, nan, %v1063_v45  ;;  %v4385_v36 = vsel %vm4383_vm4, %v16121_v30, %v1058_v56  ;;  %v16129_v30 = vld [vmem:[#allocation29_spill] sm:$0xff]  ;;  %v16130_v62 = vld [vmem:[#allocation28_spill] sm:$0xff] }
 0x3ac   : > { %16125 = vst [vmem:[#allocation12_spill] sm:$0xff] %v14311_v48  ;;  %v4165_v28 = vxor.u32 2147483648, %v4164_v18  ;;  %v14316_v63 = vsel %vm14271_vm15, 0, %v4064_v53  ;;  %vm4386_vm10 = vcmp.eq.s32.totalorder %v4381_v43, 2  ;;  %v15759_v59 = vxor.u32 2147483648, %v16126_v50 }
 0x3ad   : > { %v4043_v47 = vsub.s32 0, %v14305_v1  ;;  %v4388_v57 = vsel %vm4386_vm10, %v1061_v19, %v16120_v10  ;;  %v4484_v24 = vand.u32 3, %v16127_v51  ;;  %vm1261_vm7 = vweird.f32 %v16128_v11  ;;  %v16131_v19 = vld [vmem:[#allocation24_spill] sm:$0xff]  ;;  %v16142_v11 = vld [vmem:[#allocation9_spill] sm:$0xff] }
 0x3ae   : > { %v4166_v27 = vsel %vm4083_vm6, %v4165_v28, %v4164_v18  ;;  %v4389_v56 = vsel %vm4382_vm13, %v4385_v36, %v4388_v57  ;;  %v15758_v12 = vxor.u32 2147483648, %v16129_v30  ;;  %v15757_v16 = vxor.u32 2147483648, %v16130_v62 }
 0x3af   : > { %v4169_v60 = vsel %vm14206_vm14, %v13491_v49, %v4166_v27  ;;  %v9830_v45 = vmin.u32 %v4043_v47, %v14305_v1  ;;  %v4390_v10 = vsel %vm1053_vm0, nan, %v4389_v56  ;;  %vm4485_vm5 = vcmp.lt.s32.totalorder %v4484_v24, 2  ;;  %v16133_v27 = vld [vmem:[#allocation40_spill] sm:$0xff] }
 0x3b0   : > { %11421 = vcosq.f32 %v4169_v60  ;;  %10443 = vmatmul.mubr.msk.f32.vlgmr.msra.gmra.mrb[0].mxu1 %vm7489_vm3, %v4390_v10  ;;  %vm4486_vm6 = vcmp.eq.s32.totalorder %v4484_v24, 0  ;;  %vm4489_vm2 = vcmp.eq.s32.totalorder %v4484_v24, 2  ;;  %v4587_v43 = vand.u32 3, %v16131_v19  ;;  %v16132_v24 = vld [vmem:[#allocation7_spill] sm:$0xff] }
 0x3b1   : > { %11423 = vsinq.f32 %v4169_v60  ;;  %v4045_v18 = vclz %v9830_v45  ;;  %10959 = vmatpush3.bf16.msra.mxu1 %v14257_v21  ;;  %v4488_v46 = vsel %vm4486_vm6, %v16126_v50, %v15760_v29  ;;  %v4491_v3 = vsel %vm4489_vm2, %v15759_v59, %v16123_v23  ;;  %v16134_v60 = vld [vmem:[#allocation39_spill] sm:$0xff] }
 0x3b2   : > { %v4492_v53 = vsel %vm4485_vm5, %v4488_v46, %v4491_v3  ;;  %vm4588_vm14 = vcmp.lt.s32.totalorder %v4587_v43, 2  ;;  %vm4589_vm0 = vcmp.eq.s32.totalorder %v4587_v43, 0  ;;  %vm4592_vm1 = vcmp.eq.s32.totalorder %v4587_v43, 2  ;;  %v16135_v43 = vld [vmem:[#allocation36_spill] sm:$0xff]  ;;  %v16136_v46 = vld [vmem:[#allocation6_spill] sm:$0xff] }
 0x3b3   : > { %v9831_v36 = vadd.s32 4294967294, %v4045_v18  ;;  %v4493_v28 = vsel %vm1157_vm11, nan, %v4492_v53  ;;  %v4591_v21 = vsel %vm4589_vm0, %v16130_v62, %v15758_v12  ;;  %v4594_v47 = vsel %vm4592_vm1, %v15757_v16, %v16129_v30  ;;  %v16137_v53 = vld [vmem:[#allocation35_spill] sm:$0xff] }
 0x3b4   : > { %10445 = vmatprep.mubr.msk.f32.mxu1 %vm7489_vm3, %v4493_v28  ;;  %v4595_v57 = vsel %vm4588_vm14, %v4591_v21, %v4594_v47  ;;  %vm1365_vm8 = vweird.f32 %v16132_v24  ;;  %v15762_v56 = vxor.u32 2147483648, %v16133_v27  ;;  %v4690_v18 = vand.u32 3, %v16135_v43  ;;  %v16138_v21 = vld [vmem:[#allocation34_spill] sm:$0xff]  ;;  %v16139_v16 = vld [vmem:[#allocation27_spill] sm:$0xff] }
 0x3b5   : > { %vm9832_vm13 = vcmp.lt.s32.totalorder %v9831_v36, 0  ;;  %v4596_v10 = vsel %vm1261_vm7, nan, %v4595_v57  ;;  %vm15773_vm4 = vweird.f32 %v16136_v46  ;;  %v4793_v12 = vand.u32 3, %v16139_v16 }
 0x3b6   : > { %v4048_v3 = vsel %vm9832_vm13, 0, %v9831_v36  ;;  %10446 = vmatmul.mubr.msk.f32.gmra.mrb[2].mxu1 %vm7489_vm3, %v4596_v10  ;;  %vm4691_vm10 = vcmp.lt.s32.totalorder %v4690_v18, 2  ;;  %vm4692_vm5 = vcmp.eq.s32.totalorder %v4690_v18, 0  ;;  %vm4695_vm6 = vcmp.eq.s32.totalorder %v4690_v18, 2 }
 0x3b7   : > { %v4049_v59 = vsub.s32 32, %v4048_v3  ;;  %v4050_v29 = vshll.u32 %v14305_v1, %v4048_v3  ;;  %v4053_v45 = vsub.s32 4294967266, %v4048_v3  ;;  %vm4794_vm2 = vcmp.lt.s32.totalorder %v4793_v12, 2 }
 0x3b8   : > { %vm4795_vm14 = vcmp.eq.s32.totalorder %v4793_v12, 0  ;;  %v4694_v10 = vsel %vm4692_vm5, %v16134_v60, %v15762_v56  ;;  %v16140_v47 = vxor.u32 2147483648, %v16134_v60  ;;  %v16141_v3 = vxor.u32 2147483648, %v16137_v53 }
 0x3b9   : > { %v4051_v57 = vshrl.u32 %v14279_v38, %v4049_v59  ;;  %v4054_v36 = vadd.s32 127, %v4053_v45  ;;  %vm4798_vm0 = vcmp.eq.s32.totalorder %v4793_v12, 2  ;;  %vm15772_vm1 = vweird.f32 %v16142_v11  ;;  %v16146_v12 = vld [vmem:[#allocation44_spill] sm:$0xff] }
 0x3ba   : > { %v4697_v28 = vsel %vm4695_vm6, %v16140_v47, %v16133_v27  ;;  %v14371_v48 = vpop.eup %11421  ;;  %v4797_v18 = vsel %vm4795_vm14, %v16138_v21, %v16141_v3  ;;  %v16143_v47 = vxor.u32 2147483648, %v16138_v21  ;;  %v15771_v3 = vxor.u32 2147483648, %v12523_v14  ;;  %v16144_v27 = vld [vmem:[#allocation42_spill] sm:$0xff]  ;;  %v16150_v21 = vld [vmem:[#allocation53_spill] sm:$0xff] }
 0x3bb   : > { %v4698_v1 = vsel %vm4691_vm10, %v4694_v10, %v4697_v28  ;;  %v14377_v38 = vpop.eup %11423  ;;  %v4052_v59 = vor.u32 %v4051_v57, %v4050_v29  ;;  %v4055_v45 = vshll.u32 %v4054_v36, 23  ;;  %v15770_v10 = vxor.u32 2147483648, %v12591_v0  ;;  %v16145_v36 = vld [vmem:[#allocation8_spill] sm:$0xff] }
 0x3bc   : > { %v4699_v56 = vsel %vm1365_vm8, nan, %v4698_v1  ;;  %v4800_v60 = vsel %vm4798_vm0, %v16143_v47, %v16137_v53  ;;  %v4896_v16 = vand.u32 3, %v16144_v27  ;;  %vm1677_vm13 = vweird.f32 %v16145_v36  ;;  %v16161_v36 = vld [vmem:[#allocation63_spill] sm:$0xff] }
 0x3bd   : > { %10448 = vmatprep.mubr.msk.f32.mxu1 %vm7489_vm3, %v4699_v56  ;;  %v4801_v28 = vsel %vm4794_vm2, %v4797_v18, %v4800_v60  ;;  %v4056_v62 = vor.u32 4788187, %v4055_v45  ;;  %v4059_v29 = vcvt.s32.f32 %v4052_v59  ;;  %v16147_v59 = vld [vmem:[#allocation43_spill] sm:$0xff]  ;;  %v16151_v56 = vld [vmem:[#allocation52_spill] sm:$0xff]  ;;  %v16156_v11 = vxor.u32 2147483648, %v16150_v21 }
 0x3be   : > { %v4802_v57 = vsel %vm15773_vm4, nan, %v4801_v28  ;;  %vm4897_vm10 = vcmp.lt.s32.totalorder %v4896_v16, 2  ;;  %vm4898_vm5 = vcmp.eq.s32.totalorder %v4896_v16, 0  ;;  %vm4901_vm6 = vcmp.eq.s32.totalorder %v4896_v16, 2  ;;  %v16148_v28 = vld [vmem:[#allocation37_spill] sm:$0xff] }
 0x3bf   : > { %10449 = vmatmul.mubr.msk.f32.gmra.mrb[4].mxu1 %vm7489_vm3, %v4802_v57  ;;  %v4057_v60 = vand.u32 2147483647, %v4056_v62  ;;  %v4900_v1 = vsel %vm4898_vm5, %v12523_v14, %v15770_v10  ;;  %v4903_v18 = vsel %vm4901_vm6, %v15771_v3, %v12591_v0  ;;  %v15776_v45 = vxor.u32 2147483648, %v16147_v59  ;;  %v16149_v57 = vld [vmem:[#allocation11_spill] sm:$0xff] }
 0x3c0   : > { %v4904_v47 = vsel %vm4897_vm10, %v4900_v1, %v4903_v18  ;;  %v4999_v46 = vand.u32 3, %v16148_v28  ;;  %vm1781_vm2 = vweird.f32 %v16149_v57  ;;  %v16152_v10 = vld [vmem:[#allocation47_spill] sm:$0xff]  ;;  %v16153_v1 = vld [vmem:[#allocation10_spill] sm:$0xff]  ;;  %v16154_v3 = vxor.u32 2147483648, %v16146_v12 }
 0x3c1   : > { %v4060_v53 = vmul.f32 %v4059_v29, %v4057_v60  ;;  %v4905_v62 = vsel %vm15772_vm1, nan, %v4904_v47  ;;  %v5102_v27 = vand.u32 3, %v16152_v10  ;;  %vm15789_vm10 = vweird.f32 %v16153_v1  ;;  %v16155_v47 = vld [vmem:[#allocation51_spill] sm:$0xff] }
 0x3c2   : > { %10451 = vmatprep.mubr.msk.f32.mxu1 %vm7489_vm3, %v4905_v62  ;;  %vm5000_vm14 = vcmp.lt.s32.totalorder %v4999_v46, 2  ;;  %vm5001_vm0 = vcmp.eq.s32.totalorder %v4999_v46, 0  ;;  %vm5004_vm5 = vcmp.eq.s32.totalorder %v4999_v46, 2  ;;  %v16162_v54 = vxor.u32 2147483648, %v16155_v47 }
 0x3c3   : > { %v4061_v18 = vxor.u32 2147483648, %v4060_v53  ;;  %v5003_v16 = vsel %vm5001_vm0, %v16147_v59, %v16154_v3  ;;  %v5006_v29 = vsel %vm5004_vm5, %v15776_v45, %v16146_v12  ;;  %vm5103_vm6 = vcmp.lt.s32.totalorder %v5102_v27, 2 }
 0x3c4   : > { %v5007_v60 = vsel %vm5000_vm14, %v5003_v16, %v5006_v29  ;;  %vm5104_vm1 = vcmp.eq.s32.totalorder %v5102_v27, 0  ;;  %vm5107_vm4 = vcmp.eq.s32.totalorder %v5102_v27, 2  ;;  %v16157_v59 = vxor.u32 2147483648, %v16151_v56  ;;  %v16158_v29 = vld [vmem:[#allocation49_spill] sm:$0xff] }
 0x3c5   : > { %v4062_v46 = vsel %vm3979_vm9, %v4061_v18, %v4060_v53  ;;  %v5008_v24 = vsel %vm1677_vm13, nan, %v5007_v60  ;;  %v5106_v3 = vsel %vm5104_vm1, %v16151_v56, %v16156_v11  ;;  %v15782_v53 = vxor.u32 2147483648, %v16158_v29  ;;  %v16159_v18 = vld [vmem:[#allocation45_spill] sm:$0xff]  ;;  %v16160_v11 = vld [vmem:[#allocation14_spill] sm:$0xff] }
 0x3c6   : > { %v5109_v45 = vsel %vm5107_vm4, %v16157_v59, %v16150_v21  ;;  %v4065_v27 = vsel %vm14271_vm15, %v13565_v42, %v4062_v46  ;;  %10452 = vmatmul.mubr.msk.f32.gmra.mrb[6].mxu1 %vm7489_vm3, %v5008_v24  ;;  %v5205_v62 = vand.u32 3, %v16159_v18  ;;  %vm15787_vm9 = vweird.f32 %v16160_v11  ;;  %v16165_v56 = vld [vmem:[#allocation13_spill] sm:$0xff]  ;;  %v16167_v21 = vld [vmem:[#allocation54_spill] sm:$0xff]  ;;  %v16174_v11 = vld [vmem:[#allocation16_spill] sm:$0xff] }
 0x3c7   : > { %v5110_v16 = vsel %vm5103_vm6, %v5106_v3, %v5109_v45  ;;  %11425 = vcosq.f32 %v4065_v27  ;;  %v16163_v45 = vld [vmem:[#allocation60_spill] sm:$0xff]  ;;  %v16164_v3 = vld [vmem:[#allocation55_spill] sm:$0xff]  ;;  %vm15801_vm14 = vweird.f32 %v16165_v56 }
 0x3c8   : > { %v5111_v60 = vsel %vm1781_vm2, nan, %v5110_v16  ;;  %11427 = vsinq.f32 %v4065_v27  ;;  %vm5206_vm4 = vcmp.lt.s32.totalorder %v5205_v62, 2  ;;  %vm5207_vm15 = vcmp.eq.s32.totalorder %v5205_v62, 0  ;;  %v16166_v27 = vld [vmem:[#allocation57_spill] sm:$0xff] }
 0x3c9   : > { %10454 = vmatprep.mubr.msk.f32.mxu1 %vm7489_vm3, %v5111_v60  ;;  %vm5210_vm1 = vcmp.eq.s32.totalorder %v5205_v62, 2  ;;  %v5209_v24 = vsel %vm5207_vm15, %v16158_v29, %v16162_v54  ;;  %v15786_v46 = vxor.u32 2147483648, %v16163_v45  ;;  %v5308_v16 = vand.u32 3, %v16164_v3  ;;  %v16170_v29 = vld [vmem:[#allocation18_spill] sm:$0xff] }
 0x3ca   : > { %v5212_v59 = vsel %vm5210_vm1, %v15782_v53, %v16155_v47  ;;  %v16168_v54 = vxor.u32 2147483648, %v16161_v36 }
 0x3cb   : > { %v5213_v57 = vsel %vm5206_vm4, %v5209_v24, %v5212_v59  ;;  %vm5309_vm0 = vcmp.lt.s32.totalorder %v5308_v16, 2  ;;  %vm5310_vm5 = vcmp.eq.s32.totalorder %v5308_v16, 0  ;;  %vm5313_vm6 = vcmp.eq.s32.totalorder %v5308_v16, 2  ;;  %v16169_v59 = vld [vmem:[#allocation50_spill] sm:$0xff]  ;;  %v16171_v16 = vld [vmem:[#allocation61_spill] sm:$0xff] }
 0x3cc   : > { %v5214_v62 = vsel %vm15789_vm10, nan, %v5213_v57  ;;  %v5312_v53 = vsel %vm5310_vm5, %v16163_v45, %v16168_v54  ;;  %v5315_v24 = vsel %vm5313_vm6, %v15786_v46, %v16161_v36  ;;  %v5411_v60 = vand.u32 3, %v16169_v59  ;;  %v16187_v36 = vld [vmem:[#allocation67_spill] sm:$0xff]  ;;  %v16191_v59 = vld [vmem:[#allocation76_spill] sm:$0xff] }
 0x3cd   : > { %10455 = vmatmul.mubr.msk.f32.gmra.mrb[8].mxu1 %vm7489_vm3, %v5214_v62  ;;  %vm15799_vm4 = vweird.f32 %v16170_v29  ;;  %v5316_v12 = vsel %vm5309_vm0, %v5312_v53, %v5315_v24  ;;  %v15792_v57 = vxor.u32 2147483648, %v13155_v22  ;;  %v5514_v47 = vand.u32 3, %v16171_v16  ;;  %v16178_v16 = vld [vmem:[#allocation64_spill] sm:$0xff] }
 0x3ce   : > { %v5317_v62 = vsel %vm15787_vm9, nan, %v5316_v12  ;;  %vm5412_vm15 = vcmp.lt.s32.totalorder %v5411_v60, 2  ;;  %vm5413_vm1 = vcmp.eq.s32.totalorder %v5411_v60, 0  ;;  %vm5416_vm5 = vcmp.eq.s32.totalorder %v5411_v60, 2 }
 0x3cf   : > { %10457 = vmatprep.mubr.msk.f32.mxu1 %vm7489_vm3, %v5317_v62  ;;  %v16172_v54 = vxor.u32 2147483648, %v16166_v27  ;;  %v16173_v53 = vxor.u32 2147483648, %v16167_v21  ;;  %vm5515_vm0 = vcmp.lt.s32.totalorder %v5514_v47, 2  ;;  %vm5516_vm6 = vcmp.eq.s32.totalorder %v5514_v47, 0 }
 0x3d0   : > { %v5518_v12 = vsel %vm5516_vm6, %v13143_v7, %v15792_v57  ;;  %vm5519_vm9 = vcmp.eq.s32.totalorder %v5514_v47, 2  ;;  %vm2301_vm10 = vweird.f32 %v16174_v11  ;;  %v16179_v57 = vld [vmem:[#allocation58_spill] sm:$0xff]  ;;  %v16184_v29 = vxor.u32 2147483648, %v13304_v32  ;;  %v16196_v11 = vld [vmem:[#allocation31_spill] sm:$0xff] }
 0x3d1   : > { %v5415_v46 = vsel %vm5413_vm1, %v16167_v21, %v16172_v54  ;;  %v5418_v24 = vsel %vm5416_vm5, %v16173_v53, %v16166_v27  ;;  %v14476_v60 = vpop.eup %11425  ;;  %v16176_v54 = vxor.u32 2147483648, %v13143_v7  ;;  %v16177_v53 = vld [vmem:[#allocation65_spill] sm:$0xff]  ;;  %v5617_v45 = vand.u32 3, %v16179_v57  ;;  %v16180_v7 = vld [vmem:[#allocation68_spill] sm:$0xff] }
 0x3d2   : > { %v5419_v1 = vsel %vm5412_vm15, %v5415_v46, %v5418_v24  ;;  %16175 = vst [vmem:[#allocation3_spill] sm:$0xff] %v14476_v60  ;;  %v15804_v46 = vxor.u32 2147483648, %v16178_v16  ;;  %v14485_v24 = vpop.eup %11427  ;;  %vm15810_vm15 = vweird.f32 %v12145_v33  ;;  %v5720_v27 = vand.u32 3, %v16180_v7  ;;  %v16185_v7 = vld [vmem:[#allocation71_spill] sm:$0xff] }
 0x3d3   : > { %v5420_v62 = vsel %vm15801_vm14, nan, %v5419_v1  ;;  %v5521_v21 = vsel %vm5519_vm9, %v16176_v54, %v13155_v22  ;;  %v16181_v22 = vld [vmem:[#allocation21_spill] sm:$0xff]  ;;  %vm5618_vm1 = vcmp.lt.s32.totalorder %v5617_v45, 2  ;;  %vm5619_vm5 = vcmp.eq.s32.totalorder %v5617_v45, 0 }
 0x3d4   : > { %10458 = vmatmul.mubr.msk.f32.gmra.mrb[10].mxu1 %vm7489_vm3, %v5420_v62  ;;  %v5522_v47 = vsel %vm5515_vm0, %v5518_v12, %v5521_v21  ;;  %vm15815_vm9 = vweird.f32 %v16181_v22  ;;  %vm5622_vm0 = vcmp.eq.s32.totalorder %v5617_v45, 2  ;;  %v16182_v21 = vld [vmem:[#allocation72_spill] sm:$0xff]  ;;  %v16183_v62 = vxor.u32 2147483648, %v16177_v53 }
 0x3d5   : > { %v5523_v1 = vsel %vm15799_vm4, nan, %v5522_v47  ;;  %v5624_v47 = vsel %vm5622_vm0, %v15804_v46, %v16177_v53  ;;  %vm5721_vm6 = vcmp.lt.s32.totalorder %v5720_v27, 2  ;;  %vm5722_vm4 = vcmp.eq.s32.totalorder %v5720_v27, 0  ;;  %v16188_v46 = vld [vmem:[#allocation33_spill] sm:$0xff] }
 0x3d6   : > { %10460 = vmatprep.mubr.msk.f32.mxu1 %vm7489_vm3, %v5523_v1  ;;  %v5621_v56 = vsel %vm5619_vm5, %v16178_v16, %v16183_v62  ;;  %v5724_v1 = vsel %vm5722_vm4, %v13180_v34, %v16184_v29  ;;  %vm5725_vm14 = vcmp.eq.s32.totalorder %v5720_v27, 2  ;;  %v16186_v62 = vxor.u32 2147483648, %v13180_v34  ;;  %v16190_v29 = vld [vmem:[#allocation80_spill] sm:$0xff] }
 0x3d7   : > { %v5625_v54 = vsel %vm5618_vm1, %v5621_v56, %v5624_v47  ;;  %v5823_v16 = vand.u32 3, %v16187_v36  ;;  %vm15814_vm5 = vweird.f32 %v16188_v46  ;;  %v16189_v47 = vld [vmem:[#allocation81_spill] sm:$0xff]  ;;  %v5926_v45 = vand.u32 3, %v16191_v59 }
 0x3d8   : > { %v5626_v12 = vsel %vm2301_vm10, nan, %v5625_v54  ;;  %v5727_v57 = vsel %vm5725_vm14, %v16186_v62, %v13304_v32  ;;  %v7483_v54 = vld [vmem:[%s15587_s2 + $0x10] sm:$0xff]  ;;  %v7484_v62 = vld [vmem:[%s15587_s2 + $0x18] sm:$0x3f]  ;;  %v16194_v32 = vxor.u32 2147483648, %v16189_v47 }
 0x3d9   : > { %10461 = vmatmul.mubr.msk.f32.gmra.mrb[12].mxu1 %vm7489_vm3, %v5626_v12  ;;  %v5728_v56 = vsel %vm5721_vm6, %v5724_v1, %v5727_v57  ;;  %vm5824_vm14 = vcmp.lt.s32.totalorder %v5823_v16, 2  ;;  %vm5825_vm4 = vcmp.eq.s32.totalorder %v5823_v16, 0  ;;  %vm5828_vm1 = vcmp.eq.s32.totalorder %v5823_v16, 2 }
 0x3da   : > { %v5729_v34 = vsel %vm15810_vm15, nan, %v5728_v56  ;;  %v16192_v57 = vxor.u32 2147483648, %v16182_v21  ;;  %v16193_v1 = vxor.u32 2147483648, %v16185_v7  ;;  %vm5927_vm0 = vcmp.lt.s32.totalorder %v5926_v45, 2 }
 0x3db   : > { %10463 = vmatprep.mubr.msk.f32.mxu1 %vm7489_vm3, %v5729_v34  ;;  %vm5928_vm6 = vcmp.eq.s32.totalorder %v5926_v45, 0  ;;  %vm5931_vm15 = vcmp.eq.s32.totalorder %v5926_v45, 2  ;;  %v10960_v33 = vpack.c.bf16 %v7484_v62, %v7483_v54  ;;  %v16195_v16 = vxor.u32 2147483648, %v16190_v29  ;;  %v16199_v54 = vld [vmem:[#allocation74_spill] sm:$0xff] }
 0x3dc   : > { %v5827_v12 = vsel %vm5825_vm4, %v16185_v7, %v16192_v57  ;;  %v5830_v27 = vsel %vm5828_vm1, %v16193_v1, %v16182_v21  ;;  %v5930_v56 = vsel %vm5928_vm6, %v16190_v29, %v16194_v32  ;;  %vm15831_vm4 = vweird.f32 %v16196_v11  ;;  %v16197_v7 = vld [vmem:[#allocation79_spill] sm:$0xff]  ;;  %v16198_v32 = vld [vmem:[#allocation78_spill] sm:$0xff] }
 0x3dd   : > { %v5831_v53 = vsel %vm5824_vm14, %v5827_v12, %v5830_v27  ;;  %v5933_v57 = vsel %vm5931_vm15, %v16195_v16, %v16189_v47  ;;  %v15816_v1 = vxor.u32 2147483648, %v16197_v7  ;;  %10962 = vmatprep.subr.msk.bf16.mxu1 %vm14169_vm12, %v10960_v33  ;;  %v15820_v45 = vxor.u32 2147483648, %v16198_v32  ;;  %v16200_v16 = vld [vmem:[#allocation38_spill] sm:$0xff] }
 0x3de   : > { %v5832_v34 = vsel %vm15815_vm9, nan, %v5831_v53  ;;  %v5934_v27 = vsel %vm5927_vm0, %v5930_v56, %v5933_v57  ;;  %v6029_v62 = vand.u32 3, %v16199_v54  ;;  %vm15829_vm14 = vweird.f32 %v12475_v44  ;;  %10965 = vmatpush3.bf16.msk.msra.mxu1 %vm14169_vm12, %v10960_v33  ;;  %v16211_v44 = vld [vmem:[#allocation92_spill] sm:$0xff] }
 0x3df   : > { %10464 = vmatmul.mubr.msk.f32.gmra.mrb[14].mxu1 %vm7489_vm3, %v5832_v34  ;;  %v5935_v53 = vsel %vm15814_vm5, nan, %v5934_v27  ;;  %v15822_v12 = vxor.u32 2147483648, %v13590_v26  ;;  %v6132_v56 = vand.u32 3, %v13470_v61  ;;  %vm15830_vm6 = vweird.f32 %v16200_v16  ;;  %v16203_v61 = vld [vmem:[#allocation82_spill] sm:$0xff] }
 0x3e0   : > { %10466 = vmatprep.mubr.msk.f32.mxu1 %vm7489_vm3, %v5935_v53  ;;  %vm6030_vm15 = vcmp.lt.s32.totalorder %v6029_v62, 2  ;;  %vm6031_vm1 = vcmp.eq.s32.totalorder %v6029_v62, 0  ;;  %vm6034_vm0 = vcmp.eq.s32.totalorder %v6029_v62, 2  ;;  %v16201_v53 = vld [vmem:[#allocation86_spill] sm:$0xff]  ;;  %v15843_v16 = vxor.u32 2147483648, %v13868_v37 }
 0x3e1   : > { %v6033_v57 = vsel %vm6031_vm1, %v16198_v32, %v15816_v1  ;;  %v6036_v33 = vsel %vm6034_vm0, %v15820_v45, %v16197_v7  ;;  %vm6133_vm12 = vcmp.lt.s32.totalorder %v6132_v56, 2  ;;  %vm6134_vm5 = vcmp.eq.s32.totalorder %v6132_v56, 0  ;;  %v16204_v45 = vld [vmem:[#allocation83_spill] sm:$0xff] }
 0x3e2   : > { %v6037_v55 = vsel %vm6030_vm15, %v6033_v57, %v6036_v33  ;;  %v6136_v27 = vsel %vm6134_vm5, %v13510_v15, %v15822_v12  ;;  %vm6137_vm9 = vcmp.eq.s32.totalorder %v6132_v56, 2  ;;  %v16202_v1 = vxor.u32 2147483648, %v13510_v15  ;;  %v16205_v33 = vld [vmem:[#allocation48_spill] sm:$0xff]  ;;  %v16206_v12 = vld [vmem:[#allocation93_spill] sm:$0xff]  ;;  %v16210_v15 = vld [vmem:[#allocation46_spill] sm:$0xff] }
 0x3e3   : > { %v6038_v34 = vsel %vm15831_vm4, nan, %v6037_v55  ;;  %v6235_v7 = vand.u32 3, %v16204_v45  ;;  %vm15842_vm15 = vweird.f32 %v16205_v33  ;;  %vm15853_vm4 = vweird.f32 %v12854_v20  ;;  %v16221_v33 = vld [vmem:[#allocation96_spill] sm:$0xff] }
 0x3e4   : > { %v6139_v46 = vsel %vm6137_vm9, %v16202_v1, %v13590_v26  ;;  %10467 = vmatmul.mubr.msk.f32.gmra.mrb[16].mxu1 %vm7489_vm3, %v6038_v34  ;;  %v16207_v1 = vxor.u32 2147483648, %v16201_v53  ;;  %vm15841_vm9 = vweird.f32 %v16210_v15  ;;  %v16212_v26 = vld [vmem:[#allocation91_spill] sm:$0xff] }
 0x3e5   : > { %v6140_v57 = vsel %vm6133_vm12, %v6136_v27, %v6139_v46  ;;  %vm6236_vm5 = vcmp.lt.s32.totalorder %v6235_v7, 2  ;;  %vm6237_vm1 = vcmp.eq.s32.totalorder %v6235_v7, 0  ;;  %vm6240_vm0 = vcmp.eq.s32.totalorder %v6235_v7, 2  ;;  %v16209_v27 = vld [vmem:[#allocation88_spill] sm:$0xff]  ;;  %v16213_v7 = vld [vmem:[#allocation85_spill] sm:$0xff] }
 0x3e6   : > { %v6141_v55 = vsel %vm15829_vm14, nan, %v6140_v57  ;;  %v6239_v32 = vsel %vm6237_vm1, %v16203_v61, %v16207_v1  ;;  %v16208_v46 = vxor.u32 2147483648, %v16203_v61  ;;  %v6338_v56 = vand.u32 3, %v16209_v27 }
 0x3e7   : > { %10469 = vmatprep.mubr.msk.f32.mxu1 %vm7489_vm3, %v6141_v55  ;;  %v15836_v57 = vxor.u32 2147483648, %v16211_v44  ;;  %v6441_v45 = vand.u32 3, %v16213_v7  ;;  %v16214_v1 = vxor.u32 2147483648, %v13754_v41 }
 0x3e8   : > { %v6242_v34 = vsel %vm6240_vm0, %v16208_v46, %v16201_v53  ;;  %vm6339_vm12 = vcmp.lt.s32.totalorder %v6338_v56, 2  ;;  %vm6340_vm1 = vcmp.eq.s32.totalorder %v6338_v56, 0  ;;  %vm6343_vm14 = vcmp.eq.s32.totalorder %v6338_v56, 2  ;;  %v16223_v53 = vld [vmem:[#allocation105_spill] sm:$0xff] }
 0x3e9   : > { %v6243_v62 = vsel %vm6236_vm5, %v6239_v32, %v6242_v34  ;;  %v6342_v46 = vsel %vm6340_vm1, %v16206_v12, %v16214_v1  ;;  %v16215_v32 = vxor.u32 2147483648, %v16206_v12  ;;  %vm6442_vm5 = vcmp.lt.s32.totalorder %v6441_v45, 2 }
 0x3ea   : > { %v6244_v55 = vsel %vm15830_vm6, nan, %v6243_v62  ;;  %vm6443_vm0 = vcmp.eq.s32.totalorder %v6441_v45, 0  ;;  %vm6446_vm6 = vcmp.eq.s32.totalorder %v6441_v45, 2  ;;  %v16220_v45 = vld [vmem:[#allocation99_spill] sm:$0xff] }
 0x3eb   : > { %10470 = vmatmul.mubr.msk.f32.gmra.mrb[18].mxu1 %vm7489_vm3, %v6244_v55  ;;  %v6345_v34 = vsel %vm6343_vm14, %v16215_v32, %v13754_v41  ;;  %v6445_v62 = vsel %vm6443_vm0, %v16212_v26, %v15836_v57  ;;  %v16216_v55 = vxor.u32 2147483648, %v16212_v26  ;;  %v16217_v32 = vld [vmem:[#allocation100_spill] sm:$0xff]  ;;  %v15850_v61 = vxor.u32 2147483648, %v16220_v45  ;;  %v16222_v26 = vld [vmem:[#allocation89_spill] sm:$0xff] }
 0x3ec   : > { %v6346_v11 = vsel %vm6339_vm12, %v6342_v46, %v6345_v34  ;;  %v15847_v12 = vxor.u32 2147483648, %v16217_v32  ;;  %v16218_v34 = vld [vmem:[#allocation94_spill] sm:$0xff]  ;;  %v16219_v57 = vld [vmem:[#allocation56_spill] sm:$0xff] }
 0x3ed   : > { %v6347_v56 = vsel %vm15842_vm15, nan, %v6346_v11  ;;  %v6448_v1 = vsel %vm6446_vm6, %v16216_v55, %v16211_v44  ;;  %v6544_v41 = vand.u32 3, %v16218_v34  ;;  %vm15852_vm14 = vweird.f32 %v16219_v57  ;;  %v16225_v44 = vld [vmem:[#allocation98_spill] sm:$0xff] }
 0x3ee   : > { %10472 = vmatprep.mubr.msk.f32.mxu1 %vm7489_vm3, %v6347_v56  ;;  %v6449_v46 = vsel %vm6442_vm5, %v6445_v62, %v6448_v1  ;;  %v6647_v55 = vand.u32 3, %v16222_v26  ;;  %vm15863_vm6 = vweird.f32 %v13032_v58  ;;  %v16229_v26 = vld [vmem:[#allocation97_spill] sm:$0xff]  ;;  %v16235_v58 = vld [vmem:[#allocation108_spill] sm:$0xff] }
 0x3ef   : > { %v6450_v11 = vsel %vm15841_vm9, nan, %v6449_v46  ;;  %vm6545_vm12 = vcmp.lt.s32.totalorder %v6544_v41, 2  ;;  %vm6546_vm1 = vcmp.eq.s32.totalorder %v6544_v41, 0  ;;  %vm6549_vm5 = vcmp.eq.s32.totalorder %v6544_v41, 2 }
 0x3f0   : > { %10473 = vmatmul.mubr.msk.f32.gmra.mrb[20].mxu1 %vm7489_vm3, %v6450_v11  ;;  %v6548_v56 = vsel %vm6546_vm1, %v16217_v32, %v15843_v16  ;;  %v6551_v1 = vsel %vm6549_vm5, %v15847_v12, %v13868_v37  ;;  %vm6648_vm0 = vcmp.lt.s32.totalorder %v6647_v55, 2  ;;  %vm6649_vm9 = vcmp.eq.s32.totalorder %v6647_v55, 0  ;;  %v16226_v12 = vld [vmem:[#allocation59_spill] sm:$0xff] }
 0x3f1   : > { %v6552_v46 = vsel %vm6545_vm12, %v6548_v56, %v6551_v1  ;;  %v6651_v11 = vsel %vm6649_vm9, %v16221_v33, %v15850_v61  ;;  %vm6652_vm15 = vcmp.eq.s32.totalorder %v6647_v55, 2  ;;  %v16224_v16 = vxor.u32 2147483648, %v16221_v33  ;;  %v16227_v1 = vld [vmem:[#allocation104_spill] sm:$0xff]  ;;  %v16228_v61 = vld [vmem:[#allocation102_spill] sm:$0xff] }
 0x3f2   : > { %v6553_v62 = vsel %vm15853_vm4, nan, %v6552_v46  ;;  %v6750_v32 = vand.u32 3, %v16225_v44  ;;  %vm15862_vm1 = vweird.f32 %v16226_v12  ;;  %v15855_v37 = vxor.u32 2147483648, %v16227_v1 }
 0x3f3   : > { %v6654_v15 = vsel %vm6652_vm15, %v16224_v16, %v16220_v45  ;;  %10475 = vmatprep.mubr.msk.f32.mxu1 %vm7489_vm3, %v6553_v62  ;;  %v15861_v55 = vxor.u32 2147483648, %v16228_v61  ;;  %v6853_v41 = vand.u32 3, %v16229_v26  ;;  %v16230_v16 = vxor.u32 2147483648, %v13955_v6 }
 0x3f4   : > { %v6655_v56 = vsel %vm6648_vm0, %v6651_v11, %v6654_v15  ;;  %vm6751_vm9 = vcmp.lt.s32.totalorder %v6750_v32, 2  ;;  %vm6752_vm12 = vcmp.eq.s32.totalorder %v6750_v32, 0  ;;  %vm6755_vm5 = vcmp.eq.s32.totalorder %v6750_v32, 2 }
 0x3f5   : > { %v6656_v46 = vsel %vm15852_vm14, nan, %v6655_v56  ;;  %v6754_v33 = vsel %vm6752_vm12, %v16223_v53, %v16230_v16  ;;  %v16231_v15 = vxor.u32 2147483648, %v16223_v53  ;;  %vm6854_vm15 = vcmp.lt.s32.totalorder %v6853_v41, 2 }
 0x3f6   : > { %10476 = vmatmul.mubr.msk.f32.gmra.mrb[22].mxu1 %vm7489_vm3, %v6656_v46  ;;  %vm6855_vm0 = vcmp.eq.s32.totalorder %v6853_v41, 0  ;;  %vm6858_vm14 = vcmp.eq.s32.totalorder %v6853_v41, 2  ;;  %vm15871_vm4 = vweird.f32 %v13207_v5  ;;  %v15864_v16 = vxor.u32 2147483648, %v14105_v40  ;;  %v16234_v41 = vld [vmem:[#allocation109_spill] sm:$0xff] }
 0x3f7   : > { %v6757_v62 = vsel %vm6755_vm5, %v16231_v15, %v13955_v6  ;;  %v6857_v56 = vsel %vm6855_vm0, %v16228_v61, %v15855_v37  ;;  %v6860_v46 = vsel %vm6858_vm14, %v15861_v55, %v16227_v1  ;;  %v15868_v15 = vxor.u32 2147483648, %v14101_v35  ;;  %v16233_v37 = vld [vmem:[#allocation66_spill] sm:$0xff]  ;;  %v16236_v61 = vld [vmem:[#allocation103_spill] sm:$0xff] }
 0x3f8   : > { %v6758_v11 = vsel %vm6751_vm9, %v6754_v33, %v6757_v62  ;;  %v6861_v33 = vsel %vm6854_vm15, %v6857_v56, %v6860_v46  ;;  %v16232_v62 = vld [vmem:[#allocation107_spill] sm:$0xff]  ;;  %vm15870_vm9 = vweird.f32 %v16233_v37  ;;  %v15867_v6 = vxor.u32 2147483648, %v16234_v41 }
 0x3f9   : > { %v6759_v32 = vsel %vm15863_vm6, nan, %v6758_v11  ;;  %v6956_v53 = vand.u32 3, %v16232_v62  ;;  %v6862_v11 = vsel %vm15862_vm1, nan, %v6861_v33  ;;  %v15869_v57 = vxor.u32 2147483648, %v16235_v58 }
 0x3fa   : > { %10478 = vmatprep.mubr.msk.f32.mxu1 %vm7489_vm3, %v6759_v32  ;;  %v7059_v55 = vand.u32 3, %v16236_v61  ;;  %vm3861_vm14 = vweird.f32 %v13380_v4  ;;  %v16386_v4 = vxor.u32 2147483648, %v14214_v13 }
 0x3fb   : > { %10479 = vmatmul.mubr.msk.f32.gmra.mrb[24].mxu1 %vm7489_vm3, %v6862_v11  ;;  %vm6957_vm12 = vcmp.lt.s32.totalorder %v6956_v53, 2  ;;  %vm6958_vm5 = vcmp.eq.s32.totalorder %v6956_v53, 0  ;;  %vm6961_vm15 = vcmp.eq.s32.totalorder %v6956_v53, 2 }
 0x3fc   : > { %v6960_v32 = vsel %vm6958_vm5, %v14101_v35, %v15864_v16  ;;  %v6963_v46 = vsel %vm6961_vm15, %v15868_v15, %v14105_v40  ;;  %vm7060_vm0 = vcmp.lt.s32.totalorder %v7059_v55, 2  ;;  %vm7061_vm1 = vcmp.eq.s32.totalorder %v7059_v55, 0 }
 0x3fd   : > { %v6964_v33 = vsel %vm6957_vm12, %v6960_v32, %v6963_v46  ;;  %v7063_v11 = vsel %vm7061_vm1, %v16235_v58, %v15867_v6  ;;  %vm7064_vm6 = vcmp.eq.s32.totalorder %v7059_v55, 2  ;;  %v7162_v35 = vand.u32 3, %v14166_v9  ;;  %v16237_v6 = vld [vmem:[#allocation110_spill] sm:$0xff] }
 0x3fe   : > { %v6965_v56 = vsel %vm15871_vm4, nan, %v6964_v33  ;;  %v7066_v16 = vsel %vm7064_vm6, %v15869_v57, %v16234_v41  ;;  %vm15874_vm5 = vweird.f32 %v13291_v52  ;;  %v15872_v46 = vxor.u32 2147483648, %v14216_v25 }
 0x3ff   : > { %10481 = vmatprep.mubr.msk.f32.mxu1 %vm7489_vm3, %v6965_v56  ;;  %v7067_v32 = vsel %vm7060_vm0, %v7063_v11, %v7066_v16  ;;  %v15873_v55 = vxor.u32 2147483648, %v14214_v13  ;;  %v7265_v15 = vand.u32 3, %v16237_v6  ;;  %vm7163_vm1 = vcmp.lt.s32.totalorder %v7162_v35, 2 }
 0x400   : > { %v7068_v33 = vsel %vm15870_vm9, nan, %v7067_v32  ;;  %vm7164_vm12 = vcmp.eq.s32.totalorder %v7162_v35, 0  ;;  %vm7167_vm15 = vcmp.eq.s32.totalorder %v7162_v35, 2  ;;  %v16238_v57 = vxor.u32 2147483648, %v14294_v8 }
 0x401   : > { %10482 = vmatmul.mubr.msk.f32.gmra.mrb[26].mxu1 %vm7489_vm3, %v7068_v33  ;;  %v16239_v16 = vxor.u32 2147483648, %v14289_v17  ;;  %vm7266_vm6 = vcmp.lt.s32.totalorder %v7265_v15, 2  ;;  %vm7267_vm0 = vcmp.eq.s32.totalorder %v7265_v15, 0  ;;  %vm7270_vm9 = vcmp.eq.s32.totalorder %v7265_v15, 2 }
 0x402   : > { %v7166_v53 = vsel %vm7164_vm12, %v14289_v17, %v16238_v57  ;;  %v7269_v32 = vsel %vm7267_vm0, %v14214_v13, %v15872_v46  ;;  %vm4069_vm4 = vweird.f32 %v13565_v42  ;;  %v7272_v57 = vsel %vm7270_vm9, %v15873_v55, %v14216_v25  ;;  %v8219_v42 = vld [vmem:[%s15590_s5 + $0x48] sm:$0xff] }
 0x403   : > { %v7169_v56 = vsel %vm7167_vm15, %v16239_v16, %v14294_v8  ;;  %v15878_v16 = vxor.u32 2147483648, %v14476_v60  ;;  %v4178_v15 = vxor.u32 2147483648, %v14377_v38  ;;  %v7471_v55 = vand.u32 3, %v14246_v2 }
 0x404   : > { %v7170_v11 = vsel %vm7163_vm1, %v7166_v53, %v7169_v56  ;;  %v7273_v53 = vsel %vm7266_vm6, %v7269_v32, %v7272_v57  ;;  %v7368_v56 = vand.u32 3, %v14316_v63  ;;  %vm4173_vm1 = vweird.f32 %v13491_v49  ;;  %v8221_v49 = vld [vmem:[%s15590_s5 + $0x58] sm:$0xff] }
 0x405   : > { %v7171_v35 = vsel %vm3861_vm14, nan, %v7170_v11  ;;  %v7274_v11 = vsel %vm15874_vm5, nan, %v7273_v53  ;;  %v1158_v33 = vadd.s32 3, %v16127_v51  ;;  %v1262_v32 = vadd.s32 3, %v16131_v19 }
 0x406   : > { %10484 = vmatprep.mubr.msk.f32.mxu1 %vm7489_vm3, %v7171_v35  ;;  %vm7369_vm9 = vcmp.lt.s32.totalorder %v7368_v56, 2  ;;  %vm7370_vm12 = vcmp.eq.s32.totalorder %v7368_v56, 0  ;;  %vm7373_vm15 = vcmp.eq.s32.totalorder %v7368_v56, 2  ;;  %v16240_v35 = vxor.u32 2147483648, %v14485_v24 }
 0x407   : > { %10485 = vmatmul.mubr.msk.f32.gmra.mrb[28].mxu1 %vm7489_vm3, %v7274_v11  ;;  %v7375_v53 = vsel %vm7373_vm15, %v15878_v16, %v14485_v24  ;;  %vm7472_vm6 = vcmp.lt.s32.totalorder %v7471_v55, 2  ;;  %vm7473_vm0 = vcmp.eq.s32.totalorder %v7471_v55, 0  ;;  %vm7476_vm5 = vcmp.eq.s32.totalorder %v7471_v55, 2 }
 0x408   : > { %v7372_v57 = vsel %vm7370_vm12, %v14476_v60, %v16240_v35  ;;  %v7475_v51 = vsel %vm7473_vm0, %v14371_v48, %v4178_v15  ;;  %v1159_v11 = vand.u32 3, %v1158_v33  ;;  %v16241_v56 = vxor.u32 2147483648, %v14371_v48 }
 0x409   : > { %v7376_v46 = vsel %vm7369_vm9, %v7372_v57, %v7375_v53  ;;  %v1263_v52 = vand.u32 3, %v1262_v32  ;;  %v1366_v60 = vadd.s32 3, %v16135_v43  ;;  %v16242_v33 = vxor.u32 2147483648, %v16123_v23 }
 0x40a   : > { %v7377_v19 = vsel %vm4069_vm4, nan, %v7376_v46  ;;  %v7478_v35 = vsel %vm7476_vm5, %v16241_v56, %v14377_v38  ;;  %vm1160_vm9 = vcmp.lt.s32.totalorder %v1159_v11, 2  ;;  %vm1161_vm12 = vcmp.eq.s32.totalorder %v1159_v11, 0  ;;  %v16247_v56 = vld [vmem:[#allocation27_spill] sm:$0xff] }
 0x40b   : > { %10487 = vmatprep.mubr.msk.f32.mxu1 %vm7489_vm3, %v7377_v19  ;;  %v7479_v16 = vsel %vm7472_vm6, %v7475_v51, %v7478_v35  ;;  %vm1164_vm15 = vcmp.eq.s32.totalorder %v1159_v11, 2  ;;  %v1163_v46 = vsel %vm1161_vm12, %v16126_v50, %v16242_v33  ;;  %v16243_v57 = vxor.u32 2147483648, %v16126_v50  ;;  %v16245_v11 = vld [vmem:[#allocation28_spill] sm:$0xff]  ;;  %v16251_v33 = vld [vmem:[#allocation39_spill] sm:$0xff] }
 0x40c   : > { %v7480_v55 = vsel %vm4173_vm1, nan, %v7479_v16  ;;  %vm1264_vm5 = vcmp.lt.s32.totalorder %v1263_v52, 2  ;;  %vm1265_vm0 = vcmp.eq.s32.totalorder %v1263_v52, 0  ;;  %vm1268_vm6 = vcmp.eq.s32.totalorder %v1263_v52, 2  ;;  %v16258_v52 = vld [vmem:[#allocation34_spill] sm:$0xff] }
 0x40d   : > { %v1166_v53 = vsel %vm1164_vm15, %v16243_v57, %v16123_v23  ;;  %10488 = vmatmul.mubr.msk.f32.gmra.mrb[30].mxu1 %vm7489_vm3, %v7480_v55  ;;  %v1367_v32 = vand.u32 3, %v1366_v60  ;;  %v16244_v51 = vxor.u32 2147483648, %v16129_v30  ;;  %v16246_v23 = vxor.u32 2147483648, %v16245_v11  ;;  %v16249_v60 = vld [vmem:[#allocation40_spill] sm:$0xff] }
 0x40e   : > { %v1167_v43 = vsel %vm1160_vm9, %v1163_v46, %v1166_v53  ;;  %10498 = vmatprep.mubr.msk.f32.mxu1 %vm7489_vm3, %v14283_v39  ;;  %v1470_v35 = vadd.s32 3, %v16247_v56  ;;  %v16250_v31 = vxor.u32 2147483648, %v16249_v60  ;;  %v16252_v57 = vxor.u32 2147483648, %v16251_v33 }
 0x40f   : > { %v1168_v16 = vsel %vm1157_vm11, nan, %v1167_v43  ;;  %v1267_v19 = vsel %vm1265_vm0, %v16245_v11, %v16244_v51  ;;  %v1270_v50 = vsel %vm1268_vm6, %v16246_v23, %v16129_v30  ;;  %vm1368_vm9 = vcmp.lt.s32.totalorder %v1367_v32, 2  ;;  %v16253_v51 = vld [vmem:[#allocation12_spill] sm:$0xff]  ;;  %v16254_v11 = vld [vmem:[#allocation42_spill] sm:$0xff] }
 0x410   : > { %v1271_v55 = vsel %vm1264_vm5, %v1267_v19, %v1270_v50  ;;  %vm1369_vm12 = vcmp.eq.s32.totalorder %v1367_v32, 0  ;;  %vm1372_vm15 = vcmp.eq.s32.totalorder %v1367_v32, 2  ;;  %v1471_v43 = vand.u32 3, %v1470_v35 }
 0x411   : > { %v1272_v39 = vsel %vm1261_vm7, nan, %v1271_v55  ;;  %v1371_v46 = vsel %vm1369_vm12, %v16251_v33, %v16250_v31  ;;  %v1374_v53 = vsel %vm1372_vm15, %v16252_v57, %v16249_v60  ;;  %10499 = vmatmul.mubr.msk.f32.vlgmr.msra.gmra.mrb[0].mxu1 %vm7489_vm3, %v16253_v51  ;;  %v1574_v19 = vadd.s32 3, %v16254_v11  ;;  %v16256_v55 = vld [vmem:[#allocation35_spill] sm:$0xff]  ;;  %v16260_v51 = vld [vmem:[#allocation6_spill] sm:$0xff] }
 0x412   : > { %v1375_v30 = vsel %vm1368_vm9, %v1371_v46, %v1374_v53  ;;  %v1678_v32 = vadd.s32 3, %v16148_v28  ;;  %v1782_v23 = vadd.s32 3, %v16152_v10  ;;  %10501 = vmatprep.mubr.msk.f32.mxu1 %vm7489_vm3, %v1168_v16  ;;  %vm1472_vm11 = vcmp.lt.s32.totalorder %v1471_v43, 2 }
 0x413   : > { %v1376_v56 = vsel %vm1365_vm8, nan, %v1375_v30  ;;  %vm1473_vm7 = vcmp.eq.s32.totalorder %v1471_v43, 0  ;;  %vm1476_vm5 = vcmp.eq.s32.totalorder %v1471_v43, 2  ;;  %v16257_v35 = vxor.u32 2147483648, %v16256_v55 }
 0x414   : > { %v16259_v31 = vxor.u32 2147483648, %v16258_v52  ;;  %v1575_v46 = vand.u32 3, %v1574_v19  ;;  %v1679_v28 = vand.u32 3, %v1678_v32  ;;  %v1783_v10 = vand.u32 3, %v1782_v23  ;;  %v16266_v23 = vld [vmem:[#allocation43_spill] sm:$0xff] }
 0x415   : > { %v1475_v60 = vsel %vm1473_vm7, %v16258_v52, %v16257_v35  ;;  %v1886_v16 = vadd.s32 3, %v16159_v18  ;;  %v1990_v53 = vadd.s32 3, %v16164_v3  ;;  %10502 = vmatmul.mubr.msk.f32.gmra.mrb[2].mxu1 %vm7489_vm3, %v1272_v39  ;;  %vm16261_vm8 = vweird.f32 %v16260_v51  ;;  %v16264_v39 = vld [vmem:[#allocation44_spill] sm:$0xff]  ;;  %v16288_v51 = vld [vmem:[#allocation58_spill] sm:$0xff] }
 0x416   : > { %v1478_v33 = vsel %vm1476_vm5, %v16259_v31, %v16256_v55  ;;  %vm1576_vm0 = vcmp.lt.s32.totalorder %v1575_v46, 2  ;;  %vm1577_vm6 = vcmp.eq.s32.totalorder %v1575_v46, 0  ;;  %vm1580_vm9 = vcmp.eq.s32.totalorder %v1575_v46, 2  ;;  %10504 = vmatprep.mubr.msk.f32.mxu1 %vm7489_vm3, %v1376_v56  ;;  %v16267_v55 = vld [vmem:[#allocation9_spill] sm:$0xff]  ;;  %v16272_v31 = vld [vmem:[#allocation52_spill] sm:$0xff] }
 0x417   : > { %v1479_v57 = vsel %vm1472_vm11, %v1475_v60, %v1478_v33  ;;  %v16262_v30 = vxor.u32 2147483648, %v12591_v0  ;;  %v16263_v19 = vxor.u32 2147483648, %v12523_v14  ;;  %vm1680_vm12 = vcmp.lt.s32.totalorder %v1679_v28, 2 }
 0x418   : > { %v1480_v43 = vsel %vm16261_vm8, nan, %v1479_v57  ;;  %vm1681_vm15 = vcmp.eq.s32.totalorder %v1679_v28, 0  ;;  %v16265_v32 = vxor.u32 2147483648, %v16264_v39  ;;  %vm1684_vm11 = vcmp.eq.s32.totalorder %v1679_v28, 2 }
 0x419   : > { %v1579_v11 = vsel %vm1577_vm6, %v12523_v14, %v16262_v30  ;;  %v1582_v18 = vsel %vm1580_vm9, %v16263_v19, %v12591_v0  ;;  %vm1784_vm7 = vcmp.lt.s32.totalorder %v1783_v10, 2  ;;  %vm16268_vm5 = vweird.f32 %v16267_v55  ;;  %10505 = vmatmul.mubr.msk.f32.gmra.mrb[4].mxu1 %vm7489_vm3, %v1480_v43  ;;  %v16270_v0 = vld [vmem:[#allocation53_spill] sm:$0xff] }
 0x41a   : > { %v1583_v3 = vsel %vm1576_vm0, %v1579_v11, %v1582_v18  ;;  %v1683_v50 = vsel %vm1681_vm15, %v16266_v23, %v16265_v32  ;;  %v16269_v35 = vxor.u32 2147483648, %v16266_v23  ;;  %vm1785_vm8 = vcmp.eq.s32.totalorder %v1783_v10, 0  ;;  %v16279_v23 = vld [vmem:[#allocation49_spill] sm:$0xff] }
 0x41b   : > { %v1584_v56 = vsel %vm16268_vm5, nan, %v1583_v3  ;;  %vm1788_vm6 = vcmp.eq.s32.totalorder %v1783_v10, 2  ;;  %v16271_v60 = vxor.u32 2147483648, %v16270_v0  ;;  %v16273_v46 = vxor.u32 2147483648, %v16272_v31  ;;  %v16275_v10 = vld [vmem:[#allocation50_spill] sm:$0xff] }
 0x41c   : > { %v1686_v52 = vsel %vm1684_vm11, %v16269_v35, %v16264_v39  ;;  %v1887_v57 = vand.u32 3, %v1886_v16  ;;  %10507 = vmatprep.mubr.msk.f32.mxu1 %vm7489_vm3, %v1584_v56  ;;  %v1991_v19 = vand.u32 3, %v1990_v53  ;;  %v2094_v18 = vadd.s32 3, %v16275_v10  ;;  %v16277_v39 = vld [vmem:[#allocation51_spill] sm:$0xff]  ;;  %v16289_v10 = vld [vmem:[#allocation14_spill] sm:$0xff] }
 0x41d   : > { %v1687_v14 = vsel %vm1680_vm12, %v1683_v50, %v1686_v52  ;;  %v1787_v33 = vsel %vm1785_vm8, %v16272_v31, %v16271_v60  ;;  %v1790_v28 = vsel %vm1788_vm6, %v16273_v46, %v16270_v0  ;;  %v16278_v32 = vxor.u32 2147483648, %v16277_v39  ;;  %v16281_v56 = vld [vmem:[#allocation63_spill] sm:$0xff]  ;;  %v16283_v52 = vld [vmem:[#allocation60_spill] sm:$0xff]  ;;  %v16284_v60 = vld [vmem:[#allocation10_spill] sm:$0xff] }
 0x41e   : > { %v1688_v30 = vsel %vm1677_vm13, nan, %v1687_v14  ;;  %v1791_v11 = vsel %vm1784_vm7, %v1787_v33, %v1790_v28  ;;  %vm1888_vm0 = vcmp.lt.s32.totalorder %v1887_v57, 2  ;;  %vm1889_vm9 = vcmp.eq.s32.totalorder %v1887_v57, 0  ;;  %v16287_v28 = vld [vmem:[#allocation61_spill] sm:$0xff] }
 0x41f   : > { %v1792_v3 = vsel %vm1781_vm2, nan, %v1791_v11  ;;  %vm1892_vm12 = vcmp.eq.s32.totalorder %v1887_v57, 2  ;;  %v1891_v50 = vsel %vm1889_vm9, %v16279_v23, %v16278_v32  ;;  %v16280_v16 = vxor.u32 2147483648, %v16279_v23  ;;  %10508 = vmatmul.mubr.msk.f32.gmra.mrb[6].mxu1 %vm7489_vm3, %v1688_v30 }
 0x420   : > { %vm1992_vm15 = vcmp.lt.s32.totalorder %v1991_v19, 2  ;;  %vm1993_vm13 = vcmp.eq.s32.totalorder %v1991_v19, 0  ;;  %v16282_v35 = vxor.u32 2147483648, %v16281_v56  ;;  %vm1996_vm2 = vcmp.eq.s32.totalorder %v1991_v19, 2  ;;  %10510 = vmatprep.mubr.msk.f32.mxu1 %vm7489_vm3, %v1792_v3  ;;  %v16293_v3 = vld [vmem:[#allocation54_spill] sm:$0xff] }
 0x421   : > { %v1894_v55 = vsel %vm1892_vm12, %v16280_v16, %v16277_v39  ;;  %v2095_v0 = vand.u32 3, %v2094_v18  ;;  %vm16285_vm11 = vweird.f32 %v16284_v60  ;;  %v16286_v33 = vxor.u32 2147483648, %v16283_v52  ;;  %v16291_v18 = vld [vmem:[#allocation57_spill] sm:$0xff] }
 0x422   : > { %v1895_v53 = vsel %vm1888_vm0, %v1891_v50, %v1894_v55  ;;  %v1995_v14 = vsel %vm1993_vm13, %v16283_v52, %v16282_v35  ;;  %v2198_v57 = vadd.s32 3, %v16287_v28  ;;  %v2302_v30 = vadd.s32 3, %v16288_v51  ;;  %v16296_v52 = vld [vmem:[#allocation13_spill] sm:$0xff] }
 0x423   : > { %v1896_v31 = vsel %vm16285_vm11, nan, %v1895_v53  ;;  %v1998_v46 = vsel %vm1996_vm2, %v16286_v33, %v16281_v56  ;;  %vm2096_vm7 = vcmp.lt.s32.totalorder %v2095_v0, 2  ;;  %vm2097_vm5 = vcmp.eq.s32.totalorder %v2095_v0, 0  ;;  %v16295_v53 = vld [vmem:[#allocation68_spill] sm:$0xff]  ;;  %v16300_v33 = vld [vmem:[#allocation69_spill] sm:$0xff] }
 0x424   : > { %v1999_v11 = vsel %vm1992_vm15, %v1995_v14, %v1998_v46  ;;  %vm2100_vm8 = vcmp.eq.s32.totalorder %v2095_v0, 2  ;;  %vm16290_vm6 = vweird.f32 %v16289_v10  ;;  %v16292_v43 = vxor.u32 2147483648, %v16291_v18  ;;  %10511 = vmatmul.mubr.msk.f32.gmra.mrb[8].mxu1 %vm7489_vm3, %v1896_v31  ;;  %v16298_v0 = vld [vmem:[#allocation70_spill] sm:$0xff] }
 0x425   : > { %v2000_v19 = vsel %vm16290_vm6, nan, %v1999_v11  ;;  %v16294_v32 = vxor.u32 2147483648, %v16293_v3  ;;  %v2199_v50 = vand.u32 3, %v2198_v57  ;;  %v2303_v55 = vand.u32 3, %v2302_v30  ;;  %v16304_v30 = vld [vmem:[#allocation64_spill] sm:$0xff] }
 0x426   : > { %v2099_v39 = vsel %vm2097_vm5, %v16293_v3, %v16292_v43  ;;  %v2406_v56 = vadd.s32 3, %v16295_v53  ;;  %v2510_v35 = vadd.s32 3, %v16187_v36  ;;  %10513 = vmatprep.mubr.msk.f32.mxu1 %vm7489_vm3, %v2000_v19  ;;  %vm16297_vm0 = vweird.f32 %v16296_v52  ;;  %v16302_v36 = vld [vmem:[#allocation65_spill] sm:$0xff]  ;;  %v16305_v19 = vld [vmem:[#allocation18_spill] sm:$0xff] }
 0x427   : > { %v2102_v23 = vsel %vm2100_vm8, %v16294_v32, %v16291_v18  ;;  %vm2200_vm9 = vcmp.lt.s32.totalorder %v2199_v50, 2  ;;  %vm2201_vm12 = vcmp.eq.s32.totalorder %v2199_v50, 0  ;;  %vm2204_vm15 = vcmp.eq.s32.totalorder %v2199_v50, 2 }
 0x428   : > { %v2103_v16 = vsel %vm2096_vm7, %v2099_v39, %v2102_v23  ;;  %v16299_v60 = vxor.u32 2147483648, %v16298_v0  ;;  %v16301_v31 = vxor.u32 2147483648, %v16300_v33  ;;  %vm2304_vm13 = vcmp.lt.s32.totalorder %v2303_v55, 2 }
 0x429   : > { %v2104_v14 = vsel %vm16297_vm0, nan, %v2103_v16  ;;  %vm2305_vm2 = vcmp.eq.s32.totalorder %v2303_v55, 0  ;;  %v16303_v51 = vxor.u32 2147483648, %v16302_v36  ;;  %vm2308_vm11 = vcmp.eq.s32.totalorder %v2303_v55, 2  ;;  %v16309_v55 = vld [vmem:[#allocation77_spill] sm:$0xff] }
 0x42a   : > { %v2203_v46 = vsel %vm2201_vm12, %v16300_v33, %v16299_v60  ;;  %v2206_v28 = vsel %vm2204_vm15, %v16301_v31, %v16298_v0  ;;  %v2407_v10 = vand.u32 3, %v2406_v56  ;;  %10514 = vmatmul.mubr.msk.f32.gmra.mrb[10].mxu1 %vm7489_vm3, %v2104_v14  ;;  %vm16306_vm7 = vweird.f32 %v16305_v19  ;;  %v16311_v56 = vld [vmem:[#allocation73_spill] sm:$0xff]  ;;  %v16313_v60 = vld [vmem:[#allocation26_spill] sm:$0xff]  ;;  %v16316_v31 = vld [vmem:[#allocation71_spill] sm:$0xff] }
 0x42b   : > { %v2207_v57 = vsel %vm2200_vm9, %v2203_v46, %v2206_v28  ;;  %v2307_v11 = vsel %vm2305_vm2, %v16304_v30, %v16303_v51  ;;  %v16307_v43 = vxor.u32 2147483648, %v16304_v30  ;;  %v2511_v39 = vand.u32 3, %v2510_v35 }
 0x42c   : > { %v2208_v18 = vsel %vm16306_vm7, nan, %v2207_v57  ;;  %v2614_v32 = vadd.s32 3, %v16191_v59  ;;  %vm2408_vm5 = vcmp.lt.s32.totalorder %v2407_v10, 2  ;;  %vm2409_vm8 = vcmp.eq.s32.totalorder %v2407_v10, 0 }
 0x42d   : > { %v2310_v3 = vsel %vm2308_vm11, %v16307_v43, %v16302_v36  ;;  %10516 = vmatprep.mubr.msk.f32.mxu1 %vm7489_vm3, %v2208_v18  ;;  %vm2412_vm6 = vcmp.eq.s32.totalorder %v2407_v10, 2  ;;  %v16310_v53 = vxor.u32 2147483648, %v16309_v55  ;;  %v16312_v14 = vxor.u32 2147483648, %v16311_v56 }
 0x42e   : > { %v2311_v23 = vsel %vm2304_vm13, %v2307_v11, %v2310_v3  ;;  %vm2512_vm0 = vcmp.lt.s32.totalorder %v2511_v39, 2  ;;  %vm2513_vm9 = vcmp.eq.s32.totalorder %v2511_v39, 0  ;;  %vm2516_vm12 = vcmp.eq.s32.totalorder %v2511_v39, 2 }
 0x42f   : > { %v2312_v16 = vsel %vm2301_vm10, nan, %v2311_v23  ;;  %v2411_v52 = vsel %vm2409_vm8, %v16311_v56, %v16310_v53  ;;  %v2414_v0 = vsel %vm2412_vm6, %v16312_v14, %v16309_v55  ;;  %v2615_v59 = vand.u32 3, %v2614_v32  ;;  %v16322_v32 = vld [vmem:[#allocation83_spill] sm:$0xff]  ;;  %v16327_v55 = vld [vmem:[#allocation78_spill] sm:$0xff] }
 0x430   : > { %v2415_v35 = vsel %vm2408_vm5, %v2411_v52, %v2414_v0  ;;  %10517 = vmatmul.mubr.msk.f32.gmra.mrb[12].mxu1 %vm7489_vm3, %v2312_v16  ;;  %vm16314_vm15 = vweird.f32 %v16313_v60  ;;  %v16315_v46 = vxor.u32 2147483648, %v16182_v21  ;;  %v16317_v57 = vxor.u32 2147483648, %v16316_v31 }
 0x431   : > { %v2416_v33 = vsel %vm16314_vm15, nan, %v2415_v35  ;;  %v2718_v51 = vadd.s32 3, %v16199_v54  ;;  %vm2616_vm10 = vcmp.lt.s32.totalorder %v2615_v59, 2  ;;  %vm2617_vm13 = vcmp.eq.s32.totalorder %v2615_v59, 0  ;;  %v16321_v54 = vld [vmem:[#allocation84_spill] sm:$0xff] }
 0x432   : > { %v2515_v28 = vsel %vm2513_vm9, %v16316_v31, %v16315_v46  ;;  %v2518_v36 = vsel %vm2516_vm12, %v16317_v57, %v16182_v21  ;;  %10519 = vmatprep.mubr.msk.f32.mxu1 %vm7489_vm3, %v2416_v33  ;;  %vm2620_vm2 = vcmp.eq.s32.totalorder %v2615_v59, 2  ;;  %vm16318_vm11 = vweird.f32 %v16181_v22  ;;  %v16323_v22 = vld [vmem:[#allocation33_spill] sm:$0xff]  ;;  %v16329_v33 = vld [vmem:[#allocation31_spill] sm:$0xff]  ;;  %v16331_v31 = vld [vmem:[#allocation90_spill] sm:$0xff] }
 0x433   : > { %v2519_v30 = vsel %vm2512_vm0, %v2515_v28, %v2518_v36  ;;  %v16319_v10 = vxor.u32 2147483648, %v16189_v47  ;;  %v16320_v18 = vxor.u32 2147483648, %v16190_v29  ;;  %v2719_v21 = vand.u32 3, %v2718_v51  ;;  %v16333_v57 = vld [vmem:[#allocation87_spill] sm:$0xff] }
 0x434   : > { %v2520_v11 = vsel %vm16318_vm11, nan, %v2519_v30  ;;  %v2822_v39 = vadd.s32 3, %v16321_v54  ;;  %v2926_v23 = vadd.s32 3, %v16322_v32  ;;  %v3030_v50 = vadd.s32 3, %v16209_v27 }
 0x435   : > { %v2619_v19 = vsel %vm2617_vm13, %v16190_v29, %v16319_v10  ;;  %v2622_v43 = vsel %vm2620_vm2, %v16320_v18, %v16189_v47  ;;  %10520 = vmatmul.mubr.msk.f32.gmra.mrb[14].mxu1 %vm7489_vm3, %v2520_v11  ;;  %vm16324_vm7 = vweird.f32 %v16323_v22  ;;  %vm2720_vm5 = vcmp.lt.s32.totalorder %v2719_v21, 2  ;;  %v16325_v29 = vld [vmem:[#allocation79_spill] sm:$0xff]  ;;  %v16337_v10 = vld [vmem:[#allocation82_spill] sm:$0xff]  ;;  %v16338_v18 = vld [vmem:[#allocation41_spill] sm:$0xff] }
 0x436   : > { %v2623_v3 = vsel %vm2616_vm10, %v2619_v19, %v2622_v43  ;;  %vm2721_vm8 = vcmp.eq.s32.totalorder %v2719_v21, 0  ;;  %vm2724_vm6 = vcmp.eq.s32.totalorder %v2719_v21, 2  ;;  %v16326_v47 = vxor.u32 2147483648, %v16325_v29 }
 0x437   : > { %v2624_v16 = vsel %vm16324_vm7, nan, %v2623_v3  ;;  %v16328_v56 = vxor.u32 2147483648, %v16327_v55  ;;  %v2823_v14 = vand.u32 3, %v2822_v39  ;;  %v2927_v27 = vand.u32 3, %v2926_v23  ;;  %v16341_v39 = vld [vmem:[#allocation95_spill] sm:$0xff]  ;;  %v16343_v23 = vld [vmem:[#allocation93_spill] sm:$0xff] }
 0x438   : > { %10522 = vmatprep.mubr.msk.f32.mxu1 %vm7489_vm3, %v2624_v16  ;;  %v2723_v53 = vsel %vm2721_vm8, %v16327_v55, %v16326_v47  ;;  %v3031_v35 = vand.u32 3, %v3030_v50  ;;  %v3134_v59 = vadd.s32 3, %v16213_v7  ;;  %v3238_v60 = vadd.s32 3, %v16218_v34  ;;  %v16335_v34 = vld [vmem:[#allocation86_spill] sm:$0xff] }
 0x439   : > { %v2726_v52 = vsel %vm2724_vm6, %v16328_v56, %v16325_v29  ;;  %vm16330_vm0 = vweird.f32 %v16329_v33  ;;  %vm2824_vm9 = vcmp.lt.s32.totalorder %v2823_v14, 2  ;;  %vm2825_vm12 = vcmp.eq.s32.totalorder %v2823_v14, 0  ;;  %v16345_v47 = vld [vmem:[#allocation38_spill] sm:$0xff] }
 0x43a   : > { %v2727_v0 = vsel %vm2720_vm5, %v2723_v53, %v2726_v52  ;;  %vm2828_vm15 = vcmp.eq.s32.totalorder %v2823_v14, 2  ;;  %v16332_v28 = vxor.u32 2147483648, %v16331_v31  ;;  %v16334_v51 = vxor.u32 2147483648, %v16333_v57  ;;  %v16347_v52 = vld [vmem:[#allocation89_spill] sm:$0xff] }
 0x43b   : > { %v2728_v46 = vsel %vm16330_vm0, nan, %v2727_v0  ;;  %vm2928_vm10 = vcmp.lt.s32.totalorder %v2927_v27, 2  ;;  %vm2929_vm13 = vcmp.eq.s32.totalorder %v2927_v27, 0  ;;  %v16336_v11 = vxor.u32 2147483648, %v16335_v34 }
 0x43c   : > { %10523 = vmatmul.mubr.msk.f32.gmra.mrb[16].mxu1 %vm7489_vm3, %v2728_v46  ;;  %v2827_v36 = vsel %vm2825_vm12, %v16333_v57, %v16332_v28  ;;  %v2830_v30 = vsel %vm2828_vm15, %v16334_v51, %v16331_v31  ;;  %vm2932_vm2 = vcmp.eq.s32.totalorder %v2927_v27, 2  ;;  %vm3032_vm11 = vcmp.lt.s32.totalorder %v3031_v35, 2  ;;  %v16348_v27 = vld [vmem:[#allocation48_spill] sm:$0xff]  ;;  %v16354_v57 = vld [vmem:[#allocation101_spill] sm:$0xff] }
 0x43d   : > { %v2831_v7 = vsel %vm2824_vm9, %v2827_v36, %v2830_v30  ;;  %v2931_v19 = vsel %vm2929_vm13, %v16337_v10, %v16336_v11  ;;  %vm16339_vm7 = vweird.f32 %v16338_v18  ;;  %v16340_v21 = vxor.u32 2147483648, %v16337_v10  ;;  %v16356_v51 = vld [vmem:[#allocation100_spill] sm:$0xff] }
 0x43e   : > { %v2832_v43 = vsel %vm16339_vm7, nan, %v2831_v7  ;;  %vm3033_vm5 = vcmp.eq.s32.totalorder %v3031_v35, 0  ;;  %vm3036_vm8 = vcmp.eq.s32.totalorder %v3031_v35, 2  ;;  %v16342_v32 = vxor.u32 2147483648, %v16341_v39  ;;  %v16350_v35 = vld [vmem:[#allocation92_spill] sm:$0xff] }
 0x43f   : > { %v2934_v3 = vsel %vm2932_vm2, %v16340_v21, %v16335_v34  ;;  %10525 = vmatprep.mubr.msk.f32.mxu1 %vm7489_vm3, %v2832_v43  ;;  %v16344_v22 = vxor.u32 2147483648, %v16343_v23  ;;  %v3135_v29 = vand.u32 3, %v3134_v59  ;;  %vm16346_vm6 = vweird.f32 %v16345_v47  ;;  %v16352_v59 = vld [vmem:[#allocation91_spill] sm:$0xff]  ;;  %v16357_v34 = vld [vmem:[#allocation46_spill] sm:$0xff]  ;;  %v16364_v47 = vld [vmem:[#allocation56_spill] sm:$0xff] }
 0x440   : > { %v2935_v54 = vsel %vm2928_vm10, %v2931_v19, %v2934_v3  ;;  %v3035_v50 = vsel %vm3033_vm5, %v16343_v23, %v16342_v32  ;;  %v3239_v56 = vand.u32 3, %v3238_v60  ;;  %v3342_v14 = vadd.s32 3, %v16347_v52 }
 0x441   : > { %v3038_v16 = vsel %vm3036_vm8, %v16344_v22, %v16341_v39  ;;  %v2936_v55 = vsel %vm16346_vm6, nan, %v2935_v54  ;;  %vm16349_vm0 = vweird.f32 %v16348_v27  ;;  %vm3136_vm9 = vcmp.lt.s32.totalorder %v3135_v29, 2  ;;  %v16362_v39 = vld [vmem:[#allocation96_spill] sm:$0xff]  ;;  %v16371_v27 = vld [vmem:[#allocation102_spill] sm:$0xff] }
 0x442   : > { %v3039_v53 = vsel %vm3032_vm11, %v3035_v50, %v3038_v16  ;;  %10526 = vmatmul.mubr.msk.f32.gmra.mrb[18].mxu1 %vm7489_vm3, %v2936_v55  ;;  %vm3137_vm12 = vcmp.eq.s32.totalorder %v3135_v29, 0  ;;  %vm3140_vm15 = vcmp.eq.s32.totalorder %v3135_v29, 2  ;;  %v16351_v33 = vxor.u32 2147483648, %v16350_v35  ;;  %v16366_v55 = vld [vmem:[#allocation106_spill] sm:$0xff] }
 0x443   : > { %v3040_v0 = vsel %vm16349_vm0, nan, %v3039_v53  ;;  %v16353_v31 = vxor.u32 2147483648, %v16352_v59  ;;  %vm3240_vm10 = vcmp.lt.s32.totalorder %v3239_v56, 2  ;;  %vm3241_vm13 = vcmp.eq.s32.totalorder %v3239_v56, 0 }
 0x444   : > { %10528 = vmatprep.mubr.msk.f32.mxu1 %vm7489_vm3, %v3040_v0  ;;  %v3139_v46 = vsel %vm3137_vm12, %v16352_v59, %v16351_v33  ;;  %v16355_v36 = vxor.u32 2147483648, %v16354_v57  ;;  %vm3244_vm2 = vcmp.eq.s32.totalorder %v3239_v56, 2  ;;  %v3343_v7 = vand.u32 3, %v3342_v14  ;;  %v16372_v33 = vld [vmem:[#allocation62_spill] sm:$0xff] }
 0x445   : > { %v3142_v60 = vsel %vm3140_vm15, %v16353_v31, %v16350_v35  ;;  %vm16358_vm11 = vweird.f32 %v16357_v34  ;;  %v16359_v10 = vxor.u32 2147483648, %v16356_v51  ;;  %v3446_v18 = vadd.s32 3, %v16225_v44 }
 0x446   : > { %v3143_v28 = vsel %vm3136_vm9, %v3139_v46, %v3142_v60  ;;  %v3243_v30 = vsel %vm3241_vm13, %v16356_v51, %v16355_v36  ;;  %v3550_v43 = vadd.s32 3, %v16229_v26  ;;  %vm3344_vm7 = vcmp.lt.s32.totalorder %v3343_v7, 2 }
 0x447   : > { %v3144_v11 = vsel %vm16358_vm11, nan, %v3143_v28  ;;  %v3246_v19 = vsel %vm3244_vm2, %v16359_v10, %v16354_v57  ;;  %vm3345_vm5 = vcmp.eq.s32.totalorder %v3343_v7, 0  ;;  %vm3348_vm8 = vcmp.eq.s32.totalorder %v3343_v7, 2 }
 0x448   : > { %10529 = vmatmul.mubr.msk.f32.gmra.mrb[20].mxu1 %vm7489_vm3, %v3144_v11  ;;  %v3247_v21 = vsel %vm3240_vm10, %v3243_v30, %v3246_v19  ;;  %vm16360_vm6 = vweird.f32 %v12854_v20  ;;  %v16361_v54 = vxor.u32 2147483648, %v16220_v45  ;;  %v16363_v23 = vxor.u32 2147483648, %v16362_v39  ;;  %v16377_v30 = vld [vmem:[#allocation111_spill] sm:$0xff] }
 0x449   : > { %v3248_v3 = vsel %vm16360_vm6, nan, %v3247_v21  ;;  %v3447_v44 = vand.u32 3, %v3446_v18  ;;  %v3551_v22 = vand.u32 3, %v3550_v43  ;;  %v3654_v16 = vadd.s32 3, %v16232_v62  ;;  %v8210_v21 = vld [vmem:[%s15590_s5] sm:$0xff] }
 0x44a   : > { %v3347_v32 = vsel %vm3345_vm5, %v16362_v39, %v16361_v54  ;;  %v3350_v50 = vsel %vm3348_vm8, %v16363_v23, %v16220_v45  ;;  %10531 = vmatprep.mubr.msk.f32.mxu1 %vm7489_vm3, %v3248_v3  ;;  %v3758_v29 = vadd.s32 3, %v16236_v61  ;;  %vm16365_vm0 = vweird.f32 %v16364_v47  ;;  %v16368_v45 = vld [vmem:[#allocation105_spill] sm:$0xff]  ;;  %v8211_v3 = vld [vmem:[%s15590_s5 + $0x8] sm:$0xff] }
 0x44b   : > { %v3351_v26 = vsel %vm3344_vm7, %v3347_v32, %v3350_v50  ;;  %vm3448_vm9 = vcmp.lt.s32.totalorder %v3447_v44, 2  ;;  %vm3449_vm12 = vcmp.eq.s32.totalorder %v3447_v44, 0  ;;  %vm3452_vm15 = vcmp.eq.s32.totalorder %v3447_v44, 2 }
 0x44c   : > { %v3352_v20 = vsel %vm16365_vm0, nan, %v3351_v26  ;;  %v16367_v53 = vxor.u32 2147483648, %v16366_v55  ;;  %v16369_v52 = vxor.u32 2147483648, %v16368_v45  ;;  %vm3552_vm10 = vcmp.lt.s32.totalorder %v3551_v22, 2 }
 0x44d   : > { %10532 = vmatmul.mubr.msk.f32.gmra.mrb[22].mxu1 %vm7489_vm3, %v3352_v20  ;;  %vm3553_vm13 = vcmp.eq.s32.totalorder %v3551_v22, 0  ;;  %v16370_v61 = vxor.u32 2147483648, %v16227_v1  ;;  %vm3556_vm2 = vcmp.eq.s32.totalorder %v3551_v22, 2  ;;  %v3655_v35 = vand.u32 3, %v3654_v16  ;;  %v8213_v22 = vld [vmem:[%s15590_s5 + $0x18] sm:$0xff] }
 0x44e   : > { %v3451_v56 = vsel %vm3449_vm12, %v16368_v45, %v16367_v53  ;;  %v3454_v14 = vsel %vm3452_vm15, %v16369_v52, %v16366_v55  ;;  %vm16373_vm11 = vweird.f32 %v16372_v33  ;;  %v16374_v46 = vxor.u32 2147483648, %v16371_v27  ;;  %v16387_v45 = vld [vmem:[#allocation75_spill] sm:$0xff] }
 0x44f   : > { %v3455_v62 = vsel %vm3448_vm9, %v3451_v56, %v3454_v14  ;;  %v3555_v0 = vsel %vm3553_vm13, %v16371_v27, %v16370_v61  ;;  %v3759_v60 = vand.u32 3, %v3758_v29  ;;  %v3862_v28 = vadd.s32 3, %v14166_v9  ;;  %v8216_v27 = vld [vmem:[%s15590_s5 + $0x30] sm:$0xff] }
 0x450   : > { %v3456_v59 = vsel %vm16373_vm11, nan, %v3455_v62  ;;  %v3558_v31 = vsel %vm3556_vm2, %v16374_v46, %v16227_v1  ;;  %vm3656_vm7 = vcmp.lt.s32.totalorder %v3655_v35, 2  ;;  %vm3657_vm5 = vcmp.eq.s32.totalorder %v3655_v35, 0  ;;  %v16390_v62 = vld [vmem:[#allocation3_spill] sm:$0xff] }
 0x451   : > { %10534 = vmatprep.mubr.msk.f32.mxu1 %vm7489_vm3, %v3456_v59  ;;  %v3559_v57 = vsel %vm3552_vm10, %v3555_v0, %v3558_v31  ;;  %vm3660_vm8 = vcmp.eq.s32.totalorder %v3655_v35, 2  ;;  %vm16375_vm6 = vweird.f32 %v16226_v12  ;;  %v16376_v51 = vxor.u32 2147483648, %v14105_v40  ;;  %v8217_v0 = vld [vmem:[%s15590_s5 + $0x38] sm:$0xff] }
 0x452   : > { %v3560_v36 = vsel %vm16375_vm6, nan, %v3559_v57  ;;  %v16378_v34 = vxor.u32 2147483648, %v16377_v30  ;;  %vm3760_vm0 = vcmp.lt.s32.totalorder %v3759_v60, 2  ;;  %vm3761_vm9 = vcmp.eq.s32.totalorder %v3759_v60, 0 }
 0x453   : > { %v3659_v7 = vsel %vm3657_vm5, %v16377_v30, %v16376_v51  ;;  %10535 = vmatmul.mubr.msk.f32.gmra.mrb[24].mxu1 %vm7489_vm3, %v3560_v36  ;;  %vm3764_vm12 = vcmp.eq.s32.totalorder %v3759_v60, 2  ;;  %v3863_v11 = vand.u32 3, %v3862_v28  ;;  %vm16379_vm15 = vweird.f32 %v13207_v5  ;;  %v8222_v36 = vld [vmem:[%s15590_s5 + $0x60] sm:$0xff]  ;;  %v8223_v51 = vld [vmem:[%s15590_s5 + $0x68] sm:$0xff] }
 0x454   : > { %v3662_v1 = vsel %vm3660_vm8, %v16378_v34, %v14105_v40  ;;  %v16380_v12 = vxor.u32 2147483648, %v16234_v41  ;;  %v16381_v18 = vxor.u32 2147483648, %v16235_v58  ;;  %v3966_v40 = vadd.s32 3, %v16237_v6  ;;  %v8225_v34 = vld [vmem:[%s15590_s5 + $0x78] sm:$0xff] }
 0x455   : > { %v3663_v9 = vsel %vm3656_vm7, %v3659_v7, %v3662_v1  ;;  %vm3864_vm10 = vcmp.lt.s32.totalorder %v3863_v11, 2  ;;  %vm3865_vm13 = vcmp.eq.s32.totalorder %v3863_v11, 0  ;;  %vm3868_vm2 = vcmp.eq.s32.totalorder %v3863_v11, 2  ;;  %v8224_v7 = vld [vmem:[%s15590_s5 + $0x70] sm:$0xff]  ;;  %v8491_v11 = vld [vmem:[%s15592_s7 + $0x8] sm:$0xff] }
 0x456   : > { %v3664_v10 = vsel %vm16379_vm15, nan, %v3663_v9  ;;  %v3763_v19 = vsel %vm3761_vm9, %v16235_v58, %v16380_v12  ;;  %v3766_v43 = vsel %vm3764_vm12, %v16381_v18, %v16234_v41  ;;  %vm16382_vm11 = vweird.f32 %v16233_v37  ;;  %v8212_v37 = vld [vmem:[%s15590_s5 + $0x10] sm:$0xff]  ;;  %v8490_v9 = vld [vmem:[%s15592_s7] sm:$0xff] }
 0x457   : > { %10537 = vmatprep.mubr.msk.f32.mxu1 %vm7489_vm3, %v3664_v10  ;;  %v3767_v5 = vsel %vm3760_vm0, %v3763_v19, %v3766_v43  ;;  %v16383_v41 = vxor.u32 2147483648, %v14294_v8  ;;  %v16384_v54 = vxor.u32 2147483648, %v14289_v17  ;;  %v3967_v32 = vand.u32 3, %v3966_v40  ;;  %v15106_v12 = vld [vmem:[%s15589_s4] ss:$0 sm:$0xff] }
 0x458   : > { %v3768_v58 = vsel %vm16382_vm11, nan, %v3767_v5  ;;  %v4070_v50 = vadd.s32 3, %v14316_v63  ;;  %v4174_v44 = vadd.s32 3, %v14246_v2  ;;  %v10966_v26 = vpack.c.bf16 %v8211_v3, %v8210_v21  ;;  %v8215_v2 = vld [vmem:[%s15590_s5 + $0x28] sm:$0xff]  ;;  %v8492_v21 = vld [vmem:[%s15592_s7 + $0x10] sm:$0xff]  ;;  %v8493_v3 = vld [vmem:[%s15592_s7 + $0x18] sm:$0xff] }
 0x459   : > { %v3867_v6 = vsel %vm3865_vm13, %v14289_v17, %v16383_v41  ;;  %v3870_v39 = vsel %vm3868_vm2, %v16384_v54, %v14294_v8  ;;  %10538 = vmatmul.mubr.msk.f32.gmra.mrb[26].mxu1 %vm7489_vm3, %v3768_v58  ;;  %vm3968_vm7 = vcmp.lt.s32.totalorder %v3967_v32, 2  ;;  %vm3969_vm5 = vcmp.eq.s32.totalorder %v3967_v32, 0  ;;  %v8214_v8 = vld [vmem:[%s15590_s5 + $0x20] sm:$0xff] }
 0x45a   : > { %v3871_v23 = vsel %vm3864_vm10, %v3867_v6, %v3870_v39  ;;  %vm3972_vm8 = vcmp.eq.s32.totalorder %v3967_v32, 2  ;;  %v16385_v63 = vxor.u32 2147483648, %v14216_v25  ;;  %v4071_v47 = vand.u32 3, %v4070_v50  ;;  %10967 = vmatprep.subr.bf16.mxu0 %v10966_v26  ;;  %v8495_v50 = vld [vmem:[%s15592_s7 + $0x28] sm:$0xff] }
 0x45b   : > { %v3872_v17 = vsel %vm3861_vm14, nan, %v3871_v23  ;;  %v3974_v29 = vsel %vm3972_vm8, %v16386_v4, %v14216_v25  ;;  %v4175_v20 = vand.u32 3, %v4174_v44  ;;  %10969 = vmatpush3.bf16.msra.mxu0 %v10966_v26  ;;  %v10970_v53 = vpack.c.bf16 %v8213_v22, %v8212_v37  ;;  %v8494_v23 = vld [vmem:[%s15592_s7 + $0x20] sm:$0xff] }
 0x45c   : > { %10540 = vmatprep.mubr.msk.f32.mxu1 %vm7489_vm3, %v3872_v17  ;;  %v3971_v16 = vsel %vm3969_vm5, %v14214_v13, %v16385_v63  ;;  %vm16388_vm14 = vweird.f32 %v16387_v45  ;;  %vm4073_vm6 = vcmp.eq.s32.totalorder %v4071_v47, 0  ;;  %vm4076_vm0 = vcmp.eq.s32.totalorder %v4071_v47, 2  ;;  %v8496_v63 = vld [vmem:[%s15592_s7 + $0x30] sm:$0xff] }
 0x45d   : > { %v3975_v55 = vsel %vm3968_vm7, %v3971_v16, %v3974_v29  ;;  %v10974_v52 = vpack.c.bf16 %v8215_v2, %v8214_v8  ;;  %vm4072_vm9 = vcmp.lt.s32.totalorder %v4071_v47, 2  ;;  %v16389_v14 = vxor.u32 2147483648, %v14485_v24  ;;  %10971 = vmatprep.subr.bf16.mxu0 %v10970_v53  ;;  %v8497_v16 = vld [vmem:[%s15592_s7 + $0x38] sm:$0xff] }
 0x45e   : > { %v3976_v56 = vsel %vm16388_vm14, nan, %v3975_v55  ;;  %v16391_v25 = vxor.u32 2147483648, %v16390_v62  ;;  %vm4177_vm12 = vcmp.eq.s32.totalorder %v4175_v20, 0  ;;  %vm4180_vm15 = vcmp.eq.s32.totalorder %v4175_v20, 2 }
 0x45f   : > { %10541 = vmatmul.mubr.msk.f32.gmra.mrb[28].mxu1 %vm7489_vm3, %v3976_v56  ;;  %v4075_v13 = vsel %vm4073_vm6, %v16390_v62, %v16389_v14  ;;  %v4179_v33 = vsel %vm4177_vm12, %v14371_v48, %v4178_v15  ;;  %vm4176_vm10 = vcmp.lt.s32.totalorder %v4175_v20, 2  ;;  %10973 = vmatpush3.bf16.msra.mxu0 %v10970_v53  ;;  %v10978_v60 = vpack.c.bf16 %v8217_v0, %v8216_v27  ;;  %v8218_v15 = vld [vmem:[%s15590_s5 + $0x40] sm:$0xff] }
 0x460   : > { %v4078_v61 = vsel %vm4076_vm0, %v16391_v25, %v14485_v24  ;;  %v16392_v24 = vxor.u32 2147483648, %v14371_v48  ;;  %10975 = vmatprep.subr.bf16.mxu0 %v10974_v52  ;;  %v10982_v48 = vpack.c.bf16 %v8219_v42, %v8218_v15  ;;  %v10990_v30 = vpack.c.bf16 %v8223_v51, %v8222_v36  ;;  %v8498_v56 = vld [vmem:[%s15592_s7 + $0x40] sm:$0xff] }
 0x461   : > { %v4079_v35 = vsel %vm4072_vm9, %v4075_v13, %v4078_v61  ;;  %v10994_v1 = vpack.c.bf16 %v8225_v34, %v8224_v7  ;;  %v10998_v10 = vpack.c.bf16 %v8491_v11, %v8490_v9  ;;  %v11002_v39 = vpack.c.bf16 %v8493_v3, %v8492_v21  ;;  %v8502_v42 = vld [vmem:[%s15592_s7 + $0x60] sm:$0xff]  ;;  %v8504_v34 = vld [vmem:[%s15592_s7 + $0x70] sm:$0xff] }
 0x462   : > { %v4080_v59 = vsel %vm4069_vm4, nan, %v4079_v35  ;;  %v4182_v46 = vsel %vm4180_vm15, %v16392_v24, %v14377_v38  ;;  %v8220_v38 = vld [vmem:[%s15590_s5 + $0x50] sm:$0xff]  ;;  %v11006_v8 = vpack.c.bf16 %v8495_v50, %v8494_v23  ;;  %v11010_v53 = vpack.c.bf16 %v8497_v16, %v8496_v63 }
 0x463   : > { %10543 = vmatprep.mubr.msk.f32.mxu1 %vm7489_vm3, %v4080_v59  ;;  %v4183_v31 = vsel %vm4176_vm10, %v4179_v33, %v4182_v46  ;;  %10977 = vmatpush3.bf16.msra.mxu0 %v10974_v52  ;;  %v10986_v57 = vpack.c.bf16 %v8221_v49, %v8220_v38  ;;  %v8499_v52 = vld [vmem:[%s15592_s7 + $0x48] sm:$0xff]  ;;  %v8500_v35 = vld [vmem:[%s15592_s7 + $0x50] sm:$0xff]  ;;  %v8501_v33 = vld [vmem:[%s15592_s7 + $0x58] sm:$0xff] }
 0x464   : > { %v4184_v28 = vsel %vm4173_vm1, nan, %v4183_v31  ;;  %10979 = vmatprep.subr.bf16.mxu0 %v10978_v60  ;;  %v11014_v27 = vpack.c.bf16 %v8499_v52, %v8498_v56 }
 0x465   : > { %10544 = vmatmul.mubr.msk.f32.gmra.mrb[30].mxu1 %vm7489_vm3, %v4184_v28  ;;  %v11018_v28 = vpack.c.bf16 %v8501_v33, %v8500_v35  ;;  %vm9578_vm3 = vcmask 613376  }
 0x467   : > { %10981 = vmatpush3.bf16.msra.mxu0 %v10978_v60 }
 0x468   : > { %10983 = vmatprep.subr.bf16.mxu0 %v10982_v48 }
 0x46b   : > { %10985 = vmatpush3.bf16.msra.mxu0 %v10982_v48  ;;  %v8503_v48 = vld [vmem:[%s15592_s7 + $0x68] sm:$0xff] }
 0x46c   : > { %10987 = vmatprep.subr.bf16.mxu0 %v10986_v57 }
 0x46f   : > { %10989 = vmatpush3.bf16.msra.mxu0 %v10986_v57 }
 0x470   : > { %10991 = vmatprep.subr.bf16.mxu0 %v10990_v30 }
 0x473   : > { %10993 = vmatpush3.bf16.msra.mxu0 %v10990_v30  ;;  %v11022_v30 = vpack.c.bf16 %v8503_v48, %v8502_v42 }
 0x474   : > { %10995 = vmatprep.subr.bf16.mxu0 %v10994_v1 }
 0x477   : > { %10997 = vmatpush3.bf16.msra.mxu0 %v10994_v1  ;;  %v8505_v1 = vld [vmem:[%s15592_s7 + $0x78] sm:$0xff] }
 0x478   : > { %10999 = vmatprep.subr.bf16.mxu0 %v10998_v10 }
 0x4e4   : > { %v10500_v19 = vpop.f32.mrb[0].mxu1 }
 0x4e5   : > { %v8147_v18 = vadd.f32 %v10500_v19, %v15106_v12  ;;  %v7980_v43 = vpop.f32.mrb[1].mxu1 }
 0x4e6   : > { %v8146_v40 = vadd.f32 %v15106_v12, %v7980_v43  ;;  %v11026_v43 = vpack.c.bf16 %v8505_v1, %v8504_v34  ;;  %v8774_v1 = vld [vmem:[%s15594_s9 + $0x20] sm:$0xff] }
 0x4e7   : > { %v8179_v41 = vmax.f32 %v8147_v18, 0.0 }
 0x4e8   : > { %v8178_v5 = vmax.f32 %v8146_v40, 0.0  ;;  %v10503_v58 = vpop.f32.mrb[2].mxu1 }
 0x4e9   : > { %v8149_v6 = vadd.f32 %v10503_v58, %v15106_v12  ;;  %v7990_v54 = vpop.f32.mrb[3].mxu1 }
 0x4ea   : > { %v8148_v32 = vadd.f32 %v15106_v12, %v7990_v54  ;;  %10578 = vmatprep.mubr.f32.mxu0 %v8178_v5 }
 0x4eb   : > { %10579 = vmatmul.mubr.f32.vlgmr.msra.gmra.mrb[32].mxu0 %v8179_v41  ;;  %v8181_v37 = vmax.f32 %v8149_v6, 0.0 }
 0x4ec   : > { %v8180_v44 = vmax.f32 %v8148_v32, 0.0  ;;  %v10506_v26 = vpop.f32.mrb[4].mxu1  ;;  %11001 = vmatpush3.bf16.msra.mxu0 %v10998_v10 }
 0x4ed   : > { %v8151_v22 = vadd.f32 %v10506_v26, %v15106_v12  ;;  %v8000_v17 = vpop.f32.mrb[5].mxu1  ;;  %11003 = vmatprep.subr.bf16.mxu0 %v11002_v39 }
 0x4ee   : > { %v8150_v2 = vadd.f32 %v15106_v12, %v8000_v17  ;;  %10581 = vmatprep.mubr.f32.mxu0 %v8180_v44 }
 0x4ef   : > { %10582 = vmatmul.mubr.f32.gmra.mrb[34].mxu0 %v8181_v37  ;;  %v8183_v47 = vmax.f32 %v8151_v22, 0.0 }
 0x4f0   : > { %v8182_v4 = vmax.f32 %v8150_v2, 0.0  ;;  %11005 = vmatpush3.bf16.msra.mxu0 %v11002_v39 }
 0x4f1   : > { %11007 = vmatprep.subr.bf16.mxu0 %v11006_v8 }
 0x4f2   : > { %v10509_v29 = vpop.f32.mrb[6].mxu1  ;;  %10584 = vmatprep.mubr.f32.mxu0 %v8182_v4 }
 0x4f3   : > { %v8153_v20 = vadd.f32 %v10509_v29, %v15106_v12  ;;  %v8010_v55 = vpop.f32.mrb[7].mxu1  ;;  %10585 = vmatmul.mubr.f32.gmra.mrb[36].mxu0 %v8183_v47 }
 0x4f4   : > { %v8152_v45 = vadd.f32 %v15106_v12, %v8010_v55  ;;  %11009 = vmatpush3.bf16.msra.mxu0 %v11006_v8 }
 0x4f5   : > { %v8185_v13 = vmax.f32 %v8153_v20, 0.0  ;;  %11011 = vmatprep.subr.bf16.mxu0 %v11010_v53 }
 0x4f6   : > { %v8184_v14 = vmax.f32 %v8152_v45, 0.0 }
 0x4f7   : > { %v10512_v62 = vpop.f32.mrb[8].mxu1 }
 0x4f8   : > { %v8155_v25 = vadd.f32 %v10512_v62, %v15106_v12  ;;  %v8020_v61 = vpop.f32.mrb[9].mxu1  ;;  %10587 = vmatprep.mubr.f32.mxu0 %v8184_v14  ;;  %11013 = vmatpush3.bf16.msra.mxu0 %v11010_v53 }
 0x4f9   : > { %v8154_v0 = vadd.f32 %v15106_v12, %v8020_v61  ;;  %10588 = vmatmul.mubr.f32.gmra.mrb[38].mxu0 %v8185_v13  ;;  %11015 = vmatprep.subr.bf16.mxu0 %v11014_v27 }
 0x4fa   : > { %v8187_v46 = vmax.f32 %v8155_v25, 0.0 }
 0x4fb   : > { %v8186_v59 = vmax.f32 %v8154_v0, 0.0 }
 0x4fc   : > { %11017 = vmatpush3.bf16.msra.mxu0 %v11014_v27 }
 0x4fd   : > { %v10515_v24 = vpop.f32.mrb[10].mxu1  ;;  %10590 = vmatprep.mubr.f32.mxu0 %v8186_v59  ;;  %11019 = vmatprep.subr.bf16.mxu0 %v11018_v28 }
 0x4fe   : > { %v8157_v31 = vadd.f32 %v10515_v24, %v15106_v12  ;;  %v8030_v60 = vpop.f32.mrb[11].mxu1  ;;  %10591 = vmatmul.mubr.f32.gmra.mrb[40].mxu0 %v8187_v46 }
 0x4ff   : > { %v8156_v15 = vadd.f32 %v15106_v12, %v8030_v60 }
 0x500   : > { %v8189_v57 = vmax.f32 %v8157_v31, 0.0  ;;  %11021 = vmatpush3.bf16.msra.mxu0 %v11018_v28 }
 0x501   : > { %v8188_v38 = vmax.f32 %v8156_v15, 0.0  ;;  %11023 = vmatprep.subr.bf16.mxu0 %v11022_v30 }
 0x503   : > { %v10518_v49 = vpop.f32.mrb[12].mxu1  ;;  %10593 = vmatprep.mubr.f32.mxu0 %v8188_v38 }
 0x504   : > { %v8159_v36 = vadd.f32 %v10518_v49, %v15106_v12  ;;  %v8040_v51 = vpop.f32.mrb[13].mxu1  ;;  %10594 = vmatmul.mubr.f32.gmra.mrb[42].mxu0 %v8189_v57 }
 0x505   : > { %v8158_v7 = vadd.f32 %v15106_v12, %v8040_v51  ;;  %11025 = vmatpush3.bf16.msra.mxu0 %v11022_v30  ;;  %v8771_v51 = vld [vmem:[%s15594_s9 + $0x8] sm:$0xff]  ;;  %v8772_v30 = vld [vmem:[%s15594_s9 + $0x10] sm:$0xff] }
 0x506   : > { %v8191_v10 = vmax.f32 %v8159_v36, 0.0  ;;  %11027 = vmatprep.subr.bf16.mxu0 %v11026_v43  ;;  %v8770_v36 = vld [vmem:[%s15594_s9] sm:$0xff] }
 0x507   : > { %v8190_v9 = vmax.f32 %v8158_v7, 0.0  ;;  %v11030_v7 = vpack.c.bf16 %v8771_v51, %v8770_v36 }
 0x508   : > { %v10521_v11 = vpop.f32.mrb[14].mxu1 }
 0x509   : > { %v8161_v19 = vadd.f32 %v10521_v11, %v15106_v12  ;;  %v8050_v18 = vpop.f32.mrb[15].mxu1  ;;  %10596 = vmatprep.mubr.f32.mxu0 %v8190_v9  ;;  %11029 = vmatpush3.bf16.msra.mxu0 %v11026_v43  ;;  %v8775_v9 = vld [vmem:[%s15594_s9 + $0x28] sm:$0xff]  ;;  %v8778_v43 = vld [vmem:[%s15594_s9 + $0x40] sm:$0xff] }
 0x50a   : > { %v8160_v40 = vadd.f32 %v15106_v12, %v8050_v18  ;;  %10597 = vmatmul.mubr.f32.gmra.mrb[44].mxu0 %v8191_v10  ;;  %11031 = vmatprep.subr.bf16.mxu1 %v11030_v7  ;;  %v11038_v11 = vpack.c.bf16 %v8775_v9, %v8774_v1  ;;  %v8776_v10 = vld [vmem:[%s15594_s9 + $0x30] sm:$0xff] }
 0x50b   : > { %v8193_v5 = vmax.f32 %v8161_v19, 0.0  ;;  %11033 = vmatpush3.bf16.msra.mxu1 %v11030_v7  ;;  %v8777_v19 = vld [vmem:[%s15594_s9 + $0x38] sm:$0xff] }
 0x50c   : > { %v8192_v21 = vmax.f32 %v8160_v40, 0.0  ;;  %v11042_v18 = vpack.c.bf16 %v8777_v19, %v8776_v10  ;;  %v8779_v40 = vld [vmem:[%s15594_s9 + $0x48] sm:$0xff] }
 0x50e   : > { %10599 = vmatprep.mubr.f32.mxu0 %v8192_v21  ;;  %v11046_v21 = vpack.c.bf16 %v8779_v40, %v8778_v43 }
 0x50f   : > { %v10524_v3 = vpop.f32.mrb[16].mxu1  ;;  %10600 = vmatmul.mubr.f32.gmra.mrb[46].mxu0 %v8193_v5  ;;  %v8781_v5 = vld [vmem:[%s15594_s9 + $0x58] sm:$0xff] }
 0x510   : > { %v8163_v58 = vadd.f32 %v10524_v3, %v15106_v12  ;;  %v8060_v41 = vpop.f32.mrb[17].mxu1  ;;  %v8780_v3 = vld [vmem:[%s15594_s9 + $0x50] sm:$0xff] }
 0x511   : > { %v8162_v6 = vadd.f32 %v15106_v12, %v8060_v41  ;;  %v8782_v41 = vld [vmem:[%s15594_s9 + $0x60] sm:$0xff] }
 0x512   : > { %v8195_v39 = vmax.f32 %v8163_v58, 0.0  ;;  %v11050_v58 = vpack.c.bf16 %v8781_v5, %v8780_v3 }
 0x513   : > { %v8194_v54 = vmax.f32 %v8162_v6, 0.0  ;;  %v8783_v6 = vld [vmem:[%s15594_s9 + $0x68] sm:$0xff] }
 0x515   : > { %v10527_v32 = vpop.f32.mrb[18].mxu1  ;;  %10602 = vmatprep.mubr.f32.mxu0 %v8194_v54  ;;  %v11054_v54 = vpack.c.bf16 %v8783_v6, %v8782_v41 }
 0x516   : > { %v8165_v23 = vadd.f32 %v10527_v32, %v15106_v12  ;;  %v8070_v50 = vpop.f32.mrb[19].mxu1  ;;  %10603 = vmatmul.mubr.f32.gmra.mrb[48].mxu0 %v8195_v39  ;;  %v8784_v39 = vld [vmem:[%s15594_s9 + $0x70] sm:$0xff]  ;;  %v8785_v32 = vld [vmem:[%s15594_s9 + $0x78] sm:$0xff] }
 0x517   : > { %v8164_v44 = vadd.f32 %v15106_v12, %v8070_v50  ;;  %v15233_v50 = vld [vmem:[%s15591_s6] ss:$0 sm:$0xff] }
 0x518   : > { %v8197_v22 = vmax.f32 %v8165_v23, 0.0  ;;  %v11058_v23 = vpack.c.bf16 %v8785_v32, %v8784_v39 }
 0x519   : > { %v8196_v26 = vmax.f32 %v8164_v44, 0.0 }
 0x51b   : > { %v10530_v37 = vpop.f32.mrb[20].mxu1  ;;  %10605 = vmatprep.mubr.f32.mxu0 %v8196_v26 }
 0x51c   : > { %v8167_v17 = vadd.f32 %v10530_v37, %v15106_v12  ;;  %v8080_v8 = vpop.f32.mrb[21].mxu1  ;;  %10606 = vmatmul.mubr.f32.gmra.mrb[50].mxu0 %v8197_v22 }
 0x51d   : > { %v8166_v2 = vadd.f32 %v15106_v12, %v8080_v8 }
 0x51e   : > { %v8199_v4 = vmax.f32 %v8167_v17, 0.0 }
 0x51f   : > { %v8198_v63 = vmax.f32 %v8166_v2, 0.0 }
 0x520   : > { %v10533_v16 = vpop.f32.mrb[22].mxu1 }
 0x521   : > { %v8169_v29 = vadd.f32 %v10533_v16, %v15106_v12  ;;  %v8090_v47 = vpop.f32.mrb[23].mxu1  ;;  %10608 = vmatprep.mubr.f32.mxu0 %v8198_v63 }
 0x522   : > { %v8168_v20 = vadd.f32 %v15106_v12, %v8090_v47  ;;  %10609 = vmatmul.mubr.f32.gmra.mrb[52].mxu0 %v8199_v4 }
 0x523   : > { %v8201_v53 = vmax.f32 %v8169_v29, 0.0 }
 0x524   : > { %v8200_v55 = vmax.f32 %v8168_v20, 0.0 }
 0x526   : > { %v10536_v45 = vpop.f32.mrb[24].mxu1  ;;  %10611 = vmatprep.mubr.f32.mxu0 %v8200_v55 }
 0x527   : > { %v8171_v56 = vadd.f32 %v10536_v45, %v15106_v12  ;;  %v8100_v52 = vpop.f32.mrb[25].mxu1  ;;  %10612 = vmatmul.mubr.f32.gmra.mrb[54].mxu0 %v8201_v53 }
 0x528   : > { %v8170_v14 = vadd.f32 %v15106_v12, %v8100_v52 }
 0x529   : > { %v8203_v25 = vmax.f32 %v8171_v56, 0.0 }
 0x52a   : > { %v8202_v62 = vmax.f32 %v8170_v14, 0.0 }
 0x52c   : > { %v10539_v13 = vpop.f32.mrb[26].mxu1  ;;  %10614 = vmatprep.mubr.f32.mxu0 %v8202_v62 }
 0x52d   : > { %v8173_v61 = vadd.f32 %v10539_v13, %v15106_v12  ;;  %v8110_v27 = vpop.f32.mrb[27].mxu1  ;;  %10615 = vmatmul.mubr.f32.gmra.mrb[56].mxu0 %v8203_v25 }
 0x52e   : > { %v8172_v0 = vadd.f32 %v15106_v12, %v8110_v27 }
 0x52f   : > { %v8205_v33 = vmax.f32 %v8173_v61, 0.0 }
 0x530   : > { %v8204_v35 = vmax.f32 %v8172_v0, 0.0 }
 0x532   : > { %v10542_v59 = vpop.f32.mrb[28].mxu1  ;;  %10617 = vmatprep.mubr.f32.mxu0 %v8204_v35 }
 0x533   : > { %v8175_v24 = vadd.f32 %v10542_v59, %v15106_v12  ;;  %v8120_v46 = vpop.f32.mrb[29].mxu1  ;;  %10618 = vmatmul.mubr.f32.gmra.mrb[58].mxu0 %v8205_v33 }
 0x534   : > { %v8174_v31 = vadd.f32 %v15106_v12, %v8120_v46 }
 0x535   : > { %v8207_v28 = vmax.f32 %v8175_v24, 0.0 }
 0x536   : > { %v8206_v60 = vmax.f32 %v8174_v31, 0.0 }
 0x538   : > { %v10545_v15 = vpop.f32.mrb[30].mxu1  ;;  %10620 = vmatprep.mubr.f32.mxu0 %v8206_v60 }
 0x539   : > { %v8177_v42 = vadd.f32 %v10545_v15, %v15106_v12  ;;  %v8130_v48 = vpop.f32.mrb[31].mxu1  ;;  %10621 = vmatmul.mubr.f32.gmra.mrb[60].mxu0 %v8207_v28 }
 0x53a   : > { %v8176_v38 = vadd.f32 %v15106_v12, %v8130_v48  ;;  %v8773_v12 = vld [vmem:[%s15594_s9 + $0x18] sm:$0xff] }
 0x53b   : > { %v8209_v57 = vmax.f32 %v8177_v42, 0.0  ;;  %v11034_v34 = vpack.c.bf16 %v8773_v12, %v8772_v30 }
 0x53c   : > { %v8208_v49 = vmax.f32 %v8176_v38, 0.0 }
 0x53d   : > { %11035 = vmatprep.subr.bf16.mxu1 %v11034_v34 }
 0x53e   : > { %10623 = vmatprep.mubr.f32.mxu0 %v8208_v49  ;;  %11037 = vmatpush3.bf16.msra.mxu1 %v11034_v34 }
 0x53f   : > { %10624 = vmatmul.mubr.f32.gmra.mrb[62].mxu0 %v8209_v57  ;;  %11039 = vmatprep.subr.bf16.mxu1 %v11038_v11 }
 0x542   : > { %11041 = vmatpush3.bf16.msra.mxu1 %v11038_v11 }
 0x543   : > { %11043 = vmatprep.subr.bf16.mxu1 %v11042_v18 }
 0x546   : > { %11045 = vmatpush3.bf16.msra.mxu1 %v11042_v18 }
 0x547   : > { %11047 = vmatprep.subr.bf16.mxu1 %v11046_v21 }
 0x54a   : > { %11049 = vmatpush3.bf16.msra.mxu1 %v11046_v21 }
 0x54b   : > { %11051 = vmatprep.subr.bf16.mxu1 %v11050_v58 }
 0x54e   : > { %11053 = vmatpush3.bf16.msra.mxu1 %v11050_v58 }
 0x54f   : > { %11055 = vmatprep.subr.bf16.mxu1 %v11054_v54 }
 0x552   : > { %11057 = vmatpush3.bf16.msra.mxu1 %v11054_v54 }
 0x553   : > { %11059 = vmatprep.subr.bf16.mxu1 %v11058_v23 }
 0x556   : > { %11061 = vmatpush3.bf16.msra.mxu1 %v11058_v23 }
 0x5be   : > { %v10580_v44 = vpop.f32.mrb[32].mxu0 }
 0x5bf   : > { %v8305_v26 = vadd.f32 %v10580_v44, %v15233_v50  ;;  %v8299_v37 = vpop.f32.mrb[33].mxu0 }
 0x5c0   : > { %v8300_v22 = vadd.f32 %v15233_v50, %v8299_v37 }
 0x5c1   : > { %v8459_v2 = vmax.f32 %v8305_v26, 0.0 }
 0x5c2   : > { %v8458_v17 = vmax.f32 %v8300_v22, 0.0  ;;  %v10583_v8 = vpop.f32.mrb[34].mxu0 }
 0x5c3   : > { %v8315_v63 = vadd.f32 %v10583_v8, %v15233_v50  ;;  %v8309_v16 = vpop.f32.mrb[35].mxu0 }
 0x5c4   : > { %v8310_v4 = vadd.f32 %v15233_v50, %v8309_v16  ;;  %10658 = vmatprep.mubr.f32.mxu0 %v8458_v17 }
 0x5c5   : > { %10659 = vmatmul.mubr.f32.vlgmr.msra.gmra.mrb[64].mxu0 %v8459_v2  ;;  %v8461_v20 = vmax.f32 %v8315_v63, 0.0 }
 0x5c6   : > { %v8460_v29 = vmax.f32 %v8310_v4, 0.0  ;;  %v10586_v47 = vpop.f32.mrb[36].mxu0 }
 0x5c7   : > { %v8325_v55 = vadd.f32 %v10586_v47, %v15233_v50  ;;  %v8319_v53 = vpop.f32.mrb[37].mxu0 }
 0x5c8   : > { %v8320_v45 = vadd.f32 %v15233_v50, %v8319_v53  ;;  %10661 = vmatprep.mubr.f32.mxu0 %v8460_v29 }
 0x5c9   : > { %10662 = vmatmul.mubr.f32.gmra.mrb[66].mxu0 %v8461_v20  ;;  %v8463_v14 = vmax.f32 %v8325_v55, 0.0 }
 0x5ca   : > { %v8462_v56 = vmax.f32 %v8320_v45, 0.0 }
 0x5cc   : > { %v10589_v52 = vpop.f32.mrb[38].mxu0  ;;  %10664 = vmatprep.mubr.f32.mxu0 %v8462_v56 }
 0x5cd   : > { %v8335_v62 = vadd.f32 %v10589_v52, %v15233_v50  ;;  %v8329_v13 = vpop.f32.mrb[39].mxu0  ;;  %10665 = vmatmul.mubr.f32.gmra.mrb[68].mxu0 %v8463_v14 }
 0x5ce   : > { %v8330_v25 = vadd.f32 %v15233_v50, %v8329_v13 }
 0x5cf   : > { %v8465_v0 = vmax.f32 %v8335_v62, 0.0 }
 0x5d0   : > { %v8464_v61 = vmax.f32 %v8330_v25, 0.0 }
 0x5d1   : > { %v10592_v27 = vpop.f32.mrb[40].mxu0 }
 0x5d2   : > { %v8345_v35 = vadd.f32 %v10592_v27, %v15233_v50  ;;  %v8339_v33 = vpop.f32.mrb[41].mxu0  ;;  %10667 = vmatprep.mubr.f32.mxu0 %v8464_v61 }
 0x5d3   : > { %v8340_v59 = vadd.f32 %v15233_v50, %v8339_v33  ;;  %10668 = vmatmul.mubr.f32.gmra.mrb[70].mxu0 %v8465_v0 }
 0x5d4   : > { %v8467_v31 = vmax.f32 %v8345_v35, 0.0 }
 0x5d5   : > { %v8466_v24 = vmax.f32 %v8340_v59, 0.0 }
 0x5d7   : > { %v10595_v46 = vpop.f32.mrb[42].mxu0  ;;  %10670 = vmatprep.mubr.f32.mxu0 %v8466_v24 }
 0x5d8   : > { %v8355_v60 = vadd.f32 %v10595_v46, %v15233_v50  ;;  %v8349_v28 = vpop.f32.mrb[43].mxu0  ;;  %10671 = vmatmul.mubr.f32.gmra.mrb[72].mxu0 %v8467_v31 }
 0x5d9   : > { %v8350_v15 = vadd.f32 %v15233_v50, %v8349_v28 }
 0x5da   : > { %v8469_v38 = vmax.f32 %v8355_v60, 0.0 }
 0x5db   : > { %v8468_v42 = vmax.f32 %v8350_v15, 0.0  ;;  %v9050_v15 = vld [vmem:[%s15596_s11] sm:$0xff] }
 0x5dd   : > { %v10598_v48 = vpop.f32.mrb[44].mxu0  ;;  %10673 = vmatprep.mubr.f32.mxu0 %v8468_v42  ;;  %v9051_v42 = vld [vmem:[%s15596_s11 + $0x8] sm:$0xff] }
 0x5de   : > { %v8365_v49 = vadd.f32 %v10598_v48, %v15233_v50  ;;  %v8359_v57 = vpop.f32.mrb[45].mxu0  ;;  %10674 = vmatmul.mubr.f32.gmra.mrb[74].mxu0 %v8469_v38  ;;  %v9052_v48 = vld [vmem:[%s15596_s11 + $0x10] sm:$0xff]  ;;  %v11062_v38 = vpack.c.bf16 %v9051_v42, %v9050_v15 }
 0x5df   : > { %v8360_v36 = vadd.f32 %v15233_v50, %v8359_v57  ;;  %v9054_v57 = vld [vmem:[%s15596_s11 + $0x20] sm:$0xff] }
 0x5e0   : > { %v8471_v7 = vmax.f32 %v8365_v49, 0.0  ;;  %11063 = vmatprep.subr.bf16.mxu0 %v11062_v38 }
 0x5e1   : > { %v8470_v51 = vmax.f32 %v8360_v36, 0.0  ;;  %v9055_v36 = vld [vmem:[%s15596_s11 + $0x28] sm:$0xff]  ;;  %11065 = vmatpush3.bf16.msra.mxu0 %v11062_v38 }
 0x5e2   : > { %v10601_v30 = vpop.f32.mrb[46].mxu0 }
 0x5e3   : > { %v8375_v12 = vadd.f32 %v10601_v30, %v15233_v50  ;;  %v8369_v34 = vpop.f32.mrb[47].mxu0  ;;  %10676 = vmatprep.mubr.f32.mxu0 %v8470_v51  ;;  %v11070_v51 = vpack.c.bf16 %v9055_v36, %v9054_v57  ;;  %v9056_v30 = vld [vmem:[%s15596_s11 + $0x30] sm:$0xff] }
 0x5e4   : > { %v8370_v1 = vadd.f32 %v15233_v50, %v8369_v34  ;;  %10677 = vmatmul.mubr.f32.gmra.mrb[76].mxu0 %v8471_v7  ;;  %v9057_v7 = vld [vmem:[%s15596_s11 + $0x38] sm:$0xff]  ;;  %v9058_v34 = vld [vmem:[%s15596_s11 + $0x40] sm:$0xff] }
 0x5e5   : > { %v8473_v10 = vmax.f32 %v8375_v12, 0.0  ;;  %v11074_v12 = vpack.c.bf16 %v9057_v7, %v9056_v30 }
 0x5e6   : > { %v8472_v9 = vmax.f32 %v8370_v1, 0.0  ;;  %v9059_v1 = vld [vmem:[%s15596_s11 + $0x48] sm:$0xff] }
 0x5e8   : > { %10679 = vmatprep.mubr.f32.mxu0 %v8472_v9  ;;  %v11078_v9 = vpack.c.bf16 %v9059_v1, %v9058_v34 }
 0x5e9   : > { %v10604_v11 = vpop.f32.mrb[48].mxu0  ;;  %10680 = vmatmul.mubr.f32.gmra.mrb[78].mxu0 %v8473_v10  ;;  %v9061_v10 = vld [vmem:[%s15596_s11 + $0x58] sm:$0xff] }
 0x5ea   : > { %v8385_v19 = vadd.f32 %v10604_v11, %v15233_v50  ;;  %v8379_v18 = vpop.f32.mrb[49].mxu0  ;;  %v9060_v11 = vld [vmem:[%s15596_s11 + $0x50] sm:$0xff] }
 0x5eb   : > { %v8380_v43 = vadd.f32 %v15233_v50, %v8379_v18  ;;  %v9062_v18 = vld [vmem:[%s15596_s11 + $0x60] sm:$0xff] }
 0x5ec   : > { %v8475_v21 = vmax.f32 %v8385_v19, 0.0  ;;  %v11082_v19 = vpack.c.bf16 %v9061_v10, %v9060_v11 }
 0x5ed   : > { %v8474_v40 = vmax.f32 %v8380_v43, 0.0  ;;  %v9063_v43 = vld [vmem:[%s15596_s11 + $0x68] sm:$0xff] }
 0x5ef   : > { %v10607_v3 = vpop.f32.mrb[50].mxu0  ;;  %10682 = vmatprep.mubr.f32.mxu0 %v8474_v40  ;;  %v11086_v40 = vpack.c.bf16 %v9063_v43, %v9062_v18 }
 0x5f0   : > { %v8395_v5 = vadd.f32 %v10607_v3, %v15233_v50  ;;  %v8389_v58 = vpop.f32.mrb[51].mxu0  ;;  %10683 = vmatmul.mubr.f32.gmra.mrb[80].mxu0 %v8475_v21  ;;  %v9064_v21 = vld [vmem:[%s15596_s11 + $0x70] sm:$0xff]  ;;  %v9065_v3 = vld [vmem:[%s15596_s11 + $0x78] sm:$0xff] }
 0x5f1   : > { %v8390_v41 = vadd.f32 %v15233_v50, %v8389_v58  ;;  %v15318_v58 = vld [vmem:[%s15593_s8] ss:$0 sm:$0xff] }
 0x5f2   : > { %v8477_v39 = vmax.f32 %v8395_v5, 0.0  ;;  %v11090_v5 = vpack.c.bf16 %v9065_v3, %v9064_v21 }
 0x5f3   : > { %v8476_v6 = vmax.f32 %v8390_v41, 0.0 }
 0x5f5   : > { %v10610_v54 = vpop.f32.mrb[52].mxu0  ;;  %10685 = vmatprep.mubr.f32.mxu0 %v8476_v6 }
 0x5f6   : > { %v8405_v32 = vadd.f32 %v10610_v54, %v15233_v50  ;;  %v8399_v23 = vpop.f32.mrb[53].mxu0  ;;  %10686 = vmatmul.mubr.f32.gmra.mrb[82].mxu0 %v8477_v39 }
 0x5f7   : > { %v8400_v44 = vadd.f32 %v15233_v50, %v8399_v23 }
 0x5f8   : > { %v8479_v22 = vmax.f32 %v8405_v32, 0.0 }
 0x5f9   : > { %v8478_v26 = vmax.f32 %v8400_v44, 0.0 }
 0x5fa   : > { %v10613_v37 = vpop.f32.mrb[54].mxu0 }
 0x5fb   : > { %v8415_v17 = vadd.f32 %v10613_v37, %v15233_v50  ;;  %v8409_v8 = vpop.f32.mrb[55].mxu0  ;;  %10688 = vmatprep.mubr.f32.mxu0 %v8478_v26 }
 0x5fc   : > { %v8410_v2 = vadd.f32 %v15233_v50, %v8409_v8  ;;  %10689 = vmatmul.mubr.f32.gmra.mrb[84].mxu0 %v8479_v22 }
 0x5fd   : > { %v8481_v16 = vmax.f32 %v8415_v17, 0.0 }
 0x5fe   : > { %v8480_v63 = vmax.f32 %v8410_v2, 0.0 }
 0x600   : > { %v10616_v4 = vpop.f32.mrb[56].mxu0  ;;  %10691 = vmatprep.mubr.f32.mxu0 %v8480_v63 }
 0x601   : > { %v8425_v29 = vadd.f32 %v10616_v4, %v15233_v50  ;;  %v8419_v47 = vpop.f32.mrb[57].mxu0  ;;  %10692 = vmatmul.mubr.f32.gmra.mrb[86].mxu0 %v8481_v16 }
 0x602   : > { %v8420_v20 = vadd.f32 %v15233_v50, %v8419_v47 }
 0x603   : > { %v8483_v45 = vmax.f32 %v8425_v29, 0.0 }
 0x604   : > { %v8482_v55 = vmax.f32 %v8420_v20, 0.0 }
 0x606   : > { %v10619_v53 = vpop.f32.mrb[58].mxu0  ;;  %10694 = vmatprep.mubr.f32.mxu0 %v8482_v55 }
 0x607   : > { %v8435_v56 = vadd.f32 %v10619_v53, %v15233_v50  ;;  %v8429_v52 = vpop.f32.mrb[59].mxu0  ;;  %10695 = vmatmul.mubr.f32.gmra.mrb[88].mxu0 %v8483_v45 }
 0x608   : > { %v8430_v14 = vadd.f32 %v15233_v50, %v8429_v52 }
 0x609   : > { %v8485_v13 = vmax.f32 %v8435_v56, 0.0 }
 0x60a   : > { %v8484_v62 = vmax.f32 %v8430_v14, 0.0 }
 0x60c   : > { %v10622_v25 = vpop.f32.mrb[60].mxu0  ;;  %10697 = vmatprep.mubr.f32.mxu0 %v8484_v62 }
 0x60d   : > { %v8445_v61 = vadd.f32 %v10622_v25, %v15233_v50  ;;  %v8439_v27 = vpop.f32.mrb[61].mxu0  ;;  %10698 = vmatmul.mubr.f32.gmra.mrb[90].mxu0 %v8485_v13 }
 0x60e   : > { %v8440_v0 = vadd.f32 %v15233_v50, %v8439_v27 }
 0x60f   : > { %v8487_v33 = vmax.f32 %v8445_v61, 0.0 }
 0x610   : > { %v8486_v35 = vmax.f32 %v8440_v0, 0.0 }
 0x612   : > { %v10625_v59 = vpop.f32.mrb[62].mxu0  ;;  %10700 = vmatprep.mubr.f32.mxu0 %v8486_v35 }
 0x613   : > { %v8455_v24 = vadd.f32 %v10625_v59, %v15233_v50  ;;  %v8449_v46 = vpop.f32.mrb[63].mxu0  ;;  %10701 = vmatmul.mubr.f32.gmra.mrb[92].mxu0 %v8487_v33 }
 0x614   : > { %v8450_v31 = vadd.f32 %v15233_v50, %v8449_v46  ;;  %v9053_v50 = vld [vmem:[%s15596_s11 + $0x18] sm:$0xff] }
 0x615   : > { %v8489_v28 = vmax.f32 %v8455_v24, 0.0  ;;  %v11066_v49 = vpack.c.bf16 %v9053_v50, %v9052_v48 }
 0x616   : > { %v8488_v60 = vmax.f32 %v8450_v31, 0.0 }
 0x617   : > { %11067 = vmatprep.subr.bf16.mxu0 %v11066_v49 }
 0x618   : > { %10703 = vmatprep.mubr.f32.mxu0 %v8488_v60  ;;  %11069 = vmatpush3.bf16.msra.mxu0 %v11066_v49 }
 0x619   : > { %10704 = vmatmul.mubr.f32.gmra.mrb[94].mxu0 %v8489_v28  ;;  %11071 = vmatprep.subr.bf16.mxu0 %v11070_v51 }
 0x61c   : > { %11073 = vmatpush3.bf16.msra.mxu0 %v11070_v51 }
 0x61d   : > { %11075 = vmatprep.subr.bf16.mxu0 %v11074_v12 }
 0x620   : > { %11077 = vmatpush3.bf16.msra.mxu0 %v11074_v12 }
 0x621   : > { %11079 = vmatprep.subr.bf16.mxu0 %v11078_v9 }
 0x624   : > { %11081 = vmatpush3.bf16.msra.mxu0 %v11078_v9 }
 0x625   : > { %11083 = vmatprep.subr.bf16.mxu0 %v11082_v19 }
 0x628   : > { %11085 = vmatpush3.bf16.msra.mxu0 %v11082_v19 }
 0x629   : > { %11087 = vmatprep.subr.bf16.mxu0 %v11086_v40 }
 0x62c   : > { %11089 = vmatpush3.bf16.msra.mxu0 %v11086_v40 }
 0x62d   : > { %11091 = vmatprep.subr.bf16.mxu0 %v11090_v5 }
 0x630   : > { %11093 = vmatpush3.bf16.msra.mxu0 %v11090_v5 }
 0x698   : > { %v10660_v41 = vpop.f32.mrb[64].mxu0 }
 0x699   : > { %v8585_v6 = vadd.f32 %v10660_v41, %v15318_v58  ;;  %v8579_v54 = vpop.f32.mrb[65].mxu0 }
 0x69a   : > { %v8580_v39 = vadd.f32 %v15318_v58, %v8579_v54 }
 0x69b   : > { %v8739_v44 = vmax.f32 %v8585_v6, 0.0 }
 0x69c   : > { %v8738_v32 = vmax.f32 %v8580_v39, 0.0  ;;  %v10663_v23 = vpop.f32.mrb[66].mxu0 }
 0x69d   : > { %v8595_v26 = vadd.f32 %v10663_v23, %v15318_v58  ;;  %v8589_v37 = vpop.f32.mrb[67].mxu0 }
 0x69e   : > { %v8590_v22 = vadd.f32 %v15318_v58, %v8589_v37  ;;  %10738 = vmatprep.mubr.f32.mxu1 %v8738_v32 }
 0x69f   : > { %10739 = vmatmul.mubr.f32.vlgmr.msra.gmra.mrb[32].mxu1 %v8739_v44  ;;  %v8741_v2 = vmax.f32 %v8595_v26, 0.0 }
 0x6a0   : > { %v8740_v17 = vmax.f32 %v8590_v22, 0.0  ;;  %v10666_v8 = vpop.f32.mrb[68].mxu0 }
 0x6a1   : > { %v8605_v63 = vadd.f32 %v10666_v8, %v15318_v58  ;;  %v8599_v16 = vpop.f32.mrb[69].mxu0 }
 0x6a2   : > { %v8600_v4 = vadd.f32 %v15318_v58, %v8599_v16  ;;  %10741 = vmatprep.mubr.f32.mxu1 %v8740_v17 }
 0x6a3   : > { %10742 = vmatmul.mubr.f32.gmra.mrb[34].mxu1 %v8741_v2  ;;  %v8743_v20 = vmax.f32 %v8605_v63, 0.0 }
 0x6a4   : > { %v8742_v29 = vmax.f32 %v8600_v4, 0.0 }
 0x6a6   : > { %v10669_v47 = vpop.f32.mrb[70].mxu0  ;;  %10744 = vmatprep.mubr.f32.mxu1 %v8742_v29 }
 0x6a7   : > { %v8615_v55 = vadd.f32 %v10669_v47, %v15318_v58  ;;  %v8609_v53 = vpop.f32.mrb[71].mxu0  ;;  %10745 = vmatmul.mubr.f32.gmra.mrb[36].mxu1 %v8743_v20 }
 0x6a8   : > { %v8610_v45 = vadd.f32 %v15318_v58, %v8609_v53 }
 0x6a9   : > { %v8745_v14 = vmax.f32 %v8615_v55, 0.0 }
 0x6aa   : > { %v8744_v56 = vmax.f32 %v8610_v45, 0.0 }
 0x6ab   : > { %v10672_v52 = vpop.f32.mrb[72].mxu0 }
 0x6ac   : > { %v8625_v62 = vadd.f32 %v10672_v52, %v15318_v58  ;;  %v8619_v13 = vpop.f32.mrb[73].mxu0  ;;  %10747 = vmatprep.mubr.f32.mxu1 %v8744_v56 }
 0x6ad   : > { %v8620_v25 = vadd.f32 %v15318_v58, %v8619_v13  ;;  %10748 = vmatmul.mubr.f32.gmra.mrb[38].mxu1 %v8745_v14 }
 0x6ae   : > { %v8747_v0 = vmax.f32 %v8625_v62, 0.0 }
 0x6af   : > { %v8746_v61 = vmax.f32 %v8620_v25, 0.0 }
 0x6b1   : > { %v10675_v27 = vpop.f32.mrb[74].mxu0  ;;  %10750 = vmatprep.mubr.f32.mxu1 %v8746_v61 }
 0x6b2   : > { %v8635_v35 = vadd.f32 %v10675_v27, %v15318_v58  ;;  %v8629_v33 = vpop.f32.mrb[75].mxu0  ;;  %10751 = vmatmul.mubr.f32.gmra.mrb[40].mxu1 %v8747_v0 }
 0x6b3   : > { %v8630_v59 = vadd.f32 %v15318_v58, %v8629_v33 }
 0x6b4   : > { %v8749_v31 = vmax.f32 %v8635_v35, 0.0 }
 0x6b5   : > { %v8748_v24 = vmax.f32 %v8630_v59, 0.0  ;;  %v9330_v59 = vld [vmem:[%s15598_s13] sm:$0xff] }
 0x6b7   : > { %v10678_v46 = vpop.f32.mrb[76].mxu0  ;;  %10753 = vmatprep.mubr.f32.mxu1 %v8748_v24  ;;  %v9331_v24 = vld [vmem:[%s15598_s13 + $0x8] sm:$0xff] }
 0x6b8   : > { %v8645_v60 = vadd.f32 %v10678_v46, %v15318_v58  ;;  %v8639_v28 = vpop.f32.mrb[77].mxu0  ;;  %10754 = vmatmul.mubr.f32.gmra.mrb[42].mxu1 %v8749_v31  ;;  %v9332_v46 = vld [vmem:[%s15598_s13 + $0x10] sm:$0xff]  ;;  %v11094_v31 = vpack.c.bf16 %v9331_v24, %v9330_v59 }
 0x6b9   : > { %v8640_v15 = vadd.f32 %v15318_v58, %v8639_v28  ;;  %v9334_v28 = vld [vmem:[%s15598_s13 + $0x20] sm:$0xff] }
 0x6ba   : > { %v8751_v38 = vmax.f32 %v8645_v60, 0.0  ;;  %11095 = vmatprep.subr.bf16.mxu1 %v11094_v31 }
 0x6bb   : > { %v8750_v42 = vmax.f32 %v8640_v15, 0.0  ;;  %v9335_v15 = vld [vmem:[%s15598_s13 + $0x28] sm:$0xff]  ;;  %11097 = vmatpush3.bf16.msra.mxu1 %v11094_v31 }
 0x6bc   : > { %v10681_v48 = vpop.f32.mrb[78].mxu0 }
 0x6bd   : > { %v8655_v50 = vadd.f32 %v10681_v48, %v15318_v58  ;;  %v8649_v49 = vpop.f32.mrb[79].mxu0  ;;  %10756 = vmatprep.mubr.f32.mxu1 %v8750_v42  ;;  %v11102_v42 = vpack.c.bf16 %v9335_v15, %v9334_v28  ;;  %v9336_v48 = vld [vmem:[%s15598_s13 + $0x30] sm:$0xff] }
 0x6be   : > { %v8650_v57 = vadd.f32 %v15318_v58, %v8649_v49  ;;  %10757 = vmatmul.mubr.f32.gmra.mrb[44].mxu1 %v8751_v38  ;;  %v9337_v38 = vld [vmem:[%s15598_s13 + $0x38] sm:$0xff]  ;;  %v9338_v49 = vld [vmem:[%s15598_s13 + $0x40] sm:$0xff] }
 0x6bf   : > { %v8753_v30 = vmax.f32 %v8655_v50, 0.0  ;;  %v11106_v50 = vpack.c.bf16 %v9337_v38, %v9336_v48 }
 0x6c0   : > { %v8752_v36 = vmax.f32 %v8650_v57, 0.0  ;;  %v9339_v57 = vld [vmem:[%s15598_s13 + $0x48] sm:$0xff] }
 0x6c2   : > { %10759 = vmatprep.mubr.f32.mxu1 %v8752_v36  ;;  %v11110_v36 = vpack.c.bf16 %v9339_v57, %v9338_v49 }
 0x6c3   : > { %v10684_v51 = vpop.f32.mrb[80].mxu0  ;;  %10760 = vmatmul.mubr.f32.gmra.mrb[46].mxu1 %v8753_v30  ;;  %v9341_v30 = vld [vmem:[%s15598_s13 + $0x58] sm:$0xff] }
 0x6c4   : > { %v8665_v7 = vadd.f32 %v10684_v51, %v15318_v58  ;;  %v8659_v12 = vpop.f32.mrb[81].mxu0  ;;  %v9340_v51 = vld [vmem:[%s15598_s13 + $0x50] sm:$0xff] }
 0x6c5   : > { %v8660_v34 = vadd.f32 %v15318_v58, %v8659_v12  ;;  %v9342_v12 = vld [vmem:[%s15598_s13 + $0x60] sm:$0xff] }
 0x6c6   : > { %v8755_v9 = vmax.f32 %v8665_v7, 0.0  ;;  %v11114_v7 = vpack.c.bf16 %v9341_v30, %v9340_v51 }
 0x6c7   : > { %v8754_v1 = vmax.f32 %v8660_v34, 0.0  ;;  %v9343_v34 = vld [vmem:[%s15598_s13 + $0x68] sm:$0xff] }
 0x6c9   : > { %v10687_v11 = vpop.f32.mrb[82].mxu0  ;;  %10762 = vmatprep.mubr.f32.mxu1 %v8754_v1  ;;  %v11118_v1 = vpack.c.bf16 %v9343_v34, %v9342_v12 }
 0x6ca   : > { %v8675_v10 = vadd.f32 %v10687_v11, %v15318_v58  ;;  %v8669_v19 = vpop.f32.mrb[83].mxu0  ;;  %10763 = vmatmul.mubr.f32.gmra.mrb[48].mxu1 %v8755_v9  ;;  %v9344_v9 = vld [vmem:[%s15598_s13 + $0x70] sm:$0xff]  ;;  %v9345_v11 = vld [vmem:[%s15598_s13 + $0x78] sm:$0xff] }
 0x6cb   : > { %v8670_v18 = vadd.f32 %v15318_v58, %v8669_v19  ;;  %v15403_v19 = vld [vmem:[%s15595_s10] ss:$0 sm:$0xff] }
 0x6cc   : > { %v8757_v21 = vmax.f32 %v8675_v10, 0.0  ;;  %v11122_v10 = vpack.c.bf16 %v9345_v11, %v9344_v9 }
 0x6cd   : > { %v8756_v43 = vmax.f32 %v8670_v18, 0.0 }
 0x6cf   : > { %v10690_v40 = vpop.f32.mrb[84].mxu0  ;;  %10765 = vmatprep.mubr.f32.mxu1 %v8756_v43 }
 0x6d0   : > { %v8685_v3 = vadd.f32 %v10690_v40, %v15318_v58  ;;  %v8679_v5 = vpop.f32.mrb[85].mxu0  ;;  %10766 = vmatmul.mubr.f32.gmra.mrb[50].mxu1 %v8757_v21 }
 0x6d1   : > { %v8680_v41 = vadd.f32 %v15318_v58, %v8679_v5 }
 0x6d2   : > { %v8759_v39 = vmax.f32 %v8685_v3, 0.0 }
 0x6d3   : > { %v8758_v6 = vmax.f32 %v8680_v41, 0.0 }
 0x6d4   : > { %v10693_v54 = vpop.f32.mrb[86].mxu0 }
 0x6d5   : > { %v8695_v32 = vadd.f32 %v10693_v54, %v15318_v58  ;;  %v8689_v23 = vpop.f32.mrb[87].mxu0  ;;  %10768 = vmatprep.mubr.f32.mxu1 %v8758_v6 }
 0x6d6   : > { %v8690_v44 = vadd.f32 %v15318_v58, %v8689_v23  ;;  %10769 = vmatmul.mubr.f32.gmra.mrb[52].mxu1 %v8759_v39 }
 0x6d7   : > { %v8761_v37 = vmax.f32 %v8695_v32, 0.0 }
 0x6d8   : > { %v8760_v26 = vmax.f32 %v8690_v44, 0.0 }
 0x6da   : > { %v10696_v22 = vpop.f32.mrb[88].mxu0  ;;  %10771 = vmatprep.mubr.f32.mxu1 %v8760_v26 }
 0x6db   : > { %v8705_v17 = vadd.f32 %v10696_v22, %v15318_v58  ;;  %v8699_v8 = vpop.f32.mrb[89].mxu0  ;;  %10772 = vmatmul.mubr.f32.gmra.mrb[54].mxu1 %v8761_v37 }
 0x6dc   : > { %v8700_v2 = vadd.f32 %v15318_v58, %v8699_v8 }
 0x6dd   : > { %v8763_v4 = vmax.f32 %v8705_v17, 0.0 }
 0x6de   : > { %v8762_v63 = vmax.f32 %v8700_v2, 0.0 }
 0x6e0   : > { %v10699_v16 = vpop.f32.mrb[90].mxu0  ;;  %10774 = vmatprep.mubr.f32.mxu1 %v8762_v63 }
 0x6e1   : > { %v8715_v29 = vadd.f32 %v10699_v16, %v15318_v58  ;;  %v8709_v47 = vpop.f32.mrb[91].mxu0  ;;  %10775 = vmatmul.mubr.f32.gmra.mrb[56].mxu1 %v8763_v4 }
 0x6e2   : > { %v8710_v20 = vadd.f32 %v15318_v58, %v8709_v47 }
 0x6e3   : > { %v8765_v53 = vmax.f32 %v8715_v29, 0.0 }
 0x6e4   : > { %v8764_v55 = vmax.f32 %v8710_v20, 0.0 }
 0x6e6   : > { %v10702_v45 = vpop.f32.mrb[92].mxu0  ;;  %10777 = vmatprep.mubr.f32.mxu1 %v8764_v55 }
 0x6e7   : > { %v8725_v56 = vadd.f32 %v10702_v45, %v15318_v58  ;;  %v8719_v52 = vpop.f32.mrb[93].mxu0  ;;  %10778 = vmatmul.mubr.f32.gmra.mrb[58].mxu1 %v8765_v53 }
 0x6e8   : > { %v8720_v14 = vadd.f32 %v15318_v58, %v8719_v52 }
 0x6e9   : > { %v8767_v13 = vmax.f32 %v8725_v56, 0.0 }
 0x6ea   : > { %v8766_v62 = vmax.f32 %v8720_v14, 0.0 }
 0x6ec   : > { %v10705_v25 = vpop.f32.mrb[94].mxu0  ;;  %10780 = vmatprep.mubr.f32.mxu1 %v8766_v62 }
 0x6ed   : > { %v8735_v61 = vadd.f32 %v10705_v25, %v15318_v58  ;;  %v8729_v27 = vpop.f32.mrb[95].mxu0  ;;  %10781 = vmatmul.mubr.f32.gmra.mrb[60].mxu1 %v8767_v13 }
 0x6ee   : > { %v8730_v0 = vadd.f32 %v15318_v58, %v8729_v27  ;;  %v9333_v58 = vld [vmem:[%s15598_s13 + $0x18] sm:$0xff] }
 0x6ef   : > { %v8769_v33 = vmax.f32 %v8735_v61, 0.0  ;;  %v11098_v60 = vpack.c.bf16 %v9333_v58, %v9332_v46 }
 0x6f0   : > { %v8768_v35 = vmax.f32 %v8730_v0, 0.0 }
 0x6f1   : > { %11099 = vmatprep.subr.bf16.mxu1 %v11098_v60 }
 0x6f2   : > { %10783 = vmatprep.mubr.f32.mxu1 %v8768_v35  ;;  %11101 = vmatpush3.bf16.msra.mxu1 %v11098_v60 }
 0x6f3   : > { %10784 = vmatmul.mubr.f32.gmra.mrb[62].mxu1 %v8769_v33  ;;  %11103 = vmatprep.subr.bf16.mxu1 %v11102_v42 }
 0x6f6   : > { %11105 = vmatpush3.bf16.msra.mxu1 %v11102_v42 }
 0x6f7   : > { %11107 = vmatprep.subr.bf16.mxu1 %v11106_v50 }
 0x6fa   : > { %11109 = vmatpush3.bf16.msra.mxu1 %v11106_v50 }
 0x6fb   : > { %11111 = vmatprep.subr.bf16.mxu1 %v11110_v36 }
 0x6fe   : > { %11113 = vmatpush3.bf16.msra.mxu1 %v11110_v36 }
 0x6ff   : > { %11115 = vmatprep.subr.bf16.mxu1 %v11114_v7 }
 0x702   : > { %11117 = vmatpush3.bf16.msra.mxu1 %v11114_v7 }
 0x703   : > { %11119 = vmatprep.subr.bf16.mxu1 %v11118_v1 }
 0x706   : > { %11121 = vmatpush3.bf16.msra.mxu1 %v11118_v1 }
 0x707   : > { %11123 = vmatprep.subr.bf16.mxu1 %v11122_v10 }
 0x70a   : > { %11125 = vmatpush3.bf16.msra.mxu1 %v11122_v10 }
 0x772   : > { %v10740_v18 = vpop.f32.mrb[32].mxu1 }
 0x773   : > { %v8865_v43 = vadd.f32 %v10740_v18, %v15403_v19  ;;  %v8859_v40 = vpop.f32.mrb[33].mxu1 }
 0x774   : > { %v8860_v21 = vadd.f32 %v15403_v19, %v8859_v40 }
 0x775   : > { %v9019_v41 = vmax.f32 %v8865_v43, 0.0 }
 0x776   : > { %v9018_v3 = vmax.f32 %v8860_v21, 0.0  ;;  %v10743_v5 = vpop.f32.mrb[34].mxu1 }
 0x777   : > { %v8875_v6 = vadd.f32 %v10743_v5, %v15403_v19  ;;  %v8869_v54 = vpop.f32.mrb[35].mxu1 }
 0x778   : > { %v8870_v39 = vadd.f32 %v15403_v19, %v8869_v54  ;;  %10818 = vmatprep.mubr.f32.mxu0 %v9018_v3 }
 0x779   : > { %10819 = vmatmul.mubr.f32.vlgmr.msra.gmra.mrb[96].mxu0 %v9019_v41  ;;  %v9021_v44 = vmax.f32 %v8875_v6, 0.0 }
 0x77a   : > { %v9020_v32 = vmax.f32 %v8870_v39, 0.0  ;;  %v10746_v23 = vpop.f32.mrb[36].mxu1 }
 0x77b   : > { %v8885_v26 = vadd.f32 %v10746_v23, %v15403_v19  ;;  %v8879_v37 = vpop.f32.mrb[37].mxu1 }
 0x77c   : > { %v8880_v22 = vadd.f32 %v15403_v19, %v8879_v37  ;;  %10821 = vmatprep.mubr.f32.mxu0 %v9020_v32 }
 0x77d   : > { %10822 = vmatmul.mubr.f32.gmra.mrb[98].mxu0 %v9021_v44  ;;  %v9023_v2 = vmax.f32 %v8885_v26, 0.0 }
 0x77e   : > { %v9022_v17 = vmax.f32 %v8880_v22, 0.0 }
 0x780   : > { %v10749_v8 = vpop.f32.mrb[38].mxu1  ;;  %10824 = vmatprep.mubr.f32.mxu0 %v9022_v17 }
 0x781   : > { %v8895_v63 = vadd.f32 %v10749_v8, %v15403_v19  ;;  %v8889_v16 = vpop.f32.mrb[39].mxu1  ;;  %10825 = vmatmul.mubr.f32.gmra.mrb[100].mxu0 %v9023_v2 }
 0x782   : > { %v8890_v4 = vadd.f32 %v15403_v19, %v8889_v16 }
 0x783   : > { %v9025_v20 = vmax.f32 %v8895_v63, 0.0 }
 0x784   : > { %v9024_v29 = vmax.f32 %v8890_v4, 0.0 }
 0x785   : > { %v10752_v47 = vpop.f32.mrb[40].mxu1 }
 0x786   : > { %v8905_v55 = vadd.f32 %v10752_v47, %v15403_v19  ;;  %v8899_v53 = vpop.f32.mrb[41].mxu1  ;;  %10827 = vmatprep.mubr.f32.mxu0 %v9024_v29 }
 0x787   : > { %v8900_v45 = vadd.f32 %v15403_v19, %v8899_v53  ;;  %10828 = vmatmul.mubr.f32.gmra.mrb[102].mxu0 %v9025_v20 }
 0x788   : > { %v9027_v14 = vmax.f32 %v8905_v55, 0.0 }
 0x789   : > { %v9026_v56 = vmax.f32 %v8900_v45, 0.0 }
 0x78b   : > { %v10755_v52 = vpop.f32.mrb[42].mxu1  ;;  %10830 = vmatprep.mubr.f32.mxu0 %v9026_v56 }
 0x78c   : > { %v8915_v62 = vadd.f32 %v10755_v52, %v15403_v19  ;;  %v8909_v13 = vpop.f32.mrb[43].mxu1  ;;  %10831 = vmatmul.mubr.f32.gmra.mrb[104].mxu0 %v9027_v14 }
 0x78d   : > { %v8910_v25 = vadd.f32 %v15403_v19, %v8909_v13 }
 0x78e   : > { %v9029_v0 = vmax.f32 %v8915_v62, 0.0 }
 0x78f   : > { %v9028_v61 = vmax.f32 %v8910_v25, 0.0  ;;  %v15440_v25 = vld [vmem:[%s15597_s12] ss:$0 sm:$0xff] }
 0x791   : > { %v10758_v27 = vpop.f32.mrb[44].mxu1  ;;  %10833 = vmatprep.mubr.f32.mxu0 %v9028_v61 }
 0x792   : > { %v8925_v35 = vadd.f32 %v10758_v27, %v15403_v19  ;;  %v8919_v33 = vpop.f32.mrb[45].mxu1  ;;  %10834 = vmatmul.mubr.f32.gmra.mrb[106].mxu0 %v9029_v0 }
 0x793   : > { %v8920_v59 = vadd.f32 %v15403_v19, %v8919_v33 }
 0x794   : > { %v9031_v31 = vmax.f32 %v8925_v35, 0.0 }
 0x795   : > { %v9030_v24 = vmax.f32 %v8920_v59, 0.0 }
 0x796   : > { %v10761_v46 = vpop.f32.mrb[46].mxu1 }
 0x797   : > { %v8935_v58 = vadd.f32 %v10761_v46, %v15403_v19  ;;  %v8929_v60 = vpop.f32.mrb[47].mxu1  ;;  %10836 = vmatprep.mubr.f32.mxu0 %v9030_v24 }
 0x798   : > { %v8930_v28 = vadd.f32 %v15403_v19, %v8929_v60  ;;  %10837 = vmatmul.mubr.f32.gmra.mrb[108].mxu0 %v9031_v31 }
 0x799   : > { %v9033_v48 = vmax.f32 %v8935_v58, 0.0 }
 0x79a   : > { %v9032_v15 = vmax.f32 %v8930_v28, 0.0 }
 0x79c   : > { %10839 = vmatprep.mubr.f32.mxu0 %v9032_v15 }
 0x79d   : > { %v10764_v42 = vpop.f32.mrb[48].mxu1  ;;  %10840 = vmatmul.mubr.f32.gmra.mrb[110].mxu0 %v9033_v48 }
 0x79e   : > { %v8945_v38 = vadd.f32 %v10764_v42, %v15403_v19  ;;  %v8939_v50 = vpop.f32.mrb[49].mxu1 }
 0x79f   : > { %v8940_v49 = vadd.f32 %v15403_v19, %v8939_v50 }
 0x7a0   : > { %v9035_v36 = vmax.f32 %v8945_v38, 0.0 }
 0x7a1   : > { %v9034_v57 = vmax.f32 %v8940_v49, 0.0 }
 0x7a3   : > { %v10767_v51 = vpop.f32.mrb[50].mxu1  ;;  %10842 = vmatprep.mubr.f32.mxu0 %v9034_v57 }
 0x7a4   : > { %v8955_v30 = vadd.f32 %v10767_v51, %v15403_v19  ;;  %v8949_v7 = vpop.f32.mrb[51].mxu1  ;;  %10843 = vmatmul.mubr.f32.gmra.mrb[112].mxu0 %v9035_v36 }
 0x7a5   : > { %v8950_v12 = vadd.f32 %v15403_v19, %v8949_v7 }
 0x7a6   : > { %v9037_v9 = vmax.f32 %v8955_v30, 0.0 }
 0x7a7   : > { %v9036_v34 = vmax.f32 %v8950_v12, 0.0 }
 0x7a9   : > { %v10770_v1 = vpop.f32.mrb[52].mxu1  ;;  %10845 = vmatprep.mubr.f32.mxu0 %v9036_v34 }
 0x7aa   : > { %v8965_v11 = vadd.f32 %v10770_v1, %v15403_v19  ;;  %v8959_v10 = vpop.f32.mrb[53].mxu1  ;;  %10846 = vmatmul.mubr.f32.gmra.mrb[114].mxu0 %v9037_v9 }
 0x7ab   : > { %v8960_v18 = vadd.f32 %v15403_v19, %v8959_v10 }
 0x7ac   : > { %v9039_v21 = vmax.f32 %v8965_v11, 0.0 }
 0x7ad   : > { %v9038_v43 = vmax.f32 %v8960_v18, 0.0 }
 0x7ae   : > { %v10773_v40 = vpop.f32.mrb[54].mxu1 }
 0x7af   : > { %v8975_v3 = vadd.f32 %v10773_v40, %v15403_v19  ;;  %v8969_v5 = vpop.f32.mrb[55].mxu1  ;;  %10848 = vmatprep.mubr.f32.mxu0 %v9038_v43 }
 0x7b0   : > { %v8970_v41 = vadd.f32 %v15403_v19, %v8969_v5  ;;  %10849 = vmatmul.mubr.f32.gmra.mrb[116].mxu0 %v9039_v21 }
 0x7b1   : > { %v9041_v54 = vmax.f32 %v8975_v3, 0.0 }
 0x7b2   : > { %v9040_v6 = vmax.f32 %v8970_v41, 0.0 }
 0x7b4   : > { %v10776_v39 = vpop.f32.mrb[56].mxu1  ;;  %10851 = vmatprep.mubr.f32.mxu0 %v9040_v6 }
 0x7b5   : > { %v8985_v32 = vadd.f32 %v10776_v39, %v15403_v19  ;;  %v8979_v23 = vpop.f32.mrb[57].mxu1  ;;  %10852 = vmatmul.mubr.f32.gmra.mrb[118].mxu0 %v9041_v54 }
 0x7b6   : > { %v8980_v44 = vadd.f32 %v15403_v19, %v8979_v23 }
 0x7b7   : > { %v9043_v22 = vmax.f32 %v8985_v32, 0.0 }
 0x7b8   : > { %v9042_v26 = vmax.f32 %v8980_v44, 0.0 }
 0x7ba   : > { %v10779_v37 = vpop.f32.mrb[58].mxu1  ;;  %10854 = vmatprep.mubr.f32.mxu0 %v9042_v26 }
 0x7bb   : > { %v8995_v17 = vadd.f32 %v10779_v37, %v15403_v19  ;;  %v8989_v8 = vpop.f32.mrb[59].mxu1  ;;  %10855 = vmatmul.mubr.f32.gmra.mrb[120].mxu0 %v9043_v22 }
 0x7bc   : > { %v8990_v2 = vadd.f32 %v15403_v19, %v8989_v8 }
 0x7bd   : > { %v9045_v16 = vmax.f32 %v8995_v17, 0.0 }
 0x7be   : > { %v9044_v63 = vmax.f32 %v8990_v2, 0.0 }
 0x7c0   : > { %v10782_v4 = vpop.f32.mrb[60].mxu1  ;;  %10857 = vmatprep.mubr.f32.mxu0 %v9044_v63 }
 0x7c1   : > { %v9005_v29 = vadd.f32 %v10782_v4, %v15403_v19  ;;  %v8999_v47 = vpop.f32.mrb[61].mxu1  ;;  %10858 = vmatmul.mubr.f32.gmra.mrb[122].mxu0 %v9045_v16 }
 0x7c2   : > { %v9000_v20 = vadd.f32 %v15403_v19, %v8999_v47 }
 0x7c3   : > { %v9047_v53 = vmax.f32 %v9005_v29, 0.0 }
 0x7c4   : > { %v9046_v55 = vmax.f32 %v9000_v20, 0.0 }
 0x7c6   : > { %v10785_v45 = vpop.f32.mrb[62].mxu1  ;;  %10860 = vmatprep.mubr.f32.mxu0 %v9046_v55 }
 0x7c7   : > { %v9015_v56 = vadd.f32 %v10785_v45, %v15403_v19  ;;  %v9009_v52 = vpop.f32.mrb[63].mxu1  ;;  %10861 = vmatmul.mubr.f32.gmra.mrb[124].mxu0 %v9047_v53 }
 0x7c8   : > { %v9010_v14 = vadd.f32 %v15403_v19, %v9009_v52 }
 0x7c9   : > { %v9049_v13 = vmax.f32 %v9015_v56, 0.0 }
 0x7ca   : > { %v9048_v62 = vmax.f32 %v9010_v14, 0.0 }
 0x7cc   : > { %10863 = vmatprep.mubr.f32.mxu0 %v9048_v62 }
 0x7cd   : > { %10864 = vmatmul.mubr.f32.gmra.mrb[126].mxu0 %v9049_v13 }
 0x84c   : > { %v10820_v61 = vpop.f32.mrb[96].mxu0 }
 0x84d   : > { %v9145_v27 = vadd.f32 %v10820_v61, %v15440_v25  ;;  %v9139_v0 = vpop.f32.mrb[97].mxu0 }
 0x84e   : > { %v9140_v35 = vadd.f32 %v15440_v25, %v9139_v0 }
 0x84f   : > { %v9299_v24 = vmax.f32 %v9145_v27, 0.0 }
 0x850   : > { %v9298_v33 = vmax.f32 %v9140_v35, 0.0  ;;  %v10823_v59 = vpop.f32.mrb[98].mxu0 }
 0x851   : > { %v9155_v19 = vadd.f32 %v10823_v59, %v15440_v25  ;;  %v9149_v46 = vpop.f32.mrb[99].mxu0 }
 0x852   : > { %v9150_v31 = vadd.f32 %v15440_v25, %v9149_v46  ;;  %10898 = vmatprep.mubr.f32.mxu1 %v9298_v33 }
 0x853   : > { %10899 = vmatmul.mubr.f32.vlgmr.msra.gmra.mrb[64].mxu1 %v9299_v24  ;;  %v9301_v28 = vmax.f32 %v9155_v19, 0.0 }
 0x854   : > { %v9300_v58 = vmax.f32 %v9150_v31, 0.0  ;;  %v10826_v60 = vpop.f32.mrb[100].mxu0 }
 0x855   : > { %v9165_v15 = vadd.f32 %v10826_v60, %v15440_v25  ;;  %v9159_v42 = vpop.f32.mrb[101].mxu0 }
 0x856   : > { %v9160_v48 = vadd.f32 %v15440_v25, %v9159_v42  ;;  %10901 = vmatprep.mubr.f32.mxu1 %v9300_v58 }
 0x857   : > { %10902 = vmatmul.mubr.f32.gmra.mrb[66].mxu1 %v9301_v28  ;;  %v9303_v49 = vmax.f32 %v9165_v15, 0.0 }
 0x858   : > { %v9302_v38 = vmax.f32 %v9160_v48, 0.0 }
 0x85a   : > { %v10829_v50 = vpop.f32.mrb[102].mxu0  ;;  %10904 = vmatprep.mubr.f32.mxu1 %v9302_v38 }
 0x85b   : > { %v9175_v57 = vadd.f32 %v10829_v50, %v15440_v25  ;;  %v9169_v36 = vpop.f32.mrb[103].mxu0  ;;  %10905 = vmatmul.mubr.f32.gmra.mrb[68].mxu1 %v9303_v49 }
 0x85c   : > { %v9170_v51 = vadd.f32 %v15440_v25, %v9169_v36 }
 0x85d   : > { %v9305_v12 = vmax.f32 %v9175_v57, 0.0 }
 0x85e   : > { %v9304_v30 = vmax.f32 %v9170_v51, 0.0 }
 0x85f   : > { %v10832_v7 = vpop.f32.mrb[104].mxu0 }
 0x860   : > { %v9185_v34 = vadd.f32 %v10832_v7, %v15440_v25  ;;  %v9179_v1 = vpop.f32.mrb[105].mxu0  ;;  %10907 = vmatprep.mubr.f32.mxu1 %v9304_v30 }
 0x861   : > { %v9180_v9 = vadd.f32 %v15440_v25, %v9179_v1  ;;  %10908 = vmatmul.mubr.f32.gmra.mrb[70].mxu1 %v9305_v12 }
 0x862   : > { %v9307_v18 = vmax.f32 %v9185_v34, 0.0 }
 0x863   : > { %v9306_v11 = vmax.f32 %v9180_v9, 0.0 }
 0x865   : > { %v10835_v10 = vpop.f32.mrb[106].mxu0  ;;  %10910 = vmatprep.mubr.f32.mxu1 %v9306_v11 }
 0x866   : > { %v9195_v43 = vadd.f32 %v10835_v10, %v15440_v25  ;;  %v9189_v40 = vpop.f32.mrb[107].mxu0  ;;  %10911 = vmatmul.mubr.f32.gmra.mrb[72].mxu1 %v9307_v18 }
 0x867   : > { %v9190_v21 = vadd.f32 %v15440_v25, %v9189_v40 }
 0x868   : > { %v9309_v41 = vmax.f32 %v9195_v43, 0.0 }
 0x869   : > { %v9308_v3 = vmax.f32 %v9190_v21, 0.0  ;;  %v15477_v21 = vld [vmem:[%s15599_s14] ss:$0 sm:$0xff] }
 0x86b   : > { %v10838_v5 = vpop.f32.mrb[108].mxu0  ;;  %10913 = vmatprep.mubr.f32.mxu1 %v9308_v3 }
 0x86c   : > { %v9205_v6 = vadd.f32 %v10838_v5, %v15440_v25  ;;  %v9199_v54 = vpop.f32.mrb[109].mxu0  ;;  %10914 = vmatmul.mubr.f32.gmra.mrb[74].mxu1 %v9309_v41 }
 0x86d   : > { %v9200_v39 = vadd.f32 %v15440_v25, %v9199_v54 }
 0x86e   : > { %v9311_v44 = vmax.f32 %v9205_v6, 0.0 }
 0x86f   : > { %v9310_v32 = vmax.f32 %v9200_v39, 0.0 }
 0x870   : > { %v10841_v23 = vpop.f32.mrb[110].mxu0 }
 0x871   : > { %v9215_v26 = vadd.f32 %v10841_v23, %v15440_v25  ;;  %v9209_v37 = vpop.f32.mrb[111].mxu0  ;;  %10916 = vmatprep.mubr.f32.mxu1 %v9310_v32 }
 0x872   : > { %v9210_v22 = vadd.f32 %v15440_v25, %v9209_v37  ;;  %10917 = vmatmul.mubr.f32.gmra.mrb[76].mxu1 %v9311_v44 }
 0x873   : > { %v9313_v2 = vmax.f32 %v9215_v26, 0.0 }
 0x874   : > { %v9312_v17 = vmax.f32 %v9210_v22, 0.0 }
 0x876   : > { %10919 = vmatprep.mubr.f32.mxu1 %v9312_v17 }
 0x877   : > { %v10844_v8 = vpop.f32.mrb[112].mxu0  ;;  %10920 = vmatmul.mubr.f32.gmra.mrb[78].mxu1 %v9313_v2 }
 0x878   : > { %v9225_v63 = vadd.f32 %v10844_v8, %v15440_v25  ;;  %v9219_v16 = vpop.f32.mrb[113].mxu0 }
 0x879   : > { %v9220_v4 = vadd.f32 %v15440_v25, %v9219_v16 }
 0x87a   : > { %v9315_v47 = vmax.f32 %v9225_v63, 0.0 }
 0x87b   : > { %v9314_v29 = vmax.f32 %v9220_v4, 0.0 }
 0x87d   : > { %v10847_v20 = vpop.f32.mrb[114].mxu0  ;;  %10922 = vmatprep.mubr.f32.mxu1 %v9314_v29 }
 0x87e   : > { %v9235_v55 = vadd.f32 %v10847_v20, %v15440_v25  ;;  %v9229_v53 = vpop.f32.mrb[115].mxu0  ;;  %10923 = vmatmul.mubr.f32.gmra.mrb[80].mxu1 %v9315_v47 }
 0x87f   : > { %v9230_v45 = vadd.f32 %v15440_v25, %v9229_v53 }
 0x880   : > { %v9317_v14 = vmax.f32 %v9235_v55, 0.0 }
 0x881   : > { %v9316_v56 = vmax.f32 %v9230_v45, 0.0 }
 0x883   : > { %v10850_v52 = vpop.f32.mrb[116].mxu0  ;;  %10925 = vmatprep.mubr.f32.mxu1 %v9316_v56 }
 0x884   : > { %v9245_v62 = vadd.f32 %v10850_v52, %v15440_v25  ;;  %v9239_v13 = vpop.f32.mrb[117].mxu0  ;;  %10926 = vmatmul.mubr.f32.gmra.mrb[82].mxu1 %v9317_v14 }
 0x885   : > { %v9240_v61 = vadd.f32 %v15440_v25, %v9239_v13 }
 0x886   : > { %v9319_v35 = vmax.f32 %v9245_v62, 0.0 }
 0x887   : > { %v9318_v27 = vmax.f32 %v9240_v61, 0.0 }
 0x888   : > { %v10853_v0 = vpop.f32.mrb[118].mxu0 }
 0x889   : > { %v9255_v33 = vadd.f32 %v10853_v0, %v15440_v25  ;;  %v9249_v59 = vpop.f32.mrb[119].mxu0  ;;  %10928 = vmatprep.mubr.f32.mxu1 %v9318_v27 }
 0x88a   : > { %v9250_v24 = vadd.f32 %v15440_v25, %v9249_v59  ;;  %10929 = vmatmul.mubr.f32.gmra.mrb[84].mxu1 %v9319_v35 }
 0x88b   : > { %v9321_v46 = vmax.f32 %v9255_v33, 0.0 }
 0x88c   : > { %v9320_v19 = vmax.f32 %v9250_v24, 0.0 }
 0x88e   : > { %v10856_v31 = vpop.f32.mrb[120].mxu0  ;;  %10931 = vmatprep.mubr.f32.mxu1 %v9320_v19 }
 0x88f   : > { %v9265_v58 = vadd.f32 %v10856_v31, %v15440_v25  ;;  %v9259_v60 = vpop.f32.mrb[121].mxu0  ;;  %10932 = vmatmul.mubr.f32.gmra.mrb[86].mxu1 %v9321_v46 }
 0x890   : > { %v9260_v28 = vadd.f32 %v15440_v25, %v9259_v60 }
 0x891   : > { %v9323_v48 = vmax.f32 %v9265_v58, 0.0 }
 0x892   : > { %v9322_v15 = vmax.f32 %v9260_v28, 0.0 }
 0x894   : > { %v10859_v42 = vpop.f32.mrb[122].mxu0  ;;  %10934 = vmatprep.mubr.f32.mxu1 %v9322_v15 }
 0x895   : > { %v9275_v38 = vadd.f32 %v10859_v42, %v15440_v25  ;;  %v9269_v50 = vpop.f32.mrb[123].mxu0  ;;  %10935 = vmatmul.mubr.f32.gmra.mrb[88].mxu1 %v9323_v48 }
 0x896   : > { %v9270_v49 = vadd.f32 %v15440_v25, %v9269_v50 }
 0x897   : > { %v9325_v36 = vmax.f32 %v9275_v38, 0.0 }
 0x898   : > { %v9324_v57 = vmax.f32 %v9270_v49, 0.0 }
 0x89a   : > { %v10862_v51 = vpop.f32.mrb[124].mxu0  ;;  %10937 = vmatprep.mubr.f32.mxu1 %v9324_v57 }
 0x89b   : > { %v9285_v30 = vadd.f32 %v10862_v51, %v15440_v25  ;;  %v9279_v7 = vpop.f32.mrb[125].mxu0  ;;  %10938 = vmatmul.mubr.f32.gmra.mrb[90].mxu1 %v9325_v36 }
 0x89c   : > { %v9280_v12 = vadd.f32 %v15440_v25, %v9279_v7 }
 0x89d   : > { %v9327_v1 = vmax.f32 %v9285_v30, 0.0 }
 0x89e   : > { %v9326_v34 = vmax.f32 %v9280_v12, 0.0 }
 0x8a0   : > { %v10865_v9 = vpop.f32.mrb[126].mxu0  ;;  %10940 = vmatprep.mubr.f32.mxu1 %v9326_v34 }
 0x8a1   : > { %v9295_v11 = vadd.f32 %v10865_v9, %v15440_v25  ;;  %v9289_v10 = vpop.f32.mrb[127].mxu0  ;;  %10941 = vmatmul.mubr.f32.gmra.mrb[92].mxu1 %v9327_v1 }
 0x8a2   : > { %v9290_v18 = vadd.f32 %v15440_v25, %v9289_v10 }
 0x8a3   : > { %v9329_v40 = vmax.f32 %v9295_v11, 0.0 }
 0x8a4   : > { %v9328_v43 = vmax.f32 %v9290_v18, 0.0 }
 0x8a6   : > { %10943 = vmatprep.mubr.f32.mxu1 %v9328_v43 }
 0x8a7   : > { %10944 = vmatmul.mubr.f32.gmra.mrb[94].mxu1 %v9329_v40 }
 0x926   : > { %v10900_v25 = vpop.f32.mrb[64].mxu1 }
 0x927   : > { %v9425_v3 = vadd.f32 %v10900_v25, %v15477_v21  ;;  %v9419_v5 = vpop.f32.mrb[65].mxu1 }
 0x928   : > { %v9420_v41 = vadd.f32 %v15477_v21, %v9419_v5 }
 0x929   : > { %9580 = vst.msk [vmem:[%s15484_s25 + $0x8] sm:$0xff] %vm9578_vm3, %v9425_v3 }
 0x92a   : > { %9579 = vst.msk [vmem:[%s15484_s25] sm:$0xff] %vm9578_vm3, %v9420_v41  ;;  %v10903_v6 = vpop.f32.mrb[66].mxu1 }
 0x92b   : > { %v9435_v54 = vadd.f32 %v10903_v6, %v15477_v21  ;;  %v9429_v39 = vpop.f32.mrb[67].mxu1 }
 0x92c   : > { %v9430_v32 = vadd.f32 %v15477_v21, %v9429_v39 }
 0x92d   : > { %9582 = vst.msk [vmem:[%s15484_s25 + $0x18] sm:$0xff] %vm9578_vm3, %v9435_v54 }
 0x92e   : > { %9581 = vst.msk [vmem:[%s15484_s25 + $0x10] sm:$0xff] %vm9578_vm3, %v9430_v32  ;;  %v10906_v23 = vpop.f32.mrb[68].mxu1 }
 0x92f   : > { %v9445_v44 = vadd.f32 %v10906_v23, %v15477_v21  ;;  %v9439_v26 = vpop.f32.mrb[69].mxu1 }
 0x930   : > { %v9440_v37 = vadd.f32 %v15477_v21, %v9439_v26 }
 0x931   : > { %9584 = vst.msk [vmem:[%s15484_s25 + $0x28] sm:$0xff] %vm9578_vm3, %v9445_v44 }
 0x932   : > { %9583 = vst.msk [vmem:[%s15484_s25 + $0x20] sm:$0xff] %vm9578_vm3, %v9440_v37 }
 0x934   : > { %v10909_v22 = vpop.f32.mrb[70].mxu1 }
 0x935   : > { %v9455_v17 = vadd.f32 %v10909_v22, %v15477_v21  ;;  %v9449_v8 = vpop.f32.mrb[71].mxu1 }
 0x936   : > { %v9450_v2 = vadd.f32 %v15477_v21, %v9449_v8 }
 0x937   : > { %9586 = vst.msk [vmem:[%s15484_s25 + $0x38] sm:$0xff] %vm9578_vm3, %v9455_v17 }
 0x938   : > { %9585 = vst.msk [vmem:[%s15484_s25 + $0x30] sm:$0xff] %vm9578_vm3, %v9450_v2 }
 0x939   : > { %v10912_v63 = vpop.f32.mrb[72].mxu1 }
 0x93a   : > { %v9465_v16 = vadd.f32 %v10912_v63, %v15477_v21  ;;  %v9459_v4 = vpop.f32.mrb[73].mxu1 }
 0x93b   : > { %v9460_v29 = vadd.f32 %v15477_v21, %v9459_v4 }
 0x93c   : > { %9588 = vst.msk [vmem:[%s15484_s25 + $0x48] sm:$0xff] %vm9578_vm3, %v9465_v16 }
 0x93d   : > { %9587 = vst.msk [vmem:[%s15484_s25 + $0x40] sm:$0xff] %vm9578_vm3, %v9460_v29 }
 0x93f   : > { %v10915_v47 = vpop.f32.mrb[74].mxu1 }
 0x940   : > { %v9475_v20 = vadd.f32 %v10915_v47, %v15477_v21  ;;  %v9469_v55 = vpop.f32.mrb[75].mxu1 }
 0x941   : > { %v9470_v53 = vadd.f32 %v15477_v21, %v9469_v55 }
 0x942   : > { %9590 = vst.msk [vmem:[%s15484_s25 + $0x58] sm:$0xff] %vm9578_vm3, %v9475_v20 }
 0x943   : > { %9589 = vst.msk [vmem:[%s15484_s25 + $0x50] sm:$0xff] %vm9578_vm3, %v9470_v53 }
 0x945   : > { %v10918_v45 = vpop.f32.mrb[76].mxu1 }
 0x946   : > { %v9485_v56 = vadd.f32 %v10918_v45, %v15477_v21  ;;  %v9479_v52 = vpop.f32.mrb[77].mxu1 }
 0x947   : > { %v9480_v14 = vadd.f32 %v15477_v21, %v9479_v52 }
 0x948   : > { %9592 = vst.msk [vmem:[%s15484_s25 + $0x68] sm:$0xff] %vm9578_vm3, %v9485_v56 }
 0x949   : > { %9591 = vst.msk [vmem:[%s15484_s25 + $0x60] sm:$0xff] %vm9578_vm3, %v9480_v14 }
 0x94a   : > { %v10921_v62 = vpop.f32.mrb[78].mxu1 }
 0x94b   : > { %v9495_v13 = vadd.f32 %v10921_v62, %v15477_v21  ;;  %v9489_v61 = vpop.f32.mrb[79].mxu1 }
 0x94c   : > { %v9490_v27 = vadd.f32 %v15477_v21, %v9489_v61 }
 0x94d   : > { %9594 = vst.msk [vmem:[%s15484_s25 + $0x78] sm:$0xff] %vm9578_vm3, %v9495_v13 }
 0x94e   : > { %9593 = vst.msk [vmem:[%s15484_s25 + $0x70] sm:$0xff] %vm9578_vm3, %v9490_v27 }
 0x951   : > { %v10924_v0 = vpop.f32.mrb[80].mxu1 }
 0x952   : > { %v9505_v35 = vadd.f32 %v10924_v0, %v15477_v21  ;;  %v9499_v33 = vpop.f32.mrb[81].mxu1 }
 0x953   : > { %v9500_v59 = vadd.f32 %v15477_v21, %v9499_v33 }
 0x954   : > { %9596 = vst.msk [vmem:[%s15484_s25 + $0x88] sm:$0xff] %vm9578_vm3, %v9505_v35 }
 0x955   : > { %9595 = vst.msk [vmem:[%s15484_s25 + $0x80] sm:$0xff] %vm9578_vm3, %v9500_v59 }
 0x957   : > { %v10927_v24 = vpop.f32.mrb[82].mxu1 }
 0x958   : > { %v9515_v19 = vadd.f32 %v10927_v24, %v15477_v21  ;;  %v9509_v46 = vpop.f32.mrb[83].mxu1 }
 0x959   : > { %v9510_v31 = vadd.f32 %v15477_v21, %v9509_v46 }
 0x95a   : > { %9598 = vst.msk [vmem:[%s15484_s25 + $0x98] sm:$0xff] %vm9578_vm3, %v9515_v19 }
 0x95b   : > { %9597 = vst.msk [vmem:[%s15484_s25 + $0x90] sm:$0xff] %vm9578_vm3, %v9510_v31 }
 0x95d   : > { %v10930_v58 = vpop.f32.mrb[84].mxu1 }
 0x95e   : > { %v9525_v60 = vadd.f32 %v10930_v58, %v15477_v21  ;;  %v9519_v28 = vpop.f32.mrb[85].mxu1 }
 0x95f   : > { %v9520_v15 = vadd.f32 %v15477_v21, %v9519_v28 }
 0x960   : > { %9600 = vst.msk [vmem:[%s15484_s25 + $0xa8] sm:$0xff] %vm9578_vm3, %v9525_v60 }
 0x961   : > { %9599 = vst.msk [vmem:[%s15484_s25 + $0xa0] sm:$0xff] %vm9578_vm3, %v9520_v15 }
 0x962   : > { %v10933_v42 = vpop.f32.mrb[86].mxu1 }
 0x963   : > { %v9535_v48 = vadd.f32 %v10933_v42, %v15477_v21  ;;  %v9529_v38 = vpop.f32.mrb[87].mxu1 }
 0x964   : > { %v9530_v50 = vadd.f32 %v15477_v21, %v9529_v38 }
 0x965   : > { %9602 = vst.msk [vmem:[%s15484_s25 + $0xb8] sm:$0xff] %vm9578_vm3, %v9535_v48 }
 0x966   : > { %9601 = vst.msk [vmem:[%s15484_s25 + $0xb0] sm:$0xff] %vm9578_vm3, %v9530_v50 }
 0x968   : > { %v10936_v49 = vpop.f32.mrb[88].mxu1 }
 0x969   : > { %v9545_v57 = vadd.f32 %v10936_v49, %v15477_v21  ;;  %v9539_v36 = vpop.f32.mrb[89].mxu1 }
 0x96a   : > { %v9540_v51 = vadd.f32 %v15477_v21, %v9539_v36 }
 0x96b   : > { %9604 = vst.msk [vmem:[%s15484_s25 + $0xc8] sm:$0xff] %vm9578_vm3, %v9545_v57 }
 0x96c   : > { %9603 = vst.msk [vmem:[%s15484_s25 + $0xc0] sm:$0xff] %vm9578_vm3, %v9540_v51 }
 0x96e   : > { %v10939_v30 = vpop.f32.mrb[90].mxu1 }
 0x96f   : > { %v9555_v7 = vadd.f32 %v10939_v30, %v15477_v21  ;;  %v9549_v12 = vpop.f32.mrb[91].mxu1 }
 0x970   : > { %v9550_v34 = vadd.f32 %v15477_v21, %v9549_v12 }
 0x971   : > { %9606 = vst.msk [vmem:[%s15484_s25 + $0xd8] sm:$0xff] %vm9578_vm3, %v9555_v7 }
 0x972   : > { %9605 = vst.msk [vmem:[%s15484_s25 + $0xd0] sm:$0xff] %vm9578_vm3, %v9550_v34 }
 0x974   : > { %v10942_v1 = vpop.f32.mrb[92].mxu1 }
 0x975   : > { %v9565_v9 = vadd.f32 %v10942_v1, %v15477_v21  ;;  %v9559_v11 = vpop.f32.mrb[93].mxu1 }
 0x976   : > { %v9560_v10 = vadd.f32 %v15477_v21, %v9559_v11 }
 0x977   : > { %9608 = vst.msk [vmem:[%s15484_s25 + $0xe8] sm:$0xff] %vm9578_vm3, %v9565_v9 }
 0x978   : > { %9607 = vst.msk [vmem:[%s15484_s25 + $0xe0] sm:$0xff] %vm9578_vm3, %v9560_v10 }
 0x97a   : > { %v10945_v18 = vpop.f32.mrb[94].mxu1 }
 0x97b   : > { %v9575_v43 = vadd.f32 %v10945_v18, %v15477_v21  ;;  %v9569_v40 = vpop.f32.mrb[95].mxu1 }
 0x97c   : > { %v9570_v25 = vadd.f32 %v15477_v21, %v9569_v40 }
 0x97d   : > { %9610 = vst.msk [vmem:[%s15484_s25 + $0xf8] sm:$0xff] %vm9578_vm3, %v9575_v43 }
 0x97e   : > { %9609 = vst.msk [vmem:[%s15484_s25 + $0xf0] sm:$0xff] %vm9578_vm3, %v9570_v25 }
 0x97f PF: > { %s25_s18 = sadd.s32 1, %s11435_s18  }
 0x980   : > { %p22_p4 = scmp.ge.s32.totalorder %s25_s18, 4  }
 0x982   :  { %24 = sbr.rel (!%p22_p4) target bundleno = 1 (0x1), region = 110 }

</bundles_post_ra>
